<compile_context>
chip_gen: v5e
topology: v5e:2x2
jax: 0.10.0
libtpu: 0.0.40
codegen_flags: <defaults>
</compile_context>

<pallas_src>
import jax
import jax.numpy as jnp
from jax.experimental import pallas as pl
from jax.experimental.pallas import tpu as pltpu

TB_DEFAULT = 1024  # batch tile (lanes); multiple of 256 -> MXU-friendly on v5e/v6e/v7x


def _round_up(n, m):
    return ((n + m - 1) // m) * m


def _choose_tb(batch, tb_max):
    """Pick the batch tile (lane width of every block)."""
    if batch <= 256:
        # Single tile; block dims equal the full array dims (always legal).
        return batch
    # >= 2 grid steps so the 'parallel' axis lands on both v7x TensorCores,
    # tile a multiple of 256 for the 256-wide MXU, capped at tb_max.
    return max(256, min(tb_max, _round_up(pl.cdiv(batch, 2), 256)))


def mlp_kernel(x_ref, w1_ref, b1_ref, w2_ref, b2_ref, w3_ref, b3_ref,
               w4_ref, b4_ref, o_ref):
    # Everything is feature-major: (features, TB) with the batch on lanes.
    xt = x_ref[...]                                            # (2, TB) f32

    # Layer 1 (in=2): two rank-1 outer-product VPU updates; no 98%-zero MXU pass.
    h1 = (w1_ref[:, 0:1] * xt[0:1, :]
          + w1_ref[:, 1:2] * xt[1:2, :]
          + b1_ref[...])                                       # (128, TB) f32
    h1 = jnp.maximum(h1, 0.0)

    # Layer 2: MXU matmul, f32 operands (VMEM-resident weight), f32 accumulation.
    h2 = jnp.dot(w2_ref[...], h1,
                 preferred_element_type=jnp.float32) + b2_ref[...]
    h2 = jnp.maximum(h2, 0.0)                                  # (512, TB) f32

    # Layer 3: bf16 MXU matmul (dominant FLOPs) with f32 accumulation.
    h3 = jnp.dot(w3_ref[...], h2.astype(jnp.bfloat16),
                 preferred_element_type=jnp.float32) + b3_ref[...]
    h3 = jnp.maximum(h3, 0.0)                                  # (1024, TB) f32

    # Layer 4 (out=1): f32 VPU multiply + sublane reduction -> lane-dense row.
    y = jnp.sum(h3 * w4_ref[...], axis=0, keepdims=True) + b4_ref[...]
    o_ref[...] = y                                             # (1, TB) f32


def prepare_params(params):
    """One-time (param-load time) conversion into the kernel's feature-major layout.

    Incoming weights are (in_features, out_features); the kernel consumes the
    transposed (out, in) form with biases as (out, 1) columns.  Only w3 is bf16.
    """
    (w1, b1), (w2, b2), (w3, b3), (w4, b4) = params
    return (
        jnp.asarray(w1, jnp.float32).T,                  # (128, 2)    f32, VPU path
        b1.reshape(128, 1).astype(jnp.float32),
        jnp.asarray(w2, jnp.float32).T,                  # (512, 128)  f32 (VMEM-resident)
        b2.reshape(512, 1).astype(jnp.float32),
        jnp.asarray(w3, jnp.bfloat16).T,                 # (1024, 512) bf16 (only big weight)
        b3.reshape(1024, 1).astype(jnp.float32),
        jnp.asarray(w4, jnp.float32).reshape(1024, 1),   # f32 column for sublane reduce
        b4.reshape(1, 1).astype(jnp.float32),
    )


def binary_classification_forward(x, prepared, *, tb=TB_DEFAULT):
    """x: (B, 2) float32.  prepared: output of prepare_params().  Returns (B, 1) logits."""
    assert x.ndim == 2 and x.shape[1] == 2
    w1t, b1, w2t, b2, w3t, b3, w4c, b4 = prepared
    B = x.shape[0]
    TB = _choose_tb(B, tb)
    grid_m = pl.cdiv(B, TB)

    # Weights/biases: constant block index -> fetched once, VMEM-resident across tiles.
    const = lambda a: pl.BlockSpec(a.shape, lambda i: (0,) * a.ndim)

    flops = 2 * B * (2 * 128 + 128 * 512 + 512 * 1024 + 1024)
    bytes_accessed = (
        4 * (w1t.size + b1.size + w2t.size + b2.size + b3.size + w4c.size + b4.size)
        + 2 * w3t.size
        + 4 * x.size            # input
        + 4 * grid_m * TB       # output
    )

    out = pl.pallas_call(
        mlp_kernel,
        out_shape=jax.ShapeDtypeStruct((grid_m, TB), jnp.float32),
        grid=(grid_m,),
        in_specs=[
            pl.BlockSpec((2, TB), lambda i: (0, i)),     # x^T: lane-dense batch tiles
            const(w1t), const(b1),
            const(w2t), const(b2),
            const(w3t), const(b3),
            const(w4c), const(b4),
        ],
        out_specs=pl.BlockSpec((1, TB), lambda i: (i, 0)),  # lane-dense output row
        compiler_params=pltpu.CompilerParams(
            dimension_semantics=("parallel",),           # batch tiles -> both TCs on v7x
            vmem_limit_bytes=32 << 20,                   # v7x-safe; lifts v5e's 16 MiB default
        ),
        cost_estimate=pl.CostEstimate(flops=flops, transcendentals=0,
                                      bytes_accessed=int(bytes_accessed)),
    )(x.T, w1t, b1, w2t, b2, w3t, b3, w4c, b4)

    # (grid_m, TB) row-major == batch order; slice off tile padding, back to (B, 1).
    return out.reshape(-1)[:B].reshape(B, 1)


def init_params(key):
    """Deterministic init mirroring torch.nn.Linear default (uniform +-1/sqrt(fan_in)).
    Weights are stored as (in_features, out_features)."""
    dims = [(2, 128), (128, 512), (512, 1024), (1024, 1)]
    params = []
    for (fan_in, fan_out) in dims:
        key, kw, kb = jax.random.split(key, 3)
        bound = 1.0 / float(jnp.sqrt(fan_in))
        w = jax.random.uniform(kw, (fan_in, fan_out), jnp.float32, -bound, bound)
        b = jax.random.uniform(kb, (fan_out,), jnp.float32, -bound, bound)
        params.append((w, b))
    return params


def reference_forward(x, params):
    h = x
    for i, (w, b) in enumerate(params):
        h = jnp.dot(h, w, precision=jax.lax.Precision.HIGHEST) + b
        if i < len(params) - 1:
            h = jnp.maximum(h, 0.0)
    return h


if __name__ == "__main__":
    key = jax.random.PRNGKey(0)
    kx, kp = jax.random.split(key)

    params = init_params(kp)
    prepared = prepare_params(params)   # hoisted one-time weight prep

    # Small single-tile batch, plus a multi-tile batch exercising the partial last tile.
    for B in (8, 384):
        xb = jax.random.normal(jax.random.fold_in(kx, B), (B, 2), jnp.float32)
        y = jax.block_until_ready(binary_classification_forward(xb, prepared))
        y_ref = reference_forward(xb, params)
        assert y.shape == (B, 1)
        # bf16 MXU precision on layers 2/3 (f32 accumulate) -> loose tolerance vs f32 ref.
        assert jnp.allclose(y, y_ref, atol=5e-2, rtol=5e-2), (
            f"B={B}: max abs err {float(jnp.max(jnp.abs(y - y_ref)))}")

    print("KERNEL_OK")
</pallas_src>

<mosaic_0001>
module attributes {stable_mosaic.version = 11 : i64} {
  func.func @mlp_kernel(%arg0: i32, %arg1: memref<2x8xf32, #tpu.memory_space<vmem>>, %arg2: memref<128x2xf32, #tpu.memory_space<vmem>>, %arg3: memref<128x1xf32, #tpu.memory_space<vmem>>, %arg4: memref<512x128xf32, #tpu.memory_space<vmem>>, %arg5: memref<512x1xf32, #tpu.memory_space<vmem>>, %arg6: memref<1024x512xbf16, #tpu.memory_space<vmem>>, %arg7: memref<1024x1xf32, #tpu.memory_space<vmem>>, %arg8: memref<1024x1xf32, #tpu.memory_space<vmem>>, %arg9: memref<1x1xf32, #tpu.memory_space<vmem>>, %arg10: memref<1x8xf32, #tpu.memory_space<vmem>>) attributes {dimension_semantics = [#tpu.dimension_semantics<parallel>], iteration_bounds = array<i64: 1>, scalar_prefetch = 0 : i64, scratch_operands = 0 : i64, tpu.core_type = #tpu.core_type<tc>, window_params = [{transform_indices = @transform_0, window_bounds = array<i64: 2, 8>}, {pipeline_mode = #tpu.pipeline_mode<synchronous>, transform_indices = @transform_1, window_bounds = array<i64: 128, 2>}, {pipeline_mode = #tpu.pipeline_mode<synchronous>, transform_indices = @transform_2, window_bounds = array<i64: 128, 1>}, {pipeline_mode = #tpu.pipeline_mode<synchronous>, transform_indices = @transform_3, window_bounds = array<i64: 512, 128>}, {pipeline_mode = #tpu.pipeline_mode<synchronous>, transform_indices = @transform_4, window_bounds = array<i64: 512, 1>}, {pipeline_mode = #tpu.pipeline_mode<synchronous>, transform_indices = @transform_5, window_bounds = array<i64: 1024, 512>}, {pipeline_mode = #tpu.pipeline_mode<synchronous>, transform_indices = @transform_6, window_bounds = array<i64: 1024, 1>}, {pipeline_mode = #tpu.pipeline_mode<synchronous>, transform_indices = @transform_7, window_bounds = array<i64: 1024, 1>}, {pipeline_mode = #tpu.pipeline_mode<synchronous>, transform_indices = @transform_8, window_bounds = array<i64: 1, 1>}, {transform_indices = @transform_9, window_bounds = array<i64: 1, 8>}]} {
    %c0 = arith.constant 0 : index
    %c0_0 = arith.constant 0 : index
    %0 = vector.load %arg1[%c0, %c0_0] : memref<2x8xf32, #tpu.memory_space<vmem>>, vector<2x8xf32>
    %c0_1 = arith.constant 0 : index
    %c0_2 = arith.constant 0 : index
    %1 = vector.load %arg2[%c0_1, %c0_2] : memref<128x2xf32, #tpu.memory_space<vmem>>, vector<128x1xf32>
    %2 = vector.extract_strided_slice %0 {offsets = [0, 0], sizes = [1, 8], strides = [1, 1]} : vector<2x8xf32> to vector<1x8xf32>
    %3 = vector.broadcast %1 : vector<128x1xf32> to vector<128x8xf32>
    %4 = vector.broadcast %2 : vector<1x8xf32> to vector<128x8xf32>
    %5 = arith.mulf %3, %4 : vector<128x8xf32>
    %c0_3 = arith.constant 0 : index
    %c1 = arith.constant 1 : index
    %6 = vector.load %arg2[%c0_3, %c1] : memref<128x2xf32, #tpu.memory_space<vmem>>, vector<128x1xf32>
    %7 = vector.extract_strided_slice %0 {offsets = [1, 0], sizes = [1, 8], strides = [1, 1]} : vector<2x8xf32> to vector<1x8xf32>
    %8 = vector.broadcast %6 : vector<128x1xf32> to vector<128x8xf32>
    %9 = vector.broadcast %7 : vector<1x8xf32> to vector<128x8xf32>
    %10 = arith.mulf %8, %9 : vector<128x8xf32>
    %11 = arith.addf %5, %10 : vector<128x8xf32>
    %c0_4 = arith.constant 0 : index
    %c0_5 = arith.constant 0 : index
    %12 = vector.load %arg3[%c0_4, %c0_5] : memref<128x1xf32, #tpu.memory_space<vmem>>, vector<128x1xf32>
    %13 = vector.broadcast %12 : vector<128x1xf32> to vector<128x8xf32>
    %14 = arith.addf %11, %13 : vector<128x8xf32>
    %cst = arith.constant 0.000000e+00 : f32
    %15 = vector.broadcast %cst : f32 to vector<128x8xf32>
    %16 = arith.maximumf %14, %15 : vector<128x8xf32>
    %c0_6 = arith.constant 0 : index
    %c0_7 = arith.constant 0 : index
    %17 = vector.load %arg4[%c0_6, %c0_7] : memref<512x128xf32, #tpu.memory_space<vmem>>, vector<512x128xf32>
    %cst_8 = arith.constant dense<0.000000e+00> : vector<512x8xf32>
    %18 = tpu.matmul %17, %16, %cst_8 {dimension_numbers = #tpu.dot_dimension_numbers<[1], [0], [0], [1], [0, 0, 1, 1], [], []>} : vector<512x128xf32>, vector<128x8xf32>, vector<512x8xf32> -> vector<512x8xf32>
    %c0_9 = arith.constant 0 : index
    %c0_10 = arith.constant 0 : index
    %19 = vector.load %arg5[%c0_9, %c0_10] : memref<512x1xf32, #tpu.memory_space<vmem>>, vector<512x1xf32>
    %20 = vector.broadcast %19 : vector<512x1xf32> to vector<512x8xf32>
    %21 = arith.addf %18, %20 : vector<512x8xf32>
    %cst_11 = arith.constant 0.000000e+00 : f32
    %22 = vector.broadcast %cst_11 : f32 to vector<512x8xf32>
    %23 = arith.maximumf %21, %22 : vector<512x8xf32>
    %c0_12 = arith.constant 0 : index
    %c0_13 = arith.constant 0 : index
    %24 = vector.load %arg6[%c0_12, %c0_13] : memref<1024x512xbf16, #tpu.memory_space<vmem>>, vector<1024x512xbf16>
    %25 = arith.truncf %23 : vector<512x8xf32> to vector<512x8xbf16>
    %cst_14 = arith.constant dense<0.000000e+00> : vector<1024x8xf32>
    %26 = tpu.matmul %24, %25, %cst_14 {dimension_numbers = #tpu.dot_dimension_numbers<[1], [0], [0], [1], [0, 0, 1, 1], [], []>} : vector<1024x512xbf16>, vector<512x8xbf16>, vector<1024x8xf32> -> vector<1024x8xf32>
    %c0_15 = arith.constant 0 : index
    %c0_16 = arith.constant 0 : index
    %27 = vector.load %arg7[%c0_15, %c0_16] : memref<1024x1xf32, #tpu.memory_space<vmem>>, vector<1024x1xf32>
    %28 = vector.broadcast %27 : vector<1024x1xf32> to vector<1024x8xf32>
    %29 = arith.addf %26, %28 : vector<1024x8xf32>
    %cst_17 = arith.constant 0.000000e+00 : f32
    %30 = vector.broadcast %cst_17 : f32 to vector<1024x8xf32>
    %31 = arith.maximumf %29, %30 : vector<1024x8xf32>
    %c0_18 = arith.constant 0 : index
    %c0_19 = arith.constant 0 : index
    %32 = vector.load %arg8[%c0_18, %c0_19] : memref<1024x1xf32, #tpu.memory_space<vmem>>, vector<1024x1xf32>
    %33 = vector.broadcast %32 : vector<1024x1xf32> to vector<1024x8xf32>
    %34 = arith.mulf %31, %33 : vector<1024x8xf32>
    %cst_20 = arith.constant dense<0.000000e+00> : vector<8xf32>
    %35 = vector.multi_reduction <add>, %34, %cst_20 [0] : vector<1024x8xf32> to vector<8xf32>
    %36 = vector.shape_cast %35 : vector<8xf32> to vector<1x8xf32>
    %c0_21 = arith.constant 0 : index
    %c0_22 = arith.constant 0 : index
    %37 = vector.load %arg9[%c0_21, %c0_22] : memref<1x1xf32, #tpu.memory_space<vmem>>, vector<1x1xf32>
    %38 = vector.broadcast %37 : vector<1x1xf32> to vector<1x8xf32>
    %39 = arith.addf %36, %38 : vector<1x8xf32>
    %c0_23 = arith.constant 0 : index
    %c0_24 = arith.constant 0 : index
    %40 = vector.load %arg10[%c0_23, %c0_24] : memref<1x8xf32, #tpu.memory_space<vmem>>, vector<1x8xf32>
    tpu.vector_store %arg10[%c0_23, %c0_24], %39 {strides = array<i32>} : memref<1x8xf32, #tpu.memory_space<vmem>>, vector<1x8xf32>,
    return
  }
  func.func @transform_0(%arg0: i32) -> (i32, i32) {
    %c0_i32 = arith.constant 0 : i32
    %c0_i32_0 = arith.constant 0 : i32
    return %c0_i32, %arg0 : i32, i32
  }
  func.func @transform_1(%arg0: i32) -> (i32, i32) {
    %c0_i32 = arith.constant 0 : i32
    %c0_i32_0 = arith.constant 0 : i32
    %c0_i32_1 = arith.constant 0 : i32
    return %c0_i32, %c0_i32_0 : i32, i32
  }
  func.func @transform_2(%arg0: i32) -> (i32, i32) {
    %c0_i32 = arith.constant 0 : i32
    %c0_i32_0 = arith.constant 0 : i32
    %c0_i32_1 = arith.constant 0 : i32
    return %c0_i32, %c0_i32_0 : i32, i32
  }
  func.func @transform_3(%arg0: i32) -> (i32, i32) {
    %c0_i32 = arith.constant 0 : i32
    %c0_i32_0 = arith.constant 0 : i32
    %c0_i32_1 = arith.constant 0 : i32
    return %c0_i32, %c0_i32_0 : i32, i32
  }
  func.func @transform_4(%arg0: i32) -> (i32, i32) {
    %c0_i32 = arith.constant 0 : i32
    %c0_i32_0 = arith.constant 0 : i32
    %c0_i32_1 = arith.constant 0 : i32
    return %c0_i32, %c0_i32_0 : i32, i32
  }
  func.func @transform_5(%arg0: i32) -> (i32, i32) {
    %c0_i32 = arith.constant 0 : i32
    %c0_i32_0 = arith.constant 0 : i32
    %c0_i32_1 = arith.constant 0 : i32
    return %c0_i32, %c0_i32_0 : i32, i32
  }
  func.func @transform_6(%arg0: i32) -> (i32, i32) {
    %c0_i32 = arith.constant 0 : i32
    %c0_i32_0 = arith.constant 0 : i32
    %c0_i32_1 = arith.constant 0 : i32
    return %c0_i32, %c0_i32_0 : i32, i32
  }
  func.func @transform_7(%arg0: i32) -> (i32, i32) {
    %c0_i32 = arith.constant 0 : i32
    %c0_i32_0 = arith.constant 0 : i32
    %c0_i32_1 = arith.constant 0 : i32
    return %c0_i32, %c0_i32_0 : i32, i32
  }
  func.func @transform_8(%arg0: i32) -> (i32, i32) {
    %c0_i32 = arith.constant 0 : i32
    %c0_i32_0 = arith.constant 0 : i32
    %c0_i32_1 = arith.constant 0 : i32
    return %c0_i32, %c0_i32_0 : i32, i32
  }
  func.func @transform_9(%arg0: i32) -> (i32, i32) {
    %c0_i32 = arith.constant 0 : i32
    %c0_i32_0 = arith.constant 0 : i32
    return %arg0, %c0_i32 : i32, i32
  }
}

</mosaic_0001>

<bundles_post_ra>
// kernel: tpu_custom_call.1
= control target key start
LH: loop header
LB: loop body
LE: loop exit
PB: predicated region body
PF: predicated region fallthrough
CT: control target
= control target key end

     0   :  { %s11391_s0 = inlined_call_operand.vmem [shape: f32[2,8], index: 0, kind: input, shape index: {}]   ;;  %s11392_s1 = inlined_call_operand.vmem [shape: f32[128,2], index: 1, kind: input, shape index: {}]   ;;  %s11393_s2 = inlined_call_operand.vmem [shape: f32[128,1], index: 2, kind: input, shape index: {}]   ;;  %s11394_s3 = inlined_call_operand.vmem [shape: f32[512,128], index: 3, kind: input, shape index: {}]   ;;  %s11395_s4 = inlined_call_operand.vmem [shape: f32[512,1], index: 4, kind: input, shape index: {}]   ;;  %s11396_s5 = inlined_call_operand.vmem [shape: bf16[1024,512], index: 5, kind: input, shape index: {}]   ;;  %s11397_s6 = inlined_call_operand.vmem [shape: f32[1024,1], index: 6, kind: input, shape index: {}]   ;;  %s11398_s7 = inlined_call_operand.vmem [shape: f32[1024,1], index: 7, kind: input, shape index: {}]   ;;  %s11399_s8 = inlined_call_operand.<no memory space> [shape: f32[1,1], index: 8, kind: input, shape index: {}]   ;;  %s11400_s9 = inlined_call_operand.hbm [shape: f32[1,8], index: 9, kind: output, shape index: {}]  }
   0x1   :  { %v14_v0 = vstv %s11399_s8 }
   0x2   :  { %15 = vst [vmem:[#allocation2] sm:$0x1] %v14_v0 }
   0x3   :  { %v40_v1 = vld [vmem:[%s11392_s1 + $0x20] sm:$0xff]  ;;  %v38_v2 = vld [vmem:[%s11392_s1 + $0x10] sm:$0xff]  ;;  %v7424_v3 = vmov 1   ;;  %v7425_v4 = vmov 0  }
   0x4   :  { %7394 = vset.pattern.permute.xlu0 %v7424_v3  ;;  %7391 = vset.pattern.permute.xlu2 %v7425_v4 }
   0x5   :  { %7390 = vset.pattern.permute.xlu1 %v7425_v4  ;;  %74 = vperm.xlu2 %7391, %v40_v1  }
   0x6   :  { %158 = vperm.xlu0 %7394, %v38_v2   ;;  %64 = vperm.xlu1 %7390, %v38_v2  }
   0x7   :  { %16 = vsyncpa [#allocation4], 0  ;;  %v41_v5 = vld [vmem:[%s11392_s1 + $0x28] sm:$0xff]  ;;  %v43_v6 = vld [vmem:[%s11392_s1 + $0x38] sm:$0xff]  ;;  %vm5771_vm0 = vcmask 64512   ;;  %s6050_s29 = sshll.u32 %s11400_s9, 4  ;;  %s6051_s29 = int_to_ptr.hbm [resolvable:$true] %s6050_s29 }
   0x8   :  { %v39_v7 = vld [vmem:[%s11392_s1 + $0x18] sm:$0xff]  ;;  %v44_v8 = vld [vmem:[%s11392_s1 + $0x40] sm:$0xff]  ;;  %v46_v9 = vld [vmem:[%s11392_s1 + $0x50] sm:$0xff]  ;;  %vm6041_vm1 = vcmask 57344  }
   0x9   :  { %v47_v10 = vld [vmem:[%s11392_s1 + $0x58] sm:$0xff]  ;;  %v49_v11 = vld [vmem:[%s11392_s1 + $0x68] sm:$0xff]  ;;  %v50_v12 = vld [vmem:[%s11392_s1 + $0x70] sm:$0xff] }
   0xa   :  { %v36_v13 = vld [vmem:[%s11392_s1] sm:$0xff]  ;;  %v37_v14 = vld [vmem:[%s11392_s1 + $0x8] sm:$0xff]  ;;  %v42_v15 = vld [vmem:[%s11392_s1 + $0x30] sm:$0xff] }
   0xb   :  { %v45_v16 = vld [vmem:[%s11392_s1 + $0x48] sm:$0xff]  ;;  %v48_v17 = vld [vmem:[%s11392_s1 + $0x60] sm:$0xff]  ;;  %v51_v18 = vld [vmem:[%s11392_s1 + $0x78] sm:$0xff] }
   0xc   :  { %v246_v19 = vld [vmem:[%s11393_s2] sm:$0xff]  ;;  %v251_v20 = vld [vmem:[%s11393_s2 + $0x28] sm:$0xff]  ;;  %v248_v21 = vld [vmem:[%s11393_s2 + $0x10] sm:$0xff] }
   0xd   :  { %79 = vperm.xlu2 %7391, %v41_v5   ;;  %v247_v22 = vld [vmem:[%s11393_s2 + $0x8] sm:$0xff]  ;;  %v254_v24 = vld [vmem:[%s11393_s2 + $0x40] sm:$0xff]  ;;  %v249_v26 = vld [vmem:[%s11393_s2 + $0x18] sm:$0xff] }
   0xe   :  { %178 = vperm.xlu0 %7394, %v43_v6   ;;  %69 = vperm.xlu1 %7390, %v39_v7   ;;  %v250_v25 = vld [vmem:[%s11393_s2 + $0x20] sm:$0xff]  ;;  %v257_v28 = vld [vmem:[%s11393_s2 + $0x58] sm:$0xff]  ;;  %v252_v30 = vld [vmem:[%s11393_s2 + $0x30] sm:$0xff] }
   0xf   :  { %v253_v29 = vld [vmem:[%s11393_s2 + $0x38] sm:$0xff]  ;;  %v260_v32 = vld [vmem:[%s11393_s2 + $0x70] sm:$0xff]  ;;  %v255_v34 = vld [vmem:[%s11393_s2 + $0x48] sm:$0xff] }
  0x10   :  { %v256_v33 = vld [vmem:[%s11393_s2 + $0x50] sm:$0xff]  ;;  %v439_v38 = vld [vmem:[%s11395_s4 + $0x8] sm:$0xff]  ;;  %v258_v40 = vld [vmem:[%s11393_s2 + $0x60] sm:$0xff] }
  0x11   :  { %v259_v39 = vld [vmem:[%s11393_s2 + $0x68] sm:$0xff]  ;;  %v442_v44 = vld [vmem:[%s11395_s4 + $0x20] sm:$0xff]  ;;  %v261_v46 = vld [vmem:[%s11393_s2 + $0x78] sm:$0xff] }
  0x12   :  { %v438_v45 = vld [vmem:[%s11395_s4] sm:$0xff]  ;;  %v445_v50 = vld [vmem:[%s11395_s4 + $0x38] sm:$0xff]  ;;  %v440_v52 = vld [vmem:[%s11395_s4 + $0x10] sm:$0xff] }
  0x13   :  { %v441_v51 = vld [vmem:[%s11395_s4 + $0x18] sm:$0xff]  ;;  %v448_v56 = vld [vmem:[%s11395_s4 + $0x50] sm:$0xff]  ;;  %v443_v58 = vld [vmem:[%s11395_s4 + $0x28] sm:$0xff] }
  0x14   :  { %v444_v57 = vld [vmem:[%s11395_s4 + $0x30] sm:$0xff]  ;;  %v451_v62 = vld [vmem:[%s11395_s4 + $0x68] sm:$0xff]  ;;  %v446_v0 = vld [vmem:[%s11395_s4 + $0x40] sm:$0xff] }
  0x15   :  { %94 = vperm.xlu2 %7391, %v44_v8   ;;  %v447_v63 = vld [vmem:[%s11395_s4 + $0x48] sm:$0xff] }
  0x16   :  { %190 = vperm.xlu0 %7394, %v46_v9   ;;  %89 = vperm.xlu1 %7390, %v43_v6   ;;  %v449_v6 = vld [vmem:[%s11395_s4 + $0x58] sm:$0xff] }
  0x1d   :  { %109 = vperm.xlu2 %7391, %v47_v10  }
  0x1e   :  { %202 = vperm.xlu0 %7394, %v49_v11   ;;  %104 = vperm.xlu1 %7390, %v46_v9  }
  0x25   :  { %124 = vperm.xlu2 %7391, %v50_v12  }
  0x26   :  { %7395 = vset.pattern.permute.xlu0 %v7425_v4  ;;  %119 = vperm.xlu1 %7390, %v49_v11   ;;  %v453_v11 = vld [vmem:[%s11395_s4 + $0x78] sm:$0xff] }
  0x27   :  { %54 = vperm.xlu0 %7395, %v36_v13  }
  0x2d   :  { %7393 = vset.pattern.permute.xlu2 %v7424_v3 }
  0x2e   :  { %7392 = vset.pattern.permute.xlu1 %v7424_v3  ;;  %154 = vperm.xlu2 %7393, %v37_v14  }
  0x2f   :  { %59 = vperm.xlu0 %7395, %v37_v14   ;;  %150 = vperm.xlu1 %7392, %v36_v13  }
  0x36   :  { %166 = vperm.xlu2 %7393, %v40_v1  }
  0x37   :  { %84 = vperm.xlu0 %7395, %v42_v15   ;;  %162 = vperm.xlu1 %7392, %v39_v7  }
  0x3e   :  { %174 = vperm.xlu2 %7393, %v42_v15  }
  0x3f   :  { %99 = vperm.xlu0 %7395, %v45_v16   ;;  %170 = vperm.xlu1 %7392, %v41_v5   ;;  %v450_v5 = vld [vmem:[%s11395_s4 + $0x60] sm:$0xff] }
  0x46   :  { %186 = vperm.xlu2 %7393, %v45_v16   ;;  %v460_v16 = vld [vmem:[%s11395_s4 + $0xb0] sm:$0xff] }
  0x47   :  { %114 = vperm.xlu0 %7395, %v48_v17   ;;  %182 = vperm.xlu1 %7392, %v44_v8  }
  0x4e   :  { %198 = vperm.xlu2 %7393, %v48_v17   ;;  %v456_v17 = vld [vmem:[%s11395_s4 + $0x90] sm:$0xff] }
  0x4f   :  { %129 = vperm.xlu0 %7395, %v51_v18   ;;  %194 = vperm.xlu1 %7392, %v47_v10   ;;  %v457_v10 = vld [vmem:[%s11395_s4 + $0x98] sm:$0xff] }
  0x56   :  { %210 = vperm.xlu2 %7393, %v51_v18   ;;  %v455_v18 = vld [vmem:[%s11395_s4 + $0x88] sm:$0xff] }
  0x57   :  { %264 = vperm.xlu0 %7395, %v246_v19   ;;  %206 = vperm.xlu1 %7392, %v50_v12   ;;  %v452_v12 = vld [vmem:[%s11395_s4 + $0x70] sm:$0xff] }
  0x5e   :  { %7397 = vset.pattern.permute.xlu2 %v7425_v4 }
  0x5f   :  { %289 = vperm.xlu0 %7395, %v251_v20   ;;  %7396 = vset.pattern.permute.xlu1 %v7425_v4  ;;  %v7540_v23 = vpop.permute.xlu2 %74  ;;  %v454_v4 = vld [vmem:[%s11395_s4 + $0x80] sm:$0xff] }
  0x60   :  { %274 = vperm.xlu2 %7397, %v248_v21   ;;  %269 = vperm.xlu1 %7396, %v247_v22   ;;  %v463_v22 = vld [vmem:[%s11395_s4 + $0xc8] sm:$0xff] }
  0x67   :  { %304 = vperm.xlu0 %7395, %v254_v24   ;;  %v7551_v27 = vpop.permute.xlu2 %79  ;;  %v459_v24 = vld [vmem:[%s11395_s4 + $0xa8] sm:$0xff] }
  0x68   :  { %284 = vperm.xlu2 %7397, %v250_v25   ;;  %279 = vperm.xlu1 %7396, %v249_v26   ;;  %v458_v25 = vld [vmem:[%s11395_s4 + $0xa0] sm:$0xff] }
  0x6f   :  { %319 = vperm.xlu0 %7395, %v257_v28   ;;  %v7562_v31 = vpop.permute.xlu2 %94 }
  0x70   :  { %299 = vperm.xlu2 %7397, %v253_v29   ;;  %294 = vperm.xlu1 %7396, %v252_v30   ;;  %v466_v30 = vld [vmem:[%s11395_s4 + $0xe0] sm:$0xff] }
  0x77   :  { %334 = vperm.xlu0 %7395, %v260_v32   ;;  %v7573_v35 = vpop.permute.xlu2 %109  ;;  %v462_v32 = vld [vmem:[%s11395_s4 + $0xc0] sm:$0xff] }
  0x78   :  { %v7575_v36 = vpop.permute.xlu0 %158  ;;  %v7577_v37 = vpop.permute.xlu1 %64  ;;  %314 = vperm.xlu2 %7397, %v256_v33   ;;  %309 = vperm.xlu1 %7396, %v255_v34   ;;  %v461_v33 = vld [vmem:[%s11395_s4 + $0xb8] sm:$0xff] }
  0x7f   :  { %509 = vperm.xlu0 %7395, %v439_v38   ;;  %v7588_v41 = vpop.permute.xlu2 %124 }
  0x80   :  { %v7590_v42 = vpop.permute.xlu0 %178  ;;  %v7592_v43 = vpop.permute.xlu1 %69  ;;  %329 = vperm.xlu2 %7397, %v259_v39   ;;  %324 = vperm.xlu1 %7396, %v258_v40   ;;  %v469_v40 = vld [vmem:[%s11395_s4 + $0xf8] sm:$0xff] }
  0x87   :  { %524 = vperm.xlu0 %7395, %v442_v44   ;;  %v465_v44 = vld [vmem:[%s11395_s4 + $0xd8] sm:$0xff] }
  0x88   :  { %v7603_v47 = vpop.permute.xlu0 %190  ;;  %v7605_v48 = vpop.permute.xlu1 %89  ;;  %504 = vperm.xlu2 %7397, %v438_v45   ;;  %339 = vperm.xlu1 %7396, %v261_v46   ;;  %v464_v45 = vld [vmem:[%s11395_s4 + $0xd0] sm:$0xff] }
  0x89   :  { %v7607_v49 = vpop.permute.xlu2 %154 }
  0x8f   :  { %539 = vperm.xlu0 %7395, %v445_v50  }
  0x90   :  { %v7618_v53 = vpop.permute.xlu0 %202  ;;  %v7620_v54 = vpop.permute.xlu1 %104  ;;  %519 = vperm.xlu2 %7397, %v441_v51   ;;  %514 = vperm.xlu1 %7396, %v440_v52   ;;  %v472_v52 = vld [vmem:[%s11395_s4 + $0x110] sm:$0xff] }
  0x91   :  { %v7622_v55 = vpop.permute.xlu2 %166 }
  0x97   :  { %554 = vperm.xlu0 %7395, %v448_v56   ;;  %v468_v56 = vld [vmem:[%s11395_s4 + $0xf0] sm:$0xff] }
  0x98   :  { %v7633_v59 = vpop.permute.xlu1 %119  ;;  %534 = vperm.xlu2 %7397, %v444_v57   ;;  %529 = vperm.xlu1 %7396, %v443_v58   ;;  %v467_v57 = vld [vmem:[%s11395_s4 + $0xe8] sm:$0xff] }
  0x99   :  { %v7635_v60 = vpop.permute.xlu2 %174  ;;  %v7637_v61 = vpop.permute.xlu0 %54 }
  0x9f   :  { %569 = vperm.xlu0 %7395, %v451_v62  }
  0xa0   :  { %549 = vperm.xlu2 %7397, %v447_v63   ;;  %544 = vperm.xlu1 %7396, %v446_v0   ;;  %v475_v0 = vld [vmem:[%s11395_s4 + $0x128] sm:$0xff] }
  0xa1   :  { %v7648_v1 = vpop.permute.xlu2 %186  ;;  %v7650_v2 = vpop.permute.xlu0 %59 }
  0xa2   :  { %v7652_v3 = vpop.permute.xlu1 %150 }
  0xa7   :  { %584 = vperm.xlu0 %7395, %v454_v4   ;;  %v471_v4 = vld [vmem:[%s11395_s4 + $0x108] sm:$0xff] }
  0xa8   :  { %564 = vperm.xlu2 %7397, %v450_v5   ;;  %559 = vperm.xlu1 %7396, %v449_v6   ;;  %v470_v5 = vld [vmem:[%s11395_s4 + $0x100] sm:$0xff] }
  0xa9   :  { %v7663_v7 = vpop.permute.xlu2 %198  ;;  %v7665_v8 = vpop.permute.xlu0 %84 }
  0xaa   :  { %v7667_v9 = vpop.permute.xlu1 %162 }
  0xaf   :  { %599 = vperm.xlu0 %7395, %v457_v10  }
  0xb0   :  { %579 = vperm.xlu2 %7397, %v453_v11   ;;  %574 = vperm.xlu1 %7396, %v452_v12   ;;  %v478_v12 = vld [vmem:[%s11395_s4 + $0x140] sm:$0xff] }
  0xb1   :  { %v7678_v13 = vpop.permute.xlu2 %210  ;;  %v7680_v14 = vpop.permute.xlu0 %99 }
  0xb2   :  { %v7682_v15 = vpop.permute.xlu1 %170 }
  0xb7   :  { %614 = vperm.xlu0 %7395, %v460_v16   ;;  %v474_v16 = vld [vmem:[%s11395_s4 + $0x120] sm:$0xff] }
  0xb8   :  { %594 = vperm.xlu2 %7397, %v456_v17   ;;  %589 = vperm.xlu1 %7396, %v455_v18   ;;  %v473_v17 = vld [vmem:[%s11395_s4 + $0x118] sm:$0xff] }
  0xb9   :  { %v7693_v19 = vpop.permute.xlu0 %114 }
  0xba   :  { %v7695_v20 = vpop.permute.xlu1 %182  ;;  %v7697_v21 = vpop.permute.xlu2 %274 }
  0xbf   :  { %629 = vperm.xlu0 %7395, %v463_v22  }
  0xc0   :  { %609 = vperm.xlu2 %7397, %v459_v24   ;;  %604 = vperm.xlu1 %7396, %v458_v25   ;;  %v481_v25 = vld [vmem:[%s11395_s4 + $0x158] sm:$0xff] }
  0xc1   :  { %v130_v26 = vpop.permute.xlu0 %129 }
  0xc2   :  { %v7708_v28 = vpop.permute.xlu1 %194  ;;  %v7710_v29 = vpop.permute.xlu2 %284 }
  0xc7   :  { %644 = vperm.xlu0 %7395, %v466_v30   ;;  %v477_v30 = vld [vmem:[%s11395_s4 + $0x138] sm:$0xff] }
  0xc8   :  { %624 = vperm.xlu2 %7397, %v462_v32   ;;  %619 = vperm.xlu1 %7396, %v461_v33   ;;  %v476_v32 = vld [vmem:[%s11395_s4 + $0x130] sm:$0xff]  ;;  %v35_v33 = vld [vmem:[%s11391_s0] sm:$0x3] }
  0xc9   :  { %v7721_v34 = vpop.permute.xlu0 %264 }
  0xca   :  { %v207_v38 = vpop.permute.xlu1 %206  ;;  %v7723_v39 = vpop.permute.xlu2 %299 }
  0xcf   :  { %659 = vperm.xlu0 %7395, %v469_v40  }
  0xd0   :  { %639 = vperm.xlu2 %7397, %v465_v44   ;;  %634 = vperm.xlu1 %7396, %v464_v45  }
  0xd1   :  { %v7734_v46 = vpop.permute.xlu0 %289 }
  0xd2   :  { %v7736_v50 = vpop.permute.xlu2 %314  ;;  %v7738_v51 = vpop.permute.xlu1 %269 }
  0xd7   :  { %674 = vperm.xlu0 %7395, %v472_v52   ;;  %v7797_v52 = vperm.slane %v35_v33, 0 }
  0xd8   :  { %654 = vperm.xlu2 %7397, %v468_v56   ;;  %649 = vperm.xlu1 %7396, %v467_v57   ;;  %v7799_v56 = vperm.slane %v35_v33, 1  ;;  %v484_v57 = vld [vmem:[%s11395_s4 + $0x170] sm:$0xff] }
  0xd9   :  { %v7749_v58 = vpop.permute.xlu0 %304 }
  0xda   :  { %v330_v62 = vpop.permute.xlu2 %329  ;;  %v7751_v63 = vpop.permute.xlu1 %279 }
  0xdf   :  { %689 = vperm.xlu0 %7395, %v475_v0   ;;  %v148_v0 = vmul.f32 %v7797_v52, %v130_v26  ;;  %v146_v26 = vmul.f32 %v7797_v52, %v7633_v59 }
  0xe0   :  { %669 = vperm.xlu2 %7397, %v471_v4   ;;  %664 = vperm.xlu1 %7396, %v470_v5   ;;  %v480_v4 = vld [vmem:[%s11395_s4 + $0x150] sm:$0xff]  ;;  %v479_v5 = vld [vmem:[%s11395_s4 + $0x148] sm:$0xff] }
  0xe1   :  { %v7762_v6 = vpop.permute.xlu0 %319 }
  0xe2   :  { %v7764_v10 = vpop.permute.xlu2 %504  ;;  %v7766_v11 = vpop.permute.xlu1 %294 }
  0xe7   :  { %704 = vperm.xlu0 %7395, %v478_v12   ;;  %v228_v12 = vmul.f32 %v7799_v56, %v207_v38  ;;  %v145_v38 = vmul.f32 %v7797_v52, %v7693_v19 }
  0xe8   :  { %684 = vperm.xlu2 %7397, %v474_v16   ;;  %679 = vperm.xlu1 %7396, %v473_v17   ;;  %v229_v16 = vmul.f32 %v7799_v56, %v7678_v13  ;;  %v147_v17 = vmul.f32 %v7797_v52, %v7588_v41  ;;  %v226_v41 = vmul.f32 %v7799_v56, %v7663_v7  ;;  %v482_v7 = vld [vmem:[%s11395_s4 + $0x160] sm:$0xff] }
  0xe9   :  { %v335_v18 = vpop.permute.xlu0 %334 }
  0xea   :  { %v7777_v22 = vpop.permute.xlu2 %519  ;;  %v7779_v24 = vpop.permute.xlu1 %309  ;;  %v244_v33 = vadd.f32 %v228_v12, %v147_v17  ;;  %v242_v19 = vadd.f32 %v226_v41, %v145_v38  ;;  %v483_v12 = vld [vmem:[%s11395_s4 + $0x168] sm:$0xff]  ;;  %v144_v17 = vmul.f32 %v7797_v52, %v7573_v35  ;;  %v224_v35 = vmul.f32 %v7799_v56, %v7603_v47 }
  0xeb   :  { %v222_v47 = vmul.f32 %v7799_v56, %v7695_v20 }
  0xef   :  { %719 = vperm.xlu0 %7395, %v481_v25  }
  0xf0   :  { %699 = vperm.xlu2 %7397, %v477_v30   ;;  %694 = vperm.xlu1 %7396, %v476_v32   ;;  %v245_v30 = vadd.f32 %v229_v16, %v148_v0  ;;  %v227_v32 = vmul.f32 %v7799_v56, %v7618_v53  ;;  %v487_v0 = vld [vmem:[%s11395_s4 + $0x188] sm:$0xff]  ;;  %v225_v53 = vmul.f32 %v7799_v56, %v7708_v28 }
  0xf1   :  { %v7793_v40 = vpop.permute.xlu0 %509 }
  0xf2   :  { %v7795_v44 = vpop.permute.xlu2 %534  ;;  %v325_v45 = vpop.permute.xlu1 %324  ;;  %v243_v59 = vadd.f32 %v227_v32, %v146_v26 }
  0xf3   :  { %11401 = vst [vmem:[#allocation6_spill] sm:$0xff] %v7795_v44 }
  0xf4   :  { %v355_v16 = vadd.f32 %v330_v62, %v243_v59  ;;  %v241_v62 = vadd.f32 %v225_v53, %v144_v17  ;;  %v221_v59 = vmul.f32 %v7799_v56, %v7590_v42  ;;  %v486_v53 = vld [vmem:[%s11395_s4 + $0x180] sm:$0xff] }
  0xf6   :  { %v371_v32 = vmax.f32 %v355_v16, 0.0 }
  0xf7   :  { %734 = vperm.xlu0 %7395, %v484_v57  }
  0xf8   :  { %714 = vperm.xlu2 %7397, %v480_v4   ;;  %709 = vperm.xlu1 %7396, %v479_v5   ;;  %v356_v4 = vadd.f32 %v335_v18, %v244_v33  ;;  %v143_v18 = vmul.f32 %v7797_v52, %v7620_v54  ;;  %v223_v33 = vmul.f32 %v7799_v56, %v7648_v1 }
  0xf9   :  { %v7818_v25 = vpop.permute.xlu0 %524  ;;  %v140_v1 = vmul.f32 %v7797_v52, %v7605_v48  ;;  %v485_v48 = vld [vmem:[%s11395_s4 + $0x178] sm:$0xff] }
  0xfa   :  { %v7824_v13 = vpop.permute.xlu2 %549  ;;  %v340_v57 = vpop.permute.xlu1 %339  ;;  %v372_v28 = vmax.f32 %v356_v4, 0.0 }
  0xfb   :  { %v357_v44 = vadd.f32 %v340_v57, %v245_v30  ;;  %v142_v30 = vmul.f32 %v7797_v52, %v7680_v14  ;;  %v240_v57 = vadd.f32 %v224_v35, %v143_v18  ;;  %v141_v14 = vmul.f32 %v7797_v52, %v7562_v31 }
  0xfd   :  { %v373_v5 = vmax.f32 %v357_v44, 0.0  ;;  %v354_v44 = vadd.f32 %v325_v45, %v242_v19  ;;  %v353_v45 = vadd.f32 %v7762_v6, %v241_v62  ;;  %v490_v6 = vld [vmem:[%s11395_s4 + $0x1a0] sm:$0xff]  ;;  %v352_v20 = vadd.f32 %v7736_v50, %v240_v57 }
  0xfe   :  { %v239_v4 = vadd.f32 %v223_v33, %v142_v30  ;;  %v238_v31 = vadd.f32 %v222_v47, %v141_v14  ;;  %v220_v50 = vmul.f32 %v7799_v56, %v7635_v60  ;;  %v219_v60 = vmul.f32 %v7799_v56, %v7682_v15 }
  0xff   :  { %749 = vperm.xlu0 %7395, %v487_v0   ;;  %822 = vmatpush.msra.mxu0 %v373_v5  ;;  %v370_v41 = vmax.f32 %v354_v44, 0.0  ;;  %v369_v0 = vmax.f32 %v353_v45, 0.0  ;;  %v368_v19 = vmax.f32 %v352_v20, 0.0  ;;  %v137_v15 = vmul.f32 %v7797_v52, %v7540_v23  ;;  %v489_v23 = vld [vmem:[%s11395_s4 + $0x198] sm:$0xff] }
 0x100   :  { %7339 = vmatpush.msra.mxu1 %v373_v5  ;;  %7340 = vmatpush.msra.mxu2 %v373_v5  ;;  %v351_v42 = vadd.f32 %v7779_v24, %v239_v4  ;;  %v237_v24 = vadd.f32 %v221_v59, %v140_v1  ;;  %v136_v33 = vmul.f32 %v7797_v52, %v7592_v43 }
 0x101   :  { %7341 = vmatpush.msra.mxu3 %v373_v5  ;;  %729 = vperm.xlu2 %7397, %v483_v12   ;;  %v7843_v26 = vpop.permute.xlu0 %539  ;;  %v139_v5 = vmul.f32 %v7797_v52, %v7665_v8  ;;  %v350_v12 = vadd.f32 %v7749_v58, %v238_v31  ;;  %v218_v58 = vmul.f32 %v7799_v56, %v7622_v55 }
 0x102   :  { %724 = vperm.xlu1 %7396, %v482_v7   ;;  %823 = vmatpush.msra.mxu0 %v372_v28  ;;  %v7849_v38 = vpop.permute.xlu2 %564  ;;  %v7851_v54 = vpop.permute.xlu1 %514  ;;  %v349_v8 = vadd.f32 %v7723_v39, %v237_v24  ;;  %v367_v18 = vmax.f32 %v351_v42, 0.0  ;;  %v217_v55 = vmul.f32 %v7799_v56, %v7667_v9  ;;  %v488_v9 = vld [vmem:[%s11395_s4 + $0x190] sm:$0xff]  ;;  %v216_v57 = vmul.f32 %v7799_v56, %v7575_v36 }
 0x103   :  { %7342 = vmatpush.msra.mxu1 %v372_v28  ;;  %7343 = vmatpush.msra.mxu2 %v372_v28  ;;  %v236_v44 = vadd.f32 %v220_v50, %v139_v5  ;;  %v366_v62 = vmax.f32 %v350_v12, 0.0  ;;  %v134_v1 = vmul.f32 %v7797_v52, %v7650_v2 }
 0x104   :  { %7344 = vmatpush.msra.mxu3 %v372_v28  ;;  %824 = vmatpush.msra.mxu0 %v371_v32  ;;  %v138_v28 = vmul.f32 %v7797_v52, %v7551_v27  ;;  %v493_v27 = vld [vmem:[%s11395_s4 + $0x1b8] sm:$0xff]  ;;  %v365_v30 = vmax.f32 %v349_v8, 0.0  ;;  %v233_v43 = vadd.f32 %v217_v55, %v136_v33  ;;  %v406_v8 = vld [vmem:[%s11394_s3 + $0x100] sm:$0xff]  ;;  %v407_v55 = vld [vmem:[%s11394_s3 + $0x108] sm:$0xff] }
 0x105   :  { %7345 = vmatpush.msra.mxu1 %v371_v32  ;;  %7346 = vmatpush.msra.mxu2 %v371_v32  ;;  %v348_v39 = vadd.f32 %v7766_v11, %v236_v44  ;;  %v494_v44 = vld [vmem:[%s11395_s4 + $0x1c0] sm:$0xff] }
 0x106   :  { %7347 = vmatpush.msra.mxu3 %v371_v32  ;;  %825 = vmatpush.msra.mxu0 %v370_v41  ;;  %v235_v35 = vadd.f32 %v219_v60, %v138_v28  ;;  %v234_v32 = vadd.f32 %v218_v58, %v137_v15  ;;  %v345_v36 = vadd.f32 %v7751_v63, %v233_v43  ;;  %v499_v28 = vld [vmem:[%s11395_s4 + $0x1e8] sm:$0xff]  ;;  %v424_v43 = vld [vmem:[%s11394_s3 + $0x190] sm:$0xff] }
 0x107   :  { %7348 = vmatpush.msra.mxu1 %v370_v41  ;;  %7349 = vmatpush.msra.mxu2 %v370_v41  ;;  %v364_v59 = vmax.f32 %v348_v39, 0.0  ;;  %v495_v58 = vld [vmem:[%s11395_s4 + $0x1c8] sm:$0xff] }
 0x108   :  { %7350 = vmatpush.msra.mxu3 %v370_v41  ;;  %764 = vperm.xlu0 %7395, %v490_v6   ;;  %v347_v45 = vadd.f32 %v7734_v46, %v235_v35  ;;  %v135_v41 = vmul.f32 %v7797_v52, %v7577_v37  ;;  %v346_v14 = vadd.f32 %v7710_v29, %v234_v32  ;;  %v375_v15 = vld [vmem:[%s11394_s3 + $0x8] sm:$0xff]  ;;  %v1383_v32 = vld [vmem:[%s11397_s6] sm:$0xff] }
 0x109   :  { %826 = vmatpush.msra.mxu0 %v369_v0  ;;  %7351 = vmatpush.msra.mxu1 %v369_v0  ;;  %v7879_v16 = vpop.permute.xlu0 %554  ;;  %v215_v6 = vmul.f32 %v7799_v56, %v7607_v49  ;;  %v133_v37 = vmul.f32 %v7797_v52, %v7637_v61  ;;  %v214_v29 = vmul.f32 %v7799_v56, %v7652_v3  ;;  %v496_v49 = vld [vmem:[%s11395_s4 + $0x1d0] sm:$0xff]  ;;  %v361_v61 = vmax.f32 %v345_v36, 0.0  ;;  %v391_v35 = vld [vmem:[%s11394_s3 + $0x88] sm:$0xff] }
 0x10a   :  { %11402 = vst [vmem:[#allocation7_spill] sm:$0xff] %v7879_v16  ;;  %7352 = vmatpush.msra.mxu2 %v369_v0  ;;  %7353 = vmatpush.msra.mxu3 %v369_v0  ;;  %v7882_v17 = vpop.permute.xlu2 %579  ;;  %v7884_v7 = vpop.permute.xlu1 %529  ;;  %v363_v20 = vmax.f32 %v347_v45, 0.0  ;;  %v232_v4 = vadd.f32 %v216_v57, %v135_v41  ;;  %v362_v0 = vmax.f32 %v346_v14, 0.0  ;;  %v498_v45 = vld [vmem:[%s11395_s4 + $0x1e0] sm:$0xff]  ;;  %v392_v57 = vld [vmem:[%s11394_s3 + $0x90] sm:$0xff] }
 0x10b   :  { %744 = vperm.xlu2 %7397, %v486_v53   ;;  %739 = vperm.xlu1 %7396, %v485_v48   ;;  %v231_v63 = vadd.f32 %v215_v6, %v134_v1  ;;  %v230_v56 = vadd.f32 %v214_v29, %v133_v37  ;;  %v491_v53 = vld [vmem:[%s11395_s4 + $0x1a8] sm:$0xff]  ;;  %v1386_v6 = vld [vmem:[%s11397_s6 + $0x18] sm:$0xff]  ;;  %v1467_v16 = vld [vmem:[%s11397_s6 + $0x2a0] sm:$0xff] }
 0x10c   :  { %827 = vmatpush.msra.mxu0 %v368_v19  ;;  %7354 = vmatpush.msra.mxu1 %v368_v19  ;;  %v344_v2 = vadd.f32 %v7697_v21, %v232_v4  ;;  %v492_v21 = vld [vmem:[%s11395_s4 + $0x1b0] sm:$0xff]  ;;  %v501_v1 = vld [vmem:[%s11395_s4 + $0x1f8] sm:$0xff] }
 0x10d   :  { %7355 = vmatpush.msra.mxu2 %v368_v19  ;;  %7356 = vmatpush.msra.mxu3 %v368_v19  ;;  %v343_v42 = vadd.f32 %v7738_v51, %v231_v63  ;;  %v342_v50 = vadd.f32 %v7721_v34, %v230_v56  ;;  %v374_v34 = vld [vmem:[%s11394_s3] sm:$0xff]  ;;  %v377_v37 = vld [vmem:[%s11394_s3 + $0x18] sm:$0xff]  ;;  %v1389_v63 = vld [vmem:[%s11397_s6 + $0x30] sm:$0xff] }
 0x10e   :  { %828 = vmatpush.msra.mxu0 %v367_v18  ;;  %7357 = vmatpush.msra.mxu1 %v367_v18  ;;  %v360_v48 = vmax.f32 %v344_v2, 0.0  ;;  %v390_v19 = vld [vmem:[%s11394_s3 + $0x80] sm:$0xff]  ;;  %v393_v29 = vld [vmem:[%s11394_s3 + $0x98] sm:$0xff]  ;;  %v1384_v56 = vld [vmem:[%s11397_s6 + $0x8] sm:$0xff] }
 0x10f   :  { %7358 = vmatpush.msra.mxu2 %v367_v18  ;;  %7359 = vmatpush.msra.mxu3 %v367_v18  ;;  %v359_v51 = vmax.f32 %v343_v42, 0.0  ;;  %v358_v5 = vmax.f32 %v342_v50, 0.0  ;;  %v422_v18 = vld [vmem:[%s11394_s3 + $0x180] sm:$0xff]  ;;  %v425_v2 = vld [vmem:[%s11394_s3 + $0x198] sm:$0xff] }
 0x110   :  { %829 = vmatpush.msra.mxu0 %v366_v62  ;;  %7360 = vmatpush.msra.mxu1 %v366_v62 }
 0x111   :  { %7361 = vmatpush.msra.mxu2 %v366_v62  ;;  %7362 = vmatpush.msra.mxu3 %v366_v62  ;;  %v7905_v11 = vpop.permute.xlu0 %569 }
 0x112   :  { %779 = vperm.xlu0 %7395, %v493_v27   ;;  %830 = vmatpush.msra.mxu0 %v365_v30  ;;  %v7912_v47 = vpop.permute.xlu2 %594  ;;  %v7914_v46 = vpop.permute.xlu1 %544 }
 0x113   :  { %7363 = vmatpush.msra.mxu1 %v365_v30  ;;  %7364 = vmatpush.msra.mxu2 %v365_v30 }
 0x114   :  { %7365 = vmatpush.msra.mxu3 %v365_v30  ;;  %759 = vperm.xlu2 %7397, %v489_v23   ;;  %v423_v30 = vld [vmem:[%s11394_s3 + $0x188] sm:$0xff]  ;;  %v497_v23 = vld [vmem:[%s11395_s4 + $0x1d8] sm:$0xff] }
 0x115   :  { %754 = vperm.xlu1 %7396, %v488_v9   ;;  %831 = vmatpush.msra.mxu0 %v364_v59  ;;  %v376_v9 = vld [vmem:[%s11394_s3 + $0x10] sm:$0xff] }
 0x116   :  { %7366 = vmatpush.msra.mxu1 %v364_v59  ;;  %7367 = vmatpush.msra.mxu2 %v364_v59 }
 0x117   :  { %7368 = vmatpush.msra.mxu3 %v364_v59  ;;  %832 = vmatpush.msra.mxu0 %v363_v20  ;;  %v408_v59 = vld [vmem:[%s11394_s3 + $0x110] sm:$0xff] }
 0x118   :  { %7369 = vmatpush.msra.mxu1 %v363_v20  ;;  %7370 = vmatpush.msra.mxu2 %v363_v20 }
 0x119   :  { %7371 = vmatpush.msra.mxu3 %v363_v20  ;;  %833 = vmatpush.msra.mxu0 %v362_v0  ;;  %v7934_v31 = vpop.permute.xlu0 %584  ;;  %v500_v20 = vld [vmem:[%s11395_s4 + $0x1f0] sm:$0xff] }
 0x11a   :  { %7372 = vmatpush.msra.mxu1 %v362_v0  ;;  %7373 = vmatpush.msra.mxu2 %v362_v0  ;;  %v7936_v3 = vpop.permute.xlu2 %609  ;;  %v7938_v52 = vpop.permute.xlu1 %559 }
 0x11b   :  { %7374 = vmatpush.msra.mxu3 %v362_v0  ;;  %794 = vperm.xlu0 %7395, %v496_v49   ;;  %v409_v49 = vld [vmem:[%s11394_s3 + $0x118] sm:$0xff] }
 0x11c   :  { %834 = vmatpush.msra.mxu0 %v361_v61  ;;  %7375 = vmatpush.msra.mxu1 %v361_v61 }
 0x11d   :  { %7376 = vmatpush.msra.mxu2 %v361_v61  ;;  %7377 = vmatpush.msra.mxu3 %v361_v61  ;;  %v1385_v61 = vld [vmem:[%s11397_s6 + $0x10] sm:$0xff] }
 0x11e   :  { %774 = vperm.xlu2 %7397, %v492_v21   ;;  %769 = vperm.xlu1 %7396, %v491_v53   ;;  %v378_v21 = vld [vmem:[%s11394_s3 + $0x20] sm:$0xff] }
 0x11f   :  { %835 = vmatpush.msra.mxu0 %v360_v48  ;;  %7378 = vmatpush.msra.mxu1 %v360_v48  ;;  %v394_v53 = vld [vmem:[%s11394_s3 + $0xa0] sm:$0xff] }
 0x120   :  { %7379 = vmatpush.msra.mxu2 %v360_v48  ;;  %7380 = vmatpush.msra.mxu3 %v360_v48 }
 0x121   :  { %836 = vmatpush.msra.mxu0 %v359_v51  ;;  %7381 = vmatpush.msra.mxu1 %v359_v51  ;;  %v7948_v24 = vpop.permute.xlu0 %599 }
 0x122   :  { %7382 = vmatpush.msra.mxu2 %v359_v51  ;;  %7383 = vmatpush.msra.mxu3 %v359_v51  ;;  %v7956_v12 = vpop.permute.xlu2 %624  ;;  %v7958_v60 = vpop.permute.xlu1 %574  ;;  %v410_v51 = vld [vmem:[%s11394_s3 + $0x120] sm:$0xff] }
 0x123   :  { %837 = vmatpush.msra.mxu0 %v358_v5  ;;  %7384 = vmatpush.msra.mxu1 %v358_v5 }
 0x124   :  { %7385 = vmatpush.msra.mxu2 %v358_v5  ;;  %7386 = vmatpush.msra.mxu3 %v358_v5  ;;  %v426_v5 = vld [vmem:[%s11394_s3 + $0x1a0] sm:$0xff] }
 0x125   :  { %838 = vmatmul.f32.vlgmr.msra.gmra.mxu0 %v374_v34  ;;  %886 = vmatmul.f32.vlgmr.msra.gmra.mxu1 %v390_v19  ;;  %v1392_v34 = vld [vmem:[%s11397_s6 + $0x48] sm:$0xff] }
 0x126   :  { %934 = vmatmul.f32.vlgmr.msra.gmra.mxu2 %v406_v8  ;;  %982 = vmatmul.f32.vlgmr.msra.gmra.mxu3 %v422_v18  ;;  %v1388_v19 = vld [vmem:[%s11397_s6 + $0x28] sm:$0xff]  ;;  %v1387_v8 = vld [vmem:[%s11397_s6 + $0x20] sm:$0xff] }
 0x127   :  { %809 = vperm.xlu0 %7395, %v499_v28   ;;  %789 = vperm.xlu2 %7397, %v495_v58   ;;  %v379_v28 = vld [vmem:[%s11394_s3 + $0x28] sm:$0xff] }
 0x128   :  { %784 = vperm.xlu1 %7396, %v494_v44   ;;  %v395_v58 = vld [vmem:[%s11394_s3 + $0xa8] sm:$0xff] }
 0x129   :  { %v7975_v62 = vpop.permute.xlu0 %614 }
 0x12a   :  { %v7983_v39 = vpop.permute.xlu2 %639  ;;  %v7985_v27 = vpop.permute.xlu1 %589 }
 0x12d   :  { %841 = vmatmul.f32.gmra.mxu0 %v375_v15  ;;  %889 = vmatmul.f32.gmra.mxu1 %v391_v35  ;;  %v411_v35 = vld [vmem:[%s11394_s3 + $0x128] sm:$0xff] }
 0x12e   :  { %937 = vmatmul.f32.gmra.mxu2 %v407_v55  ;;  %985 = vmatmul.f32.gmra.mxu3 %v423_v30  ;;  %v427_v55 = vld [vmem:[%s11394_s3 + $0x1a8] sm:$0xff]  ;;  %v1395_v30 = vld [vmem:[%s11397_s6 + $0x60] sm:$0xff] }
 0x12f   :  { %1513 = vperm.xlu0 %7395, %v1383_v32   ;;  %804 = vperm.xlu2 %7397, %v498_v45   ;;  %v1391_v32 = vld [vmem:[%s11397_s6 + $0x40] sm:$0xff]  ;;  %v1390_v45 = vld [vmem:[%s11397_s6 + $0x38] sm:$0xff] }
 0x130   :  { %799 = vperm.xlu1 %7396, %v497_v23  }
 0x131   :  { %v8002_v33 = vpop.permute.xlu0 %629 }
 0x132   :  { %v8010_v41 = vpop.permute.xlu2 %654  ;;  %v8012_v14 = vpop.permute.xlu1 %604 }
 0x135   :  { %844 = vmatmul.f32.gmra.mxu0 %v376_v9  ;;  %892 = vmatmul.f32.gmra.mxu1 %v392_v57  ;;  %v380_v9 = vld [vmem:[%s11394_s3 + $0x30] sm:$0xff] }
 0x136   :  { %940 = vmatmul.f32.gmra.mxu2 %v408_v59  ;;  %988 = vmatmul.f32.gmra.mxu3 %v424_v43  ;;  %v396_v57 = vld [vmem:[%s11394_s3 + $0xb0] sm:$0xff] }
 0x137   :  { %1528 = vperm.xlu0 %7395, %v1386_v6   ;;  %819 = vperm.xlu2 %7397, %v501_v1   ;;  %v412_v6 = vld [vmem:[%s11394_s3 + $0x130] sm:$0xff] }
 0x138   :  { %814 = vperm.xlu1 %7396, %v500_v20   ;;  %v428_v1 = vld [vmem:[%s11394_s3 + $0x1b0] sm:$0xff]  ;;  %v1398_v20 = vld [vmem:[%s11397_s6 + $0x78] sm:$0xff] }
 0x139   :  { %v8029_v36 = vpop.permute.xlu0 %644 }
 0x13a   :  { %11403 = vst [vmem:[#allocation8_spill] sm:$0xff] %v8029_v36  ;;  %v8037_v4 = vpop.permute.xlu2 %669  ;;  %v8039_v0 = vpop.permute.xlu1 %619  ;;  %v1470_v36 = vld [vmem:[%s11397_s6 + $0x2b8] sm:$0xff] }
 0x13b   :  { %11404 = vst [vmem:[#allocation9_spill] sm:$0xff] %v8037_v4 }
 0x13d   :  { %847 = vmatmul.f32.gmra.mxu0 %v377_v37  ;;  %895 = vmatmul.f32.gmra.mxu1 %v393_v29  ;;  %v1394_v37 = vld [vmem:[%s11397_s6 + $0x58] sm:$0xff]  ;;  %v1393_v29 = vld [vmem:[%s11397_s6 + $0x50] sm:$0xff] }
 0x13e   :  { %943 = vmatmul.f32.gmra.mxu2 %v409_v49  ;;  %991 = vmatmul.f32.gmra.mxu3 %v425_v2  ;;  %v381_v2 = vld [vmem:[%s11394_s3 + $0x38] sm:$0xff] }
 0x13f   :  { %1543 = vperm.xlu0 %7395, %v1389_v63   ;;  %1523 = vperm.xlu2 %7397, %v1385_v61   ;;  %v397_v63 = vld [vmem:[%s11394_s3 + $0xb8] sm:$0xff] }
 0x140   :  { %1518 = vperm.xlu1 %7396, %v1384_v56   ;;  %v413_v56 = vld [vmem:[%s11394_s3 + $0x138] sm:$0xff] }
 0x141   :  { %v8056_v42 = vpop.permute.xlu0 %659 }
 0x142   :  { %v8064_v48 = vpop.permute.xlu2 %684  ;;  %v8066_v50 = vpop.permute.xlu1 %634 }
 0x143   :  { %11405 = vst [vmem:[#allocation10_spill] sm:$0xff] %v8064_v48 }
 0x144   :  { %11406 = vst [vmem:[#allocation11_spill] sm:$0xff] %v8066_v50 }
 0x145   :  { %850 = vmatmul.f32.gmra.mxu0 %v378_v21  ;;  %898 = vmatmul.f32.gmra.mxu1 %v394_v53  ;;  %v429_v21 = vld [vmem:[%s11394_s3 + $0x1b8] sm:$0xff] }
 0x146   :  { %946 = vmatmul.f32.gmra.mxu2 %v410_v51  ;;  %994 = vmatmul.f32.gmra.mxu3 %v426_v5  ;;  %v1401_v51 = vld [vmem:[%s11397_s6 + $0x90] sm:$0xff] }
 0x147   :  { %1558 = vperm.xlu0 %7395, %v1392_v34   ;;  %1538 = vperm.xlu2 %7397, %v1388_v19   ;;  %v1397_v5 = vld [vmem:[%s11397_s6 + $0x70] sm:$0xff]  ;;  %v1396_v34 = vld [vmem:[%s11397_s6 + $0x68] sm:$0xff] }
 0x148   :  { %1533 = vperm.xlu1 %7396, %v1387_v8   ;;  %v382_v8 = vld [vmem:[%s11394_s3 + $0x40] sm:$0xff] }
 0x149   :  { %v8083_v18 = vpop.permute.xlu0 %674 }
 0x14a   :  { %11407 = vst [vmem:[#allocation12_spill] sm:$0xff] %v8083_v18  ;;  %v8091_v44 = vpop.permute.xlu2 %699  ;;  %v8093_v15 = vpop.permute.xlu1 %649 }
 0x14b   :  { %11408 = vst [vmem:[#allocation13_spill] sm:$0xff] %v8091_v44 }
 0x14d   :  { %853 = vmatmul.f32.gmra.mxu0 %v379_v28  ;;  %901 = vmatmul.f32.gmra.mxu1 %v395_v58  ;;  %v398_v28 = vld [vmem:[%s11394_s3 + $0xc0] sm:$0xff] }
 0x14e   :  { %949 = vmatmul.f32.gmra.mxu2 %v411_v35  ;;  %997 = vmatmul.f32.gmra.mxu3 %v427_v55  ;;  %v414_v35 = vld [vmem:[%s11394_s3 + $0x140] sm:$0xff] }
 0x14f   :  { %1573 = vperm.xlu0 %7395, %v1395_v30   ;;  %1553 = vperm.xlu2 %7397, %v1391_v32   ;;  %v430_v55 = vld [vmem:[%s11394_s3 + $0x1c0] sm:$0xff]  ;;  %v1404_v30 = vld [vmem:[%s11397_s6 + $0xa8] sm:$0xff] }
 0x150   :  { %1548 = vperm.xlu1 %7396, %v1390_v45   ;;  %v1400_v32 = vld [vmem:[%s11397_s6 + $0x88] sm:$0xff]  ;;  %v1399_v45 = vld [vmem:[%s11397_s6 + $0x80] sm:$0xff] }
 0x151   :  { %v8110_v23 = vpop.permute.xlu0 %689 }
 0x152   :  { %11409 = vst [vmem:[#allocation14_spill] sm:$0xff] %v8110_v23  ;;  %v8118_v59 = vpop.permute.xlu2 %714  ;;  %v8120_v43 = vpop.permute.xlu1 %664 }
 0x153   :  { %11410 = vst [vmem:[#allocation15_spill] sm:$0xff] %v8118_v59 }
 0x154   :  { %11411 = vst [vmem:[#allocation16_spill] sm:$0xff] %v8120_v43 }
 0x155   :  { %856 = vmatmul.f32.gmra.mxu0 %v380_v9  ;;  %904 = vmatmul.f32.gmra.mxu1 %v396_v57 }
 0x156   :  { %952 = vmatmul.f32.gmra.mxu2 %v412_v6  ;;  %1000 = vmatmul.f32.gmra.mxu3 %v428_v1  ;;  %v383_v6 = vld [vmem:[%s11394_s3 + $0x48] sm:$0xff] }
 0x157   :  { %1588 = vperm.xlu0 %7395, %v1398_v20   ;;  %1568 = vperm.xlu2 %7397, %v1394_v37   ;;  %v399_v1 = vld [vmem:[%s11394_s3 + $0xc8] sm:$0xff] }
 0x158   :  { %1563 = vperm.xlu1 %7396, %v1393_v29   ;;  %v415_v37 = vld [vmem:[%s11394_s3 + $0x148] sm:$0xff] }
 0x159   :  { %v8137_v49 = vpop.permute.xlu0 %704  ;;  %v431_v29 = vld [vmem:[%s11394_s3 + $0x1c8] sm:$0xff] }
 0x15a   :  { %11412 = vst [vmem:[#allocation17_spill] sm:$0xff] %v8137_v49  ;;  %v8145_v61 = vpop.permute.xlu1 %679 }
 0x15b   :  { %11413 = vst [vmem:[#allocation18_spill] sm:$0xff] %v8145_v61  ;;  %v8153_v53 = vpop.permute.xlu2 %729 }
 0x15c   :  { %11414 = vst [vmem:[#allocation19_spill] sm:$0xff] %v8153_v53 }
 0x15d   :  { %859 = vmatmul.f32.gmra.mxu0 %v381_v2  ;;  %907 = vmatmul.f32.gmra.mxu1 %v397_v63  ;;  %v1407_v2 = vld [vmem:[%s11397_s6 + $0xc0] sm:$0xff] }
 0x15e   :  { %955 = vmatmul.f32.gmra.mxu2 %v413_v56  ;;  %1003 = vmatmul.f32.gmra.mxu3 %v429_v21  ;;  %v1403_v63 = vld [vmem:[%s11397_s6 + $0xa0] sm:$0xff]  ;;  %v1402_v56 = vld [vmem:[%s11397_s6 + $0x98] sm:$0xff] }
 0x15f   :  { %1603 = vperm.xlu0 %7395, %v1401_v51   ;;  %1583 = vperm.xlu2 %7397, %v1397_v5   ;;  %v384_v5 = vld [vmem:[%s11394_s3 + $0x50] sm:$0xff] }
 0x160   :  { %1578 = vperm.xlu1 %7396, %v1396_v34   ;;  %v400_v34 = vld [vmem:[%s11394_s3 + $0xd0] sm:$0xff] }
 0x161   :  { %v8164_v19 = vpop.permute.xlu0 %719 }
 0x162   :  { %11415 = vst [vmem:[#allocation20_spill] sm:$0xff] %v8164_v19  ;;  %v8172_v58 = vpop.permute.xlu1 %694 }
 0x163   :  { %11416 = vst [vmem:[#allocation21_spill] sm:$0xff] %v8172_v58 }
 0x165   :  { %862 = vmatmul.f32.gmra.mxu0 %v382_v8  ;;  %910 = vmatmul.f32.gmra.mxu1 %v398_v28  ;;  %v8189_v9 = vpop.permute.xlu2 %744  ;;  %v416_v8 = vld [vmem:[%s11394_s3 + $0x150] sm:$0xff] }
 0x166   :  { %11417 = vst [vmem:[#allocation22_spill] sm:$0xff] %v8189_v9  ;;  %958 = vmatmul.f32.gmra.mxu2 %v414_v35  ;;  %1006 = vmatmul.f32.gmra.mxu3 %v430_v55  ;;  %v432_v28 = vld [vmem:[%s11394_s3 + $0x1d0] sm:$0xff]  ;;  %v1410_v35 = vld [vmem:[%s11397_s6 + $0xd8] sm:$0xff] }
 0x167   :  { %1618 = vperm.xlu0 %7395, %v1404_v30   ;;  %1598 = vperm.xlu2 %7397, %v1400_v32   ;;  %v1406_v55 = vld [vmem:[%s11397_s6 + $0xb8] sm:$0xff]  ;;  %v1405_v32 = vld [vmem:[%s11397_s6 + $0xb0] sm:$0xff] }
 0x168   :  { %1593 = vperm.xlu1 %7396, %v1399_v45  }
 0x169   :  { %v8191_v57 = vpop.permute.xlu0 %734 }
 0x16a   :  { %11418 = vst [vmem:[#allocation23_spill] sm:$0xff] %v8191_v57  ;;  %v8199_v20 = vpop.permute.xlu1 %709 }
 0x16b   :  { %11419 = vst [vmem:[#allocation24_spill] sm:$0xff] %v8199_v20 }
 0x16d   :  { %865 = vmatmul.f32.gmra.mxu0 %v383_v6  ;;  %913 = vmatmul.f32.gmra.mxu1 %v399_v1  ;;  %v385_v6 = vld [vmem:[%s11394_s3 + $0x58] sm:$0xff] }
 0x16e   :  { %961 = vmatmul.f32.gmra.mxu2 %v415_v37  ;;  %1009 = vmatmul.f32.gmra.mxu3 %v431_v29  ;;  %v8216_v21 = vpop.permute.xlu2 %759  ;;  %v401_v1 = vld [vmem:[%s11394_s3 + $0xd8] sm:$0xff] }
 0x16f   :  { %11420 = vst [vmem:[#allocation25_spill] sm:$0xff] %v8216_v21  ;;  %1633 = vperm.xlu0 %7395, %v1407_v2   ;;  %1613 = vperm.xlu2 %7397, %v1403_v63   ;;  %v417_v37 = vld [vmem:[%s11394_s3 + $0x158] sm:$0xff]  ;;  %v1413_v63 = vld [vmem:[%s11397_s6 + $0xf0] sm:$0xff] }
 0x170   :  { %1608 = vperm.xlu1 %7396, %v1402_v56   ;;  %v433_v29 = vld [vmem:[%s11394_s3 + $0x1d8] sm:$0xff]  ;;  %v1409_v56 = vld [vmem:[%s11397_s6 + $0xd0] sm:$0xff] }
 0x171   :  { %v8218_v51 = vpop.permute.xlu0 %749 }
 0x172   :  { %11421 = vst [vmem:[#allocation26_spill] sm:$0xff] %v8218_v51 }
 0x174   :  { %v8238_v30 = vpop.permute.xlu1 %724 }
 0x175   :  { %11422 = vst [vmem:[#allocation27_spill] sm:$0xff] %v8238_v30  ;;  %868 = vmatmul.f32.gmra.mxu0 %v384_v5  ;;  %916 = vmatmul.f32.gmra.mxu1 %v400_v34  ;;  %v1408_v5 = vld [vmem:[%s11397_s6 + $0xc8] sm:$0xff] }
 0x176   :  { %964 = vmatmul.f32.gmra.mxu2 %v416_v8  ;;  %1012 = vmatmul.f32.gmra.mxu3 %v432_v28  ;;  %v386_v28 = vld [vmem:[%s11394_s3 + $0x60] sm:$0xff] }
 0x177   :  { %1648 = vperm.xlu0 %7395, %v1410_v35   ;;  %1628 = vperm.xlu2 %7397, %v1406_v55   ;;  %v402_v35 = vld [vmem:[%s11394_s3 + $0xe0] sm:$0xff] }
 0x178   :  { %1623 = vperm.xlu1 %7396, %v1405_v32   ;;  %v8243_v45 = vpop.permute.xlu2 %774  ;;  %v418_v55 = vld [vmem:[%s11394_s3 + $0x160] sm:$0xff] }
 0x179   :  { %11423 = vst [vmem:[#allocation28_spill] sm:$0xff] %v8243_v45  ;;  %v434_v32 = vld [vmem:[%s11394_s3 + $0x1e0] sm:$0xff] }
 0x17a   :  { %v8257_v2 = vpop.permute.xlu0 %764 }
 0x17b   :  { %11424 = vst [vmem:[#allocation29_spill] sm:$0xff] %v8257_v2 }
 0x17d   :  { %871 = vmatmul.f32.gmra.mxu0 %v385_v6  ;;  %919 = vmatmul.f32.gmra.mxu1 %v401_v1  ;;  %v8268_v34 = vpop.permute.xlu1 %739  ;;  %v1416_v6 = vld [vmem:[%s11397_s6 + $0x108] sm:$0xff] }
 0x17e   :  { %11425 = vst [vmem:[#allocation30_spill] sm:$0xff] %v8268_v34  ;;  %967 = vmatmul.f32.gmra.mxu2 %v417_v37  ;;  %1015 = vmatmul.f32.gmra.mxu3 %v433_v29  ;;  %v1412_v1 = vld [vmem:[%s11397_s6 + $0xe8] sm:$0xff]  ;;  %v1411_v37 = vld [vmem:[%s11397_s6 + $0xe0] sm:$0xff] }
 0x17f   :  { %1663 = vperm.xlu0 %7395, %v1413_v63   ;;  %1643 = vperm.xlu2 %7397, %v1409_v56  }
 0x180   :  { %1638 = vperm.xlu1 %7396, %v1408_v5   ;;  %v387_v5 = vld [vmem:[%s11394_s3 + $0x68] sm:$0xff] }
 0x181   :  { %v8270_v8 = vpop.permute.xlu2 %789 }
 0x182   :  { %11426 = vst [vmem:[#allocation31_spill] sm:$0xff] %v8270_v8 }
 0x184   :  { %v8293_v29 = vpop.permute.xlu0 %779 }
 0x185   :  { %874 = vmatmul.f32.gmra.mxu0 %v386_v28  ;;  %922 = vmatmul.f32.gmra.mxu1 %v402_v35  ;;  %11427 = vst [vmem:[#allocation32_spill] sm:$0xff] %v8293_v29  ;;  %v403_v28 = vld [vmem:[%s11394_s3 + $0xe8] sm:$0xff] }
 0x186   :  { %970 = vmatmul.f32.gmra.mxu2 %v418_v55  ;;  %1018 = vmatmul.f32.gmra.mxu3 %v434_v32  ;;  %v419_v35 = vld [vmem:[%s11394_s3 + $0x168] sm:$0xff]  ;;  %v1419_v32 = vld [vmem:[%s11397_s6 + $0x120] sm:$0xff] }
 0x187   :  { %1678 = vperm.xlu0 %7395, %v1416_v6   ;;  %1658 = vperm.xlu2 %7397, %v1412_v1   ;;  %v8295_v63 = vpop.permute.xlu1 %754  ;;  %v435_v55 = vld [vmem:[%s11394_s3 + $0x1e8] sm:$0xff]  ;;  %v1415_v6 = vld [vmem:[%s11397_s6 + $0x100] sm:$0xff]  ;;  %v1414_v1 = vld [vmem:[%s11397_s6 + $0xf8] sm:$0xff] }
 0x188   :  { %11428 = vst [vmem:[#allocation33_spill] sm:$0xff] %v8295_v63  ;;  %1653 = vperm.xlu1 %7396, %v1411_v37  }
 0x189   :  { %v8297_v56 = vpop.permute.xlu2 %804 }
 0x18a   :  { %11429 = vst [vmem:[#allocation34_spill] sm:$0xff] %v8297_v56 }
 0x18d   :  { %877 = vmatmul.f32.gmra.mxu0 %v387_v5  ;;  %925 = vmatmul.f32.gmra.mxu1 %v403_v28  ;;  %v8320_v37 = vpop.permute.xlu0 %794  ;;  %v388_v5 = vld [vmem:[%s11394_s3 + $0x70] sm:$0xff] }
 0x18e   :  { %973 = vmatmul.f32.gmra.mxu2 %v419_v35  ;;  %1021 = vmatmul.f32.gmra.mxu3 %v435_v55  ;;  %11430 = vst [vmem:[#allocation35_spill] sm:$0xff] %v8320_v37  ;;  %v404_v28 = vld [vmem:[%s11394_s3 + $0xf0] sm:$0xff] }
 0x18f   :  { %1693 = vperm.xlu0 %7395, %v1419_v32   ;;  %1673 = vperm.xlu2 %7397, %v1415_v6   ;;  %v420_v35 = vld [vmem:[%s11394_s3 + $0x170] sm:$0xff]  ;;  %v1422_v32 = vld [vmem:[%s11397_s6 + $0x138] sm:$0xff] }
 0x190   :  { %1668 = vperm.xlu1 %7396, %v1414_v1   ;;  %v8322_v9 = vpop.permute.xlu1 %769  ;;  %v436_v55 = vld [vmem:[%s11394_s3 + $0x1f0] sm:$0xff]  ;;  %v1418_v6 = vld [vmem:[%s11397_s6 + $0x118] sm:$0xff] }
 0x191   :  { %11431 = vst [vmem:[#allocation36_spill] sm:$0xff] %v8322_v9  ;;  %v8324_v43 = vpop.permute.xlu2 %819  ;;  %v1417_v1 = vld [vmem:[%s11397_s6 + $0x110] sm:$0xff] }
 0x192   :  { %11432 = vst [vmem:[#allocation37_spill] sm:$0xff] %v8324_v43 }
 0x195   :  { %880 = vmatmul.f32.gmra.mxu0 %v388_v5  ;;  %928 = vmatmul.f32.gmra.mxu1 %v404_v28  ;;  %v389_v5 = vld [vmem:[%s11394_s3 + $0x78] sm:$0xff] }
 0x196   :  { %976 = vmatmul.f32.gmra.mxu2 %v420_v35  ;;  %1024 = vmatmul.f32.gmra.mxu3 %v436_v55  ;;  %v405_v28 = vld [vmem:[%s11394_s3 + $0xf8] sm:$0xff] }
 0x197   :  { %1708 = vperm.xlu0 %7395, %v1422_v32   ;;  %1688 = vperm.xlu2 %7397, %v1418_v6   ;;  %v421_v35 = vld [vmem:[%s11394_s3 + $0x178] sm:$0xff]  ;;  %v1425_v32 = vld [vmem:[%s11397_s6 + $0x150] sm:$0xff] }
 0x198   :  { %1683 = vperm.xlu1 %7396, %v1417_v1   ;;  %v437_v55 = vld [vmem:[%s11394_s3 + $0x1f8] sm:$0xff]  ;;  %v1421_v6 = vld [vmem:[%s11397_s6 + $0x130] sm:$0xff]  ;;  %v1420_v1 = vld [vmem:[%s11397_s6 + $0x128] sm:$0xff] }
 0x199   :  { %v8347_v51 = vpop.permute.xlu0 %809  ;;  %v8349_v4 = vpop.permute.xlu2 %1523 }
 0x19a   :  { %11433 = vst [vmem:[#allocation38_spill] sm:$0xff] %v8347_v51  ;;  %v8351_v63 = vpop.permute.xlu1 %784 }
 0x19b   :  { %11434 = vst [vmem:[#allocation39_spill] sm:$0xff] %v8349_v4 }
 0x19c   :  { %11435 = vst [vmem:[#allocation40_spill] sm:$0xff] %v8351_v63 }
 0x19d   :  { %883 = vmatmul.f32.gmra.mxu0 %v389_v5  ;;  %931 = vmatmul.f32.gmra.mxu1 %v405_v28  ;;  %v1428_v5 = vld [vmem:[%s11397_s6 + $0x168] sm:$0xff] }
 0x19e   :  { %979 = vmatmul.f32.gmra.mxu2 %v421_v35  ;;  %1027 = vmatmul.f32.gmra.mxu3 %v437_v55  ;;  %v1424_v28 = vld [vmem:[%s11397_s6 + $0x148] sm:$0xff]  ;;  %v1423_v35 = vld [vmem:[%s11397_s6 + $0x140] sm:$0xff] }
 0x19f   :  { %1723 = vperm.xlu0 %7395, %v1425_v32   ;;  %1703 = vperm.xlu2 %7397, %v1421_v6  }
 0x1a0   :  { %1698 = vperm.xlu1 %7396, %v1420_v1  }
 0x1a1   :  { %v8374_v4 = vpop.permute.xlu0 %1513  ;;  %v8376_v18 = vpop.permute.xlu2 %1538 }
 0x1a2   :  { %11436 = vst [vmem:[#allocation41_spill] sm:$0xff] %v8374_v4  ;;  %v8378_v21 = vpop.permute.xlu1 %799  ;;  %v8380_v61 = vpop.f32.mrf.mxu0 }
 0x1a3   :  { %11437 = vst [vmem:[#allocation42_spill] sm:$0xff] %v8376_v18  ;;  %v8382_v2 = vpop.f32.mrf.mxu1 }
 0x1a4   :  { %11438 = vst [vmem:[#allocation43_spill] sm:$0xff] %v8378_v21 }
 0x1a7   :  { %1738 = vperm.xlu0 %7395, %v1428_v5   ;;  %1718 = vperm.xlu2 %7397, %v1424_v28   ;;  %v1431_v5 = vld [vmem:[%s11397_s6 + $0x180] sm:$0xff] }
 0x1a8   :  { %1713 = vperm.xlu1 %7396, %v1423_v35   ;;  %v1427_v28 = vld [vmem:[%s11397_s6 + $0x160] sm:$0xff]  ;;  %v1426_v35 = vld [vmem:[%s11397_s6 + $0x158] sm:$0xff] }
 0x1a9   :  { %v8393_v55 = vpop.permute.xlu0 %1528  ;;  %v8395_v32 = vpop.f32.mrf.mxu2 }
 0x1aa   :  { %11439 = vst [vmem:[#allocation44_spill] sm:$0xff] %v8393_v55  ;;  %v8397_v6 = vpop.f32.mrf.mxu3  ;;  %v8399_v1 = vpop.permute.xlu2 %1553 }
 0x1ab   :  { %11440 = vst [vmem:[#allocation45_spill] sm:$0xff] %v8395_v32  ;;  %v8401_v18 = vpop.permute.xlu1 %814  ;;  %v8403_v4 = vpop.f32.mrf.mxu0 }
 0x1ac   :  { %11441 = vst [vmem:[#allocation46_spill] sm:$0xff] %v8397_v6  ;;  %v8405_v48 = vpop.f32.mrf.mxu1 }
 0x1ad   :  { %11442 = vst [vmem:[#allocation47_spill] sm:$0xff] %v8399_v1 }
 0x1ae   :  { %11443 = vst [vmem:[#allocation48_spill] sm:$0xff] %v8401_v18 }
 0x1af   :  { %1753 = vperm.xlu0 %7395, %v1431_v5   ;;  %1733 = vperm.xlu2 %7397, %v1427_v28   ;;  %v1434_v5 = vld [vmem:[%s11397_s6 + $0x198] sm:$0xff] }
 0x1b0   :  { %1728 = vperm.xlu1 %7396, %v1426_v35   ;;  %v1430_v28 = vld [vmem:[%s11397_s6 + $0x178] sm:$0xff]  ;;  %v1429_v35 = vld [vmem:[%s11397_s6 + $0x170] sm:$0xff] }
 0x1b1   :  { %v8416_v1 = vpop.permute.xlu0 %1543  ;;  %v8418_v55 = vpop.f32.mrf.mxu2 }
 0x1b2   :  { %11444 = vst [vmem:[#allocation49_spill] sm:$0xff] %v8416_v1  ;;  %v8420_v6 = vpop.f32.mrf.mxu3  ;;  %v8422_v32 = vpop.permute.xlu2 %1568 }
 0x1b3   :  { %11445 = vst [vmem:[#allocation50_spill] sm:$0xff] %v8418_v55  ;;  %v8424_v9 = vpop.permute.xlu1 %1518  ;;  %v8426_v23 = vpop.f32.mrf.mxu0 }
 0x1b4   :  { %11446 = vst [vmem:[#allocation51_spill] sm:$0xff] %v8420_v6  ;;  %v8428_v45 = vpop.f32.mrf.mxu1 }
 0x1b5   :  { %11447 = vst [vmem:[#allocation52_spill] sm:$0xff] %v8422_v32 }
 0x1b6   :  { %11448 = vst [vmem:[#allocation53_spill] sm:$0xff] %v8424_v9 }
 0x1b7   :  { %1768 = vperm.xlu0 %7395, %v1434_v5   ;;  %1748 = vperm.xlu2 %7397, %v1430_v28   ;;  %v1437_v5 = vld [vmem:[%s11397_s6 + $0x1b0] sm:$0xff] }
 0x1b8   :  { %1743 = vperm.xlu1 %7396, %v1429_v35   ;;  %v1433_v28 = vld [vmem:[%s11397_s6 + $0x190] sm:$0xff]  ;;  %v1432_v35 = vld [vmem:[%s11397_s6 + $0x188] sm:$0xff] }
 0x1b9   :  { %v8439_v32 = vpop.permute.xlu0 %1558  ;;  %v8441_v1 = vpop.f32.mrf.mxu2 }
 0x1ba   :  { %11449 = vst [vmem:[#allocation54_spill] sm:$0xff] %v8439_v32  ;;  %v8443_v9 = vpop.f32.mrf.mxu3  ;;  %v8445_v6 = vpop.permute.xlu2 %1583 }
 0x1bb   :  { %11450 = vst [vmem:[#allocation55_spill] sm:$0xff] %v8441_v1  ;;  %v8447_v55 = vpop.permute.xlu1 %1533  ;;  %v8449_v58 = vpop.f32.mrf.mxu0 }
 0x1bc   :  { %11451 = vst [vmem:[#allocation56_spill] sm:$0xff] %v8443_v9  ;;  %v8451_v29 = vpop.f32.mrf.mxu1 }
 0x1bd   :  { %11452 = vst [vmem:[#allocation57_spill] sm:$0xff] %v8445_v6 }
 0x1be   :  { %11453 = vst [vmem:[#allocation58_spill] sm:$0xff] %v8447_v55 }
 0x1bf   :  { %1783 = vperm.xlu0 %7395, %v1437_v5   ;;  %1763 = vperm.xlu2 %7397, %v1433_v28   ;;  %v1440_v5 = vld [vmem:[%s11397_s6 + $0x1c8] sm:$0xff] }
 0x1c0   :  { %1758 = vperm.xlu1 %7396, %v1432_v35   ;;  %v1436_v28 = vld [vmem:[%s11397_s6 + $0x1a8] sm:$0xff]  ;;  %v1435_v35 = vld [vmem:[%s11397_s6 + $0x1a0] sm:$0xff] }
 0x1c1   :  { %v8462_v6 = vpop.permute.xlu0 %1573  ;;  %v8464_v32 = vpop.f32.mrf.mxu2 }
 0x1c2   :  { %11454 = vst [vmem:[#allocation59_spill] sm:$0xff] %v8462_v6  ;;  %v8466_v55 = vpop.f32.mrf.mxu3  ;;  %v8468_v9 = vpop.permute.xlu2 %1598 }
 0x1c3   :  { %11455 = vst [vmem:[#allocation60_spill] sm:$0xff] %v8464_v32  ;;  %v8470_v1 = vpop.permute.xlu1 %1548  ;;  %v8472_v44 = vpop.f32.mrf.mxu0 }
 0x1c4   :  { %11456 = vst [vmem:[#allocation61_spill] sm:$0xff] %v8466_v55  ;;  %v8474_v63 = vpop.f32.mrf.mxu1 }
 0x1c5   :  { %11457 = vst [vmem:[#allocation62_spill] sm:$0xff] %v8468_v9 }
 0x1c6   :  { %11458 = vst [vmem:[#allocation63_spill] sm:$0xff] %v8470_v1 }
 0x1c7   :  { %1798 = vperm.xlu0 %7395, %v1440_v5   ;;  %1778 = vperm.xlu2 %7397, %v1436_v28   ;;  %v1443_v5 = vld [vmem:[%s11397_s6 + $0x1e0] sm:$0xff] }
 0x1c8   :  { %1773 = vperm.xlu1 %7396, %v1435_v35   ;;  %v1439_v28 = vld [vmem:[%s11397_s6 + $0x1c0] sm:$0xff]  ;;  %v1438_v35 = vld [vmem:[%s11397_s6 + $0x1b8] sm:$0xff] }
 0x1c9   :  { %v8485_v9 = vpop.permute.xlu0 %1588  ;;  %v8487_v6 = vpop.f32.mrf.mxu2 }
 0x1ca   :  { %11459 = vst [vmem:[#allocation64_spill] sm:$0xff] %v8485_v9  ;;  %v8489_v1 = vpop.f32.mrf.mxu3  ;;  %v8491_v55 = vpop.permute.xlu2 %1613 }
 0x1cb   :  { %11460 = vst [vmem:[#allocation65_spill] sm:$0xff] %v8487_v6  ;;  %v8493_v32 = vpop.permute.xlu1 %1563  ;;  %v8495_v49 = vpop.f32.mrf.mxu0 }
 0x1cc   :  { %11461 = vst [vmem:[#allocation66_spill] sm:$0xff] %v8489_v1  ;;  %v8497_v8 = vpop.f32.mrf.mxu1 }
 0x1cd   :  { %11462 = vst [vmem:[#allocation67_spill] sm:$0xff] %v8491_v55 }
 0x1ce   :  { %11463 = vst [vmem:[#allocation68_spill] sm:$0xff] %v8493_v32 }
 0x1cf   :  { %1813 = vperm.xlu0 %7395, %v1443_v5   ;;  %1793 = vperm.xlu2 %7397, %v1439_v28   ;;  %v1446_v5 = vld [vmem:[%s11397_s6 + $0x1f8] sm:$0xff] }
 0x1d0   :  { %1788 = vperm.xlu1 %7396, %v1438_v35   ;;  %v1442_v28 = vld [vmem:[%s11397_s6 + $0x1d8] sm:$0xff]  ;;  %v1441_v35 = vld [vmem:[%s11397_s6 + $0x1d0] sm:$0xff] }
 0x1d1   :  { %v8508_v55 = vpop.permute.xlu0 %1603  ;;  %v8510_v9 = vpop.f32.mrf.mxu2 }
 0x1d2   :  { %11464 = vst [vmem:[#allocation69_spill] sm:$0xff] %v8508_v55  ;;  %v8512_v32 = vpop.f32.mrf.mxu3  ;;  %v8514_v1 = vpop.permute.xlu2 %1628 }
 0x1d3   :  { %11465 = vst [vmem:[#allocation70_spill] sm:$0xff] %v8510_v9  ;;  %v8516_v6 = vpop.permute.xlu1 %1578  ;;  %v8518_v20 = vpop.f32.mrf.mxu0 }
 0x1d4   :  { %11466 = vst [vmem:[#allocation71_spill] sm:$0xff] %v8512_v32  ;;  %v8520_v37 = vpop.f32.mrf.mxu1 }
 0x1d5   :  { %11467 = vst [vmem:[#allocation72_spill] sm:$0xff] %v8514_v1 }
 0x1d6   :  { %11468 = vst [vmem:[#allocation73_spill] sm:$0xff] %v8516_v6 }
 0x1d7   :  { %1828 = vperm.xlu0 %7395, %v1446_v5   ;;  %1808 = vperm.xlu2 %7397, %v1442_v28   ;;  %v1449_v5 = vld [vmem:[%s11397_s6 + $0x210] sm:$0xff] }
 0x1d8   :  { %1803 = vperm.xlu1 %7396, %v1441_v35   ;;  %v1445_v28 = vld [vmem:[%s11397_s6 + $0x1f0] sm:$0xff]  ;;  %v1444_v35 = vld [vmem:[%s11397_s6 + $0x1e8] sm:$0xff] }
 0x1d9   :  { %v8531_v1 = vpop.permute.xlu0 %1618  ;;  %v8533_v55 = vpop.f32.mrf.mxu2 }
 0x1da   :  { %11469 = vst [vmem:[#allocation74_spill] sm:$0xff] %v8531_v1  ;;  %v8535_v6 = vpop.f32.mrf.mxu3  ;;  %v8537_v32 = vpop.permute.xlu2 %1643 }
 0x1db   :  { %11470 = vst [vmem:[#allocation75_spill] sm:$0xff] %v8533_v55  ;;  %v8539_v9 = vpop.permute.xlu1 %1593  ;;  %v8541_v59 = vpop.f32.mrf.mxu0 }
 0x1dc   :  { %11471 = vst [vmem:[#allocation76_spill] sm:$0xff] %v8535_v6  ;;  %v8543_v21 = vpop.f32.mrf.mxu1 }
 0x1dd   :  { %11472 = vst [vmem:[#allocation77_spill] sm:$0xff] %v8537_v32 }
 0x1de   :  { %11473 = vst [vmem:[#allocation78_spill] sm:$0xff] %v8539_v9 }
 0x1df   :  { %1843 = vperm.xlu0 %7395, %v1449_v5   ;;  %1823 = vperm.xlu2 %7397, %v1445_v28   ;;  %v1452_v5 = vld [vmem:[%s11397_s6 + $0x228] sm:$0xff] }
 0x1e0   :  { %1818 = vperm.xlu1 %7396, %v1444_v35   ;;  %v1448_v28 = vld [vmem:[%s11397_s6 + $0x208] sm:$0xff]  ;;  %v1447_v35 = vld [vmem:[%s11397_s6 + $0x200] sm:$0xff] }
 0x1e1   :  { %v8554_v32 = vpop.permute.xlu0 %1633  ;;  %v8556_v1 = vpop.f32.mrf.mxu2 }
 0x1e2   :  { %11474 = vst [vmem:[#allocation79_spill] sm:$0xff] %v8554_v32  ;;  %v8558_v9 = vpop.f32.mrf.mxu3  ;;  %v8560_v6 = vpop.permute.xlu2 %1658 }
 0x1e3   :  { %11475 = vst [vmem:[#allocation80_spill] sm:$0xff] %v8556_v1  ;;  %v8562_v55 = vpop.permute.xlu1 %1608  ;;  %v8564_v19 = vpop.f32.mrf.mxu0 }
 0x1e4   :  { %11476 = vst [vmem:[#allocation81_spill] sm:$0xff] %v8558_v9  ;;  %v8566_v56 = vpop.f32.mrf.mxu1 }
 0x1e5   :  { %11477 = vst [vmem:[#allocation82_spill] sm:$0xff] %v8560_v6 }
 0x1e6   :  { %11478 = vst [vmem:[#allocation83_spill] sm:$0xff] %v8562_v55 }
 0x1e7   :  { %1858 = vperm.xlu0 %7395, %v1452_v5   ;;  %1838 = vperm.xlu2 %7397, %v1448_v28   ;;  %v1455_v5 = vld [vmem:[%s11397_s6 + $0x240] sm:$0xff] }
 0x1e8   :  { %1833 = vperm.xlu1 %7396, %v1447_v35   ;;  %v1451_v28 = vld [vmem:[%s11397_s6 + $0x220] sm:$0xff]  ;;  %v1450_v35 = vld [vmem:[%s11397_s6 + $0x218] sm:$0xff] }
 0x1e9   :  { %v8577_v6 = vpop.permute.xlu0 %1648  ;;  %v8579_v32 = vpop.f32.mrf.mxu2 }
 0x1ea   :  { %11479 = vst [vmem:[#allocation84_spill] sm:$0xff] %v8577_v6  ;;  %v8581_v55 = vpop.f32.mrf.mxu3  ;;  %v8583_v9 = vpop.permute.xlu2 %1673 }
 0x1eb   :  { %11480 = vst [vmem:[#allocation85_spill] sm:$0xff] %v8579_v32  ;;  %v8585_v1 = vpop.permute.xlu1 %1623  ;;  %v8587_v30 = vpop.f32.mrf.mxu0 }
 0x1ec   :  { %11481 = vst [vmem:[#allocation86_spill] sm:$0xff] %v8581_v55  ;;  %v8589_v43 = vpop.f32.mrf.mxu1 }
 0x1ed   :  { %11482 = vst [vmem:[#allocation87_spill] sm:$0xff] %v8583_v9 }
 0x1ee   :  { %11483 = vst [vmem:[#allocation88_spill] sm:$0xff] %v8585_v1 }
 0x1ef   :  { %1873 = vperm.xlu0 %7395, %v1455_v5   ;;  %1853 = vperm.xlu2 %7397, %v1451_v28   ;;  %v1458_v5 = vld [vmem:[%s11397_s6 + $0x258] sm:$0xff] }
 0x1f0   :  { %1848 = vperm.xlu1 %7396, %v1450_v35   ;;  %v1454_v28 = vld [vmem:[%s11397_s6 + $0x238] sm:$0xff]  ;;  %v1453_v35 = vld [vmem:[%s11397_s6 + $0x230] sm:$0xff] }
 0x1f1   :  { %v8600_v9 = vpop.permute.xlu0 %1663  ;;  %v8602_v6 = vpop.f32.mrf.mxu2 }
 0x1f2   :  { %11484 = vst [vmem:[#allocation89_spill] sm:$0xff] %v8600_v9  ;;  %v8604_v1 = vpop.f32.mrf.mxu3  ;;  %v8606_v55 = vpop.permute.xlu2 %1688 }
 0x1f3   :  { %11485 = vst [vmem:[#allocation90_spill] sm:$0xff] %v8602_v6  ;;  %v8608_v32 = vpop.permute.xlu1 %1638  ;;  %v8610_v51 = vpop.f32.mrf.mxu0 }
 0x1f4   :  { %11486 = vst [vmem:[#allocation91_spill] sm:$0xff] %v8604_v1  ;;  %v8612_v53 = vpop.f32.mrf.mxu1 }
 0x1f5   :  { %11487 = vst [vmem:[#allocation92_spill] sm:$0xff] %v8606_v55 }
 0x1f6   :  { %11488 = vst [vmem:[#allocation93_spill] sm:$0xff] %v8608_v32 }
 0x1f7   :  { %11489 = vst [vmem:[#allocation94_spill] sm:$0xff] %v8610_v51  ;;  %1888 = vperm.xlu0 %7395, %v1458_v5   ;;  %1868 = vperm.xlu2 %7397, %v1454_v28   ;;  %v1461_v5 = vld [vmem:[%s11397_s6 + $0x270] sm:$0xff] }
 0x1f8   :  { %11490 = vst [vmem:[#allocation95_spill] sm:$0xff] %v8612_v53  ;;  %1863 = vperm.xlu1 %7396, %v1453_v35   ;;  %v1457_v28 = vld [vmem:[%s11397_s6 + $0x250] sm:$0xff]  ;;  %v1456_v35 = vld [vmem:[%s11397_s6 + $0x248] sm:$0xff] }
 0x1f9   :  { %v8623_v55 = vpop.permute.xlu0 %1678  ;;  %v8625_v9 = vpop.f32.mrf.mxu2 }
 0x1fa   :  { %11491 = vst [vmem:[#allocation96_spill] sm:$0xff] %v8623_v55  ;;  %v8627_v32 = vpop.f32.mrf.mxu3  ;;  %v8629_v1 = vpop.permute.xlu2 %1703 }
 0x1fb   :  { %11492 = vst [vmem:[#allocation97_spill] sm:$0xff] %v8625_v9  ;;  %v8631_v6 = vpop.permute.xlu1 %1653  ;;  %v8633_v34 = vpop.f32.mrf.mxu0 }
 0x1fc   :  { %11493 = vst [vmem:[#allocation98_spill] sm:$0xff] %v8627_v32  ;;  %v8635_v18 = vpop.f32.mrf.mxu1 }
 0x1fd   :  { %11494 = vst [vmem:[#allocation99_spill] sm:$0xff] %v8629_v1 }
 0x1fe   :  { %11495 = vst [vmem:[#allocation100_spill] sm:$0xff] %v8631_v6 }
 0x1ff   :  { %1903 = vperm.xlu0 %7395, %v1461_v5   ;;  %1883 = vperm.xlu2 %7397, %v1457_v28   ;;  %v1464_v5 = vld [vmem:[%s11397_s6 + $0x288] sm:$0xff] }
 0x200   :  { %1878 = vperm.xlu1 %7396, %v1456_v35   ;;  %v1460_v28 = vld [vmem:[%s11397_s6 + $0x268] sm:$0xff]  ;;  %v1459_v35 = vld [vmem:[%s11397_s6 + $0x260] sm:$0xff] }
 0x201   :  { %v8646_v1 = vpop.permute.xlu0 %1693  ;;  %v8648_v55 = vpop.f32.mrf.mxu2 }
 0x202   :  { %11496 = vst [vmem:[#allocation101_spill] sm:$0xff] %v8646_v1  ;;  %v8650_v6 = vpop.f32.mrf.mxu3  ;;  %v8652_v32 = vpop.permute.xlu2 %1718 }
 0x203   :  { %11497 = vst [vmem:[#allocation102_spill] sm:$0xff] %v8648_v55  ;;  %v8654_v9 = vpop.permute.xlu1 %1668  ;;  %v8656_v53 = vpop.f32.mrf.mxu0 }
 0x204   :  { %11498 = vst [vmem:[#allocation103_spill] sm:$0xff] %v8650_v6  ;;  %v8658_v50 = vpop.f32.mrf.mxu1 }
 0x205   :  { %11499 = vst [vmem:[#allocation104_spill] sm:$0xff] %v8652_v32 }
 0x206   :  { %11500 = vst [vmem:[#allocation105_spill] sm:$0xff] %v8654_v9 }
 0x207   :  { %11501 = vst [vmem:[#allocation106_spill] sm:$0xff] %v8658_v50  ;;  %1918 = vperm.xlu0 %7395, %v1464_v5   ;;  %1898 = vperm.xlu2 %7397, %v1460_v28   ;;  %v1463_v5 = vld [vmem:[%s11397_s6 + $0x280] sm:$0xff]  ;;  %v1462_v28 = vld [vmem:[%s11397_s6 + $0x278] sm:$0xff] }
 0x208   :  { %1893 = vperm.xlu1 %7396, %v1459_v35  }
 0x209   :  { %v8669_v32 = vpop.permute.xlu0 %1708  ;;  %v8671_v1 = vpop.f32.mrf.mxu2 }
 0x20a   :  { %11502 = vst [vmem:[#allocation107_spill] sm:$0xff] %v8669_v32  ;;  %v8673_v9 = vpop.f32.mrf.mxu3  ;;  %v8675_v6 = vpop.permute.xlu2 %1733 }
 0x20b   :  { %11503 = vst [vmem:[#allocation108_spill] sm:$0xff] %v8671_v1  ;;  %v8677_v55 = vpop.permute.xlu1 %1683  ;;  %v878_v57 = vpop.f32.mrf.mxu0 }
 0x20c   :  { %11504 = vst [vmem:[#allocation109_spill] sm:$0xff] %v8673_v9  ;;  %v926_v51 = vpop.f32.mrf.mxu1 }
 0x20d   :  { %11505 = vst [vmem:[#allocation110_spill] sm:$0xff] %v8675_v6 }
 0x20e   :  { %11506 = vst [vmem:[#allocation111_spill] sm:$0xff] %v8677_v55 }
 0x20f   :  { %1933 = vperm.xlu0 %7395, %v1467_v16   ;;  %1913 = vperm.xlu2 %7397, %v1463_v5   ;;  %v1466_v16 = vld [vmem:[%s11397_s6 + $0x298] sm:$0xff]  ;;  %v1465_v5 = vld [vmem:[%s11397_s6 + $0x290] sm:$0xff] }
 0x210   :  { %1908 = vperm.xlu1 %7396, %v1462_v28   ;;  %v8709_v28 = vadd.f32 %v8380_v61, %v7764_v10  ;;  %v8729_v10 = vadd.f32 %v8428_v45, %v7912_v47 }
 0x211   :  { %v8688_v35 = vpop.permute.xlu0 %1723  ;;  %v8690_v6 = vpop.f32.mrf.mxu2 }
 0x212   :  { %11507 = vst [vmem:[#allocation112_spill] sm:$0xff] %v8688_v35  ;;  %v8692_v32 = vpop.f32.mrf.mxu3  ;;  %v8694_v55 = vpop.permute.xlu2 %1748  ;;  %v8717_v35 = vadd.f32 %v8403_v4, %v7793_v40  ;;  %v8737_v40 = vadd.f32 %v8451_v29, %v7948_v24  ;;  %v8751_v4 = vadd.f32 %v8495_v49, %v7884_v7  ;;  %v11511_v24 = vld [vmem:[#allocation6_spill] sm:$0xff]  ;;  %v8770_v7 = vadd.f32 %v8541_v59, %v7843_v26 }
 0x213   :  { %11508 = vst [vmem:[#allocation113_spill] sm:$0xff] %v8692_v32  ;;  %v8696_v9 = vpop.permute.xlu1 %1698  ;;  %v881_v1 = vpop.f32.mrf.mxu0  ;;  %v8725_v32 = vadd.f32 %v8426_v23, %v7851_v54  ;;  %v8745_v54 = vadd.f32 %v8474_v63, %v8012_v14  ;;  %v8766_v23 = vadd.f32 %v8520_v37, %v7975_v62  ;;  %v8785_v62 = vadd.f32 %v8566_v56, %v7956_v12  ;;  %v11518_v63 = vld [vmem:[#allocation95_spill] sm:$0xff] }
 0x214   :  { %11509 = vst [vmem:[#allocation114_spill] sm:$0xff] %v8694_v55  ;;  %v929_v50 = vpop.f32.mrf.mxu1  ;;  %v8713_v55 = vadd.f32 %v8382_v2, %v7934_v31  ;;  %v8733_v31 = vadd.f32 %v8449_v58, %v7777_v22  ;;  %v8755_v22 = vadd.f32 %v8497_v8, %v7936_v3  ;;  %v8774_v3 = vadd.f32 %v8543_v21, %v8039_v0  ;;  %v1469_v0 = vld [vmem:[%s11397_s6 + $0x2b0] sm:$0xff] }
 0x215   :  { %11510 = vst [vmem:[#allocation115_spill] sm:$0xff] %v8696_v9  ;;  %v8721_v9 = vadd.f32 %v8405_v48, %v7985_v27  ;;  %v8741_v27 = vadd.f32 %v8472_v44, %v7818_v25  ;;  %v8759_v48 = vadd.f32 %v8518_v20, %v11511_v24  ;;  %v882_v25 = vadd.f32 %v881_v1, %v7958_v60  ;;  %v11514_v2 = vld [vmem:[#allocation7_spill] sm:$0xff] }
 0x216   :  { %v930_v49 = vadd.f32 %v929_v50, %v8010_v41  ;;  %v8781_v58 = vadd.f32 %v8564_v19, %v7914_v46  ;;  %v879_v26 = vadd.f32 %v878_v57, %v7905_v11  ;;  %v1473_v41 = vld [vmem:[%s11397_s6 + $0x2d0] sm:$0xff]  ;;  %v8797_v46 = vadd.f32 %v8587_v30, %v7824_v13  ;;  %v1468_v50 = vld [vmem:[%s11397_s6 + $0x2a8] sm:$0xff] }
 0x217   :  { %1948 = vperm.xlu0 %7395, %v1470_v36   ;;  %1928 = vperm.xlu2 %7397, %v1466_v16   ;;  %v8801_v12 = vadd.f32 %v8633_v34, %v7938_v52  ;;  %v927_v11 = vadd.f32 %v926_v51, %v8093_v15  ;;  %v8810_v19 = vadd.f32 %v8635_v18, %v7983_v39  ;;  %v1045_v57 = vmax.f32 %v882_v25, 0.0  ;;  %v11512_v15 = vld [vmem:[#allocation8_spill] sm:$0xff]  ;;  %v11513_v51 = vld [vmem:[#allocation106_spill] sm:$0xff]  ;;  %v11516_v8 = vld [vmem:[#allocation23_spill] sm:$0xff] }
 0x218   :  { %1923 = vperm.xlu1 %7396, %v1465_v5   ;;  %v876_v13 = vadd.f32 %v8656_v53, %v7849_v38  ;;  %v8816_v52 = vadd.f32 %v8589_v43, %v8002_v33  ;;  %v1061_v30 = vmax.f32 %v930_v49, 0.0  ;;  %v11515_v34 = vld [vmem:[#allocation94_spill] sm:$0xff]  ;;  %v1044_v18 = vmax.f32 %v879_v26, 0.0  ;;  %v11517_v53 = vld [vmem:[#allocation11_spill] sm:$0xff]  ;;  %v11519_v43 = vld [vmem:[#allocation48_spill] sm:$0xff] }
 0x219   :  { %v8747_v36 = vpop.permute.xlu0 %1738  ;;  %v977_v47 = vpop.f32.mrf.mxu2  ;;  %v870_v39 = vadd.f32 %v11515_v34, %v11514_v2  ;;  %v918_v56 = vadd.f32 %v11518_v63, %v11517_v53  ;;  %v1060_v33 = vmax.f32 %v927_v11, 0.0  ;;  %v1042_v24 = vmax.f32 %v8801_v12, 0.0  ;;  %v11525_v12 = vld [vmem:[#allocation27_spill] sm:$0xff] }
 0x21a   :  { %v1025_v44 = vpop.f32.mrf.mxu3  ;;  %v8762_v14 = vpop.permute.xlu2 %1763  ;;  %v978_v29 = vadd.f32 %v977_v47, %v11516_v8  ;;  %v1058_v25 = vmax.f32 %v8810_v19, 0.0  ;;  %v1043_v49 = vmax.f32 %v876_v13, 0.0  ;;  %v11523_v11 = vld [vmem:[#allocation113_spill] sm:$0xff]  ;;  %v11526_v19 = vld [vmem:[#allocation108_spill] sm:$0xff]  ;;  %v1472_v53 = vld [vmem:[%s11397_s6 + $0x2c8] sm:$0xff] }
 0x21b   :  { %v8777_v61 = vpop.permute.xlu1 %1713  ;;  %v884_v60 = vpop.f32.mrf.mxu0  ;;  %v1026_v37 = vadd.f32 %v1025_v44, %v11519_v43  ;;  %v11522_v44 = vld [vmem:[#allocation38_spill] sm:$0xff]  ;;  %v972_v13 = vadd.f32 %v11526_v19, %v11525_v12  ;;  %v1041_v63 = vmax.f32 %v870_v39, 0.0  ;;  %v11529_v43 = vld [vmem:[#allocation20_spill] sm:$0xff]  ;;  %v11534_v39 = vld [vmem:[#allocation97_spill] sm:$0xff] }
 0x21c   :  { %v885_v59 = vadd.f32 %v884_v60, %v7882_v17  ;;  %v932_v20 = vpop.f32.mrf.mxu1  ;;  %v11520_v60 = vld [vmem:[#allocation30_spill] sm:$0xff] }
 0x21d   :  { %v933_v17 = vadd.f32 %v932_v20, %v8056_v42  ;;  %v924_v42 = vadd.f32 %v11513_v51, %v11512_v15  ;;  %v1077_v15 = vmax.f32 %v978_v29, 0.0  ;;  %v1093_v34 = vmax.f32 %v1026_v37, 0.0  ;;  %v1471_v29 = vld [vmem:[%s11397_s6 + $0x2c0] sm:$0xff] }
 0x21e   :  { %v1046_v21 = vmax.f32 %v885_v59, 0.0  ;;  %v11536_v12 = vld [vmem:[#allocation98_spill] sm:$0xff] }
 0x21f   :  { %v1062_v45 = vmax.f32 %v933_v17, 0.0  ;;  %1963 = vperm.xlu0 %7395, %v1473_v41   ;;  %1943 = vperm.xlu2 %7397, %v1469_v0   ;;  %v1059_v20 = vmax.f32 %v924_v42, 0.0  ;;  %v11521_v41 = vld [vmem:[#allocation19_spill] sm:$0xff]  ;;  %v1023_v17 = vadd.f32 %v11523_v11, %v11522_v44  ;;  %v1056_v44 = vmax.f32 %v8816_v52, 0.0 }
 0x220   :  { %1938 = vperm.xlu1 %7396, %v1468_v50   ;;  %v1358_v38 = vpack.c.bf16 %v1046_v21, %v1045_v57  ;;  %v975_v0 = vadd.f32 %v8690_v6, %v11521_v41  ;;  %v11524_v50 = vld [vmem:[#allocation37_spill] sm:$0xff]  ;;  %v1476_v42 = vld [vmem:[%s11397_s6 + $0x2e8] sm:$0xff]  ;;  %v1040_v41 = vmax.f32 %v8797_v46, 0.0  ;;  %v1039_v46 = vmax.f32 %v8781_v58, 0.0 }
 0x221   :  { %v8826_v1 = vpop.permute.xlu0 %1753  ;;  %v980_v16 = vpop.f32.mrf.mxu2  ;;  %v1366_v5 = vpack.c.bf16 %v1062_v45, %v1061_v30  ;;  %v1357_v30 = vpack.c.bf16 %v1044_v18, %v1043_v49  ;;  %v11527_v45 = vld [vmem:[#allocation34_spill] sm:$0xff]  ;;  %v11528_v6 = vld [vmem:[#allocation109_spill] sm:$0xff]  ;;  %v1057_v18 = vmax.f32 %v918_v56, 0.0  ;;  %v11533_v11 = vld [vmem:[#allocation15_spill] sm:$0xff]  ;;  %v1055_v52 = vmax.f32 %v8785_v62, 0.0 }
 0x222   :  { %v981_v26 = vadd.f32 %v980_v16, %v11520_v60  ;;  %v1028_v47 = vpop.f32.mrf.mxu3  ;;  %v8831_v59 = vpop.permute.xlu2 %1778  ;;  %3431 = vmatpush.bf16.msrb.mxu1 %v1358_v38  ;;  %v1020_v2 = vadd.f32 %v11528_v6, %v11527_v45  ;;  %v1365_v38 = vpack.c.bf16 %v1060_v33, %v1059_v20  ;;  %v11530_v16 = vld [vmem:[#allocation102_spill] sm:$0xff]  ;;  %v11531_v60 = vld [vmem:[#allocation43_spill] sm:$0xff]  ;;  %v1092_v33 = vmax.f32 %v1023_v17, 0.0 }
 0x223   :  { %v1029_v57 = vadd.f32 %v1028_v47, %v11524_v50  ;;  %v8838_v21 = vpop.permute.xlu1 %1728  ;;  %3760 = vmatpush.bf16.msrb.mxu2 %v1366_v5  ;;  %v969_v5 = vadd.f32 %v11530_v16, %v11529_v43  ;;  %v1076_v47 = vmax.f32 %v975_v0, 0.0  ;;  %v966_v56 = vadd.f32 %v11534_v39, %v11533_v11  ;;  %v11539_v6 = vld [vmem:[#allocation31_spill] sm:$0xff]  ;;  %v1479_v16 = vld [vmem:[%s11397_s6 + $0x300] sm:$0xff]  ;;  %v11546_v11 = vld [vmem:[#allocation80_spill] sm:$0xff] }
 0x224   :  { %v1078_v51 = vmax.f32 %v981_v26, 0.0  ;;  %v11532_v26 = vld [vmem:[#allocation103_spill] sm:$0xff]  ;;  %v1356_v50 = vpack.c.bf16 %v1042_v24, %v1041_v63  ;;  %v1364_v17 = vpack.c.bf16 %v1058_v25, %v1057_v18  ;;  %v1038_v58 = vmax.f32 %v8770_v7, 0.0  ;;  %v11542_v63 = vld [vmem:[#allocation85_spill] sm:$0xff] }
 0x225   :  { %v1094_v8 = vmax.f32 %v1029_v57, 0.0  ;;  %v1017_v37 = vadd.f32 %v11532_v26, %v11531_v60  ;;  %v11535_v57 = vld [vmem:[#allocation35_spill] sm:$0xff]  ;;  %v1054_v62 = vmax.f32 %v8774_v3, 0.0  ;;  %v1355_v43 = vpack.c.bf16 %v1040_v41, %v1039_v46  ;;  %v1475_v7 = vld [vmem:[%s11397_s6 + $0x2e0] sm:$0xff]  ;;  %v1474_v3 = vld [vmem:[%s11397_s6 + $0x2d8] sm:$0xff] }
 0x226   :  { %3432 = vmatpush.bf16.msrb.mxu1 %v1357_v30  ;;  %v1374_v49 = vpack.c.bf16 %v1078_v51, %v1077_v15  ;;  %v1014_v19 = vadd.f32 %v11536_v12, %v11535_v57  ;;  %v1075_v15 = vmax.f32 %v972_v13, 0.0  ;;  %v1091_v51 = vmax.f32 %v1020_v2, 0.0  ;;  %v11537_v30 = vld [vmem:[#allocation24_spill] sm:$0xff]  ;;  %v11545_v41 = vld [vmem:[#allocation13_spill] sm:$0xff]  ;;  %v11550_v46 = vld [vmem:[#allocation75_spill] sm:$0xff] }
 0x227   :  { %3761 = vmatpush.bf16.msrb.mxu2 %v1365_v38  ;;  %1978 = vperm.xlu0 %7395, %v1476_v42   ;;  %v1382_v20 = vpack.c.bf16 %v1094_v8, %v1093_v34  ;;  %v11538_v42 = vld [vmem:[#allocation90_spill] sm:$0xff]  ;;  %v11540_v34 = vld [vmem:[#allocation91_spill] sm:$0xff]  ;;  %v1074_v13 = vmax.f32 %v969_v5, 0.0  ;;  %v1090_v2 = vmax.f32 %v1017_v37, 0.0  ;;  %v1073_v26 = vmax.f32 %v966_v56, 0.0  ;;  %v11547_v56 = vld [vmem:[#allocation32_spill] sm:$0xff] }
 0x228   :  { %1958 = vperm.xlu2 %7397, %v1472_v53   ;;  %1953 = vperm.xlu1 %7396, %v1471_v29   ;;  %v963_v45 = vadd.f32 %v11538_v42, %v11537_v30  ;;  %v1011_v24 = vadd.f32 %v11540_v34, %v11539_v6  ;;  %v1373_v53 = vpack.c.bf16 %v1076_v47, %v1075_v15  ;;  %v11541_v29 = vld [vmem:[#allocation17_spill] sm:$0xff]  ;;  %v11544_v5 = vld [vmem:[#allocation86_spill] sm:$0xff]  ;;  %v1089_v37 = vmax.f32 %v1014_v19, 0.0  ;;  %v11551_v30 = vld [vmem:[#allocation28_spill] sm:$0xff] }
 0x229   :  { %4089 = vmatpush.bf16.msrb.mxu3 %v1374_v49  ;;  %4418 = vmatpush.bf16.msrb.mxu0 %v1382_v20  ;;  %v8863_v0 = vpop.permute.xlu0 %1768  ;;  %v1381_v25 = vpack.c.bf16 %v1092_v33, %v1091_v51  ;;  %v960_v18 = vadd.f32 %v11542_v63, %v11541_v29  ;;  %v11543_v49 = vld [vmem:[#allocation40_spill] sm:$0xff]  ;;  %v1363_v47 = vpack.c.bf16 %v1056_v44, %v1055_v52  ;;  %v1037_v33 = vmax.f32 %v8759_v48, 0.0  ;;  %v11549_v48 = vld [vmem:[#allocation21_spill] sm:$0xff]  ;;  %v11556_v63 = vld [vmem:[#allocation71_spill] sm:$0xff] }
 0x22a   :  { %v8871_v8 = vpop.permute.xlu2 %1793  ;;  %3433 = vmatpush.bf16.msrb.mxu1 %v1356_v50  ;;  %v1008_v60 = vadd.f32 %v11544_v5, %v11543_v49  ;;  %v1053_v20 = vmax.f32 %v8766_v23, 0.0  ;;  %v957_v39 = vadd.f32 %v11546_v11, %v11545_v41  ;;  %v11548_v50 = vld [vmem:[#allocation81_spill] sm:$0xff]  ;;  %v1072_v44 = vmax.f32 %v963_v45, 0.0  ;;  %v11552_v42 = vld [vmem:[#allocation76_spill] sm:$0xff] }
 0x22b   :  { %v8873_v38 = vpop.permute.xlu1 %1743  ;;  %3762 = vmatpush.bf16.msrb.mxu2 %v1364_v17  ;;  %v1005_v57 = vadd.f32 %v11548_v50, %v11547_v56  ;;  %v1088_v12 = vmax.f32 %v1011_v24, 0.0  ;;  %v1372_v19 = vpack.c.bf16 %v1074_v13, %v1073_v26  ;;  %v1380_v15 = vpack.c.bf16 %v1090_v2, %v1089_v37  ;;  %v11553_v2 = vld [vmem:[#allocation14_spill] sm:$0xff]  ;;  %v11555_v29 = vld [vmem:[#allocation36_spill] sm:$0xff]  ;;  %v11558_v26 = vld [vmem:[#allocation65_spill] sm:$0xff] }
 0x22c   :  { %v1036_v51 = vmax.f32 %v8751_v4, 0.0  ;;  %v1052_v17 = vmax.f32 %v8755_v22, 0.0  ;;  %v954_v23 = vadd.f32 %v11550_v46, %v11549_v48  ;;  %v1354_v52 = vpack.c.bf16 %v1038_v58, %v1037_v33  ;;  %v11560_v33 = vld [vmem:[#allocation66_spill] sm:$0xff] }
 0x22d   :  { %4090 = vmatpush.bf16.msrb.mxu3 %v1373_v53  ;;  %4419 = vmatpush.bf16.msrb.mxu0 %v1381_v25  ;;  %v1002_v6 = vadd.f32 %v11552_v42, %v11551_v30  ;;  %v1071_v34 = vmax.f32 %v960_v18, 0.0  ;;  %v1087_v45 = vmax.f32 %v1008_v60, 0.0  ;;  %v1362_v13 = vpack.c.bf16 %v1054_v62, %v1053_v20  ;;  %v11554_v53 = vld [vmem:[#allocation70_spill] sm:$0xff]  ;;  %v11566_v42 = vld [vmem:[#allocation55_spill] sm:$0xff] }
 0x22e   :  { %3434 = vmatpush.bf16.msrb.mxu1 %v1355_v43  ;;  %v1035_v4 = vmax.f32 %v8741_v27, 0.0  ;;  %v1051_v22 = vmax.f32 %v8745_v54, 0.0  ;;  %v951_v25 = vadd.f32 %v11554_v53, %v11553_v2  ;;  %v999_v58 = vadd.f32 %v11556_v63, %v11555_v29  ;;  %v11557_v60 = vld [vmem:[#allocation10_spill] sm:$0xff] }
 0x22f   :  { %3763 = vmatpush.bf16.msrb.mxu2 %v1363_v47  ;;  %1993 = vperm.xlu0 %7395, %v1479_v16   ;;  %v1070_v18 = vmax.f32 %v957_v39, 0.0  ;;  %v1086_v16 = vmax.f32 %v1005_v57, 0.0  ;;  %v1371_v5 = vpack.c.bf16 %v1072_v44, %v1071_v34  ;;  %v1379_v62 = vpack.c.bf16 %v1088_v12, %v1087_v45  ;;  %v11561_v57 = vld [vmem:[#allocation18_spill] sm:$0xff]  ;;  %v11562_v44 = vld [vmem:[#allocation60_spill] sm:$0xff]  ;;  %v11567_v34 = vld [vmem:[#allocation33_spill] sm:$0xff] }
 0x230   :  { %1973 = vperm.xlu2 %7397, %v1475_v7   ;;  %1968 = vperm.xlu1 %7396, %v1474_v3   ;;  %v1034_v27 = vmax.f32 %v8733_v31, 0.0  ;;  %v1050_v54 = vmax.f32 %v8737_v40, 0.0  ;;  %v948_v37 = vadd.f32 %v11558_v26, %v11557_v60  ;;  %v1353_v47 = vpack.c.bf16 %v1036_v51, %v1035_v4  ;;  %v1482_v7 = vld [vmem:[%s11397_s6 + $0x318] sm:$0xff]  ;;  %v1477_v40 = vld [vmem:[%s11397_s6 + $0x2f0] sm:$0xff] }
 0x231   :  { %4091 = vmatpush.bf16.msrb.mxu3 %v1372_v19  ;;  %4420 = vmatpush.bf16.msrb.mxu0 %v1380_v15  ;;  %v8902_v24 = vpop.permute.xlu0 %1783  ;;  %v11559_v3 = vld [vmem:[#allocation29_spill] sm:$0xff]  ;;  %v1069_v41 = vmax.f32 %v954_v23, 0.0  ;;  %v1085_v11 = vmax.f32 %v1002_v6, 0.0  ;;  %v1361_v39 = vpack.c.bf16 %v1052_v17, %v1051_v22  ;;  %v1033_v56 = vmax.f32 %v8725_v32, 0.0  ;;  %v11565_v32 = vld [vmem:[#allocation12_spill] sm:$0xff] }
 0x232   :  { %v8910_v43 = vpop.permute.xlu2 %1808  ;;  %3435 = vmatpush.bf16.msrb.mxu1 %v1354_v52  ;;  %v996_v20 = vadd.f32 %v11560_v33, %v11559_v3  ;;  %v1478_v31 = vld [vmem:[%s11397_s6 + $0x2f8] sm:$0xff]  ;;  %v1049_v50 = vmax.f32 %v8729_v10, 0.0  ;;  %v945_v12 = vadd.f32 %v11562_v44, %v11561_v57  ;;  %v1068_v17 = vmax.f32 %v951_v25, 0.0  ;;  %v7085_v26 = vld [vmem:[%s11396_s5 + $0xc] sm:$0xf0]  ;;  %v1480_v44 = vld [vmem:[%s11397_s6 + $0x308] sm:$0xff] }
 0x233   :  { %v8912_v49 = vpop.permute.xlu1 %1758  ;;  %3764 = vmatpush.bf16.msrb.mxu2 %v1362_v13  ;;  %v11563_v19 = vld [vmem:[#allocation25_spill] sm:$0xff]  ;;  %v1084_v48 = vmax.f32 %v999_v58, 0.0  ;;  %v1370_v46 = vpack.c.bf16 %v1070_v18, %v1069_v41  ;;  %v1378_v23 = vpack.c.bf16 %v1086_v16, %v1085_v11  ;;  %v1032_v52 = vmax.f32 %v8717_v35, 0.0  ;;  %v11568_v45 = vld [vmem:[#allocation56_spill] sm:$0xff]  ;;  %v11570_v16 = vld [vmem:[#allocation50_spill] sm:$0xff] }
 0x234   :  { %v11564_v15 = vld [vmem:[#allocation61_spill] sm:$0xff]  ;;  %v1048_v30 = vmax.f32 %v8721_v9, 0.0  ;;  %v942_v10 = vadd.f32 %v11566_v42, %v11565_v32  ;;  %v1352_v6 = vpack.c.bf16 %v1034_v27, %v1033_v56  ;;  %v990_v13 = vadd.f32 %v11568_v45, %v11567_v34  ;;  %v11572_v27 = vld [vmem:[#allocation51_spill] sm:$0xff]  ;;  %v11575_v11 = vld [vmem:[#allocation22_spill] sm:$0xff] }
 0x235   :  { %4092 = vmatpush.bf16.msrb.mxu3 %v1371_v5  ;;  %4421 = vmatpush.bf16.msrb.mxu0 %v1379_v62  ;;  %v993_v51 = vadd.f32 %v11564_v15, %v11563_v19  ;;  %v1067_v4 = vmax.f32 %v948_v37, 0.0  ;;  %v1083_v22 = vmax.f32 %v996_v20, 0.0  ;;  %v1360_v53 = vpack.c.bf16 %v1050_v54, %v1049_v50  ;;  %v6061_v58 = vld [vmem:[%s11396_s5] sm:$0xf]  ;;  %v7083_v37 = vld [vmem:[%s11396_s5 + $0x4] sm:$0xf] }
 0x236   :  { %3436 = vmatpush.bf16.msrb.mxu1 %v1353_v47  ;;  %v1031_v35 = vmax.f32 %v8709_v28, 0.0  ;;  %v1047_v9 = vmax.f32 %v8713_v55, 0.0  ;;  %v1066_v25 = vmax.f32 %v945_v12, 0.0  ;;  %v11569_v18 = vld [vmem:[#allocation9_spill] sm:$0xff]  ;;  %v11571_v62 = vld [vmem:[#allocation26_spill] sm:$0xff]  ;;  %v1485_v41 = vld [vmem:[%s11397_s6 + $0x330] sm:$0xff]  ;;  %v6062_v12 = vor.u32 %v7085_v26, %v6061_v58 }
 0x237   :  { %3765 = vmatpush.bf16.msrb.mxu2 %v1361_v39  ;;  %2008 = vperm.xlu0 %7395, %v1482_v7   ;;  %v1082_v29 = vmax.f32 %v993_v51, 0.0  ;;  %v939_v5 = vadd.f32 %v11570_v16, %v11569_v18  ;;  %v987_v60 = vadd.f32 %v11572_v27, %v11571_v62  ;;  %v1369_v28 = vpack.c.bf16 %v1068_v17, %v1067_v4  ;;  %v6063_v47 = vld [vmem:[%s11396_s5 + $0x10] sm:$0xf0]  ;;  %v11574_v3 = vld [vmem:[#allocation45_spill] sm:$0xff]  ;;  %v11576_v39 = vld [vmem:[#allocation46_spill] sm:$0xff] }
 0x238   :  { %1988 = vperm.xlu2 %7397, %v1478_v31   ;;  %1983 = vperm.xlu1 %7396, %v1477_v40   ;;  %v1377_v55 = vpack.c.bf16 %v1084_v48, %v1083_v22  ;;  %v11573_v7 = vld [vmem:[#allocation16_spill] sm:$0xff]  ;;  %v1351_v20 = vpack.c.bf16 %v1032_v52, %v1031_v35  ;;  %v984_v31 = vadd.f32 %v11576_v39, %v11575_v11  ;;  %v1065_v40 = vmax.f32 %v942_v10, 0.0  ;;  %v7084_v10 = vld [vmem:[%s11396_s5 + $0xc] sm:$0xf]  ;;  %v6077_v58 = vld [vmem:[%s11396_s5 + $0x20] sm:$0xf] }
 0x239   :  { %4093 = vmatpush.bf16.msrb.mxu3 %v1370_v46  ;;  %4422 = vmatpush.bf16.msrb.mxu0 %v1378_v23  ;;  %v8941_v2 = vpop.permute.xlu0 %1798  ;;  %v936_v33 = vadd.f32 %v11574_v3, %v11573_v7  ;;  %v1081_v56 = vmax.f32 %v990_v13, 0.0  ;;  %v1359_v50 = vpack.c.bf16 %v1048_v30, %v1047_v9  ;;  %v1481_v57 = vld [vmem:[%s11397_s6 + $0x310] sm:$0xff]  ;;  %v6066_v19 = vor.u32 %v7083_v37, %v6063_v47  ;;  %v6069_v30 = vld [vmem:[%s11396_s5 + $0x8] sm:$0xf]  ;;  %v7086_v32 = vld [vmem:[%s11396_s5 + $0x14] sm:$0xf0] }
 0x23a   :  { %v8945_v63 = vpop.permute.xlu2 %1823  ;;  %3437 = vmatpush.bf16.msrb.mxu1 %v1352_v6  ;;  %v1064_v15 = vmax.f32 %v939_v5, 0.0  ;;  %v1080_v51 = vmax.f32 %v987_v60, 0.0  ;;  %v1368_v17 = vpack.c.bf16 %v1066_v25, %v1065_v40  ;;  %v1079_v23 = vmax.f32 %v984_v31, 0.0  ;;  %v6071_v6 = vld [vmem:[%s11396_s5 + $0x18] sm:$0xf0]  ;;  %v1488_v4 = vld [vmem:[%s11397_s6 + $0x348] sm:$0xff] }
 0x23b   :  { %v8954_v54 = vpop.permute.xlu1 %1773  ;;  %3766 = vmatpush.bf16.msrb.mxu2 %v1360_v53  ;;  %v1376_v48 = vpack.c.bf16 %v1082_v29, %v1081_v56  ;;  %v1063_v46 = vmax.f32 %v936_v33, 0.0  ;;  %v6070_v22 = vor.u32 %v7086_v32, %v6069_v30  ;;  %v1484_v53 = vld [vmem:[%s11397_s6 + $0x328] sm:$0xff]  ;;  %v6074_v35 = vor.u32 %v7084_v10, %v6071_v6  ;;  %v1483_v9 = vld [vmem:[%s11397_s6 + $0x320] sm:$0xff]  ;;  %v7089_v16 = vld [vmem:[%s11396_s5 + $0x2c] sm:$0xf0] }
 0x23c   :  { %v1375_v13 = vpack.c.bf16 %v1080_v51, %v1079_v23  ;;  %v7087_v5 = vld [vmem:[%s11396_s5 + $0x24] sm:$0xf]  ;;  %v6079_v62 = vld [vmem:[%s11396_s5 + $0x30] sm:$0xf0]  ;;  %v6085_v47 = vld [vmem:[%s11396_s5 + $0x28] sm:$0xf] }
 0x23d   :  { %4094 = vmatpush.bf16.msrb.mxu3 %v1369_v28  ;;  %4423 = vmatpush.bf16.msrb.mxu0 %v1377_v55  ;;  %v1367_v45 = vpack.c.bf16 %v1064_v15, %v1063_v46  ;;  %v1491_v27 = vld [vmem:[%s11397_s6 + $0x360] sm:$0xff]  ;;  %v1486_v28 = vld [vmem:[%s11397_s6 + $0x338] sm:$0xff]  ;;  %v6078_v55 = vor.u32 %v7089_v16, %v6077_v58  ;;  %v6082_v26 = vor.u32 %v7087_v5, %v6079_v62  ;;  %v7088_v33 = vld [vmem:[%s11396_s5 + $0x2c] sm:$0xf] }
 0x23e   :  { %3438 = vmatpush.bf16.msrb.mxu1 %v1351_v20  ;;  %v1487_v60 = vld [vmem:[%s11397_s6 + $0x340] sm:$0xff]  ;;  %v7090_v7 = vld [vmem:[%s11396_s5 + $0x34] sm:$0xf0]  ;;  %v6087_v20 = vld [vmem:[%s11396_s5 + $0x38] sm:$0xf0] }
 0x23f   :  { %3767 = vmatpush.bf16.msrb.mxu2 %v1359_v50  ;;  %2023 = vperm.xlu0 %7395, %v1485_v41   ;;  %v1494_v11 = vld [vmem:[%s11397_s6 + $0x378] sm:$0xff]  ;;  %v6086_v39 = vor.u32 %v7090_v7, %v6085_v47  ;;  %v6090_v40 = vor.u32 %v7088_v33, %v6087_v20  ;;  %v1489_v56 = vld [vmem:[%s11397_s6 + $0x350] sm:$0xff]  ;;  %v7091_v15 = vld [vmem:[%s11396_s5 + $0x44] sm:$0xf] }
 0x240   :  { %2003 = vperm.xlu2 %7397, %v1481_v57   ;;  %1998 = vperm.xlu1 %7396, %v1480_v44   ;;  %v1490_v31 = vld [vmem:[%s11397_s6 + $0x358] sm:$0xff]  ;;  %v6093_v44 = vld [vmem:[%s11396_s5 + $0x40] sm:$0xf]  ;;  %v6095_v51 = vld [vmem:[%s11396_s5 + $0x50] sm:$0xf0] }
 0x241   :  { %4095 = vmatpush.bf16.msrb.mxu3 %v1368_v17  ;;  %4424 = vmatpush.bf16.msrb.mxu0 %v1376_v48  ;;  %v8978_v52 = vpop.permute.xlu0 %1813  ;;  %v1497_v17 = vld [vmem:[%s11397_s6 + $0x390] sm:$0xff]  ;;  %v1492_v46 = vld [vmem:[%s11397_s6 + $0x368] sm:$0xff]  ;;  %v6098_v30 = vor.u32 %v7091_v15, %v6095_v51  ;;  %v7094_v6 = vld [vmem:[%s11396_s5 + $0x54] sm:$0xf0] }
 0x242   :  { %3439 = vmatmul.bf16.vlgmr.msrb.gmra.mxu1 %v6062_v12  ;;  %3768 = vmatmul.bf16.vlgmr.msrb.gmra.mxu2 %v6066_v19  ;;  %v8986_v42 = vpop.permute.xlu2 %1838  ;;  %v7093_v19 = vld [vmem:[%s11396_s5 + $0x4c] sm:$0xf0]  ;;  %v6101_v10 = vld [vmem:[%s11396_s5 + $0x48] sm:$0xf]  ;;  %v1495_v16 = vld [vmem:[%s11397_s6 + $0x380] sm:$0xff] }
 0x243   :  { %v8994_v34 = vpop.permute.xlu1 %1788  ;;  %v1493_v48 = vld [vmem:[%s11397_s6 + $0x370] sm:$0xff]  ;;  %v6094_v23 = vor.u32 %v7093_v19, %v6093_v44  ;;  %v1503_v47 = vld [vmem:[%s11397_s6 + $0x3c0] sm:$0xff]  ;;  %v1498_v33 = vld [vmem:[%s11397_s6 + $0x398] sm:$0xff] }
 0x244   :  { %v1499_v7 = vld [vmem:[%s11397_s6 + $0x3a0] sm:$0xff]  ;;  %v7096_v44 = vld [vmem:[%s11396_s5 + $0x6c] sm:$0xf]  ;;  %v6119_v19 = vld [vmem:[%s11396_s5 + $0x78] sm:$0xf0] }
 0x245   :  { %4096 = vmatpush.bf16.msrb.mxu3 %v1367_v45  ;;  %4425 = vmatpush.bf16.msrb.mxu0 %v1375_v13  ;;  %v7092_v13 = vld [vmem:[%s11396_s5 + $0x4c] sm:$0xf]  ;;  %v1506_v51 = vld [vmem:[%s11397_s6 + $0x3d8] sm:$0xff] }
 0x247   :  { %2038 = vperm.xlu0 %7395, %v1488_v4   ;;  %v6103_v4 = vld [vmem:[%s11396_s5 + $0x58] sm:$0xf0] }
 0x248   :  { %4097 = vmatmul.bf16.vlgmr.msrb.gmra.mxu3 %v6070_v22  ;;  %2018 = vperm.xlu2 %7397, %v1484_v53   ;;  %v1500_v53 = vld [vmem:[%s11397_s6 + $0x3a8] sm:$0xff]  ;;  %v6106_v58 = vor.u32 %v7092_v13, %v6103_v4  ;;  %v7101_v4 = vld [vmem:[%s11396_s5 + $0x8c] sm:$0xf0] }
 0x249   :  { %2013 = vperm.xlu1 %7396, %v1483_v9   ;;  %v9005_v25 = vpop.permute.xlu0 %1828  ;;  %4426 = vmatmul.bf16.vlgmr.msrb.gmra.mxu0 %v6074_v35  ;;  %v6102_v35 = vor.u32 %v7094_v6, %v6101_v10  ;;  %v1496_v9 = vld [vmem:[%s11397_s6 + $0x388] sm:$0xff]  ;;  %v6125_v6 = vld [vmem:[%s11396_s5 + $0x80] sm:$0xf] }
 0x24a   :  { %v9007_v29 = vpop.permute.xlu2 %1853 }
 0x24b   :  { %v9012_v18 = vpop.permute.xlu1 %1803 }
 0x24f   :  { %2053 = vperm.xlu0 %7395, %v1491_v27   ;;  %v6109_v27 = vld [vmem:[%s11396_s5 + $0x60] sm:$0xf] }
 0x250   :  { %2033 = vperm.xlu2 %7397, %v1487_v60  }
 0x251   :  { %2028 = vperm.xlu1 %7396, %v1486_v28   ;;  %v9032_v37 = vpop.permute.xlu0 %1843  ;;  %v7097_v28 = vld [vmem:[%s11396_s5 + $0x6c] sm:$0xf0] }
 0x252   :  { %3444 = vmatmul.bf16.gmra.mxu1 %v6078_v55  ;;  %3773 = vmatmul.bf16.gmra.mxu2 %v6082_v26  ;;  %v9040_v3 = vpop.permute.xlu2 %1868  ;;  %v7095_v55 = vld [vmem:[%s11396_s5 + $0x64] sm:$0xf]  ;;  %v6111_v26 = vld [vmem:[%s11396_s5 + $0x70] sm:$0xf0]  ;;  %v6110_v20 = vor.u32 %v7097_v28, %v6109_v27  ;;  %v6126_v27 = vor.u32 %v7101_v4, %v6125_v6  ;;  %v7105_v6 = vld [vmem:[%s11396_s5 + $0xac] sm:$0xf0] }
 0x253   :  { %v9048_v41 = vpop.permute.xlu1 %1818  ;;  %v7103_v4 = vld [vmem:[%s11396_s5 + $0xa4] sm:$0xf] }
 0x257   :  { %2068 = vperm.xlu0 %7395, %v1494_v11   ;;  %v6114_v11 = vor.u32 %v7095_v55, %v6111_v26  ;;  %v6133_v26 = vld [vmem:[%s11396_s5 + $0x88] sm:$0xf] }
 0x258   :  { %4102 = vmatmul.bf16.gmra.mxu3 %v6086_v39  ;;  %2048 = vperm.xlu2 %7397, %v1490_v31   ;;  %v6117_v31 = vld [vmem:[%s11396_s5 + $0x68] sm:$0xf] }
 0x259   :  { %2043 = vperm.xlu1 %7396, %v1489_v56   ;;  %v9059_v50 = vpop.permute.xlu0 %1858  ;;  %4431 = vmatmul.bf16.gmra.mxu0 %v6090_v40  ;;  %v7098_v40 = vld [vmem:[%s11396_s5 + $0x74] sm:$0xf0] }
 0x25a   :  { %v9061_v57 = vpop.permute.xlu2 %1883 }
 0x25b   :  { %v9066_v12 = vpop.permute.xlu1 %1833 }
 0x25f   :  { %2083 = vperm.xlu0 %7395, %v1497_v17   ;;  %v6118_v17 = vor.u32 %v7098_v40, %v6117_v31  ;;  %v4876_v31 = vld [vmem:[%s11398_s7 + $0x8] sm:$0xff] }
 0x260   :  { %2063 = vperm.xlu2 %7397, %v1493_v48   ;;  %v1502_v48 = vld [vmem:[%s11397_s6 + $0x3b8] sm:$0xff] }
 0x261   :  { %2058 = vperm.xlu1 %7396, %v1492_v46   ;;  %v9086_v32 = vpop.permute.xlu0 %1873  ;;  %v6122_v46 = vor.u32 %v7096_v44, %v6119_v19  ;;  %v1508_v44 = vld [vmem:[%s11397_s6 + $0x3e8] sm:$0xff] }
 0x262   :  { %3449 = vmatmul.bf16.gmra.mxu1 %v6094_v23  ;;  %3778 = vmatmul.bf16.gmra.mxu2 %v6098_v30  ;;  %v9094_v45 = vpop.permute.xlu2 %1898  ;;  %v1501_v23 = vld [vmem:[%s11397_s6 + $0x3b0] sm:$0xff] }
 0x263   :  { %v9102_v22 = vpop.permute.xlu1 %1848 }
 0x267   :  { %2098 = vperm.xlu0 %7395, %v1500_v53   ;;  %v7099_v53 = vld [vmem:[%s11396_s5 + $0x84] sm:$0xf] }
 0x268   :  { %4107 = vmatmul.bf16.gmra.mxu3 %v6102_v35  ;;  %2078 = vperm.xlu2 %7397, %v1496_v9   ;;  %v6127_v35 = vld [vmem:[%s11396_s5 + $0x90] sm:$0xf0] }
 0x269   :  { %2073 = vperm.xlu1 %7396, %v1495_v16   ;;  %v9113_v5 = vpop.permute.xlu0 %1888  ;;  %4436 = vmatmul.bf16.gmra.mxu0 %v6106_v58  ;;  %v1509_v9 = vld [vmem:[%s11397_s6 + $0x3f0] sm:$0xff]  ;;  %v1504_v16 = vld [vmem:[%s11397_s6 + $0x3c8] sm:$0xff]  ;;  %v6130_v28 = vor.u32 %v7099_v53, %v6127_v35  ;;  %v4879_v35 = vld [vmem:[%s11398_s7 + $0x20] sm:$0xff] }
 0x26a   :  { %v9115_v62 = vpop.permute.xlu2 %1913  ;;  %v1505_v58 = vld [vmem:[%s11397_s6 + $0x3d0] sm:$0xff] }
 0x26b   :  { %11577 = vst [vmem:[#allocation6_spill] sm:$0xff] %v9115_v62  ;;  %v9120_v60 = vpop.permute.xlu1 %1863  ;;  %v6143_v53 = vld [vmem:[%s11396_s5 + $0xb0] sm:$0xf0] }
 0x26f   :  { %2113 = vperm.xlu0 %7395, %v1503_v47   ;;  %v7102_v47 = vld [vmem:[%s11396_s5 + $0x94] sm:$0xf0] }
 0x270   :  { %2093 = vperm.xlu2 %7397, %v1499_v7   ;;  %v6134_v40 = vor.u32 %v7102_v47, %v6133_v26  ;;  %v6149_v26 = vld [vmem:[%s11396_s5 + $0xa8] sm:$0xf]  ;;  %v7106_v47 = vld [vmem:[%s11396_s5 + $0xb4] sm:$0xf0] }
 0x271   :  { %2088 = vperm.xlu1 %7396, %v1498_v33   ;;  %v9140_v39 = vpop.permute.xlu0 %1903  ;;  %v7100_v33 = vld [vmem:[%s11396_s5 + $0x8c] sm:$0xf] }
 0x272   :  { %3454 = vmatmul.bf16.gmra.mxu1 %v6110_v20  ;;  %3783 = vmatmul.bf16.gmra.mxu2 %v6114_v11  ;;  %v9148_v56 = vpop.permute.xlu2 %1928  ;;  %v6135_v20 = vld [vmem:[%s11396_s5 + $0x98] sm:$0xf0] }
 0x273   :  { %11578 = vst [vmem:[#allocation8_spill] sm:$0xff] %v9148_v56  ;;  %v9156_v15 = vpop.permute.xlu1 %1878  ;;  %v6138_v19 = vor.u32 %v7100_v33, %v6135_v20  ;;  %v7104_v20 = vld [vmem:[%s11396_s5 + $0xac] sm:$0xf] }
 0x277   :  { %2128 = vperm.xlu0 %7395, %v1506_v51   ;;  %v1507_v51 = vld [vmem:[%s11397_s6 + $0x3e0] sm:$0xff] }
 0x278   :  { %4112 = vmatmul.bf16.gmra.mxu3 %v6118_v17  ;;  %2108 = vperm.xlu2 %7397, %v1502_v48  }
 0x279   :  { %2103 = vperm.xlu1 %7396, %v1501_v23   ;;  %v9167_v30 = vpop.permute.xlu0 %1918  ;;  %4441 = vmatmul.bf16.gmra.mxu0 %v6122_v46  ;;  %v6141_v46 = vld [vmem:[%s11396_s5 + $0xa0] sm:$0xf] }
 0x27a   :  { %11579 = vst [vmem:[#allocation106_spill] sm:$0xff] %v9167_v30  ;;  %v9169_v10 = vpop.permute.xlu2 %1943 }
 0x27b   :  { %11580 = vst [vmem:[#allocation7_spill] sm:$0xff] %v9169_v10  ;;  %v9174_v13 = vpop.permute.xlu1 %1893 }
 0x27f   :  { %2143 = vperm.xlu0 %7395, %v1509_v9   ;;  %v4875_v9 = vld [vmem:[%s11398_s7] sm:$0xff] }
 0x280   :  { %2123 = vperm.xlu2 %7397, %v1505_v58   ;;  %v1510_v58 = vld [vmem:[%s11397_s6 + $0x3f8] sm:$0xff] }
 0x281   :  { %2118 = vperm.xlu1 %7396, %v1504_v16   ;;  %v9194_v55 = vpop.permute.xlu0 %1933  ;;  %v6142_v16 = vor.u32 %v7105_v6, %v6141_v46  ;;  %v4877_v6 = vld [vmem:[%s11398_s7 + $0x10] sm:$0xff] }
 0x282   :  { %11581 = vst [vmem:[#allocation94_spill] sm:$0xff] %v9194_v55  ;;  %3459 = vmatmul.bf16.gmra.mxu1 %v6126_v27  ;;  %3788 = vmatmul.bf16.gmra.mxu2 %v6130_v28  ;;  %v9202_v7 = vpop.permute.xlu2 %1958  ;;  %v6146_v27 = vor.u32 %v7103_v4, %v6143_v53 }
 0x283   :  { %11582 = vst [vmem:[#allocation23_spill] sm:$0xff] %v9202_v7  ;;  %v9210_v11 = vpop.permute.xlu1 %1908 }
 0x287   :  { %5010 = vperm.xlu0 %7395, %v4876_v31   ;;  %v6151_v31 = vld [vmem:[%s11396_s5 + $0xb8] sm:$0xf0] }
 0x288   :  { %4117 = vmatmul.bf16.gmra.mxu3 %v6134_v40  ;;  %2138 = vperm.xlu2 %7397, %v1508_v44   ;;  %v4882_v44 = vld [vmem:[%s11398_s7 + $0x38] sm:$0xff]  ;;  %v6154_v46 = vor.u32 %v7104_v20, %v6151_v31  ;;  %v4880_v20 = vld [vmem:[%s11398_s7 + $0x28] sm:$0xff] }
 0x289   :  { %2133 = vperm.xlu1 %7396, %v1507_v51   ;;  %v9221_v17 = vpop.permute.xlu0 %1948  ;;  %4446 = vmatmul.bf16.gmra.mxu0 %v6138_v19  ;;  %v6150_v19 = vor.u32 %v7106_v47, %v6149_v26  ;;  %v4878_v51 = vld [vmem:[%s11398_s7 + $0x18] sm:$0xff]  ;;  %v4885_v26 = vld [vmem:[%s11398_s7 + $0x50] sm:$0xff] }
 0x28a   :  { %11583 = vst [vmem:[#allocation11_spill] sm:$0xff] %v9221_v17  ;;  %v9223_v48 = vpop.permute.xlu2 %1973  ;;  %v4881_v47 = vld [vmem:[%s11398_s7 + $0x30] sm:$0xff] }
 0x28b   :  { %11584 = vst [vmem:[#allocation95_spill] sm:$0xff] %v9223_v48  ;;  %v9228_v23 = vpop.permute.xlu1 %1923 }
 0x28c   :  { %11585 = vst [vmem:[#allocation48_spill] sm:$0xff] %v9228_v23 }
 0x28f   :  { %5025 = vperm.xlu0 %7395, %v4879_v35   ;;  %v6157_v35 = vld [vmem:[%s11396_s5 + $0xc0] sm:$0xf] }
 0x290   :  { %5005 = vperm.xlu2 %7397, %v4875_v9  }
 0x291   :  { %2148 = vperm.xlu1 %7396, %v1510_v58   ;;  %v9248_v28 = vpop.permute.xlu0 %1963  ;;  %v7109_v58 = vld [vmem:[%s11396_s5 + $0xcc] sm:$0xf0] }
 0x292   :  { %11586 = vst [vmem:[#allocation30_spill] sm:$0xff] %v9248_v28  ;;  %3464 = vmatmul.bf16.gmra.mxu1 %v6142_v16  ;;  %3793 = vmatmul.bf16.gmra.mxu2 %v6146_v27  ;;  %v9256_v33 = vpop.permute.xlu2 %1988  ;;  %v7107_v16 = vld [vmem:[%s11396_s5 + $0xc4] sm:$0xf]  ;;  %v6159_v27 = vld [vmem:[%s11396_s5 + $0xd0] sm:$0xf0]  ;;  %v6158_v31 = vor.u32 %v7109_v58, %v6157_v35 }
 0x293   :  { %11587 = vst [vmem:[#allocation19_spill] sm:$0xff] %v9256_v33  ;;  %v9264_v40 = vpop.permute.xlu1 %1938  ;;  %v7108_v35 = vld [vmem:[%s11396_s5 + $0xcc] sm:$0xf]  ;;  %v6167_v58 = vld [vmem:[%s11396_s5 + $0xd8] sm:$0xf0] }
 0x294   :  { %11588 = vst [vmem:[#allocation38_spill] sm:$0xff] %v9264_v40 }
 0x297   :  { %5040 = vperm.xlu0 %7395, %v4882_v44   ;;  %v6162_v44 = vor.u32 %v7107_v16, %v6159_v27  ;;  %v4888_v27 = vld [vmem:[%s11398_s7 + $0x68] sm:$0xff] }
 0x298   :  { %4122 = vmatmul.bf16.gmra.mxu3 %v6150_v19  ;;  %5020 = vperm.xlu2 %7397, %v4878_v51   ;;  %v6165_v51 = vld [vmem:[%s11396_s5 + $0xc8] sm:$0xf] }
 0x299   :  { %5015 = vperm.xlu1 %7396, %v4877_v6   ;;  %v9275_v4 = vpop.permute.xlu0 %1978  ;;  %4451 = vmatmul.bf16.gmra.mxu0 %v6154_v46  ;;  %v7110_v46 = vld [vmem:[%s11396_s5 + $0xd4] sm:$0xf0] }
 0x29a   :  { %11589 = vst [vmem:[#allocation113_spill] sm:$0xff] %v9275_v4  ;;  %v9277_v53 = vpop.permute.xlu2 %2003  ;;  %v4895_v4 = vld [vmem:[%s11398_s7 + $0xa0] sm:$0xff] }
 0x29b   :  { %11590 = vst [vmem:[#allocation37_spill] sm:$0xff] %v9277_v53  ;;  %v9282_v9 = vpop.permute.xlu1 %1953  ;;  %v6181_v53 = vld [vmem:[%s11396_s5 + $0xe8] sm:$0xf] }
 0x29c   :  { %11591 = vst [vmem:[#allocation27_spill] sm:$0xff] %v9282_v9 }
 0x29f   :  { %5055 = vperm.xlu0 %7395, %v4885_v26   ;;  %v6166_v26 = vor.u32 %v7110_v46, %v6165_v51  ;;  %v6173_v51 = vld [vmem:[%s11396_s5 + $0xe0] sm:$0xf] }
 0x2a0   :  { %5035 = vperm.xlu2 %7397, %v4881_v47   ;;  %v4884_v47 = vld [vmem:[%s11398_s7 + $0x48] sm:$0xff] }
 0x2a1   :  { %5030 = vperm.xlu1 %7396, %v4880_v20   ;;  %v9302_v19 = vpop.permute.xlu0 %1993  ;;  %v6170_v20 = vor.u32 %v7108_v35, %v6167_v58  ;;  %v7113_v35 = vld [vmem:[%s11396_s5 + $0xec] sm:$0xf0]  ;;  %v7111_v58 = vld [vmem:[%s11396_s5 + $0xe4] sm:$0xf] }
 0x2a2   :  { %11592 = vst [vmem:[#allocation108_spill] sm:$0xff] %v9302_v19  ;;  %3469 = vmatmul.bf16.gmra.mxu1 %v6158_v31  ;;  %3798 = vmatmul.bf16.gmra.mxu2 %v6162_v44  ;;  %v9310_v6 = vpop.permute.xlu2 %2018  ;;  %v4883_v31 = vld [vmem:[%s11398_s7 + $0x40] sm:$0xff]  ;;  %v7114_v19 = vld [vmem:[%s11396_s5 + $0xf4] sm:$0xf0] }
 0x2a3   :  { %11593 = vst [vmem:[#allocation34_spill] sm:$0xff] %v9310_v6  ;;  %v9318_v16 = vpop.permute.xlu1 %1968 }
 0x2a4   :  { %11594 = vst [vmem:[#allocation109_spill] sm:$0xff] %v9318_v16  ;;  %v4898_v16 = vld [vmem:[%s11398_s7 + $0xb8] sm:$0xff] }
 0x2a7   :  { %5070 = vperm.xlu0 %7395, %v4888_v27   ;;  %v6175_v27 = vld [vmem:[%s11396_s5 + $0xf0] sm:$0xf0] }
 0x2a8   :  { %4127 = vmatmul.bf16.gmra.mxu3 %v6166_v26  ;;  %5050 = vperm.xlu2 %7397, %v4884_v47   ;;  %v4891_v26 = vld [vmem:[%s11398_s7 + $0x80] sm:$0xff] }
 0x2a9   :  { %5045 = vperm.xlu1 %7396, %v4883_v31   ;;  %v9329_v44 = vpop.permute.xlu0 %2008  ;;  %4456 = vmatmul.bf16.gmra.mxu0 %v6170_v20  ;;  %v4887_v47 = vld [vmem:[%s11398_s7 + $0x60] sm:$0xff]  ;;  %v4886_v20 = vld [vmem:[%s11398_s7 + $0x58] sm:$0xff]  ;;  %v6174_v31 = vor.u32 %v7113_v35, %v6173_v51  ;;  %v7112_v51 = vld [vmem:[%s11396_s5 + $0xec] sm:$0xf] }
 0x2aa   :  { %11595 = vst [vmem:[#allocation20_spill] sm:$0xff] %v9329_v44  ;;  %v9331_v6 = vpop.permute.xlu2 %2033  ;;  %v6183_v35 = vld [vmem:[%s11396_s5 + $0xf8] sm:$0xf0] }
 0x2ab   :  { %11596 = vst [vmem:[#allocation102_spill] sm:$0xff] %v9331_v6  ;;  %v9336_v46 = vpop.permute.xlu1 %1983  ;;  %v6178_v6 = vor.u32 %v7111_v58, %v6175_v27  ;;  %v4894_v27 = vld [vmem:[%s11398_s7 + $0x98] sm:$0xff] }
 0x2ac   :  { %11597 = vst [vmem:[#allocation43_spill] sm:$0xff] %v9336_v46 }
 0x2af   :  { %5085 = vperm.xlu0 %7395, %v4891_v26   ;;  %v6182_v26 = vor.u32 %v7114_v19, %v6181_v53  ;;  %v6189_v53 = vld [vmem:[%s11396_s5 + $0x100] sm:$0xf] }
 0x2b0   :  { %5065 = vperm.xlu2 %7397, %v4887_v47   ;;  %v6186_v47 = vor.u32 %v7112_v51, %v6183_v35  ;;  %v7117_v51 = vld [vmem:[%s11396_s5 + $0x10c] sm:$0xf0]  ;;  %v7115_v35 = vld [vmem:[%s11396_s5 + $0x104] sm:$0xf] }
 0x2b1   :  { %5060 = vperm.xlu1 %7396, %v4886_v20   ;;  %v9356_v44 = vpop.permute.xlu0 %2023  ;;  %v4889_v20 = vld [vmem:[%s11398_s7 + $0x70] sm:$0xff] }
 0x2b2   :  { %11598 = vst [vmem:[#allocation103_spill] sm:$0xff] %v9356_v44  ;;  %3474 = vmatmul.bf16.gmra.mxu1 %v6174_v31  ;;  %3803 = vmatmul.bf16.gmra.mxu2 %v6178_v6  ;;  %v9364_v33 = vpop.permute.xlu2 %2048  ;;  %v4890_v6 = vld [vmem:[%s11398_s7 + $0x78] sm:$0xff] }
 0x2b3   :  { %11599 = vst [vmem:[#allocation15_spill] sm:$0xff] %v9364_v33  ;;  %v9372_v58 = vpop.permute.xlu1 %1998 }
 0x2b4   :  { %11600 = vst [vmem:[#allocation97_spill] sm:$0xff] %v9372_v58  ;;  %v7118_v58 = vld [vmem:[%s11396_s5 + $0x114] sm:$0xf0] }
 0x2b7   :  { %5100 = vperm.xlu0 %7395, %v4894_v27   ;;  %v6191_v27 = vld [vmem:[%s11396_s5 + $0x110] sm:$0xf0] }
 0x2b8   :  { %4132 = vmatmul.bf16.gmra.mxu3 %v6182_v26  ;;  %5080 = vperm.xlu2 %7397, %v4890_v6   ;;  %v4897_v26 = vld [vmem:[%s11398_s7 + $0xb0] sm:$0xff] }
 0x2b9   :  { %5075 = vperm.xlu1 %7396, %v4889_v20   ;;  %v9383_v31 = vpop.permute.xlu0 %2038  ;;  %4461 = vmatmul.bf16.gmra.mxu0 %v6186_v47  ;;  %v4893_v6 = vld [vmem:[%s11398_s7 + $0x90] sm:$0xff]  ;;  %v4892_v47 = vld [vmem:[%s11398_s7 + $0x88] sm:$0xff]  ;;  %v6190_v20 = vor.u32 %v7117_v51, %v6189_v53  ;;  %v6199_v51 = vld [vmem:[%s11396_s5 + $0x118] sm:$0xf0] }
 0x2ba   :  { %11601 = vst [vmem:[#allocation35_spill] sm:$0xff] %v9383_v31  ;;  %v9385_v33 = vpop.permute.xlu2 %2063  ;;  %v7116_v53 = vld [vmem:[%s11396_s5 + $0x10c] sm:$0xf] }
 0x2bb   :  { %11602 = vst [vmem:[#allocation98_spill] sm:$0xff] %v9385_v33  ;;  %v9390_v19 = vpop.permute.xlu1 %2013  ;;  %v6194_v33 = vor.u32 %v7115_v35, %v6191_v27  ;;  %v11607_v27 = vld [vmem:[#allocation41_spill] sm:$0xff] }
 0x2bc   :  { %11603 = vst [vmem:[#allocation24_spill] sm:$0xff] %v9390_v19  ;;  %v6197_v19 = vld [vmem:[%s11396_s5 + $0x108] sm:$0xf] }
 0x2bf   :  { %v3440_v31 = vpop.f32.mrf.mxu1  ;;  %5115 = vperm.xlu0 %7395, %v4897_v26  }
 0x2c0   :  { %5095 = vperm.xlu2 %7397, %v4893_v6   ;;  %v3441_v26 = vadd.f32 %v3440_v31, %v11607_v27  ;;  %v4900_v6 = vld [vmem:[%s11398_s7 + $0xc8] sm:$0xff]  ;;  %v7121_v27 = vld [vmem:[%s11396_s5 + $0x12c] sm:$0xf0] }
 0x2c1   :  { %5090 = vperm.xlu1 %7396, %v4892_v47   ;;  %v9410_v44 = vpop.permute.xlu0 %2053  ;;  %v6198_v47 = vor.u32 %v7118_v58, %v6197_v19  ;;  %v6205_v19 = vld [vmem:[%s11396_s5 + $0x120] sm:$0xf] }
 0x2c2   :  { %11604 = vst [vmem:[#allocation90_spill] sm:$0xff] %v9410_v44  ;;  %3479 = vmatmul.bf16.gmra.mxu1 %v6190_v20  ;;  %3808 = vmatmul.bf16.gmra.mxu2 %v6194_v33  ;;  %v9418_v46 = vpop.permute.xlu2 %2078  ;;  %v4896_v20 = vld [vmem:[%s11398_s7 + $0xa8] sm:$0xff]  ;;  %v6206_v28 = vor.u32 %v7121_v27, %v6205_v19 }
 0x2c3   :  { %11605 = vst [vmem:[#allocation31_spill] sm:$0xff] %v9418_v46  ;;  %v9426_v35 = vpop.permute.xlu1 %2028  ;;  %v6202_v46 = vor.u32 %v7116_v53, %v6199_v51  ;;  %v7120_v19 = vld [vmem:[%s11396_s5 + $0x12c] sm:$0xf] }
 0x2c4   :  { %11606 = vst [vmem:[#allocation91_spill] sm:$0xff] %v9426_v35 }
 0x2c5   :  { %v3769_v33 = vpop.f32.mrf.mxu2 }
 0x2c6   :  { %v3770_v44 = vadd.f32 %v3769_v33, %v3441_v26  ;;  %v4427_v48 = vpop.f32.mrf.mxu0  ;;  %v11611_v26 = vld [vmem:[#allocation53_spill] sm:$0xff] }
 0x2c7   :  { %v3442_v35 = vpop.f32.mrf.mxu1  ;;  %5130 = vperm.xlu0 %7395, %v4900_v6   ;;  %v4903_v33 = vld [vmem:[%s11398_s7 + $0xe0] sm:$0xff] }
 0x2c8   :  { %4137 = vmatmul.bf16.gmra.mxu3 %v6198_v47  ;;  %5110 = vperm.xlu2 %7397, %v4896_v20   ;;  %v3443_v6 = vadd.f32 %v3442_v35, %v11611_v26  ;;  %v6213_v26 = vld [vmem:[%s11396_s5 + $0x128] sm:$0xf] }
 0x2c9   :  { %5105 = vperm.xlu1 %7396, %v4895_v4   ;;  %v9438_v31 = vpop.permute.xlu0 %2068  ;;  %4466 = vmatmul.bf16.gmra.mxu0 %v6202_v46  ;;  %v7119_v4 = vld [vmem:[%s11396_s5 + $0x124] sm:$0xf]  ;;  %v6207_v46 = vld [vmem:[%s11396_s5 + $0x130] sm:$0xf0] }
 0x2ca   :  { %11608 = vst [vmem:[#allocation17_spill] sm:$0xff] %v9438_v31  ;;  %v9440_v58 = vpop.permute.xlu2 %2093  ;;  %v6210_v7 = vor.u32 %v7119_v4, %v6207_v46  ;;  %v11615_v4 = vld [vmem:[#allocation39_spill] sm:$0xff] }
 0x2cb   :  { %11609 = vst [vmem:[#allocation85_spill] sm:$0xff] %v9440_v58  ;;  %v9445_v53 = vpop.permute.xlu1 %2043  ;;  %v4098_v51 = vpop.f32.mrf.mxu3  ;;  %v4899_v58 = vld [vmem:[%s11398_s7 + $0xc0] sm:$0xff] }
 0x2cc   :  { %11610 = vst [vmem:[#allocation40_spill] sm:$0xff] %v9445_v53  ;;  %v4099_v47 = vadd.f32 %v4098_v51, %v3770_v44 }
 0x2cd   :  { %v3771_v20 = vpop.f32.mrf.mxu2 }
 0x2ce   :  { %v3772_v31 = vadd.f32 %v3771_v20, %v3443_v6  ;;  %v9463_v53 = vadd.f32 %v4427_v48, %v4099_v47  ;;  %v4429_v35 = vpop.f32.mrf.mxu0  ;;  %v7122_v48 = vld [vmem:[%s11396_s5 + $0x134] sm:$0xf0] }
 0x2cf   :  { %v3445_v44 = vpop.f32.mrf.mxu1  ;;  %5145 = vperm.xlu0 %7395, %v4903_v33   ;;  %v4902_v20 = vld [vmem:[%s11398_s7 + $0xd8] sm:$0xff] }
 0x2d0   :  { %5125 = vperm.xlu2 %7397, %v4899_v58   ;;  %v3446_v46 = vadd.f32 %v3445_v44, %v11615_v4  ;;  %v11619_v4 = vld [vmem:[#allocation44_spill] sm:$0xff] }
 0x2d1   :  { %5120 = vperm.xlu1 %7396, %v4898_v16   ;;  %v9468_v51 = vpop.permute.xlu0 %2083  ;;  %v6215_v16 = vld [vmem:[%s11396_s5 + $0x138] sm:$0xf0] }
 0x2d2   :  { %11612 = vst [vmem:[#allocation86_spill] sm:$0xff] %v9468_v51  ;;  %3484 = vmatmul.bf16.gmra.mxu1 %v6206_v28  ;;  %3813 = vmatmul.bf16.gmra.mxu2 %v6210_v7  ;;  %v9476_v6 = vpop.permute.xlu2 %2108  ;;  %v4906_v7 = vld [vmem:[%s11398_s7 + $0xf8] sm:$0xff]  ;;  %v6214_v28 = vor.u32 %v7122_v48, %v6213_v26 }
 0x2d3   :  { %11613 = vst [vmem:[#allocation13_spill] sm:$0xff] %v9476_v6  ;;  %v9484_v58 = vpop.permute.xlu1 %2058  ;;  %v4100_v27 = vpop.f32.mrf.mxu3  ;;  %v6218_v6 = vor.u32 %v7120_v19, %v6215_v16 }
 0x2d4   :  { %11614 = vst [vmem:[#allocation80_spill] sm:$0xff] %v9484_v58  ;;  %v4101_v47 = vadd.f32 %v4100_v27, %v3772_v31  ;;  %v4901_v58 = vld [vmem:[%s11398_s7 + $0xd0] sm:$0xff] }
 0x2d5   :  { %v3774_v33 = vpop.f32.mrf.mxu2  ;;  %v7125_v27 = vld [vmem:[%s11396_s5 + $0x14c] sm:$0xf0] }
 0x2d6   :  { %v3775_v51 = vadd.f32 %v3774_v33, %v3446_v46  ;;  %v9493_v9 = vadd.f32 %v4429_v35, %v4101_v47  ;;  %v4432_v44 = vpop.f32.mrf.mxu0  ;;  %v6221_v35 = vld [vmem:[%s11396_s5 + $0x140] sm:$0xf]  ;;  %v4905_v33 = vld [vmem:[%s11398_s7 + $0xf0] sm:$0xff] }
 0x2d7   :  { %v3447_v31 = vpop.f32.mrf.mxu1  ;;  %5160 = vperm.xlu0 %7395, %v4906_v7   ;;  %v4909_v7 = vld [vmem:[%s11398_s7 + $0x110] sm:$0xff] }
 0x2d8   :  { %4142 = vmatmul.bf16.gmra.mxu3 %v6214_v28  ;;  %5140 = vperm.xlu2 %7397, %v4902_v20   ;;  %v3448_v46 = vadd.f32 %v3447_v31, %v11619_v4  ;;  %v6229_v4 = vld [vmem:[%s11396_s5 + $0x148] sm:$0xf] }
 0x2d9   :  { %5135 = vperm.xlu1 %7396, %v4901_v58   ;;  %v9498_v26 = vpop.permute.xlu0 %2098  ;;  %4471 = vmatmul.bf16.gmra.mxu0 %v6218_v6  ;;  %v7123_v58 = vld [vmem:[%s11396_s5 + $0x144] sm:$0xf]  ;;  %v6223_v6 = vld [vmem:[%s11396_s5 + $0x150] sm:$0xf0] }
 0x2da   :  { %11616 = vst [vmem:[#allocation32_spill] sm:$0xff] %v9498_v26  ;;  %v9500_v48 = vpop.permute.xlu2 %2123  ;;  %v4904_v26 = vld [vmem:[%s11398_s7 + $0xe8] sm:$0xff]  ;;  %v6226_v17 = vor.u32 %v7123_v58, %v6223_v6 }
 0x2db   :  { %11617 = vst [vmem:[#allocation81_spill] sm:$0xff] %v9500_v48  ;;  %v9505_v19 = vpop.permute.xlu1 %2073  ;;  %v4103_v16 = vpop.f32.mrf.mxu3  ;;  %v11623_v6 = vld [vmem:[#allocation58_spill] sm:$0xff] }
 0x2dc   :  { %11618 = vst [vmem:[#allocation21_spill] sm:$0xff] %v9505_v19  ;;  %v4104_v47 = vadd.f32 %v4103_v16, %v3775_v51  ;;  %v6222_v19 = vor.u32 %v7125_v27, %v6221_v35  ;;  %v7124_v35 = vld [vmem:[%s11396_s5 + $0x14c] sm:$0xf] }
 0x2dd   :  { %v3776_v28 = vpop.f32.mrf.mxu2 }
 0x2de   :  { %v3777_v20 = vadd.f32 %v3776_v28, %v3448_v46  ;;  %v9523_v48 = vadd.f32 %v4432_v44, %v4104_v47  ;;  %v4434_v31 = vpop.f32.mrf.mxu0  ;;  %v7126_v44 = vld [vmem:[%s11396_s5 + $0x154] sm:$0xf0] }
 0x2df   :  { %v3450_v51 = vpop.f32.mrf.mxu1  ;;  %5175 = vperm.xlu0 %7395, %v4909_v7  }
 0x2e0   :  { %5155 = vperm.xlu2 %7397, %v4905_v33   ;;  %v3451_v47 = vadd.f32 %v3450_v51, %v11623_v6  ;;  %v4908_v33 = vld [vmem:[%s11398_s7 + $0x108] sm:$0xff]  ;;  %v7129_v6 = vld [vmem:[%s11396_s5 + $0x16c] sm:$0xf0] }
 0x2e1   :  { %5150 = vperm.xlu1 %7396, %v4904_v26   ;;  %v9528_v16 = vpop.permute.xlu0 %2113  ;;  %v6231_v26 = vld [vmem:[%s11396_s5 + $0x158] sm:$0xf0] }
 0x2e2   :  { %11620 = vst [vmem:[#allocation75_spill] sm:$0xff] %v9528_v16  ;;  %3489 = vmatmul.bf16.gmra.mxu1 %v6222_v19  ;;  %3818 = vmatmul.bf16.gmra.mxu2 %v6226_v17  ;;  %v9536_v46 = vpop.permute.xlu2 %2138  ;;  %v4912_v17 = vld [vmem:[%s11398_s7 + $0x128] sm:$0xff]  ;;  %v6230_v19 = vor.u32 %v7126_v44, %v6229_v4 }
 0x2e3   :  { %11621 = vst [vmem:[#allocation28_spill] sm:$0xff] %v9536_v46  ;;  %v9544_v27 = vpop.permute.xlu1 %2088  ;;  %v4105_v58 = vpop.f32.mrf.mxu3  ;;  %v6234_v46 = vor.u32 %v7124_v35, %v6231_v26 }
 0x2e4   :  { %11622 = vst [vmem:[#allocation76_spill] sm:$0xff] %v9544_v27  ;;  %v4106_v7 = vadd.f32 %v4105_v58, %v3777_v20  ;;  %v4907_v27 = vld [vmem:[%s11398_s7 + $0x100] sm:$0xff]  ;;  %v4747_v20 = vmax.f32 %v9463_v53, 0.0 }
 0x2e5   :  { %v3779_v28 = vpop.f32.mrf.mxu2  ;;  %v7127_v53 = vld [vmem:[%s11396_s5 + $0x164] sm:$0xf] }
 0x2e6   :  { %v3780_v16 = vadd.f32 %v3779_v28, %v3451_v47  ;;  %v4435_v10 = vadd.f32 %v4434_v31, %v4106_v7  ;;  %v4437_v40 = vpop.f32.mrf.mxu0  ;;  %v6237_v31 = vld [vmem:[%s11396_s5 + $0x160] sm:$0xf] }
 0x2e7   :  { %v3452_v51 = vpop.f32.mrf.mxu1  ;;  %5190 = vperm.xlu0 %7395, %v4912_v17   ;;  %v4915_v17 = vld [vmem:[%s11398_s7 + $0x140] sm:$0xff] }
 0x2e8   :  { %4147 = vmatmul.bf16.gmra.mxu3 %v6230_v19  ;;  %5170 = vperm.xlu2 %7397, %v4908_v33   ;;  %v4911_v28 = vld [vmem:[%s11398_s7 + $0x120] sm:$0xff] }
 0x2e9   :  { %5165 = vperm.xlu1 %7396, %v4907_v27   ;;  %v9557_v4 = vpop.permute.xlu0 %2128  ;;  %4476 = vmatmul.bf16.gmra.mxu0 %v6234_v46  ;;  %v6239_v46 = vld [vmem:[%s11396_s5 + $0x170] sm:$0xf0]  ;;  %v11626_v27 = vld [vmem:[#allocation42_spill] sm:$0xff] }
 0x2ea   :  { %11624 = vst [vmem:[#allocation14_spill] sm:$0xff] %v9557_v4  ;;  %v5006_v44 = vpop.permute.xlu2 %5005  ;;  %v3453_v47 = vadd.f32 %v3452_v51, %v11626_v27  ;;  %v6238_v4 = vor.u32 %v7129_v6, %v6237_v31  ;;  %v7128_v6 = vld [vmem:[%s11396_s5 + $0x16c] sm:$0xf] }
 0x2eb   :  { %v5643_v35 = vmul.f32 %v5006_v44, %v4747_v20  ;;  %v9562_v26 = vpop.permute.xlu1 %2103  ;;  %v4108_v58 = vpop.f32.mrf.mxu3  ;;  %v4910_v44 = vld [vmem:[%s11398_s7 + $0x118] sm:$0xff] }
 0x2ec   :  { %11625 = vst [vmem:[#allocation70_spill] sm:$0xff] %v9562_v26  ;;  %v4109_v7 = vadd.f32 %v4108_v58, %v3780_v16  ;;  %v6242_v26 = vor.u32 %v7127_v53, %v6239_v46  ;;  %v4750_v58 = vmax.f32 %v4435_v10, 0.0  ;;  %v6247_v10 = vld [vmem:[%s11396_s5 + $0x178] sm:$0xf0] }
 0x2ed   :  { %v3781_v19 = vpop.f32.mrf.mxu2  ;;  %v6250_v55 = vor.u32 %v7128_v6, %v6247_v10 }
 0x2ee   :  { %v3782_v33 = vadd.f32 %v3781_v19, %v3453_v47  ;;  %v9580_v20 = vadd.f32 %v4437_v40, %v4109_v7  ;;  %v4439_v51 = vpop.f32.mrf.mxu0  ;;  %v6245_v47 = vld [vmem:[%s11396_s5 + $0x168] sm:$0xf]  ;;  %v7130_v40 = vld [vmem:[%s11396_s5 + $0x174] sm:$0xf0] }
 0x2ef   :  { %v3455_v16 = vpop.f32.mrf.mxu1  ;;  %5205 = vperm.xlu0 %7395, %v4915_v17   ;;  %v11629_v17 = vld [vmem:[#allocation49_spill] sm:$0xff] }
 0x2f0   :  { %5185 = vperm.xlu2 %7397, %v4911_v28   ;;  %v3456_v19 = vadd.f32 %v3455_v16, %v11629_v17  ;;  %v7133_v17 = vld [vmem:[%s11396_s5 + $0x18c] sm:$0xf0] }
 0x2f1   :  { %5180 = vperm.xlu1 %7396, %v4910_v44   ;;  %v9585_v27 = vpop.permute.xlu0 %2143 }
 0x2f2   :  { %11627 = vst [vmem:[#allocation36_spill] sm:$0xff] %v9585_v27  ;;  %3494 = vmatmul.bf16.gmra.mxu1 %v6238_v4  ;;  %3823 = vmatmul.bf16.gmra.mxu2 %v6242_v26  ;;  %v5021_v31 = vpop.permute.xlu2 %5020  ;;  %v4918_v4 = vld [vmem:[%s11398_s7 + $0x158] sm:$0xff]  ;;  %v6246_v26 = vor.u32 %v7130_v40, %v6245_v47 }
 0x2f3   :  { %v9599_v53 = vmul.f32 %v5021_v31, %v4750_v58  ;;  %v9601_v46 = vpop.permute.xlu1 %2118  ;;  %v4110_v7 = vpop.f32.mrf.mxu3  ;;  %v4914_v27 = vld [vmem:[%s11398_s7 + $0x138] sm:$0xff]  ;;  %v4913_v31 = vld [vmem:[%s11398_s7 + $0x130] sm:$0xff] }
 0x2f4   :  { %11628 = vst [vmem:[#allocation71_spill] sm:$0xff] %v9601_v46  ;;  %v4111_v28 = vadd.f32 %v4110_v7, %v3782_v33  ;;  %v4748_v7 = vmax.f32 %v9493_v9, 0.0  ;;  %v7131_v9 = vld [vmem:[%s11396_s5 + $0x184] sm:$0xf] }
 0x2f5   :  { %v3784_v44 = vpop.f32.mrf.mxu2 }
 0x2f6   :  { %v3785_v56 = vadd.f32 %v3784_v44, %v3456_v19  ;;  %v9610_v58 = vadd.f32 %v4439_v51, %v4111_v28  ;;  %v4442_v16 = vpop.f32.mrf.mxu0  ;;  %v6253_v51 = vld [vmem:[%s11396_s5 + $0x180] sm:$0xf]  ;;  %v11631_v19 = vld [vmem:[#allocation63_spill] sm:$0xff] }
 0x2f7   :  { %v3457_v33 = vpop.f32.mrf.mxu1  ;;  %5220 = vperm.xlu0 %7395, %v4918_v4   ;;  %v4921_v44 = vld [vmem:[%s11398_s7 + $0x170] sm:$0xff] }
 0x2f8   :  { %4152 = vmatmul.bf16.gmra.mxu3 %v6246_v26  ;;  %5200 = vperm.xlu2 %7397, %v4914_v27   ;;  %v5772_v27 = vsel %vm5771_vm0, %v5643_v35, 0.0  ;;  %v3458_v28 = vadd.f32 %v3457_v33, %v11631_v19  ;;  %v4916_v35 = vld [vmem:[%s11398_s7 + $0x148] sm:$0xff]  ;;  %v6254_v33 = vor.u32 %v7133_v17, %v6253_v51  ;;  %v4751_v19 = vmax.f32 %v9580_v20, 0.0 }
 0x2f9   :  { %5195 = vperm.xlu1 %7396, %v4913_v31   ;;  %v5011_v47 = vpop.permute.xlu0 %5010  ;;  %4481 = vmatmul.bf16.gmra.mxu0 %v6250_v55  ;;  %v6255_v55 = vld [vmem:[%s11396_s5 + $0x190] sm:$0xf0]  ;;  %v7132_v20 = vld [vmem:[%s11396_s5 + $0x18c] sm:$0xf] }
 0x2fa   :  { %v5644_v40 = vmul.f32 %v5011_v47, %v4748_v7  ;;  %v4917_v47 = vld [vmem:[%s11398_s7 + $0x150] sm:$0xff] }
 0x2fb   :  { %v9619_v6 = vpop.permute.xlu1 %2133  ;;  %v4113_v10 = vpop.f32.mrf.mxu3 }
 0x2fc   :  { %11630 = vst [vmem:[#allocation10_spill] sm:$0xff] %v9619_v6  ;;  %v5773_v4 = vsel %vm5771_vm0, %v5644_v40, 0.0  ;;  %v4114_v26 = vadd.f32 %v4113_v10, %v3785_v56  ;;  %v6258_v40 = vor.u32 %v7131_v9, %v6255_v55 }
 0x2fd   :  { %v9636_v31 = vadd.f32 %v5773_v4, %v5772_v27  ;;  %v3786_v7 = vpop.f32.mrf.mxu2  ;;  %v5036_v4 = vpop.permute.xlu2 %5035 }
 0x2fe   :  { %v3787_v6 = vadd.f32 %v3786_v7, %v3458_v28  ;;  %v4443_v46 = vadd.f32 %v4442_v16, %v4114_v26  ;;  %v4444_v56 = vpop.f32.mrf.mxu0  ;;  %v6261_v16 = vld [vmem:[%s11396_s5 + $0x188] sm:$0xf]  ;;  %v7134_v28 = vld [vmem:[%s11396_s5 + $0x194] sm:$0xf0] }
 0x2ff   :  { %v3460_v10 = vpop.f32.mrf.mxu1  ;;  %5235 = vperm.xlu0 %7395, %v4921_v44   ;;  %v11633_v26 = vld [vmem:[#allocation47_spill] sm:$0xff] }
 0x300   :  { %v4753_v27 = vmax.f32 %v4443_v46, 0.0  ;;  %5215 = vperm.xlu2 %7397, %v4917_v47   ;;  %v6263_v46 = vld [vmem:[%s11396_s5 + $0x198] sm:$0xf0]  ;;  %v3461_v44 = vadd.f32 %v3460_v10, %v11633_v26  ;;  %v6262_v47 = vor.u32 %v7134_v28, %v6261_v16  ;;  %v4749_v28 = vmax.f32 %v9523_v48, 0.0  ;;  %v11634_v48 = vld [vmem:[#allocation54_spill] sm:$0xff] }
 0x301   :  { %5210 = vperm.xlu1 %7396, %v4916_v35   ;;  %v5026_v23 = vpop.permute.xlu0 %5025 }
 0x302   :  { %v9651_v51 = vmul.f32 %v5036_v4, %v4753_v27  ;;  %v5647_v17 = vmul.f32 %v5026_v23, %v4751_v19  ;;  %3499 = vmatmul.bf16.gmra.mxu1 %v6254_v33  ;;  %3828 = vmatmul.bf16.gmra.mxu2 %v6258_v40  ;;  %v4924_v23 = vld [vmem:[%s11398_s7 + $0x188] sm:$0xff]  ;;  %v6266_v40 = vor.u32 %v7132_v20, %v6263_v46  ;;  %v4919_v4 = vld [vmem:[%s11398_s7 + $0x160] sm:$0xff]  ;;  %v7137_v20 = vld [vmem:[%s11396_s5 + $0x1ac] sm:$0xf0] }
 0x303   :  { %v9659_v9 = vpop.permute.xlu1 %2148  ;;  %v4115_v55 = vpop.f32.mrf.mxu3  ;;  %v4920_v33 = vld [vmem:[%s11398_s7 + $0x168] sm:$0xff] }
 0x304   :  { %11632 = vst [vmem:[#allocation65_spill] sm:$0xff] %v9659_v9  ;;  %v4116_v7 = vadd.f32 %v4115_v55, %v3787_v6 }
 0x305   :  { %v3789_v35 = vpop.f32.mrf.mxu2 }
 0x306   :  { %v3790_v19 = vadd.f32 %v3789_v35, %v3461_v44  ;;  %v4445_v27 = vadd.f32 %v4444_v56, %v4116_v7  ;;  %v4447_v9 = vpop.f32.mrf.mxu0  ;;  %v6269_v56 = vld [vmem:[%s11396_s5 + $0x1a0] sm:$0xf]  ;;  %v7135_v44 = vld [vmem:[%s11396_s5 + $0x1a4] sm:$0xf]  ;;  %v6271_v7 = vld [vmem:[%s11396_s5 + $0x1b0] sm:$0xf0] }
 0x307   :  { %v3462_v10 = vpop.f32.mrf.mxu1  ;;  %5250 = vperm.xlu0 %7395, %v4924_v23  }
 0x308   :  { %v4754_v6 = vmax.f32 %v4445_v27, 0.0  ;;  %4157 = vmatmul.bf16.gmra.mxu3 %v6262_v47  ;;  %5230 = vperm.xlu2 %7397, %v4920_v33   ;;  %v3463_v23 = vadd.f32 %v3462_v10, %v11634_v48  ;;  %v4927_v33 = vld [vmem:[%s11398_s7 + $0x1a0] sm:$0xff]  ;;  %v4922_v10 = vld [vmem:[%s11398_s7 + $0x178] sm:$0xff]  ;;  %v5777_v48 = vsel %vm5771_vm0, %v9599_v53, 0.0  ;;  %v7136_v53 = vld [vmem:[%s11396_s5 + $0x1ac] sm:$0xf] }
 0x309   :  { %5225 = vperm.xlu1 %7396, %v4919_v4   ;;  %v5041_v16 = vpop.permute.xlu0 %5040  ;;  %4486 = vmatmul.bf16.gmra.mxu0 %v6266_v40  ;;  %v4923_v27 = vld [vmem:[%s11398_s7 + $0x180] sm:$0xff]  ;;  %v6270_v4 = vor.u32 %v7137_v20, %v6269_v56  ;;  %v7138_v56 = vld [vmem:[%s11396_s5 + $0x1b4] sm:$0xf0]  ;;  %v4752_v20 = vmax.f32 %v9610_v58, 0.0 }
 0x30a   :  { %v5650_v55 = vmul.f32 %v5041_v16, %v4754_v6  ;;  %v4930_v58 = vld [vmem:[%s11398_s7 + $0x1b8] sm:$0xff] }
 0x30b   :  { %v5016_v46 = vpop.permute.xlu1 %5015  ;;  %v4118_v26 = vpop.f32.mrf.mxu3 }
 0x30c   :  { %v5645_v47 = vmul.f32 %v5016_v46, %v4749_v28  ;;  %v4119_v35 = vadd.f32 %v4118_v26, %v3790_v19  ;;  %v6274_v28 = vor.u32 %v7135_v44, %v6271_v7  ;;  %v6279_v44 = vld [vmem:[%s11396_s5 + $0x1b8] sm:$0xf0] }
 0x30d   :  { %v3791_v40 = vpop.f32.mrf.mxu2 }
 0x30e   :  { %v5775_v6 = vsel %vm5771_vm0, %v5645_v47, 0.0  ;;  %v3792_v16 = vadd.f32 %v3791_v40, %v3463_v23  ;;  %v4448_v30 = vadd.f32 %v4447_v9, %v4119_v35  ;;  %v4449_v19 = vpop.f32.mrf.mxu0  ;;  %v6277_v9 = vld [vmem:[%s11396_s5 + $0x1a8] sm:$0xf]  ;;  %v11635_v35 = vld [vmem:[#allocation68_spill] sm:$0xff] }
 0x30f   :  { %v5776_v46 = vadd.f32 %v5775_v6, %v9636_v31  ;;  %v3465_v26 = vpop.f32.mrf.mxu1  ;;  %5265 = vperm.xlu0 %7395, %v4927_v33   ;;  %v5779_v31 = vsel %vm5771_vm0, %v5647_v17, 0.0  ;;  %v6278_v17 = vor.u32 %v7138_v56, %v6277_v9  ;;  %v4926_v6 = vld [vmem:[%s11398_s7 + $0x198] sm:$0xff]  ;;  %v5783_v9 = vsel %vm5771_vm0, %v9651_v51, 0.0 }
 0x310   :  { %5245 = vperm.xlu2 %7397, %v4923_v27   ;;  %v3466_v33 = vadd.f32 %v3465_v26, %v11635_v35  ;;  %v4925_v26 = vld [vmem:[%s11398_s7 + $0x190] sm:$0xff] }
 0x311   :  { %v5778_v62 = vadd.f32 %v5777_v48, %v5776_v46  ;;  %5240 = vperm.xlu1 %7396, %v4922_v10   ;;  %v6282_v10 = vor.u32 %v7136_v53, %v6279_v44  ;;  %v4755_v44 = vmax.f32 %v4448_v30, 0.0  ;;  %v6287_v30 = vld [vmem:[%s11396_s5 + $0x1d0] sm:$0xf0] }
 0x312   :  { %3504 = vmatmul.bf16.gmra.mxu1 %v6270_v4  ;;  %3833 = vmatmul.bf16.gmra.mxu2 %v6274_v28 }
 0x313   :  { %v5031_v7 = vpop.permute.xlu1 %5030  ;;  %v5780_v23 = vadd.f32 %v5779_v31, %v5778_v62  ;;  %v4120_v47 = vpop.f32.mrf.mxu3 }
 0x314   :  { %v5648_v40 = vmul.f32 %v5031_v7, %v4752_v20  ;;  %v4121_v27 = vadd.f32 %v4120_v47, %v3792_v16  ;;  %v5051_v31 = vpop.permute.xlu2 %5050  ;;  %v7141_v47 = vld [vmem:[%s11396_s5 + $0x1cc] sm:$0xf0] }
 0x315   :  { %v3794_v4 = vpop.f32.mrf.mxu2 }
 0x316   :  { %v5781_v28 = vsel %vm5771_vm0, %v5648_v40, 0.0  ;;  %v3795_v46 = vadd.f32 %v3794_v4, %v3466_v33  ;;  %v4450_v62 = vadd.f32 %v4449_v19, %v4121_v27  ;;  %v4452_v16 = vpop.f32.mrf.mxu0  ;;  %v5785_v19 = vsel %vm5771_vm0, %v5650_v55, 0.0  ;;  %v7139_v40 = vld [vmem:[%s11396_s5 + $0x1c4] sm:$0xf]  ;;  %v11636_v55 = vld [vmem:[#allocation52_spill] sm:$0xff] }
 0x317   :  { %v5782_v48 = vadd.f32 %v5781_v28, %v5780_v23  ;;  %v3467_v20 = vpop.f32.mrf.mxu1  ;;  %5280 = vperm.xlu0 %7395, %v4930_v58   ;;  %v6285_v23 = vld [vmem:[%s11396_s5 + $0x1c0] sm:$0xf]  ;;  %v4933_v4 = vld [vmem:[%s11398_s7 + $0x1d0] sm:$0xff] }
 0x318   :  { %v4756_v56 = vmax.f32 %v4450_v62, 0.0  ;;  %4162 = vmatmul.bf16.gmra.mxu3 %v6278_v17  ;;  %5260 = vperm.xlu2 %7397, %v4926_v6   ;;  %v3468_v27 = vadd.f32 %v3467_v20, %v11636_v55  ;;  %v6286_v28 = vor.u32 %v7141_v47, %v6285_v23  ;;  %v4928_v20 = vld [vmem:[%s11398_s7 + $0x1a8] sm:$0xff]  ;;  %v7142_v23 = vld [vmem:[%s11396_s5 + $0x1d4] sm:$0xf0] }
 0x319   :  { %v5784_v53 = vadd.f32 %v5783_v9, %v5782_v48  ;;  %5255 = vperm.xlu1 %7396, %v4925_v26   ;;  %4491 = vmatmul.bf16.gmra.mxu0 %v6282_v10  ;;  %v4929_v10 = vld [vmem:[%s11398_s7 + $0x1b0] sm:$0xff]  ;;  %v6290_v9 = vor.u32 %v7139_v40, %v6287_v30 }
 0x31a   :  { %v5652_v7 = vmul.f32 %v5051_v31, %v4756_v56  ;;  %v11637_v30 = vld [vmem:[#allocation59_spill] sm:$0xff] }
 0x31b   :  { %v5046_v51 = vpop.permute.xlu1 %5045  ;;  %v5786_v35 = vadd.f32 %v5785_v19, %v5784_v53  ;;  %v4123_v33 = vpop.f32.mrf.mxu3 }
 0x31c   :  { %v5651_v58 = vmul.f32 %v5046_v51, %v4755_v44  ;;  %v4124_v17 = vadd.f32 %v4123_v33, %v3795_v46  ;;  %v5789_v53 = vsel %vm5771_vm0, %v5652_v7, 0.0  ;;  %v5056_v44 = vpop.permute.xlu0 %5055  ;;  %v7140_v7 = vld [vmem:[%s11396_s5 + $0x1cc] sm:$0xf] }
 0x31d   :  { %v3796_v6 = vpop.f32.mrf.mxu2 }
 0x31e   :  { %v5787_v62 = vsel %vm5771_vm0, %v5651_v58, 0.0  ;;  %v3797_v26 = vadd.f32 %v3796_v6, %v3468_v27  ;;  %v4453_v48 = vadd.f32 %v4452_v16, %v4124_v17  ;;  %v4454_v46 = vpop.f32.mrf.mxu0  ;;  %v6293_v16 = vld [vmem:[%s11396_s5 + $0x1c8] sm:$0xf] }
 0x31f   :  { %v5788_v56 = vadd.f32 %v5787_v62, %v5786_v35  ;;  %v3470_v31 = vpop.f32.mrf.mxu1  ;;  %5295 = vperm.xlu0 %7395, %v4933_v4   ;;  %v6295_v35 = vld [vmem:[%s11396_s5 + $0x1d8] sm:$0xf0]  ;;  %v4936_v58 = vld [vmem:[%s11398_s7 + $0x1e8] sm:$0xff]  ;;  %v6294_v17 = vor.u32 %v7142_v23, %v6293_v16  ;;  %v6303_v16 = vld [vmem:[%s11396_s5 + $0x1f0] sm:$0xf0] }
 0x320   :  { %v4757_v19 = vmax.f32 %v4453_v48, 0.0  ;;  %5275 = vperm.xlu2 %7397, %v4929_v10   ;;  %v3471_v55 = vadd.f32 %v3470_v31, %v11637_v30  ;;  %v4932_v10 = vld [vmem:[%s11398_s7 + $0x1c8] sm:$0xff] }
 0x321   :  { %v5790_v51 = vadd.f32 %v5789_v53, %v5788_v56  ;;  %5270 = vperm.xlu1 %7396, %v4928_v20   ;;  %v4931_v20 = vld [vmem:[%s11398_s7 + $0x1c0] sm:$0xff] }
 0x322   :  { %v5653_v47 = vmul.f32 %v5056_v44, %v4757_v19  ;;  %3509 = vmatmul.bf16.gmra.mxu1 %v6286_v28  ;;  %3838 = vmatmul.bf16.gmra.mxu2 %v6290_v9  ;;  %v6298_v28 = vor.u32 %v7140_v7, %v6295_v35  ;;  %v6301_v19 = vld [vmem:[%s11396_s5 + $0x1e0] sm:$0xf] }
 0x323   :  { %v4125_v33 = vpop.f32.mrf.mxu3  ;;  %v5061_v31 = vpop.permute.xlu1 %5060 }
 0x324   :  { %v5791_v40 = vsel %vm5771_vm0, %v5653_v47, 0.0  ;;  %v4126_v27 = vadd.f32 %v4125_v33, %v3797_v26  ;;  %v11638_v47 = vld [vmem:[#allocation73_spill] sm:$0xff] }
 0x325   :  { %v5792_v4 = vadd.f32 %v5791_v40, %v5790_v51  ;;  %v3799_v6 = vpop.f32.mrf.mxu2  ;;  %v7143_v51 = vld [vmem:[%s11396_s5 + $0x1e4] sm:$0xf] }
 0x326   :  { %v3800_v62 = vadd.f32 %v3799_v6, %v3471_v55  ;;  %v4455_v48 = vadd.f32 %v4454_v46, %v4126_v27  ;;  %v4457_v9 = vpop.f32.mrf.mxu0  ;;  %v7145_v46 = vld [vmem:[%s11396_s5 + $0x1ec] sm:$0xf0]  ;;  %v4939_v33 = vld [vmem:[%s11398_s7 + $0x200] sm:$0xff] }
 0x327   :  { %v3472_v26 = vpop.f32.mrf.mxu1  ;;  %5310 = vperm.xlu0 %7395, %v4936_v58   ;;  %v4935_v55 = vld [vmem:[%s11398_s7 + $0x1e0] sm:$0xff]  ;;  %v6302_v6 = vor.u32 %v7145_v46, %v6301_v19 }
 0x328   :  { %v4758_v56 = vmax.f32 %v4455_v48, 0.0  ;;  %4167 = vmatmul.bf16.gmra.mxu3 %v6294_v17  ;;  %5290 = vperm.xlu2 %7397, %v4932_v10   ;;  %v3473_v7 = vadd.f32 %v3472_v26, %v11638_v47  ;;  %v4934_v17 = vld [vmem:[%s11398_s7 + $0x1d8] sm:$0xff]  ;;  %v6306_v10 = vor.u32 %v7143_v51, %v6303_v16 }
 0x329   :  { %5285 = vperm.xlu1 %7396, %v4931_v20   ;;  %4496 = vmatmul.bf16.gmra.mxu0 %v6298_v28  ;;  %v5066_v20 = vpop.permute.xlu2 %5065  ;;  %v4942_v16 = vld [vmem:[%s11398_s7 + $0x218] sm:$0xff] }
 0x32a   :  { %v5654_v53 = vmul.f32 %v5061_v31, %v4758_v56  ;;  %v7144_v56 = vld [vmem:[%s11396_s5 + $0x1ec] sm:$0xf]  ;;  %v6311_v31 = vld [vmem:[%s11396_s5 + $0x1f8] sm:$0xf0] }
 0x32b   :  { %v4128_v44 = vpop.f32.mrf.mxu3 }
 0x32c   :  { %v5793_v23 = vsel %vm5771_vm0, %v5654_v53, 0.0  ;;  %v4129_v35 = vadd.f32 %v4128_v44, %v3800_v62  ;;  %v11639_v44 = vld [vmem:[#allocation57_spill] sm:$0xff] }
 0x32d   :  { %v5794_v40 = vadd.f32 %v5793_v23, %v5792_v4  ;;  %v3801_v30 = vpop.f32.mrf.mxu2  ;;  %v6309_v4 = vld [vmem:[%s11396_s5 + $0x1e8] sm:$0xf] }
 0x32e   :  { %v3802_v27 = vadd.f32 %v3801_v30, %v3473_v7  ;;  %v4458_v58 = vadd.f32 %v4457_v9, %v4129_v35  ;;  %v4459_v28 = vpop.f32.mrf.mxu0  ;;  %v7146_v9 = vld [vmem:[%s11396_s5 + $0x1f4] sm:$0xf0] }
 0x32f   :  { %v3475_v62 = vpop.f32.mrf.mxu1  ;;  %5325 = vperm.xlu0 %7395, %v4939_v33   ;;  %v6310_v23 = vor.u32 %v7146_v9, %v6309_v4  ;;  %v4938_v35 = vld [vmem:[%s11398_s7 + $0x1f8] sm:$0xff]  ;;  %v6314_v33 = vor.u32 %v7144_v56, %v6311_v31  ;;  %v6319_v4 = vld [vmem:[%s11396_s5 + $0x210] sm:$0xf0] }
 0x330   :  { %v4759_v48 = vmax.f32 %v4458_v58, 0.0  ;;  %5305 = vperm.xlu2 %7397, %v4935_v55   ;;  %v3476_v46 = vadd.f32 %v3475_v62, %v11639_v44  ;;  %v4937_v58 = vld [vmem:[%s11398_s7 + $0x1f0] sm:$0xff]  ;;  %v6317_v62 = vld [vmem:[%s11396_s5 + $0x200] sm:$0xf] }
 0x331   :  { %5300 = vperm.xlu1 %7396, %v4934_v17  }
 0x332   :  { %v5655_v26 = vmul.f32 %v5066_v20, %v4759_v48  ;;  %3514 = vmatmul.bf16.gmra.mxu1 %v6302_v6  ;;  %3843 = vmatmul.bf16.gmra.mxu2 %v6306_v10  ;;  %v5071_v10 = vpop.permute.xlu0 %5070  ;;  %v7147_v20 = vld [vmem:[%s11396_s5 + $0x204] sm:$0xf] }
 0x333   :  { %v4130_v53 = vpop.f32.mrf.mxu3 }
 0x334   :  { %v5795_v19 = vsel %vm5771_vm0, %v5655_v26, 0.0  ;;  %v4131_v51 = vadd.f32 %v4130_v53, %v3802_v27  ;;  %v11640_v26 = vld [vmem:[#allocation64_spill] sm:$0xff] }
 0x335   :  { %v5796_v47 = vadd.f32 %v5795_v19, %v5794_v40  ;;  %v3804_v7 = vpop.f32.mrf.mxu2  ;;  %v4945_v53 = vld [vmem:[%s11398_s7 + $0x230] sm:$0xff] }
 0x336   :  { %v3805_v30 = vadd.f32 %v3804_v7, %v3476_v46  ;;  %v4460_v55 = vadd.f32 %v4459_v28, %v4131_v51  ;;  %v4462_v17 = vpop.f32.mrf.mxu0  ;;  %v7149_v28 = vld [vmem:[%s11396_s5 + $0x20c] sm:$0xf0] }
 0x337   :  { %v3477_v27 = vpop.f32.mrf.mxu1  ;;  %5340 = vperm.xlu0 %7395, %v4942_v16   ;;  %v4941_v46 = vld [vmem:[%s11398_s7 + $0x210] sm:$0xff]  ;;  %v6318_v7 = vor.u32 %v7149_v28, %v6317_v62 }
 0x338   :  { %v4760_v6 = vmax.f32 %v4460_v55, 0.0  ;;  %4172 = vmatmul.bf16.gmra.mxu3 %v6310_v23  ;;  %5320 = vperm.xlu2 %7397, %v4938_v35   ;;  %v3478_v56 = vadd.f32 %v3477_v27, %v11640_v26  ;;  %v4940_v23 = vld [vmem:[%s11398_s7 + $0x208] sm:$0xff]  ;;  %v6322_v35 = vor.u32 %v7147_v20, %v6319_v4 }
 0x339   :  { %5315 = vperm.xlu1 %7396, %v4937_v58   ;;  %4501 = vmatmul.bf16.gmra.mxu0 %v6314_v33  ;;  %v5076_v58 = vpop.permute.xlu1 %5075  ;;  %v4948_v4 = vld [vmem:[%s11398_s7 + $0x248] sm:$0xff] }
 0x33a   :  { %v5656_v40 = vmul.f32 %v5071_v10, %v4760_v6  ;;  %v7148_v6 = vld [vmem:[%s11396_s5 + $0x20c] sm:$0xf]  ;;  %v6327_v10 = vld [vmem:[%s11396_s5 + $0x218] sm:$0xf0] }
 0x33b   :  { %v4133_v48 = vpop.f32.mrf.mxu3 }
 0x33c   :  { %v5797_v9 = vsel %vm5771_vm0, %v5656_v40, 0.0  ;;  %v4134_v31 = vadd.f32 %v4133_v48, %v3805_v30  ;;  %v11641_v48 = vld [vmem:[#allocation78_spill] sm:$0xff] }
 0x33d   :  { %v5798_v19 = vadd.f32 %v5797_v9, %v5796_v47  ;;  %v3806_v44 = vpop.f32.mrf.mxu2  ;;  %v6325_v47 = vld [vmem:[%s11396_s5 + $0x208] sm:$0xf] }
 0x33e   :  { %v3807_v51 = vadd.f32 %v3806_v44, %v3478_v56  ;;  %v4463_v16 = vadd.f32 %v4462_v17, %v4134_v31  ;;  %v4464_v33 = vpop.f32.mrf.mxu0  ;;  %v7150_v17 = vld [vmem:[%s11396_s5 + $0x214] sm:$0xf0]  ;;  %v4944_v31 = vld [vmem:[%s11398_s7 + $0x228] sm:$0xff] }
 0x33f   :  { %v3480_v30 = vpop.f32.mrf.mxu1  ;;  %5355 = vperm.xlu0 %7395, %v4945_v53   ;;  %v6326_v9 = vor.u32 %v7150_v17, %v6325_v47  ;;  %v6330_v53 = vor.u32 %v7148_v6, %v6327_v10  ;;  %v6335_v47 = vld [vmem:[%s11396_s5 + $0x230] sm:$0xf0] }
 0x340   :  { %v4761_v55 = vmax.f32 %v4463_v16, 0.0  ;;  %5335 = vperm.xlu2 %7397, %v4941_v46   ;;  %v3481_v28 = vadd.f32 %v3480_v30, %v11641_v48  ;;  %v4943_v16 = vld [vmem:[%s11398_s7 + $0x220] sm:$0xff] }
 0x341   :  { %5330 = vperm.xlu1 %7396, %v4940_v23   ;;  %v6333_v30 = vld [vmem:[%s11396_s5 + $0x220] sm:$0xf] }
 0x342   :  { %v5657_v27 = vmul.f32 %v5076_v58, %v4761_v55  ;;  %3519 = vmatmul.bf16.gmra.mxu1 %v6318_v7  ;;  %3848 = vmatmul.bf16.gmra.mxu2 %v6322_v35  ;;  %v5081_v35 = vpop.permute.xlu2 %5080  ;;  %v7151_v58 = vld [vmem:[%s11396_s5 + $0x224] sm:$0xf] }
 0x343   :  { %v4135_v40 = vpop.f32.mrf.mxu3 }
 0x344   :  { %v5799_v62 = vsel %vm5771_vm0, %v5657_v27, 0.0  ;;  %v4136_v20 = vadd.f32 %v4135_v40, %v3807_v51  ;;  %v11642_v27 = vld [vmem:[#allocation62_spill] sm:$0xff] }
 0x345   :  { %v5800_v26 = vadd.f32 %v5799_v62, %v5798_v19  ;;  %v3809_v56 = vpop.f32.mrf.mxu2  ;;  %v4951_v40 = vld [vmem:[%s11398_s7 + $0x260] sm:$0xff] }
 0x346   :  { %v3810_v44 = vadd.f32 %v3809_v56, %v3481_v28  ;;  %v4465_v46 = vadd.f32 %v4464_v33, %v4136_v20  ;;  %v4467_v23 = vpop.f32.mrf.mxu0  ;;  %v7153_v33 = vld [vmem:[%s11396_s5 + $0x22c] sm:$0xf0]  ;;  %v4947_v28 = vld [vmem:[%s11398_s7 + $0x240] sm:$0xff] }
 0x347   :  { %v3482_v51 = vpop.f32.mrf.mxu1  ;;  %5370 = vperm.xlu0 %7395, %v4948_v4   ;;  %v6334_v56 = vor.u32 %v7153_v33, %v6333_v30 }
 0x348   :  { %v4762_v7 = vmax.f32 %v4465_v46, 0.0  ;;  %4177 = vmatmul.bf16.gmra.mxu3 %v6326_v9  ;;  %5350 = vperm.xlu2 %7397, %v4944_v31   ;;  %v3483_v6 = vadd.f32 %v3482_v51, %v11642_v27  ;;  %v4946_v9 = vld [vmem:[%s11398_s7 + $0x238] sm:$0xff]  ;;  %v6338_v31 = vor.u32 %v7151_v58, %v6335_v47 }
 0x349   :  { %5345 = vperm.xlu1 %7396, %v4943_v16   ;;  %4506 = vmatmul.bf16.gmra.mxu0 %v6330_v53  ;;  %v5086_v16 = vpop.permute.xlu0 %5085  ;;  %v4954_v47 = vld [vmem:[%s11398_s7 + $0x278] sm:$0xff] }
 0x34a   :  { %v5658_v19 = vmul.f32 %v5081_v35, %v4762_v7  ;;  %v7152_v7 = vld [vmem:[%s11396_s5 + $0x22c] sm:$0xf]  ;;  %v6343_v35 = vld [vmem:[%s11396_s5 + $0x238] sm:$0xf0] }
 0x34b   :  { %v4138_v55 = vpop.f32.mrf.mxu3 }
 0x34c   :  { %v5801_v17 = vsel %vm5771_vm0, %v5658_v19, 0.0  ;;  %v4139_v10 = vadd.f32 %v4138_v55, %v3810_v44  ;;  %v11643_v55 = vld [vmem:[#allocation69_spill] sm:$0xff] }
 0x34d   :  { %v5802_v62 = vadd.f32 %v5801_v17, %v5800_v26  ;;  %v3811_v48 = vpop.f32.mrf.mxu2  ;;  %v6341_v26 = vld [vmem:[%s11396_s5 + $0x228] sm:$0xf] }
 0x34e   :  { %v3812_v20 = vadd.f32 %v3811_v48, %v3483_v6  ;;  %v4468_v4 = vadd.f32 %v4467_v23, %v4139_v10  ;;  %v4469_v53 = vpop.f32.mrf.mxu0  ;;  %v7154_v23 = vld [vmem:[%s11396_s5 + $0x234] sm:$0xf0] }
 0x34f   :  { %v3485_v44 = vpop.f32.mrf.mxu1  ;;  %5385 = vperm.xlu0 %7395, %v4951_v40   ;;  %v6342_v17 = vor.u32 %v7154_v23, %v6341_v26  ;;  %v4950_v10 = vld [vmem:[%s11398_s7 + $0x258] sm:$0xff]  ;;  %v6346_v40 = vor.u32 %v7152_v7, %v6343_v35  ;;  %v6351_v26 = vld [vmem:[%s11396_s5 + $0x250] sm:$0xf0] }
 0x350   :  { %v4763_v46 = vmax.f32 %v4468_v4, 0.0  ;;  %5365 = vperm.xlu2 %7397, %v4947_v28   ;;  %v3486_v33 = vadd.f32 %v3485_v44, %v11643_v55  ;;  %v4949_v4 = vld [vmem:[%s11398_s7 + $0x250] sm:$0xff]  ;;  %v6349_v44 = vld [vmem:[%s11396_s5 + $0x240] sm:$0xf] }
 0x351   :  { %5360 = vperm.xlu1 %7396, %v4946_v9  }
 0x352   :  { %v5659_v51 = vmul.f32 %v5086_v16, %v4763_v46  ;;  %3524 = vmatmul.bf16.gmra.mxu1 %v6334_v56  ;;  %3853 = vmatmul.bf16.gmra.mxu2 %v6338_v31  ;;  %v5091_v31 = vpop.permute.xlu1 %5090  ;;  %v7155_v16 = vld [vmem:[%s11396_s5 + $0x244] sm:$0xf] }
 0x353   :  { %v4140_v19 = vpop.f32.mrf.mxu3 }
 0x354   :  { %v5803_v30 = vsel %vm5771_vm0, %v5659_v51, 0.0  ;;  %v4141_v58 = vadd.f32 %v4140_v19, %v3812_v20  ;;  %v11644_v51 = vld [vmem:[#allocation83_spill] sm:$0xff] }
 0x355   :  { %v5804_v27 = vadd.f32 %v5803_v30, %v5802_v62  ;;  %v3814_v6 = vpop.f32.mrf.mxu2  ;;  %v4957_v19 = vld [vmem:[%s11398_s7 + $0x290] sm:$0xff] }
 0x356   :  { %v3815_v48 = vadd.f32 %v3814_v6, %v3486_v33  ;;  %v4470_v28 = vadd.f32 %v4469_v53, %v4141_v58  ;;  %v4472_v9 = vpop.f32.mrf.mxu0  ;;  %v7157_v53 = vld [vmem:[%s11396_s5 + $0x24c] sm:$0xf0] }
 0x357   :  { %v3487_v20 = vpop.f32.mrf.mxu1  ;;  %5400 = vperm.xlu0 %7395, %v4954_v47   ;;  %v4953_v33 = vld [vmem:[%s11398_s7 + $0x270] sm:$0xff]  ;;  %v6350_v6 = vor.u32 %v7157_v53, %v6349_v44 }
 0x358   :  { %v4764_v56 = vmax.f32 %v4470_v28, 0.0  ;;  %4182 = vmatmul.bf16.gmra.mxu3 %v6342_v17  ;;  %5380 = vperm.xlu2 %7397, %v4950_v10   ;;  %v3488_v7 = vadd.f32 %v3487_v20, %v11644_v51  ;;  %v4952_v17 = vld [vmem:[%s11398_s7 + $0x268] sm:$0xff]  ;;  %v6354_v10 = vor.u32 %v7155_v16, %v6351_v26 }
 0x359   :  { %5375 = vperm.xlu1 %7396, %v4949_v4   ;;  %4511 = vmatmul.bf16.gmra.mxu0 %v6346_v40  ;;  %v5096_v4 = vpop.permute.xlu2 %5095  ;;  %v4960_v26 = vld [vmem:[%s11398_s7 + $0x2a8] sm:$0xff] }
 0x35a   :  { %v5660_v62 = vmul.f32 %v5091_v31, %v4764_v56  ;;  %v7156_v56 = vld [vmem:[%s11396_s5 + $0x24c] sm:$0xf]  ;;  %v6359_v31 = vld [vmem:[%s11396_s5 + $0x258] sm:$0xf0] }
 0x35b   :  { %v4143_v46 = vpop.f32.mrf.mxu3 }
 0x35c   :  { %v5805_v23 = vsel %vm5771_vm0, %v5660_v62, 0.0  ;;  %v4144_v35 = vadd.f32 %v4143_v46, %v3815_v48  ;;  %v11645_v46 = vld [vmem:[#allocation67_spill] sm:$0xff] }
 0x35d   :  { %v5806_v30 = vadd.f32 %v5805_v23, %v5804_v27  ;;  %v3816_v55 = vpop.f32.mrf.mxu2  ;;  %v6357_v27 = vld [vmem:[%s11396_s5 + $0x248] sm:$0xf] }
 0x35e   :  { %v3817_v58 = vadd.f32 %v3816_v55, %v3488_v7  ;;  %v4473_v47 = vadd.f32 %v4472_v9, %v4144_v35  ;;  %v4474_v40 = vpop.f32.mrf.mxu0  ;;  %v7158_v9 = vld [vmem:[%s11396_s5 + $0x254] sm:$0xf0]  ;;  %v4956_v35 = vld [vmem:[%s11398_s7 + $0x288] sm:$0xff] }
 0x35f   :  { %v3490_v48 = vpop.f32.mrf.mxu1  ;;  %5415 = vperm.xlu0 %7395, %v4957_v19   ;;  %v6358_v23 = vor.u32 %v7158_v9, %v6357_v27  ;;  %v6362_v19 = vor.u32 %v7156_v56, %v6359_v31  ;;  %v6367_v27 = vld [vmem:[%s11396_s5 + $0x270] sm:$0xf0] }
 0x360   :  { %v4765_v28 = vmax.f32 %v4473_v47, 0.0  ;;  %5395 = vperm.xlu2 %7397, %v4953_v33   ;;  %v3491_v53 = vadd.f32 %v3490_v48, %v11645_v46  ;;  %v4955_v47 = vld [vmem:[%s11398_s7 + $0x280] sm:$0xff] }
 0x361   :  { %5390 = vperm.xlu1 %7396, %v4952_v17   ;;  %v6365_v48 = vld [vmem:[%s11396_s5 + $0x260] sm:$0xf] }
 0x362   :  { %v5661_v20 = vmul.f32 %v5096_v4, %v4765_v28  ;;  %3529 = vmatmul.bf16.gmra.mxu1 %v6350_v6  ;;  %3858 = vmatmul.bf16.gmra.mxu2 %v6354_v10  ;;  %v5101_v10 = vpop.permute.xlu0 %5100  ;;  %v7159_v4 = vld [vmem:[%s11396_s5 + $0x264] sm:$0xf] }
 0x363   :  { %v4145_v62 = vpop.f32.mrf.mxu3 }
 0x364   :  { %v5807_v44 = vsel %vm5771_vm0, %v5661_v20, 0.0  ;;  %v4146_v16 = vadd.f32 %v4145_v62, %v3817_v58  ;;  %v11646_v20 = vld [vmem:[#allocation74_spill] sm:$0xff] }
 0x365   :  { %v5808_v51 = vadd.f32 %v5807_v44, %v5806_v30  ;;  %v3819_v7 = vpop.f32.mrf.mxu2  ;;  %v4963_v62 = vld [vmem:[%s11398_s7 + $0x2c0] sm:$0xff] }
 0x366   :  { %v3820_v55 = vadd.f32 %v3819_v7, %v3491_v53  ;;  %v4475_v33 = vadd.f32 %v4474_v40, %v4146_v16  ;;  %v4477_v17 = vpop.f32.mrf.mxu0  ;;  %v7161_v40 = vld [vmem:[%s11396_s5 + $0x26c] sm:$0xf0]  ;;  %v4959_v53 = vld [vmem:[%s11398_s7 + $0x2a0] sm:$0xff] }
 0x367   :  { %v3492_v58 = vpop.f32.mrf.mxu1  ;;  %5430 = vperm.xlu0 %7395, %v4960_v26   ;;  %v6366_v7 = vor.u32 %v7161_v40, %v6365_v48 }
 0x368   :  { %v4766_v6 = vmax.f32 %v4475_v33, 0.0  ;;  %4187 = vmatmul.bf16.gmra.mxu3 %v6358_v23  ;;  %5410 = vperm.xlu2 %7397, %v4956_v35   ;;  %v3493_v56 = vadd.f32 %v3492_v58, %v11646_v20  ;;  %v4958_v23 = vld [vmem:[%s11398_s7 + $0x298] sm:$0xff]  ;;  %v6370_v35 = vor.u32 %v7159_v4, %v6367_v27 }
 0x369   :  { %5405 = vperm.xlu1 %7396, %v4955_v47   ;;  %4516 = vmatmul.bf16.gmra.mxu0 %v6362_v19  ;;  %v5106_v47 = vpop.permute.xlu1 %5105  ;;  %v4966_v27 = vld [vmem:[%s11398_s7 + $0x2d8] sm:$0xff] }
 0x36a   :  { %v5662_v30 = vmul.f32 %v5101_v10, %v4766_v6  ;;  %v7160_v6 = vld [vmem:[%s11396_s5 + $0x26c] sm:$0xf]  ;;  %v6375_v10 = vld [vmem:[%s11396_s5 + $0x278] sm:$0xf0] }
 0x36b   :  { %v4148_v28 = vpop.f32.mrf.mxu3 }
 0x36c   :  { %v5809_v9 = vsel %vm5771_vm0, %v5662_v30, 0.0  ;;  %v4149_v31 = vadd.f32 %v4148_v28, %v3820_v55  ;;  %v11647_v28 = vld [vmem:[#allocation88_spill] sm:$0xff] }
 0x36d   :  { %v5810_v44 = vadd.f32 %v5809_v9, %v5808_v51  ;;  %v3821_v46 = vpop.f32.mrf.mxu2  ;;  %v6373_v51 = vld [vmem:[%s11396_s5 + $0x268] sm:$0xf] }
 0x36e   :  { %v3822_v16 = vadd.f32 %v3821_v46, %v3493_v56  ;;  %v4478_v26 = vadd.f32 %v4477_v17, %v4149_v31  ;;  %v4479_v19 = vpop.f32.mrf.mxu0  ;;  %v7162_v17 = vld [vmem:[%s11396_s5 + $0x274] sm:$0xf0] }
 0x36f   :  { %v3495_v55 = vpop.f32.mrf.mxu1  ;;  %5445 = vperm.xlu0 %7395, %v4963_v62   ;;  %v6374_v9 = vor.u32 %v7162_v17, %v6373_v51  ;;  %v4962_v31 = vld [vmem:[%s11398_s7 + $0x2b8] sm:$0xff]  ;;  %v6378_v62 = vor.u32 %v7160_v6, %v6375_v10  ;;  %v6383_v51 = vld [vmem:[%s11396_s5 + $0x290] sm:$0xf0] }
 0x370   :  { %v4767_v33 = vmax.f32 %v4478_v26, 0.0  ;;  %5425 = vperm.xlu2 %7397, %v4959_v53   ;;  %v3496_v40 = vadd.f32 %v3495_v55, %v11647_v28  ;;  %v4961_v26 = vld [vmem:[%s11398_s7 + $0x2b0] sm:$0xff]  ;;  %v6381_v55 = vld [vmem:[%s11396_s5 + $0x280] sm:$0xf] }
 0x371   :  { %5420 = vperm.xlu1 %7396, %v4958_v23  }
 0x372   :  { %v5663_v58 = vmul.f32 %v5106_v47, %v4767_v33  ;;  %3534 = vmatmul.bf16.gmra.mxu1 %v6366_v7  ;;  %3863 = vmatmul.bf16.gmra.mxu2 %v6370_v35  ;;  %v5111_v35 = vpop.permute.xlu2 %5110  ;;  %v7163_v47 = vld [vmem:[%s11396_s5 + $0x284] sm:$0xf] }
 0x373   :  { %v4150_v30 = vpop.f32.mrf.mxu3 }
 0x374   :  { %v5811_v48 = vsel %vm5771_vm0, %v5663_v58, 0.0  ;;  %v4151_v4 = vadd.f32 %v4150_v30, %v3822_v16  ;;  %v11648_v58 = vld [vmem:[#allocation72_spill] sm:$0xff] }
 0x375   :  { %v5812_v20 = vadd.f32 %v5811_v48, %v5810_v44  ;;  %v3824_v56 = vpop.f32.mrf.mxu2  ;;  %v4969_v30 = vld [vmem:[%s11398_s7 + $0x2f0] sm:$0xff] }
 0x376   :  { %v3825_v46 = vadd.f32 %v3824_v56, %v3496_v40  ;;  %v4480_v53 = vadd.f32 %v4479_v19, %v4151_v4  ;;  %v4482_v23 = vpop.f32.mrf.mxu0  ;;  %v7165_v19 = vld [vmem:[%s11396_s5 + $0x28c] sm:$0xf0] }
 0x377   :  { %v3497_v16 = vpop.f32.mrf.mxu1  ;;  %5460 = vperm.xlu0 %7395, %v4966_v27   ;;  %v4965_v40 = vld [vmem:[%s11398_s7 + $0x2d0] sm:$0xff]  ;;  %v6382_v56 = vor.u32 %v7165_v19, %v6381_v55 }
 0x378   :  { %v4768_v7 = vmax.f32 %v4480_v53, 0.0  ;;  %4192 = vmatmul.bf16.gmra.mxu3 %v6374_v9  ;;  %5440 = vperm.xlu2 %7397, %v4962_v31   ;;  %v3498_v6 = vadd.f32 %v3497_v16, %v11648_v58  ;;  %v4964_v9 = vld [vmem:[%s11398_s7 + $0x2c8] sm:$0xff]  ;;  %v6386_v31 = vor.u32 %v7163_v47, %v6383_v51 }
 0x379   :  { %5435 = vperm.xlu1 %7396, %v4961_v26   ;;  %4521 = vmatmul.bf16.gmra.mxu0 %v6378_v62  ;;  %v5116_v26 = vpop.permute.xlu0 %5115  ;;  %v4972_v51 = vld [vmem:[%s11398_s7 + $0x308] sm:$0xff] }
 0x37a   :  { %v5664_v44 = vmul.f32 %v5111_v35, %v4768_v7  ;;  %v7164_v7 = vld [vmem:[%s11396_s5 + $0x28c] sm:$0xf]  ;;  %v6391_v35 = vld [vmem:[%s11396_s5 + $0x298] sm:$0xf0] }
 0x37b   :  { %v4153_v33 = vpop.f32.mrf.mxu3 }
 0x37c   :  { %v5813_v17 = vsel %vm5771_vm0, %v5664_v44, 0.0  ;;  %v4154_v10 = vadd.f32 %v4153_v33, %v3825_v46  ;;  %v11649_v33 = vld [vmem:[#allocation79_spill] sm:$0xff] }
 0x37d   :  { %v5814_v48 = vadd.f32 %v5813_v17, %v5812_v20  ;;  %v3826_v28 = vpop.f32.mrf.mxu2  ;;  %v6389_v20 = vld [vmem:[%s11396_s5 + $0x288] sm:$0xf] }
 0x37e   :  { %v3827_v4 = vadd.f32 %v3826_v28, %v3498_v6  ;;  %v4483_v27 = vadd.f32 %v4482_v23, %v4154_v10  ;;  %v4484_v62 = vpop.f32.mrf.mxu0  ;;  %v7166_v23 = vld [vmem:[%s11396_s5 + $0x294] sm:$0xf0]  ;;  %v4968_v10 = vld [vmem:[%s11398_s7 + $0x2e8] sm:$0xff] }
 0x37f   :  { %v3500_v46 = vpop.f32.mrf.mxu1  ;;  %5475 = vperm.xlu0 %7395, %v4969_v30   ;;  %v6390_v17 = vor.u32 %v7166_v23, %v6389_v20  ;;  %v6394_v30 = vor.u32 %v7164_v7, %v6391_v35  ;;  %v6399_v20 = vld [vmem:[%s11396_s5 + $0x2b0] sm:$0xf0] }
 0x380   :  { %v4769_v53 = vmax.f32 %v4483_v27, 0.0  ;;  %5455 = vperm.xlu2 %7397, %v4965_v40   ;;  %v3501_v19 = vadd.f32 %v3500_v46, %v11649_v33  ;;  %v4967_v27 = vld [vmem:[%s11398_s7 + $0x2e0] sm:$0xff] }
 0x381   :  { %5450 = vperm.xlu1 %7396, %v4964_v9   ;;  %v6397_v46 = vld [vmem:[%s11396_s5 + $0x2a0] sm:$0xf] }
 0x382   :  { %v5665_v16 = vmul.f32 %v5116_v26, %v4769_v53  ;;  %3539 = vmatmul.bf16.gmra.mxu1 %v6382_v56  ;;  %3868 = vmatmul.bf16.gmra.mxu2 %v6386_v31  ;;  %v5121_v31 = vpop.permute.xlu1 %5120  ;;  %v7167_v26 = vld [vmem:[%s11396_s5 + $0x2a4] sm:$0xf] }
 0x383   :  { %v4155_v44 = vpop.f32.mrf.mxu3 }
 0x384   :  { %v5815_v55 = vsel %vm5771_vm0, %v5665_v16, 0.0  ;;  %v4156_v47 = vadd.f32 %v4155_v44, %v3827_v4  ;;  %v11650_v16 = vld [vmem:[#allocation93_spill] sm:$0xff] }
 0x385   :  { %v5816_v58 = vadd.f32 %v5815_v55, %v5814_v48  ;;  %v3829_v6 = vpop.f32.mrf.mxu2  ;;  %v4975_v44 = vld [vmem:[%s11398_s7 + $0x320] sm:$0xff] }
 0x386   :  { %v3830_v28 = vadd.f32 %v3829_v6, %v3501_v19  ;;  %v4485_v40 = vadd.f32 %v4484_v62, %v4156_v47  ;;  %v4487_v9 = vpop.f32.mrf.mxu0  ;;  %v7169_v62 = vld [vmem:[%s11396_s5 + $0x2ac] sm:$0xf0]  ;;  %v4971_v19 = vld [vmem:[%s11398_s7 + $0x300] sm:$0xff] }
 0x387   :  { %v3502_v4 = vpop.f32.mrf.mxu1  ;;  %5490 = vperm.xlu0 %7395, %v4972_v51   ;;  %v6398_v6 = vor.u32 %v7169_v62, %v6397_v46 }
 0x388   :  { %v4770_v56 = vmax.f32 %v4485_v40, 0.0  ;;  %4197 = vmatmul.bf16.gmra.mxu3 %v6390_v17  ;;  %5470 = vperm.xlu2 %7397, %v4968_v10   ;;  %v3503_v7 = vadd.f32 %v3502_v4, %v11650_v16  ;;  %v4970_v17 = vld [vmem:[%s11398_s7 + $0x2f8] sm:$0xff]  ;;  %v6402_v10 = vor.u32 %v7167_v26, %v6399_v20 }
 0x389   :  { %5465 = vperm.xlu1 %7396, %v4967_v27   ;;  %4526 = vmatmul.bf16.gmra.mxu0 %v6394_v30  ;;  %v5126_v27 = vpop.permute.xlu2 %5125  ;;  %v4978_v20 = vld [vmem:[%s11398_s7 + $0x338] sm:$0xff] }
 0x38a   :  { %v5666_v48 = vmul.f32 %v5121_v31, %v4770_v56  ;;  %v7168_v56 = vld [vmem:[%s11396_s5 + $0x2ac] sm:$0xf]  ;;  %v6407_v31 = vld [vmem:[%s11396_s5 + $0x2b8] sm:$0xf0] }
 0x38b   :  { %v4158_v53 = vpop.f32.mrf.mxu3 }
 0x38c   :  { %v5817_v23 = vsel %vm5771_vm0, %v5666_v48, 0.0  ;;  %v4159_v35 = vadd.f32 %v4158_v53, %v3830_v28  ;;  %v11651_v53 = vld [vmem:[#allocation77_spill] sm:$0xff] }
 0x38d   :  { %v5818_v55 = vadd.f32 %v5817_v23, %v5816_v58  ;;  %v3831_v33 = vpop.f32.mrf.mxu2  ;;  %v6405_v58 = vld [vmem:[%s11396_s5 + $0x2a8] sm:$0xf] }
 0x38e   :  { %v3832_v47 = vadd.f32 %v3831_v33, %v3503_v7  ;;  %v4488_v51 = vadd.f32 %v4487_v9, %v4159_v35  ;;  %v4489_v30 = vpop.f32.mrf.mxu0  ;;  %v7170_v9 = vld [vmem:[%s11396_s5 + $0x2b4] sm:$0xf0] }
 0x38f   :  { %v3505_v28 = vpop.f32.mrf.mxu1  ;;  %5505 = vperm.xlu0 %7395, %v4975_v44   ;;  %v6406_v23 = vor.u32 %v7170_v9, %v6405_v58  ;;  %v4974_v35 = vld [vmem:[%s11398_s7 + $0x318] sm:$0xff]  ;;  %v6410_v44 = vor.u32 %v7168_v56, %v6407_v31  ;;  %v6415_v58 = vld [vmem:[%s11396_s5 + $0x2d0] sm:$0xf0] }
 0x390   :  { %v4771_v40 = vmax.f32 %v4488_v51, 0.0  ;;  %5485 = vperm.xlu2 %7397, %v4971_v19   ;;  %v3506_v62 = vadd.f32 %v3505_v28, %v11651_v53  ;;  %v4973_v51 = vld [vmem:[%s11398_s7 + $0x310] sm:$0xff]  ;;  %v6413_v28 = vld [vmem:[%s11396_s5 + $0x2c0] sm:$0xf] }
 0x391   :  { %5480 = vperm.xlu1 %7396, %v4970_v17  }
 0x392   :  { %v5667_v4 = vmul.f32 %v5126_v27, %v4771_v40  ;;  %3544 = vmatmul.bf16.gmra.mxu1 %v6398_v6  ;;  %3873 = vmatmul.bf16.gmra.mxu2 %v6402_v10  ;;  %v5131_v10 = vpop.permute.xlu0 %5130  ;;  %v7171_v27 = vld [vmem:[%s11396_s5 + $0x2c4] sm:$0xf] }
 0x393   :  { %v4160_v48 = vpop.f32.mrf.mxu3 }
 0x394   :  { %v5819_v46 = vsel %vm5771_vm0, %v5667_v4, 0.0  ;;  %v4161_v26 = vadd.f32 %v4160_v48, %v3832_v47  ;;  %v11652_v4 = vld [vmem:[#allocation84_spill] sm:$0xff] }
 0x395   :  { %v5820_v16 = vadd.f32 %v5819_v46, %v5818_v55  ;;  %v3834_v7 = vpop.f32.mrf.mxu2  ;;  %v4981_v48 = vld [vmem:[%s11398_s7 + $0x350] sm:$0xff] }
 0x396   :  { %v3835_v33 = vadd.f32 %v3834_v7, %v3506_v62  ;;  %v4490_v19 = vadd.f32 %v4489_v30, %v4161_v26  ;;  %v4492_v17 = vpop.f32.mrf.mxu0  ;;  %v7173_v30 = vld [vmem:[%s11396_s5 + $0x2cc] sm:$0xf0] }
 0x397   :  { %v3507_v47 = vpop.f32.mrf.mxu1  ;;  %5520 = vperm.xlu0 %7395, %v4978_v20   ;;  %v4977_v62 = vld [vmem:[%s11398_s7 + $0x330] sm:$0xff]  ;;  %v6414_v7 = vor.u32 %v7173_v30, %v6413_v28 }
 0x398   :  { %v4772_v6 = vmax.f32 %v4490_v19, 0.0  ;;  %4202 = vmatmul.bf16.gmra.mxu3 %v6406_v23  ;;  %5500 = vperm.xlu2 %7397, %v4974_v35   ;;  %v3508_v56 = vadd.f32 %v3507_v47, %v11652_v4  ;;  %v4976_v23 = vld [vmem:[%s11398_s7 + $0x328] sm:$0xff]  ;;  %v6418_v35 = vor.u32 %v7171_v27, %v6415_v58 }
 0x399   :  { %5495 = vperm.xlu1 %7396, %v4973_v51   ;;  %4531 = vmatmul.bf16.gmra.mxu0 %v6410_v44  ;;  %v5136_v51 = vpop.permute.xlu1 %5135  ;;  %v4984_v58 = vld [vmem:[%s11398_s7 + $0x368] sm:$0xff] }
 0x39a   :  { %v5668_v55 = vmul.f32 %v5131_v10, %v4772_v6  ;;  %v7172_v6 = vld [vmem:[%s11396_s5 + $0x2cc] sm:$0xf]  ;;  %v6423_v10 = vld [vmem:[%s11396_s5 + $0x2d8] sm:$0xf0] }
 0x39b   :  { %v4163_v40 = vpop.f32.mrf.mxu3 }
 0x39c   :  { %v5821_v9 = vsel %vm5771_vm0, %v5668_v55, 0.0  ;;  %v4164_v31 = vadd.f32 %v4163_v40, %v3835_v33  ;;  %v11653_v40 = vld [vmem:[#allocation100_spill] sm:$0xff] }
 0x39d   :  { %v5822_v46 = vadd.f32 %v5821_v9, %v5820_v16  ;;  %v3836_v53 = vpop.f32.mrf.mxu2  ;;  %v6421_v16 = vld [vmem:[%s11396_s5 + $0x2c8] sm:$0xf] }
 0x39e   :  { %v3837_v26 = vadd.f32 %v3836_v53, %v3508_v56  ;;  %v4493_v20 = vadd.f32 %v4492_v17, %v4164_v31  ;;  %v4494_v44 = vpop.f32.mrf.mxu0  ;;  %v7174_v17 = vld [vmem:[%s11396_s5 + $0x2d4] sm:$0xf0]  ;;  %v4980_v31 = vld [vmem:[%s11398_s7 + $0x348] sm:$0xff] }
 0x39f   :  { %v3510_v33 = vpop.f32.mrf.mxu1  ;;  %5535 = vperm.xlu0 %7395, %v4981_v48   ;;  %v6422_v9 = vor.u32 %v7174_v17, %v6421_v16  ;;  %v6426_v48 = vor.u32 %v7172_v6, %v6423_v10  ;;  %v6431_v16 = vld [vmem:[%s11396_s5 + $0x2f0] sm:$0xf0] }
 0x3a0   :  { %v4773_v19 = vmax.f32 %v4493_v20, 0.0  ;;  %5515 = vperm.xlu2 %7397, %v4977_v62   ;;  %v3511_v30 = vadd.f32 %v3510_v33, %v11653_v40  ;;  %v4979_v20 = vld [vmem:[%s11398_s7 + $0x340] sm:$0xff] }
 0x3a1   :  { %5510 = vperm.xlu1 %7396, %v4976_v23   ;;  %v6429_v33 = vld [vmem:[%s11396_s5 + $0x2e0] sm:$0xf] }
 0x3a2   :  { %v5669_v47 = vmul.f32 %v5136_v51, %v4773_v19  ;;  %3549 = vmatmul.bf16.gmra.mxu1 %v6414_v7  ;;  %3878 = vmatmul.bf16.gmra.mxu2 %v6418_v35  ;;  %v5141_v35 = vpop.permute.xlu2 %5140  ;;  %v7175_v51 = vld [vmem:[%s11396_s5 + $0x2e4] sm:$0xf] }
 0x3a3   :  { %v4165_v55 = vpop.f32.mrf.mxu3 }
 0x3a4   :  { %v5823_v28 = vsel %vm5771_vm0, %v5669_v47, 0.0  ;;  %v4166_v27 = vadd.f32 %v4165_v55, %v3837_v26  ;;  %v11654_v47 = vld [vmem:[#allocation82_spill] sm:$0xff] }
 0x3a5   :  { %v5824_v4 = vadd.f32 %v5823_v28, %v5822_v46  ;;  %v3839_v56 = vpop.f32.mrf.mxu2  ;;  %v4987_v55 = vld [vmem:[%s11398_s7 + $0x380] sm:$0xff] }
 0x3a6   :  { %v3840_v53 = vadd.f32 %v3839_v56, %v3511_v30  ;;  %v4495_v62 = vadd.f32 %v4494_v44, %v4166_v27  ;;  %v4497_v23 = vpop.f32.mrf.mxu0  ;;  %v7177_v44 = vld [vmem:[%s11396_s5 + $0x2ec] sm:$0xf0]  ;;  %v4983_v30 = vld [vmem:[%s11398_s7 + $0x360] sm:$0xff] }
 0x3a7   :  { %v3512_v26 = vpop.f32.mrf.mxu1  ;;  %5550 = vperm.xlu0 %7395, %v4984_v58   ;;  %v6430_v56 = vor.u32 %v7177_v44, %v6429_v33 }
 0x3a8   :  { %v4774_v7 = vmax.f32 %v4495_v62, 0.0  ;;  %4207 = vmatmul.bf16.gmra.mxu3 %v6422_v9  ;;  %5530 = vperm.xlu2 %7397, %v4980_v31   ;;  %v3513_v6 = vadd.f32 %v3512_v26, %v11654_v47  ;;  %v4982_v9 = vld [vmem:[%s11398_s7 + $0x358] sm:$0xff]  ;;  %v6434_v31 = vor.u32 %v7175_v51, %v6431_v16 }
 0x3a9   :  { %5525 = vperm.xlu1 %7396, %v4979_v20   ;;  %4536 = vmatmul.bf16.gmra.mxu0 %v6426_v48  ;;  %v5146_v20 = vpop.permute.xlu0 %5145  ;;  %v4990_v16 = vld [vmem:[%s11398_s7 + $0x398] sm:$0xff] }
 0x3aa   :  { %v5670_v46 = vmul.f32 %v5141_v35, %v4774_v7  ;;  %v7176_v7 = vld [vmem:[%s11396_s5 + $0x2ec] sm:$0xf]  ;;  %v6439_v35 = vld [vmem:[%s11396_s5 + $0x2f8] sm:$0xf0] }
 0x3ab   :  { %v4168_v19 = vpop.f32.mrf.mxu3 }
 0x3ac   :  { %v5825_v17 = vsel %vm5771_vm0, %v5670_v46, 0.0  ;;  %v4169_v10 = vadd.f32 %v4168_v19, %v3840_v53  ;;  %v11655_v19 = vld [vmem:[#allocation89_spill] sm:$0xff] }
 0x3ad   :  { %v5826_v28 = vadd.f32 %v5825_v17, %v5824_v4  ;;  %v3841_v40 = vpop.f32.mrf.mxu2  ;;  %v6437_v4 = vld [vmem:[%s11396_s5 + $0x2e8] sm:$0xf] }
 0x3ae   :  { %v3842_v27 = vadd.f32 %v3841_v40, %v3513_v6  ;;  %v4498_v58 = vadd.f32 %v4497_v23, %v4169_v10  ;;  %v4499_v48 = vpop.f32.mrf.mxu0  ;;  %v7178_v23 = vld [vmem:[%s11396_s5 + $0x2f4] sm:$0xf0] }
 0x3af   :  { %v3515_v53 = vpop.f32.mrf.mxu1  ;;  %5565 = vperm.xlu0 %7395, %v4987_v55   ;;  %v6438_v17 = vor.u32 %v7178_v23, %v6437_v4  ;;  %v4986_v10 = vld [vmem:[%s11398_s7 + $0x378] sm:$0xff]  ;;  %v6442_v55 = vor.u32 %v7176_v7, %v6439_v35  ;;  %v6447_v4 = vld [vmem:[%s11396_s5 + $0x310] sm:$0xf0] }
 0x3b0   :  { %v4775_v62 = vmax.f32 %v4498_v58, 0.0  ;;  %5545 = vperm.xlu2 %7397, %v4983_v30   ;;  %v3516_v44 = vadd.f32 %v3515_v53, %v11655_v19  ;;  %v4985_v58 = vld [vmem:[%s11398_s7 + $0x370] sm:$0xff]  ;;  %v6445_v53 = vld [vmem:[%s11396_s5 + $0x300] sm:$0xf] }
 0x3b1   :  { %5540 = vperm.xlu1 %7396, %v4982_v9  }
 0x3b2   :  { %v5671_v26 = vmul.f32 %v5146_v20, %v4775_v62  ;;  %3554 = vmatmul.bf16.gmra.mxu1 %v6430_v56  ;;  %3883 = vmatmul.bf16.gmra.mxu2 %v6434_v31  ;;  %v5151_v31 = vpop.permute.xlu1 %5150  ;;  %v7179_v20 = vld [vmem:[%s11396_s5 + $0x304] sm:$0xf] }
 0x3b3   :  { %v4170_v46 = vpop.f32.mrf.mxu3 }
 0x3b4   :  { %v5827_v33 = vsel %vm5771_vm0, %v5671_v26, 0.0  ;;  %v4171_v51 = vadd.f32 %v4170_v46, %v3842_v27  ;;  %v11656_v26 = vld [vmem:[#allocation105_spill] sm:$0xff]  ;;  %v4993_v46 = vld [vmem:[%s11398_s7 + $0x3b0] sm:$0xff] }
 0x3b5   :  { %v5828_v47 = vadd.f32 %v5827_v33, %v5826_v28  ;;  %v3844_v6 = vpop.f32.mrf.mxu2 }
 0x3b6   :  { %v3845_v40 = vadd.f32 %v3844_v6, %v3516_v44  ;;  %v4500_v30 = vadd.f32 %v4499_v48, %v4171_v51  ;;  %v4502_v9 = vpop.f32.mrf.mxu0  ;;  %v7181_v48 = vld [vmem:[%s11396_s5 + $0x30c] sm:$0xf0] }
 0x3b7   :  { %v3517_v27 = vpop.f32.mrf.mxu1  ;;  %5580 = vperm.xlu0 %7395, %v4990_v16   ;;  %v4989_v44 = vld [vmem:[%s11398_s7 + $0x390] sm:$0xff]  ;;  %v6446_v6 = vor.u32 %v7181_v48, %v6445_v53 }
 0x3b8   :  { %v4776_v56 = vmax.f32 %v4500_v30, 0.0  ;;  %4212 = vmatmul.bf16.gmra.mxu3 %v6438_v17  ;;  %5560 = vperm.xlu2 %7397, %v4986_v10   ;;  %v3518_v7 = vadd.f32 %v3517_v27, %v11656_v26  ;;  %v4988_v17 = vld [vmem:[%s11398_s7 + $0x388] sm:$0xff]  ;;  %v6450_v10 = vor.u32 %v7179_v20, %v6447_v4 }
 0x3b9   :  { %5555 = vperm.xlu1 %7396, %v4985_v58   ;;  %4541 = vmatmul.bf16.gmra.mxu0 %v6442_v55  ;;  %v5156_v58 = vpop.permute.xlu2 %5155  ;;  %v4996_v4 = vld [vmem:[%s11398_s7 + $0x3c8] sm:$0xff] }
 0x3ba   :  { %v5672_v28 = vmul.f32 %v5151_v31, %v4776_v56  ;;  %v7180_v56 = vld [vmem:[%s11396_s5 + $0x30c] sm:$0xf]  ;;  %v6455_v31 = vld [vmem:[%s11396_s5 + $0x318] sm:$0xf0] }
 0x3bb   :  { %v4173_v62 = vpop.f32.mrf.mxu3 }
 0x3bc   :  { %v5829_v23 = vsel %vm5771_vm0, %v5672_v28, 0.0  ;;  %v4174_v35 = vadd.f32 %v4173_v62, %v3845_v40  ;;  %v11657_v62 = vld [vmem:[#allocation87_spill] sm:$0xff] }
 0x3bd   :  { %v5830_v33 = vadd.f32 %v5829_v23, %v5828_v47  ;;  %v3846_v19 = vpop.f32.mrf.mxu2  ;;  %v6453_v47 = vld [vmem:[%s11396_s5 + $0x308] sm:$0xf] }
 0x3be   :  { %v3847_v51 = vadd.f32 %v3846_v19, %v3518_v7  ;;  %v4503_v16 = vadd.f32 %v4502_v9, %v4174_v35  ;;  %v4504_v55 = vpop.f32.mrf.mxu0  ;;  %v7182_v9 = vld [vmem:[%s11396_s5 + $0x314] sm:$0xf0]  ;;  %v4992_v35 = vld [vmem:[%s11398_s7 + $0x3a8] sm:$0xff] }
 0x3bf   :  { %v3520_v40 = vpop.f32.mrf.mxu1  ;;  %5595 = vperm.xlu0 %7395, %v4993_v46   ;;  %v6454_v23 = vor.u32 %v7182_v9, %v6453_v47  ;;  %v6458_v46 = vor.u32 %v7180_v56, %v6455_v31  ;;  %v6463_v47 = vld [vmem:[%s11396_s5 + $0x330] sm:$0xf0] }
 0x3c0   :  { %v4777_v30 = vmax.f32 %v4503_v16, 0.0  ;;  %5575 = vperm.xlu2 %7397, %v4989_v44   ;;  %v3521_v48 = vadd.f32 %v3520_v40, %v11657_v62  ;;  %v4991_v16 = vld [vmem:[%s11398_s7 + $0x3a0] sm:$0xff] }
 0x3c1   :  { %5570 = vperm.xlu1 %7396, %v4988_v17   ;;  %v6461_v40 = vld [vmem:[%s11396_s5 + $0x320] sm:$0xf] }
 0x3c2   :  { %v5673_v27 = vmul.f32 %v5156_v58, %v4777_v30  ;;  %3559 = vmatmul.bf16.gmra.mxu1 %v6446_v6  ;;  %3888 = vmatmul.bf16.gmra.mxu2 %v6450_v10  ;;  %v5161_v10 = vpop.permute.xlu0 %5160  ;;  %v7183_v58 = vld [vmem:[%s11396_s5 + $0x324] sm:$0xf] }
 0x3c3   :  { %v4175_v28 = vpop.f32.mrf.mxu3 }
 0x3c4   :  { %v5831_v53 = vsel %vm5771_vm0, %v5673_v27, 0.0  ;;  %v4176_v20 = vadd.f32 %v4175_v28, %v3847_v51  ;;  %v11658_v27 = vld [vmem:[#allocation96_spill] sm:$0xff]  ;;  %v4999_v28 = vld [vmem:[%s11398_s7 + $0x3e0] sm:$0xff] }
 0x3c5   :  { %v5832_v26 = vadd.f32 %v5831_v53, %v5830_v33  ;;  %v3849_v7 = vpop.f32.mrf.mxu2 }
 0x3c6   :  { %v3850_v19 = vadd.f32 %v3849_v7, %v3521_v48  ;;  %v4505_v44 = vadd.f32 %v4504_v55, %v4176_v20  ;;  %v4507_v17 = vpop.f32.mrf.mxu0  ;;  %v7185_v55 = vld [vmem:[%s11396_s5 + $0x32c] sm:$0xf0]  ;;  %v4995_v48 = vld [vmem:[%s11398_s7 + $0x3c0] sm:$0xff] }
 0x3c7   :  { %v3522_v51 = vpop.f32.mrf.mxu1  ;;  %5610 = vperm.xlu0 %7395, %v4996_v4   ;;  %v6462_v7 = vor.u32 %v7185_v55, %v6461_v40 }
 0x3c8   :  { %v4778_v6 = vmax.f32 %v4505_v44, 0.0  ;;  %4217 = vmatmul.bf16.gmra.mxu3 %v6454_v23  ;;  %5590 = vperm.xlu2 %7397, %v4992_v35   ;;  %v3523_v56 = vadd.f32 %v3522_v51, %v11658_v27  ;;  %v4994_v23 = vld [vmem:[%s11398_s7 + $0x3b8] sm:$0xff]  ;;  %v6466_v35 = vor.u32 %v7183_v58, %v6463_v47 }
 0x3c9   :  { %5585 = vperm.xlu1 %7396, %v4991_v16   ;;  %4546 = vmatmul.bf16.gmra.mxu0 %v6458_v46  ;;  %v5166_v16 = vpop.permute.xlu1 %5165  ;;  %v5002_v47 = vld [vmem:[%s11398_s7 + $0x3f8] sm:$0xff] }
 0x3ca   :  { %v5674_v33 = vmul.f32 %v5161_v10, %v4778_v6  ;;  %v7184_v6 = vld [vmem:[%s11396_s5 + $0x32c] sm:$0xf]  ;;  %v6471_v10 = vld [vmem:[%s11396_s5 + $0x338] sm:$0xf0] }
 0x3cb   :  { %v4178_v30 = vpop.f32.mrf.mxu3 }
 0x3cc   :  { %v5833_v9 = vsel %vm5771_vm0, %v5674_v33, 0.0  ;;  %v4179_v31 = vadd.f32 %v4178_v30, %v3850_v19  ;;  %v11659_v30 = vld [vmem:[#allocation111_spill] sm:$0xff] }
 0x3cd   :  { %v5834_v53 = vadd.f32 %v5833_v9, %v5832_v26  ;;  %v3851_v62 = vpop.f32.mrf.mxu2  ;;  %v6469_v26 = vld [vmem:[%s11396_s5 + $0x328] sm:$0xf] }
 0x3ce   :  { %v3852_v20 = vadd.f32 %v3851_v62, %v3523_v56  ;;  %v4508_v4 = vadd.f32 %v4507_v17, %v4179_v31  ;;  %v4509_v46 = vpop.f32.mrf.mxu0  ;;  %v7186_v17 = vld [vmem:[%s11396_s5 + $0x334] sm:$0xf0] }
 0x3cf   :  { %v3525_v19 = vpop.f32.mrf.mxu1  ;;  %5625 = vperm.xlu0 %7395, %v4999_v28   ;;  %v6470_v9 = vor.u32 %v7186_v17, %v6469_v26  ;;  %v4998_v31 = vld [vmem:[%s11398_s7 + $0x3d8] sm:$0xff]  ;;  %v6474_v28 = vor.u32 %v7184_v6, %v6471_v10  ;;  %v6479_v26 = vld [vmem:[%s11396_s5 + $0x350] sm:$0xf0] }
 0x3d0   :  { %v4779_v44 = vmax.f32 %v4508_v4, 0.0  ;;  %5605 = vperm.xlu2 %7397, %v4995_v48   ;;  %v3526_v55 = vadd.f32 %v3525_v19, %v11659_v30  ;;  %v4997_v4 = vld [vmem:[%s11398_s7 + $0x3d0] sm:$0xff]  ;;  %v6477_v19 = vld [vmem:[%s11396_s5 + $0x340] sm:$0xf] }
 0x3d1   :  { %5600 = vperm.xlu1 %7396, %v4994_v23   ;;  %v5001_v30 = vld [vmem:[%s11398_s7 + $0x3f0] sm:$0xff] }
 0x3d2   :  { %v5675_v51 = vmul.f32 %v5166_v16, %v4779_v44  ;;  %3564 = vmatmul.bf16.gmra.mxu1 %v6462_v7  ;;  %3893 = vmatmul.bf16.gmra.mxu2 %v6466_v35  ;;  %v5171_v35 = vpop.permute.xlu2 %5170  ;;  %v7187_v16 = vld [vmem:[%s11396_s5 + $0x344] sm:$0xf] }
 0x3d3   :  { %v4180_v33 = vpop.f32.mrf.mxu3 }
 0x3d4   :  { %v5835_v40 = vsel %vm5771_vm0, %v5675_v51, 0.0  ;;  %v4181_v58 = vadd.f32 %v4180_v33, %v3852_v20  ;;  %v11660_v51 = vld [vmem:[#allocation92_spill] sm:$0xff] }
 0x3d5   :  { %v5836_v27 = vadd.f32 %v5835_v40, %v5834_v53  ;;  %v3854_v56 = vpop.f32.mrf.mxu2 }
 0x3d6   :  { %v3855_v62 = vadd.f32 %v3854_v56, %v3526_v55  ;;  %v4510_v48 = vadd.f32 %v4509_v46, %v4181_v58  ;;  %v4512_v23 = vpop.f32.mrf.mxu0  ;;  %v7189_v46 = vld [vmem:[%s11396_s5 + $0x34c] sm:$0xf0]  ;;  %v6482_v56 = vor.u32 %v7187_v16, %v6479_v26 }
 0x3d7   :  { %v3527_v20 = vpop.f32.mrf.mxu1  ;;  %5640 = vperm.xlu0 %7395, %v5002_v47   ;;  %v5000_v47 = vld [vmem:[%s11398_s7 + $0x3e8] sm:$0xff] }
 0x3d8   :  { %v4780_v7 = vmax.f32 %v4510_v48, 0.0  ;;  %4222 = vmatmul.bf16.gmra.mxu3 %v6470_v9  ;;  %5620 = vperm.xlu2 %7397, %v4998_v31   ;;  %v3528_v6 = vadd.f32 %v3527_v20, %v11660_v51  ;;  %v6478_v9 = vor.u32 %v7189_v46, %v6477_v19  ;;  %v7188_v20 = vld [vmem:[%s11396_s5 + $0x34c] sm:$0xf]  ;;  %v11661_v19 = vld [vmem:[#allocation101_spill] sm:$0xff] }
 0x3d9   :  { %5615 = vperm.xlu1 %7396, %v4997_v4   ;;  %4551 = vmatmul.bf16.gmra.mxu0 %v6474_v28  ;;  %v5176_v4 = vpop.permute.xlu0 %5175 }
 0x3da   :  { %v5676_v53 = vmul.f32 %v5171_v35, %v4780_v7  ;;  %v6487_v7 = vld [vmem:[%s11396_s5 + $0x358] sm:$0xf0] }
 0x3db   :  { %v4183_v44 = vpop.f32.mrf.mxu3  ;;  %v6490_v51 = vor.u32 %v7188_v20, %v6487_v7 }
 0x3dc   :  { %v5837_v17 = vsel %vm5771_vm0, %v5676_v53, 0.0  ;;  %v4184_v10 = vadd.f32 %v4183_v44, %v3855_v62  ;;  %v7190_v62 = vld [vmem:[%s11396_s5 + $0x354] sm:$0xf0] }
 0x3dd   :  { %v5838_v33 = vadd.f32 %v5837_v17, %v5836_v27  ;;  %v3856_v40 = vpop.f32.mrf.mxu2  ;;  %v6485_v27 = vld [vmem:[%s11396_s5 + $0x348] sm:$0xf] }
 0x3de   :  { %v3857_v55 = vadd.f32 %v3856_v40, %v3528_v6  ;;  %v4513_v58 = vadd.f32 %v4512_v23, %v4184_v10  ;;  %v4514_v31 = vpop.f32.mrf.mxu0  ;;  %v6486_v16 = vor.u32 %v7190_v62, %v6485_v27  ;;  %v6033_v40 = vld [vmem:[#allocation2] sm:$0x1]  ;;  %v11662_v27 = vld [vmem:[#allocation115_spill] sm:$0xff] }
 0x3df   :  { %v3530_v28 = vpop.f32.mrf.mxu1 }
 0x3e0   :  { %v4781_v48 = vmax.f32 %v4513_v58, 0.0  ;;  %5635 = vperm.xlu2 %7397, %v5001_v30   ;;  %v3531_v44 = vadd.f32 %v3530_v28, %v11661_v19  ;;  %v6493_v28 = vld [vmem:[%s11396_s5 + $0x360] sm:$0xf] }
 0x3e1   :  { %5630 = vperm.xlu1 %7396, %v5000_v47  }
 0x3e2   :  { %v5677_v23 = vmul.f32 %v5176_v4, %v4781_v48  ;;  %3569 = vmatmul.bf16.gmra.mxu1 %v6478_v9  ;;  %3898 = vmatmul.bf16.gmra.mxu2 %v6482_v56  ;;  %v5181_v9 = vpop.permute.xlu1 %5180  ;;  %v6495_v48 = vld [vmem:[%s11396_s5 + $0x370] sm:$0xf0] }
 0x3e3   :  { %v4185_v35 = vpop.f32.mrf.mxu3 }
 0x3e4   :  { %v5839_v53 = vsel %vm5771_vm0, %v5677_v23, 0.0  ;;  %v4186_v46 = vadd.f32 %v4185_v35, %v3857_v55 }
 0x3e5   :  { %v5840_v26 = vadd.f32 %v5839_v53, %v5838_v33  ;;  %v3859_v17 = vpop.f32.mrf.mxu2  ;;  %v7193_v33 = vld [vmem:[%s11396_s5 + $0x36c] sm:$0xf0] }
 0x3e6   :  { %v3860_v6 = vadd.f32 %v3859_v17, %v3531_v44  ;;  %v4515_v10 = vadd.f32 %v4514_v31, %v4186_v46  ;;  %v4517_v30 = vpop.f32.mrf.mxu0  ;;  %v7191_v31 = vld [vmem:[%s11396_s5 + $0x364] sm:$0xf]  ;;  %v6494_v19 = vor.u32 %v7193_v33, %v6493_v28 }
 0x3e7   :  { %v3532_v58 = vpop.f32.mrf.mxu1  ;;  %v6498_v44 = vor.u32 %v7191_v31, %v6495_v48 }
 0x3e8   :  { %v4782_v47 = vmax.f32 %v4515_v10, 0.0  ;;  %4227 = vmatmul.bf16.gmra.mxu3 %v6486_v16  ;;  %v3533_v62 = vadd.f32 %v3532_v58, %v11662_v27  ;;  %v6501_v10 = vld [vmem:[%s11396_s5 + $0x368] sm:$0xf] }
 0x3e9   :  { %6036 = vperm.xlu1 %7396, %v6033_v40   ;;  %4556 = vmatmul.bf16.gmra.mxu0 %v6490_v51  ;;  %v5186_v51 = vpop.permute.xlu2 %5185  ;;  %v7194_v40 = vld [vmem:[%s11396_s5 + $0x374] sm:$0xf0] }
 0x3ea   :  { %v5678_v56 = vmul.f32 %v5181_v9, %v4782_v47  ;;  %v11663_v9 = vld [vmem:[#allocation99_spill] sm:$0xff] }
 0x3eb   :  { %v4188_v55 = vpop.f32.mrf.mxu3 }
 0x3ec   :  { %v5841_v4 = vsel %vm5771_vm0, %v5678_v56, 0.0  ;;  %v4189_v23 = vadd.f32 %v4188_v55, %v3860_v6  ;;  %v6503_v6 = vld [vmem:[%s11396_s5 + $0x378] sm:$0xf0]  ;;  %v6502_v55 = vor.u32 %v7194_v40, %v6501_v10 }
 0x3ed   :  { %v5842_v20 = vadd.f32 %v5841_v4, %v5840_v26  ;;  %v3861_v7 = vpop.f32.mrf.mxu2  ;;  %v7192_v26 = vld [vmem:[%s11396_s5 + $0x36c] sm:$0xf] }
 0x3ee   :  { %v3862_v35 = vadd.f32 %v3861_v7, %v3533_v62  ;;  %v4518_v53 = vadd.f32 %v4517_v30, %v4189_v23  ;;  %v4519_v46 = vpop.f32.mrf.mxu0  ;;  %v6506_v48 = vor.u32 %v7192_v26, %v6503_v6 }
 0x3ef   :  { %v3535_v16 = vpop.f32.mrf.mxu1 }
 0x3f0   :  { %v4783_v17 = vmax.f32 %v4518_v53, 0.0  ;;  %v3536_v56 = vadd.f32 %v3535_v16, %v11663_v9  ;;  %v5191_v53 = vpop.permute.xlu0 %5190 }
 0x3f2   :  { %v5679_v58 = vmul.f32 %v5186_v51, %v4783_v17  ;;  %3574 = vmatmul.bf16.gmra.mxu1 %v6494_v19  ;;  %3903 = vmatmul.bf16.gmra.mxu2 %v6498_v44  ;;  %v6509_v44 = vld [vmem:[%s11396_s5 + $0x380] sm:$0xf]  ;;  %v11664_v51 = vld [vmem:[#allocation107_spill] sm:$0xff] }
 0x3f3   :  { %v4190_v30 = vpop.f32.mrf.mxu3 }
 0x3f4   :  { %v5843_v47 = vsel %vm5771_vm0, %v5679_v58, 0.0  ;;  %v4191_v28 = vadd.f32 %v4190_v30, %v3862_v35  ;;  %v7195_v35 = vld [vmem:[%s11396_s5 + $0x384] sm:$0xf] }
 0x3f5   :  { %v5844_v33 = vadd.f32 %v5843_v47, %v5842_v20  ;;  %v3864_v31 = vpop.f32.mrf.mxu2  ;;  %v7197_v20 = vld [vmem:[%s11396_s5 + $0x38c] sm:$0xf0] }
 0x3f6   :  { %v3865_v4 = vadd.f32 %v3864_v31, %v3536_v56  ;;  %v4520_v27 = vadd.f32 %v4519_v46, %v4191_v28  ;;  %v4522_v62 = vpop.f32.mrf.mxu0  ;;  %v6511_v46 = vld [vmem:[%s11396_s5 + $0x390] sm:$0xf0]  ;;  %v6510_v47 = vor.u32 %v7197_v20, %v6509_v44  ;;  %v5196_v31 = vpop.permute.xlu1 %5195 }
 0x3f7   :  { %v3537_v23 = vpop.f32.mrf.mxu1  ;;  %v6514_v9 = vor.u32 %v7195_v35, %v6511_v46 }
 0x3f8   :  { %v4784_v7 = vmax.f32 %v4520_v27, 0.0  ;;  %4232 = vmatmul.bf16.gmra.mxu3 %v6502_v55  ;;  %v3538_v10 = vadd.f32 %v3537_v23, %v11664_v51  ;;  %v7198_v27 = vld [vmem:[%s11396_s5 + $0x394] sm:$0xf0] }
 0x3f9   :  { %4561 = vmatmul.bf16.gmra.mxu0 %v6506_v48  ;;  %v6517_v48 = vld [vmem:[%s11396_s5 + $0x388] sm:$0xf] }
 0x3fa   :  { %v5680_v19 = vmul.f32 %v5191_v53, %v4784_v7  ;;  %v6518_v44 = vor.u32 %v7198_v27, %v6517_v48 }
 0x3fb   :  { %v4193_v17 = vpop.f32.mrf.mxu3 }
 0x3fc   :  { %v5845_v16 = vsel %vm5771_vm0, %v5680_v19, 0.0  ;;  %v4194_v40 = vadd.f32 %v4193_v17, %v3865_v4  ;;  %v6519_v4 = vld [vmem:[%s11396_s5 + $0x398] sm:$0xf0] }
 0x3fd   :  { %v5846_v58 = vadd.f32 %v5845_v16, %v5844_v33  ;;  %v3866_v26 = vpop.f32.mrf.mxu2  ;;  %v7196_v33 = vld [vmem:[%s11396_s5 + $0x38c] sm:$0xf] }
 0x3fe   :  { %v3867_v6 = vadd.f32 %v3866_v26, %v3538_v10  ;;  %v4523_v30 = vadd.f32 %v4522_v62, %v4194_v40  ;;  %v4524_v56 = vpop.f32.mrf.mxu0  ;;  %v6522_v35 = vor.u32 %v7196_v33, %v6519_v4  ;;  %v5201_v26 = vpop.permute.xlu2 %5200 }
 0x3ff   :  { %v3540_v28 = vpop.f32.mrf.mxu1 }
 0x400   :  { %v4785_v55 = vmax.f32 %v4523_v30, 0.0  ;;  %v3541_v53 = vadd.f32 %v3540_v28, %v8777_v61  ;;  %v7201_v61 = vld [vmem:[%s11396_s5 + $0x3ac] sm:$0xf0] }
 0x401   :  { %v11665_v28 = vld [vmem:[#allocation104_spill] sm:$0xff] }
 0x402   :  { %v5681_v23 = vmul.f32 %v5196_v31, %v4785_v55  ;;  %3579 = vmatmul.bf16.gmra.mxu1 %v6510_v47  ;;  %3908 = vmatmul.bf16.gmra.mxu2 %v6514_v9  ;;  %v6525_v47 = vld [vmem:[%s11396_s5 + $0x3a0] sm:$0xf] }
 0x403   :  { %v4195_v62 = vpop.f32.mrf.mxu3  ;;  %v6526_v4 = vor.u32 %v7201_v61, %v6525_v47 }
 0x404   :  { %v5847_v7 = vsel %vm5771_vm0, %v5681_v23, 0.0  ;;  %v4196_v19 = vadd.f32 %v4195_v62, %v3867_v6  ;;  %v6527_v6 = vld [vmem:[%s11396_s5 + $0x3b0] sm:$0xf0] }
 0x405   :  { %v5848_v17 = vadd.f32 %v5847_v7, %v5846_v58  ;;  %v3869_v20 = vpop.f32.mrf.mxu2  ;;  %v7199_v58 = vld [vmem:[%s11396_s5 + $0x3a4] sm:$0xf] }
 0x406   :  { %v3870_v46 = vadd.f32 %v3869_v20, %v3541_v53  ;;  %v4525_v16 = vadd.f32 %v4524_v56, %v4196_v19  ;;  %v4527_v51 = vpop.f32.mrf.mxu0  ;;  %v6530_v62 = vor.u32 %v7199_v58, %v6527_v6  ;;  %v6533_v20 = vld [vmem:[%s11396_s5 + $0x3a8] sm:$0xf] }
 0x407   :  { %v3542_v10 = vpop.f32.mrf.mxu1 }
 0x408   :  { %v4786_v40 = vmax.f32 %v4525_v16, 0.0  ;;  %4237 = vmatmul.bf16.gmra.mxu3 %v6518_v44  ;;  %v3543_v55 = vadd.f32 %v3542_v10, %v11665_v28  ;;  %v5206_v44 = vpop.permute.xlu0 %5205 }
 0x409   :  { %4566 = vmatmul.bf16.gmra.mxu0 %v6522_v35  ;;  %v7202_v35 = vld [vmem:[%s11396_s5 + $0x3b4] sm:$0xf0] }
 0x40a   :  { %v5682_v30 = vmul.f32 %v5201_v26, %v4786_v40  ;;  %v11666_v40 = vld [vmem:[#allocation112_spill] sm:$0xff]  ;;  %v6534_v47 = vor.u32 %v7202_v35, %v6533_v20 }
 0x40b   :  { %v4198_v9 = vpop.f32.mrf.mxu3 }
 0x40c   :  { %v5849_v56 = vsel %vm5771_vm0, %v5682_v30, 0.0  ;;  %v4199_v31 = vadd.f32 %v4198_v9, %v3870_v46  ;;  %v6535_v46 = vld [vmem:[%s11396_s5 + $0x3b8] sm:$0xf0] }
 0x40d   :  { %v5850_v48 = vadd.f32 %v5849_v56, %v5848_v17  ;;  %v3871_v27 = vpop.f32.mrf.mxu2  ;;  %v7200_v17 = vld [vmem:[%s11396_s5 + $0x3ac] sm:$0xf] }
 0x40e   :  { %v3872_v23 = vadd.f32 %v3871_v27, %v3543_v55  ;;  %v4528_v33 = vadd.f32 %v4527_v51, %v4199_v31  ;;  %v4529_v7 = vpop.f32.mrf.mxu0  ;;  %v6538_v58 = vor.u32 %v7200_v17, %v6535_v46  ;;  %v5211_v27 = vpop.permute.xlu1 %5210 }
 0x40f   :  { %v3545_v53 = vpop.f32.mrf.mxu1 }
 0x410   :  { %v4787_v19 = vmax.f32 %v4528_v33, 0.0  ;;  %v3546_v26 = vadd.f32 %v3545_v53, %v11666_v40 }
 0x412   :  { %v5683_v16 = vmul.f32 %v5206_v44, %v4787_v19  ;;  %3584 = vmatmul.bf16.gmra.mxu1 %v6526_v4  ;;  %3913 = vmatmul.bf16.gmra.mxu2 %v6530_v62  ;;  %v6541_v4 = vld [vmem:[%s11396_s5 + $0x3c0] sm:$0xf] }
 0x413   :  { %v4200_v51 = vpop.f32.mrf.mxu3 }
 0x414   :  { %v5851_v10 = vsel %vm5771_vm0, %v5683_v16, 0.0  ;;  %v4201_v30 = vadd.f32 %v4200_v51, %v3872_v23  ;;  %v7203_v23 = vld [vmem:[%s11396_s5 + $0x3c4] sm:$0xf] }
 0x415   :  { %v5852_v9 = vadd.f32 %v5851_v10, %v5850_v48  ;;  %v3874_v61 = vpop.f32.mrf.mxu2  ;;  %v7205_v48 = vld [vmem:[%s11396_s5 + $0x3cc] sm:$0xf0] }
 0x416   :  { %v3875_v6 = vadd.f32 %v3874_v61, %v3546_v26  ;;  %v4530_v56 = vadd.f32 %v4529_v7, %v4201_v30  ;;  %v4532_v28 = vpop.f32.mrf.mxu0  ;;  %v6543_v7 = vld [vmem:[%s11396_s5 + $0x3d0] sm:$0xf0]  ;;  %v6542_v46 = vor.u32 %v7205_v48, %v6541_v4  ;;  %v5216_v30 = vpop.permute.xlu2 %5215  ;;  %v7206_v61 = vld [vmem:[%s11396_s5 + $0x3d4] sm:$0xf0] }
 0x417   :  { %v3547_v55 = vpop.f32.mrf.mxu1  ;;  %v6546_v51 = vor.u32 %v7203_v23, %v6543_v7 }
 0x418   :  { %v4788_v31 = vmax.f32 %v4530_v56, 0.0  ;;  %4242 = vmatmul.bf16.gmra.mxu3 %v6534_v47  ;;  %v3548_v19 = vadd.f32 %v3547_v55, %v8838_v21  ;;  %v6549_v47 = vld [vmem:[%s11396_s5 + $0x3c8] sm:$0xf] }
 0x419   :  { %4571 = vmatmul.bf16.gmra.mxu0 %v6538_v58  ;;  %v6551_v58 = vld [vmem:[%s11396_s5 + $0x3d8] sm:$0xf0] }
 0x41a   :  { %v5684_v33 = vmul.f32 %v5211_v27, %v4788_v31  ;;  %v6550_v27 = vor.u32 %v7206_v61, %v6549_v47 }
 0x41b   :  { %v4203_v62 = vpop.f32.mrf.mxu3 }
 0x41c   :  { %v5853_v53 = vsel %vm5771_vm0, %v5684_v33, 0.0  ;;  %v4204_v44 = vadd.f32 %v4203_v62, %v3875_v6 }
 0x41d   :  { %v5854_v20 = vadd.f32 %v5853_v53, %v5852_v9  ;;  %v3876_v35 = vpop.f32.mrf.mxu2  ;;  %v7204_v9 = vld [vmem:[%s11396_s5 + $0x3cc] sm:$0xf] }
 0x41e   :  { %v3877_v16 = vadd.f32 %v3876_v35, %v3548_v19  ;;  %v4533_v17 = vadd.f32 %v4532_v28, %v4204_v44  ;;  %v4534_v10 = vpop.f32.mrf.mxu0  ;;  %v11667_v28 = vld [vmem:[#allocation110_spill] sm:$0xff]  ;;  %v6554_v62 = vor.u32 %v7204_v9, %v6551_v58  ;;  %v5221_v44 = vpop.permute.xlu0 %5220 }
 0x41f   :  { %v3550_v40 = vpop.f32.mrf.mxu1 }
 0x420   :  { %v4789_v26 = vmax.f32 %v4533_v17, 0.0  ;;  %v3551_v55 = vadd.f32 %v3550_v40, %v11667_v28  ;;  %v6557_v17 = vld [vmem:[%s11396_s5 + $0x3e0] sm:$0xf] }
 0x422   :  { %v5685_v21 = vmul.f32 %v5216_v30, %v4789_v26  ;;  %3589 = vmatmul.bf16.gmra.mxu1 %v6542_v46  ;;  %3918 = vmatmul.bf16.gmra.mxu2 %v6546_v51  ;;  %v6559_v51 = vld [vmem:[%s11396_s5 + $0x3f0] sm:$0xf0] }
 0x423   :  { %v4205_v6 = vpop.f32.mrf.mxu3 }
 0x424   :  { %v5855_v56 = vsel %vm5771_vm0, %v5685_v21, 0.0  ;;  %v4206_v31 = vadd.f32 %v4205_v6, %v3877_v16  ;;  %v7207_v16 = vld [vmem:[%s11396_s5 + $0x3e4] sm:$0xf] }
 0x425   :  { %v5856_v33 = vadd.f32 %v5855_v56, %v5854_v20  ;;  %v3879_v4 = vpop.f32.mrf.mxu2  ;;  %v7209_v20 = vld [vmem:[%s11396_s5 + $0x3ec] sm:$0xf0]  ;;  %v6562_v58 = vor.u32 %v7207_v16, %v6559_v51 }
 0x426   :  { %v3880_v48 = vadd.f32 %v3879_v4, %v3551_v55  ;;  %v4535_v23 = vadd.f32 %v4534_v10, %v4206_v31  ;;  %v4537_v7 = vpop.f32.mrf.mxu0  ;;  %v6558_v9 = vor.u32 %v7209_v20, %v6557_v17  ;;  %v5226_v55 = vpop.permute.xlu1 %5225  ;;  %v6565_v31 = vld [vmem:[%s11396_s5 + $0x3e8] sm:$0xf]  ;;  %v6567_v4 = vld [vmem:[%s11396_s5 + $0x3f8] sm:$0xf0] }
 0x427   :  { %v3552_v53 = vpop.f32.mrf.mxu1 }
 0x428   :  { %v4790_v19 = vmax.f32 %v4535_v23, 0.0  ;;  %4247 = vmatmul.bf16.gmra.mxu3 %v6550_v27  ;;  %v3553_v40 = vadd.f32 %v3552_v53, %v8747_v36  ;;  %v7210_v27 = vld [vmem:[%s11396_s5 + $0x3f4] sm:$0xf0] }
 0x429   :  { %4576 = vmatmul.bf16.gmra.mxu0 %v6554_v62  ;;  %v6566_v53 = vor.u32 %v7210_v27, %v6565_v31 }
 0x42a   :  { %v5686_v35 = vmul.f32 %v5221_v44, %v4790_v19 }
 0x42b   :  { %v4208_v46 = vpop.f32.mrf.mxu3 }
 0x42c   :  { %v5857_v10 = vsel %vm5771_vm0, %v5686_v35, 0.0  ;;  %v4209_v26 = vadd.f32 %v4208_v46, %v3880_v48 }
 0x42d   :  { %v5858_v30 = vadd.f32 %v5857_v10, %v5856_v33  ;;  %v3881_v47 = vpop.f32.mrf.mxu2  ;;  %v7208_v33 = vld [vmem:[%s11396_s5 + $0x3ec] sm:$0xf]  ;;  %v5231_v10 = vpop.permute.xlu2 %5230 }
 0x42e   :  { %v3882_v61 = vadd.f32 %v3881_v47, %v3553_v40  ;;  %v4538_v21 = vadd.f32 %v4537_v7, %v4209_v26  ;;  %v4539_v6 = vpop.f32.mrf.mxu0  ;;  %v6570_v35 = vor.u32 %v7208_v33, %v6567_v4  ;;  %v6573_v26 = vld [vmem:[%s11396_s5 + $0x400] sm:$0xf] }
 0x42f   :  { %v3555_v56 = vpop.f32.mrf.mxu1 }
 0x430   :  { %v4791_v28 = vmax.f32 %v4538_v21, 0.0  ;;  %v3556_v23 = vadd.f32 %v3555_v56, %v8873_v38  ;;  %v7213_v38 = vld [vmem:[%s11396_s5 + $0x40c] sm:$0xf0] }
 0x431   :  { %v6574_v27 = vor.u32 %v7213_v38, %v6573_v26 }
 0x432   :  { %v5687_v36 = vmul.f32 %v5226_v55, %v4791_v28  ;;  %3594 = vmatmul.bf16.gmra.mxu1 %v6558_v9  ;;  %3923 = vmatmul.bf16.gmra.mxu2 %v6562_v58  ;;  %v11668_v9 = vld [vmem:[#allocation114_spill] sm:$0xff] }
 0x433   :  { %v4210_v62 = vpop.f32.mrf.mxu3 }
 0x434   :  { %v5859_v48 = vsel %vm5771_vm0, %v5687_v36, 0.0  ;;  %v4211_v7 = vadd.f32 %v4210_v62, %v3882_v61  ;;  %v6575_v61 = vld [vmem:[%s11396_s5 + $0x410] sm:$0xf0] }
 0x435   :  { %v5860_v19 = vadd.f32 %v5859_v48, %v5858_v30  ;;  %v3884_v44 = vpop.f32.mrf.mxu2  ;;  %v7211_v30 = vld [vmem:[%s11396_s5 + $0x404] sm:$0xf]  ;;  %v5236_v48 = vpop.permute.xlu0 %5235 }
 0x436   :  { %v3885_v17 = vadd.f32 %v3884_v44, %v3556_v23  ;;  %v4540_v46 = vadd.f32 %v4539_v6, %v4211_v7  ;;  %v4542_v20 = vpop.f32.mrf.mxu0  ;;  %v6578_v36 = vor.u32 %v7211_v30, %v6575_v61  ;;  %v6581_v23 = vld [vmem:[%s11396_s5 + $0x408] sm:$0xf]  ;;  %v7214_v7 = vld [vmem:[%s11396_s5 + $0x414] sm:$0xf0]  ;;  %v6583_v44 = vld [vmem:[%s11396_s5 + $0x418] sm:$0xf0] }
 0x437   :  { %v3557_v16 = vpop.f32.mrf.mxu1 }
 0x438   :  { %v4792_v51 = vmax.f32 %v4540_v46, 0.0  ;;  %4252 = vmatmul.bf16.gmra.mxu3 %v6566_v53  ;;  %v3558_v58 = vadd.f32 %v3557_v16, %v11668_v9  ;;  %v6582_v16 = vor.u32 %v7214_v7, %v6581_v23 }
 0x439   :  { %4581 = vmatmul.bf16.gmra.mxu0 %v6570_v35 }
 0x43a   :  { %v5688_v40 = vmul.f32 %v5231_v10, %v4792_v51 }
 0x43b   :  { %v4213_v47 = vpop.f32.mrf.mxu3 }
 0x43c   :  { %v5861_v21 = vsel %vm5771_vm0, %v5688_v40, 0.0  ;;  %v4214_v6 = vadd.f32 %v4213_v47, %v3885_v17 }
 0x43d   :  { %v5862_v56 = vadd.f32 %v5861_v21, %v5860_v19  ;;  %v3886_v28 = vpop.f32.mrf.mxu2  ;;  %v7212_v19 = vld [vmem:[%s11396_s5 + $0x40c] sm:$0xf]  ;;  %v5241_v21 = vpop.permute.xlu1 %5240 }
 0x43e   :  { %v3887_v55 = vadd.f32 %v3886_v28, %v3558_v58  ;;  %v4543_v31 = vadd.f32 %v4542_v20, %v4214_v6  ;;  %v4544_v33 = vpop.f32.mrf.mxu0  ;;  %v6586_v40 = vor.u32 %v7212_v19, %v6583_v44  ;;  %v6589_v58 = vld [vmem:[%s11396_s5 + $0x420] sm:$0xf]  ;;  %v6591_v28 = vld [vmem:[%s11396_s5 + $0x430] sm:$0xf0]  ;;  %v5246_v44 = vpop.permute.xlu2 %5245 }
 0x43f   :  { %v3560_v4 = vpop.f32.mrf.mxu1 }
 0x440   :  { %v4793_v62 = vmax.f32 %v4543_v31, 0.0  ;;  %v3561_v46 = vadd.f32 %v3560_v4, %v8826_v1  ;;  %v7217_v1 = vld [vmem:[%s11396_s5 + $0x42c] sm:$0xf0] }
 0x442   :  { %v5689_v53 = vmul.f32 %v5236_v48, %v4793_v62  ;;  %3599 = vmatmul.bf16.gmra.mxu1 %v6574_v27  ;;  %3928 = vmatmul.bf16.gmra.mxu2 %v6578_v36  ;;  %v6590_v48 = vor.u32 %v7217_v1, %v6589_v58  ;;  %v5251_v1 = vpop.permute.xlu0 %5250 }
 0x443   :  { %v4215_v35 = vpop.f32.mrf.mxu3 }
 0x444   :  { %v5863_v17 = vsel %vm5771_vm0, %v5689_v53, 0.0  ;;  %v4216_v20 = vadd.f32 %v4215_v35, %v3887_v55  ;;  %v6597_v35 = vld [vmem:[%s11396_s5 + $0x428] sm:$0xf] }
 0x445   :  { %v5864_v51 = vadd.f32 %v5863_v17, %v5862_v56  ;;  %v3889_v10 = vpop.f32.mrf.mxu2  ;;  %v7215_v56 = vld [vmem:[%s11396_s5 + $0x424] sm:$0xf]  ;;  %v7218_v17 = vld [vmem:[%s11396_s5 + $0x434] sm:$0xf0] }
 0x446   :  { %v3890_v26 = vadd.f32 %v3889_v10, %v3561_v46  ;;  %v4545_v47 = vadd.f32 %v4544_v33, %v4216_v20  ;;  %v4547_v38 = vpop.f32.mrf.mxu0  ;;  %v6594_v23 = vor.u32 %v7215_v56, %v6591_v28  ;;  %v7216_v46 = vld [vmem:[%s11396_s5 + $0x42c] sm:$0xf]  ;;  %v6599_v20 = vld [vmem:[%s11396_s5 + $0x438] sm:$0xf0]  ;;  %v6605_v28 = vld [vmem:[%s11396_s5 + $0x440] sm:$0xf] }
 0x447   :  { %v3562_v30 = vpop.f32.mrf.mxu1 }
 0x448   :  { %v4794_v61 = vmax.f32 %v4545_v47, 0.0  ;;  %4257 = vmatmul.bf16.gmra.mxu3 %v6582_v16  ;;  %v3563_v31 = vadd.f32 %v3562_v30, %v8912_v49  ;;  %v6602_v30 = vor.u32 %v7216_v46, %v6599_v20  ;;  %v6613_v46 = vld [vmem:[%s11396_s5 + $0x448] sm:$0xf]  ;;  %v7222_v20 = vld [vmem:[%s11396_s5 + $0x454] sm:$0xf0] }
 0x449   :  { %4586 = vmatmul.bf16.gmra.mxu0 %v6586_v40 }
 0x44a   :  { %v5690_v9 = vmul.f32 %v5241_v21, %v4794_v61 }
 0x44b   :  { %v4218_v6 = vpop.f32.mrf.mxu3 }
 0x44c   :  { %v5865_v55 = vsel %vm5771_vm0, %v5690_v9, 0.0  ;;  %v4219_v27 = vadd.f32 %v4218_v6, %v3890_v26  ;;  %v6598_v26 = vor.u32 %v7218_v17, %v6597_v35 }
 0x44d   :  { %v5866_v36 = vadd.f32 %v5865_v55, %v5864_v51  ;;  %v3891_v33 = vpop.f32.mrf.mxu2 }
 0x44e   :  { %v3892_v4 = vadd.f32 %v3891_v33, %v3563_v31  ;;  %v4548_v62 = vadd.f32 %v4547_v38, %v4219_v27  ;;  %v4549_v7 = vpop.f32.mrf.mxu0  ;;  %v7219_v31 = vld [vmem:[%s11396_s5 + $0x444] sm:$0xf]  ;;  %v6607_v27 = vld [vmem:[%s11396_s5 + $0x450] sm:$0xf0] }
 0x44f   :  { %v3565_v53 = vpop.f32.mrf.mxu1 }
 0x450   :  { %v4795_v19 = vmax.f32 %v4548_v62, 0.0  ;;  %v3566_v10 = vadd.f32 %v3565_v53, %v8762_v14  ;;  %v7221_v14 = vld [vmem:[%s11396_s5 + $0x44c] sm:$0xf0] }
 0x451   :  { %v6606_v53 = vor.u32 %v7221_v14, %v6605_v28  ;;  %v5261_v28 = vpop.permute.xlu2 %5260  ;;  %v6621_v14 = vld [vmem:[%s11396_s5 + $0x460] sm:$0xf] }
 0x452   :  { %v5691_v49 = vmul.f32 %v5246_v44, %v4795_v19  ;;  %3604 = vmatmul.bf16.gmra.mxu1 %v6590_v48  ;;  %3933 = vmatmul.bf16.gmra.mxu2 %v6594_v23  ;;  %v6610_v19 = vor.u32 %v7219_v31, %v6607_v27  ;;  %v7223_v27 = vld [vmem:[%s11396_s5 + $0x464] sm:$0xf] }
 0x453   :  { %v4220_v16 = vpop.f32.mrf.mxu3 }
 0x454   :  { %v5867_v51 = vsel %vm5771_vm0, %v5691_v49, 0.0  ;;  %v4221_v40 = vadd.f32 %v4220_v16, %v3892_v4  ;;  %v5256_v49 = vpop.permute.xlu1 %5255  ;;  %v7220_v16 = vld [vmem:[%s11396_s5 + $0x44c] sm:$0xf] }
 0x455   :  { %v5868_v47 = vadd.f32 %v5867_v51, %v5866_v36  ;;  %v3894_v38 = vpop.f32.mrf.mxu2  ;;  %v6615_v51 = vld [vmem:[%s11396_s5 + $0x458] sm:$0xf0] }
 0x456   :  { %v3895_v61 = vadd.f32 %v3894_v38, %v3566_v10  ;;  %v4550_v21 = vadd.f32 %v4549_v7, %v4221_v40  ;;  %v4552_v9 = vpop.f32.mrf.mxu0  ;;  %v6614_v38 = vor.u32 %v7222_v20, %v6613_v46  ;;  %v5266_v46 = vpop.permute.xlu0 %5265  ;;  %v6629_v20 = vld [vmem:[%s11396_s5 + $0x468] sm:$0xf] }
 0x457   :  { %v3567_v58 = vpop.f32.mrf.mxu1 }
 0x458   :  { %v4796_v6 = vmax.f32 %v4550_v21, 0.0  ;;  %4262 = vmatmul.bf16.gmra.mxu3 %v6598_v26  ;;  %v3568_v33 = vadd.f32 %v3567_v58, %v8863_v0  ;;  %v6618_v21 = vor.u32 %v7220_v16, %v6615_v51  ;;  %v7224_v16 = vld [vmem:[%s11396_s5 + $0x46c] sm:$0xf]  ;;  %v6631_v51 = vld [vmem:[%s11396_s5 + $0x478] sm:$0xf0] }
 0x459   :  { %4591 = vmatmul.bf16.gmra.mxu0 %v6602_v30 }
 0x45a   :  { %v5692_v56 = vmul.f32 %v5251_v1, %v4796_v6 }
 0x45b   :  { %v4223_v55 = vpop.f32.mrf.mxu3 }
 0x45c   :  { %v5869_v36 = vsel %vm5771_vm0, %v5692_v56, 0.0  ;;  %v4224_v4 = vadd.f32 %v4223_v55, %v3895_v61 }
 0x45d   :  { %v5870_v62 = vadd.f32 %v5869_v36, %v5868_v47  ;;  %v3896_v48 = vpop.f32.mrf.mxu2  ;;  %v6623_v36 = vld [vmem:[%s11396_s5 + $0x470] sm:$0xf0] }
 0x45e   :  { %v3897_v23 = vadd.f32 %v3896_v48, %v3568_v33  ;;  %v4553_v7 = vadd.f32 %v4552_v9, %v4224_v4  ;;  %v4554_v44 = vpop.f32.mrf.mxu0 }
 0x45f   :  { %v3570_v35 = vpop.f32.mrf.mxu1 }
 0x460   :  { %v4797_v17 = vmax.f32 %v4553_v7, 0.0  ;;  %v3571_v26 = vadd.f32 %v3570_v35, %v8954_v54  ;;  %v7225_v54 = vld [vmem:[%s11396_s5 + $0x46c] sm:$0xf0] }
 0x462   :  { %v5693_v0 = vmul.f32 %v5256_v49, %v4797_v17  ;;  %3609 = vmatmul.bf16.gmra.mxu1 %v6606_v53  ;;  %3938 = vmatmul.bf16.gmra.mxu2 %v6610_v19  ;;  %v6622_v19 = vor.u32 %v7225_v54, %v6621_v14  ;;  %v6637_v14 = vld [vmem:[%s11396_s5 + $0x480] sm:$0xf]  ;;  %v7227_v54 = vld [vmem:[%s11396_s5 + $0x484] sm:$0xf] }
 0x463   :  { %v4225_v10 = vpop.f32.mrf.mxu3 }
 0x464   :  { %v5871_v40 = vsel %vm5771_vm0, %v5693_v0, 0.0  ;;  %v4226_v47 = vadd.f32 %v4225_v10, %v3897_v23  ;;  %v7226_v0 = vld [vmem:[%s11396_s5 + $0x474] sm:$0xf0] }
 0x465   :  { %v5872_v30 = vadd.f32 %v5871_v40, %v5870_v62  ;;  %v3899_v61 = vpop.f32.mrf.mxu2 }
 0x466   :  { %v3900_v9 = vadd.f32 %v3899_v61, %v3571_v26  ;;  %v4555_v58 = vadd.f32 %v4554_v44, %v4226_v47  ;;  %v4557_v6 = vpop.f32.mrf.mxu0  ;;  %v6626_v44 = vor.u32 %v7223_v27, %v6623_v36  ;;  %v6639_v27 = vld [vmem:[%s11396_s5 + $0x490] sm:$0xf0] }
 0x467   :  { %v3572_v1 = vpop.f32.mrf.mxu1 }
 0x468   :  { %v4798_v56 = vmax.f32 %v4555_v58, 0.0  ;;  %4267 = vmatmul.bf16.gmra.mxu3 %v6614_v38  ;;  %v3573_v4 = vadd.f32 %v3572_v1, %v8831_v59  ;;  %v6630_v38 = vor.u32 %v7226_v0, %v6629_v20  ;;  %v7230_v20 = vld [vmem:[%s11396_s5 + $0x494] sm:$0xf0]  ;;  %v7228_v0 = vld [vmem:[%s11396_s5 + $0x48c] sm:$0xf] }
 0x469   :  { %4596 = vmatmul.bf16.gmra.mxu0 %v6618_v21  ;;  %v6634_v21 = vor.u32 %v7224_v16, %v6631_v51 }
 0x46a   :  { %v5694_v55 = vmul.f32 %v5261_v28, %v4798_v56  ;;  %v5271_v28 = vpop.permute.xlu1 %5270 }
 0x46b   :  { %v4228_v31 = vpop.f32.mrf.mxu3 }
 0x46c   :  { %v5873_v33 = vsel %vm5771_vm0, %v5694_v55, 0.0  ;;  %v4229_v62 = vadd.f32 %v4228_v31, %v3900_v9 }
 0x46d   :  { %v5874_v48 = vadd.f32 %v5873_v33, %v5872_v30  ;;  %v3901_v23 = vpop.f32.mrf.mxu2 }
 0x46e   :  { %v3902_v7 = vadd.f32 %v3901_v23, %v3573_v4  ;;  %v4558_v53 = vadd.f32 %v4557_v6, %v4229_v62  ;;  %v4559_v35 = vpop.f32.mrf.mxu0 }
 0x46f   :  { %v3575_v17 = vpop.f32.mrf.mxu1 }
 0x470   :  { %v4799_v49 = vmax.f32 %v4558_v53, 0.0  ;;  %v3576_v26 = vadd.f32 %v3575_v17, %v8902_v24  ;;  %v7229_v24 = vld [vmem:[%s11396_s5 + $0x48c] sm:$0xf0] }
 0x471   :  { %v6638_v53 = vor.u32 %v7229_v24, %v6637_v14  ;;  %v7231_v14 = vld [vmem:[%s11396_s5 + $0x4a4] sm:$0xf] }
 0x472   :  { %v5695_v59 = vmul.f32 %v5266_v46, %v4799_v49  ;;  %3614 = vmatmul.bf16.gmra.mxu1 %v6622_v19  ;;  %3943 = vmatmul.bf16.gmra.mxu2 %v6626_v44  ;;  %v6642_v19 = vor.u32 %v7227_v54, %v6639_v27  ;;  %v5276_v49 = vpop.permute.xlu2 %5275  ;;  %v6645_v46 = vld [vmem:[%s11396_s5 + $0x488] sm:$0xf] }
 0x473   :  { %v4230_v10 = vpop.f32.mrf.mxu3 }
 0x474   :  { %v5875_v40 = vsel %vm5771_vm0, %v5695_v59, 0.0  ;;  %v4231_v47 = vadd.f32 %v4230_v10, %v3902_v7  ;;  %v6647_v59 = vld [vmem:[%s11396_s5 + $0x498] sm:$0xf0] }
 0x475   :  { %v5876_v30 = vadd.f32 %v5875_v40, %v5874_v48  ;;  %v3904_v61 = vpop.f32.mrf.mxu2 }
 0x476   :  { %v3905_v9 = vadd.f32 %v3904_v61, %v3576_v26  ;;  %v4560_v58 = vadd.f32 %v4559_v35, %v4231_v47  ;;  %v4562_v6 = vpop.f32.mrf.mxu0  ;;  %v6646_v26 = vor.u32 %v7230_v20, %v6645_v46  ;;  %v6663_v46 = vld [vmem:[%s11396_s5 + $0x4b8] sm:$0xf0] }
 0x477   :  { %v3577_v1 = vpop.f32.mrf.mxu1 }
 0x478   :  { %v4800_v56 = vmax.f32 %v4560_v58, 0.0  ;;  %4272 = vmatmul.bf16.gmra.mxu3 %v6630_v38  ;;  %v3578_v33 = vadd.f32 %v3577_v1, %v8994_v34  ;;  %v5281_v1 = vpop.permute.xlu0 %5280 }
 0x479   :  { %4601 = vmatmul.bf16.gmra.mxu0 %v6634_v21 }
 0x47a   :  { %v5696_v55 = vmul.f32 %v5271_v28, %v4800_v56  ;;  %v6653_v28 = vld [vmem:[%s11396_s5 + $0x4a0] sm:$0xf] }
 0x47b   :  { %v4233_v31 = vpop.f32.mrf.mxu3 }
 0x47c   :  { %v5877_v36 = vsel %vm5771_vm0, %v5696_v55, 0.0  ;;  %v4234_v4 = vadd.f32 %v4233_v31, %v3905_v9  ;;  %v6655_v31 = vld [vmem:[%s11396_s5 + $0x4b0] sm:$0xf0] }
 0x47d   :  { %v5878_v62 = vadd.f32 %v5877_v36, %v5876_v30  ;;  %v3906_v48 = vpop.f32.mrf.mxu2  ;;  %v6650_v30 = vor.u32 %v7228_v0, %v6647_v59 }
 0x47e   :  { %v3907_v23 = vadd.f32 %v3906_v48, %v3578_v33  ;;  %v4563_v7 = vadd.f32 %v4562_v6, %v4234_v4  ;;  %v4564_v44 = vpop.f32.mrf.mxu0 }
 0x47f   :  { %v3580_v35 = vpop.f32.mrf.mxu1 }
 0x480   :  { %v4801_v17 = vmax.f32 %v4563_v7, 0.0  ;;  %v3581_v10 = vadd.f32 %v3580_v35, %v8871_v8  ;;  %v7233_v8 = vld [vmem:[%s11396_s5 + $0x4ac] sm:$0xf0]  ;;  %v6661_v35 = vld [vmem:[%s11396_s5 + $0x4a8] sm:$0xf] }
 0x481   :  { %v6654_v48 = vor.u32 %v7233_v8, %v6653_v28 }
 0x482   :  { %v5697_v34 = vmul.f32 %v5276_v49, %v4801_v17  ;;  %3619 = vmatmul.bf16.gmra.mxu1 %v6638_v53  ;;  %3948 = vmatmul.bf16.gmra.mxu2 %v6642_v19  ;;  %v7234_v17 = vld [vmem:[%s11396_s5 + $0x4b4] sm:$0xf0]  ;;  %v7232_v49 = vld [vmem:[%s11396_s5 + $0x4ac] sm:$0xf] }
 0x483   :  { %v4235_v16 = vpop.f32.mrf.mxu3 }
 0x484   :  { %v5879_v51 = vsel %vm5771_vm0, %v5697_v34, 0.0  ;;  %v4236_v40 = vadd.f32 %v4235_v16, %v3907_v23  ;;  %v6658_v23 = vor.u32 %v7231_v14, %v6655_v31  ;;  %v6662_v16 = vor.u32 %v7234_v17, %v6661_v35 }
 0x485   :  { %v5880_v47 = vadd.f32 %v5879_v51, %v5878_v62  ;;  %v3909_v38 = vpop.f32.mrf.mxu2 }
 0x486   :  { %v3910_v61 = vadd.f32 %v3909_v38, %v3581_v10  ;;  %v4565_v21 = vadd.f32 %v4564_v44, %v4236_v40  ;;  %v4567_v9 = vpop.f32.mrf.mxu0  ;;  %v5286_v44 = vpop.permute.xlu1 %5285  ;;  %v6666_v40 = vor.u32 %v7232_v49, %v6663_v46 }
 0x487   :  { %v3582_v58 = vpop.f32.mrf.mxu1 }
 0x488   :  { %v4802_v6 = vmax.f32 %v4565_v21, 0.0  ;;  %4277 = vmatmul.bf16.gmra.mxu3 %v6646_v26  ;;  %v3583_v54 = vadd.f32 %v3582_v58, %v8941_v2  ;;  %v5291_v21 = vpop.permute.xlu2 %5290  ;;  %v6669_v58 = vld [vmem:[%s11396_s5 + $0x4c0] sm:$0xf] }
 0x489   :  { %4606 = vmatmul.bf16.gmra.mxu0 %v6650_v30 }
 0x48a   :  { %v5698_v56 = vmul.f32 %v5281_v1, %v4802_v6  ;;  %v7235_v1 = vld [vmem:[%s11396_s5 + $0x4c4] sm:$0xf] }
 0x48b   :  { %v4238_v55 = vpop.f32.mrf.mxu3 }
 0x48c   :  { %v5881_v24 = vsel %vm5771_vm0, %v5698_v56, 0.0  ;;  %v4239_v27 = vadd.f32 %v4238_v55, %v3910_v61  ;;  %v6671_v56 = vld [vmem:[%s11396_s5 + $0x4d0] sm:$0xf0] }
 0x48d   :  { %v5882_v36 = vadd.f32 %v5881_v24, %v5880_v47  ;;  %v3911_v33 = vpop.f32.mrf.mxu2 }
 0x48e   :  { %v3912_v4 = vadd.f32 %v3911_v33, %v3583_v54  ;;  %v4568_v62 = vadd.f32 %v4567_v9, %v4239_v27  ;;  %v4569_v7 = vpop.f32.mrf.mxu0 }
 0x48f   :  { %v3585_v53 = vpop.f32.mrf.mxu1 }
 0x490   :  { %v4803_v19 = vmax.f32 %v4568_v62, 0.0  ;;  %v3586_v0 = vadd.f32 %v3585_v53, %v9012_v18  ;;  %v7237_v18 = vld [vmem:[%s11396_s5 + $0x4cc] sm:$0xf0]  ;;  %v7236_v53 = vld [vmem:[%s11396_s5 + $0x4cc] sm:$0xf] }
 0x491   :  { %v6670_v27 = vor.u32 %v7237_v18, %v6669_v58 }
 0x492   :  { %v5699_v2 = vmul.f32 %v5286_v44, %v4803_v19  ;;  %3624 = vmatmul.bf16.gmra.mxu1 %v6654_v48  ;;  %3953 = vmatmul.bf16.gmra.mxu2 %v6658_v23  ;;  %v5296_v48 = vpop.permute.xlu0 %5295  ;;  %v6677_v23 = vld [vmem:[%s11396_s5 + $0x4c8] sm:$0xf]  ;;  %v6679_v19 = vld [vmem:[%s11396_s5 + $0x4d8] sm:$0xf0] }
 0x493   :  { %v4240_v20 = vpop.f32.mrf.mxu3 }
 0x494   :  { %v5883_v34 = vsel %vm5771_vm0, %v5699_v2, 0.0  ;;  %v4241_v59 = vadd.f32 %v4240_v20, %v3912_v4 }
 0x495   :  { %v5884_v51 = vadd.f32 %v5883_v34, %v5882_v36  ;;  %v3914_v10 = vpop.f32.mrf.mxu2  ;;  %v6674_v36 = vor.u32 %v7235_v1, %v6671_v56  ;;  %v6682_v34 = vor.u32 %v7236_v53, %v6679_v19 }
 0x496   :  { %v3915_v26 = vadd.f32 %v3914_v10, %v3586_v0  ;;  %v4570_v47 = vadd.f32 %v4569_v7, %v4241_v59  ;;  %v4572_v38 = vpop.f32.mrf.mxu0  ;;  %v7238_v7 = vld [vmem:[%s11396_s5 + $0x4d4] sm:$0xf0] }
 0x497   :  { %v3587_v30 = vpop.f32.mrf.mxu1  ;;  %v6678_v49 = vor.u32 %v7238_v7, %v6677_v23 }
 0x498   :  { %v4804_v61 = vmax.f32 %v4570_v47, 0.0  ;;  %4282 = vmatmul.bf16.gmra.mxu3 %v6662_v16  ;;  %v3588_v55 = vadd.f32 %v3587_v30, %v8910_v43  ;;  %v6685_v47 = vld [vmem:[%s11396_s5 + $0x4e0] sm:$0xf]  ;;  %v7239_v30 = vld [vmem:[%s11396_s5 + $0x4e4] sm:$0xf] }
 0x499   :  { %4611 = vmatmul.bf16.gmra.mxu0 %v6666_v40  ;;  %v5301_v40 = vpop.permute.xlu1 %5300 }
 0x49a   :  { %v5700_v9 = vmul.f32 %v5291_v21, %v4804_v61  ;;  %v6687_v61 = vld [vmem:[%s11396_s5 + $0x4f0] sm:$0xf0] }
 0x49b   :  { %v4243_v6 = vpop.f32.mrf.mxu3 }
 0x49c   :  { %v5885_v28 = vsel %vm5771_vm0, %v5700_v9, 0.0  ;;  %v4244_v8 = vadd.f32 %v4243_v6, %v3915_v26 }
 0x49d   :  { %v5886_v14 = vadd.f32 %v5885_v28, %v5884_v51  ;;  %v3916_v31 = vpop.f32.mrf.mxu2 }
 0x49e   :  { %v3917_v24 = vadd.f32 %v3916_v31, %v3588_v55  ;;  %v4573_v54 = vadd.f32 %v4572_v38, %v4244_v8  ;;  %v4574_v33 = vpop.f32.mrf.mxu0  ;;  %v6690_v55 = vor.u32 %v7239_v30, %v6687_v61 }
 0x49f   :  { %v3590_v4 = vpop.f32.mrf.mxu1 }
 0x4a0   :  { %v4805_v62 = vmax.f32 %v4573_v54, 0.0  ;;  %v3591_v17 = vadd.f32 %v3590_v4, %v8978_v52  ;;  %v7241_v52 = vld [vmem:[%s11396_s5 + $0x4ec] sm:$0xf0]  ;;  %v6693_v54 = vld [vmem:[%s11396_s5 + $0x4e8] sm:$0xf] }
 0x4a1   :  { %v6686_v28 = vor.u32 %v7241_v52, %v6685_v47 }
 0x4a2   :  { %v5701_v43 = vmul.f32 %v5296_v48, %v4805_v62  ;;  %3629 = vmatmul.bf16.gmra.mxu1 %v6670_v27  ;;  %3958 = vmatmul.bf16.gmra.mxu2 %v6674_v36  ;;  %v7242_v27 = vld [vmem:[%s11396_s5 + $0x4f4] sm:$0xf0]  ;;  %v7240_v36 = vld [vmem:[%s11396_s5 + $0x4ec] sm:$0xf] }
 0x4a3   :  { %v4245_v44 = vpop.f32.mrf.mxu3  ;;  %v6694_v7 = vor.u32 %v7242_v27, %v6693_v54 }
 0x4a4   :  { %v5887_v35 = vsel %vm5771_vm0, %v5701_v43, 0.0  ;;  %v4246_v2 = vadd.f32 %v4245_v44, %v3917_v24  ;;  %v5306_v24 = vpop.permute.xlu2 %5305 }
 0x4a5   :  { %v5888_v46 = vadd.f32 %v5887_v35, %v5886_v14  ;;  %v3919_v20 = vpop.f32.mrf.mxu2 }
 0x4a6   :  { %v3920_v0 = vadd.f32 %v3919_v20, %v3591_v17  ;;  %v4575_v59 = vadd.f32 %v4574_v33, %v4246_v2  ;;  %v4577_v16 = vpop.f32.mrf.mxu0  ;;  %v6695_v33 = vld [vmem:[%s11396_s5 + $0x4f8] sm:$0xf0] }
 0x4a7   :  { %v3592_v51 = vpop.f32.mrf.mxu1  ;;  %v6698_v19 = vor.u32 %v7240_v36, %v6695_v33 }
 0x4a8   :  { %v4806_v10 = vmax.f32 %v4575_v59, 0.0  ;;  %4287 = vmatmul.bf16.gmra.mxu3 %v6678_v49  ;;  %v3593_v9 = vadd.f32 %v3592_v51, %v9048_v41  ;;  %v7243_v59 = vld [vmem:[%s11396_s5 + $0x504] sm:$0xf] }
 0x4a9   :  { %4616 = vmatmul.bf16.gmra.mxu0 %v6682_v34  ;;  %v6701_v34 = vld [vmem:[%s11396_s5 + $0x500] sm:$0xf] }
 0x4aa   :  { %v5702_v26 = vmul.f32 %v5301_v40, %v4806_v10 }
 0x4ab   :  { %v4248_v38 = vpop.f32.mrf.mxu3 }
 0x4ac   :  { %v5889_v21 = vsel %vm5771_vm0, %v5702_v26, 0.0  ;;  %v4249_v58 = vadd.f32 %v4248_v38, %v3920_v0 }
 0x4ad   :  { %v5890_v6 = vadd.f32 %v5889_v21, %v5888_v46  ;;  %v3921_v18 = vpop.f32.mrf.mxu2  ;;  %v5311_v46 = vpop.permute.xlu0 %5310 }
 0x4ae   :  { %v3922_v1 = vadd.f32 %v3921_v18, %v3593_v9  ;;  %v4578_v56 = vadd.f32 %v4577_v16, %v4249_v58  ;;  %v4579_v8 = vpop.f32.mrf.mxu0  ;;  %v6703_v16 = vld [vmem:[%s11396_s5 + $0x510] sm:$0xf0]  ;;  %v6709_v18 = vld [vmem:[%s11396_s5 + $0x508] sm:$0xf] }
 0x4af   :  { %v3595_v14 = vpop.f32.mrf.mxu1  ;;  %v6706_v61 = vor.u32 %v7243_v59, %v6703_v16 }
 0x4b0   :  { %v4807_v31 = vmax.f32 %v4578_v56, 0.0  ;;  %v3596_v48 = vadd.f32 %v3595_v14, %v8945_v63  ;;  %v7245_v63 = vld [vmem:[%s11396_s5 + $0x50c] sm:$0xf0]  ;;  %v7244_v56 = vld [vmem:[%s11396_s5 + $0x50c] sm:$0xf] }
 0x4b1   :  { %v6702_v30 = vor.u32 %v7245_v63, %v6701_v34 }
 0x4b2   :  { %v5703_v41 = vmul.f32 %v5306_v24, %v4807_v31  ;;  %3634 = vmatmul.bf16.gmra.mxu1 %v6686_v28  ;;  %3963 = vmatmul.bf16.gmra.mxu2 %v6690_v55  ;;  %v6711_v28 = vld [vmem:[%s11396_s5 + $0x518] sm:$0xf0] }
 0x4b3   :  { %v4250_v4 = vpop.f32.mrf.mxu3 }
 0x4b4   :  { %v5891_v62 = vsel %vm5771_vm0, %v5703_v41, 0.0  ;;  %v4251_v23 = vadd.f32 %v4250_v4, %v3922_v1  ;;  %v7246_v1 = vld [vmem:[%s11396_s5 + $0x514] sm:$0xf0]  ;;  %v6714_v41 = vor.u32 %v7244_v56, %v6711_v28 }
 0x4b5   :  { %v5892_v43 = vadd.f32 %v5891_v62, %v5890_v6  ;;  %v3924_v53 = vpop.f32.mrf.mxu2  ;;  %v5316_v6 = vpop.permute.xlu1 %5315  ;;  %v6710_v24 = vor.u32 %v7246_v1, %v6709_v18 }
 0x4b6   :  { %v3925_v44 = vadd.f32 %v3924_v53, %v3596_v48  ;;  %v4580_v35 = vadd.f32 %v4579_v8, %v4251_v23  ;;  %v4582_v17 = vpop.f32.mrf.mxu0  ;;  %v5321_v23 = vpop.permute.xlu2 %5320 }
 0x4b7   :  { %v3597_v2 = vpop.f32.mrf.mxu1 }
 0x4b8   :  { %v4808_v49 = vmax.f32 %v4580_v35, 0.0  ;;  %4292 = vmatmul.bf16.gmra.mxu3 %v6694_v7  ;;  %v3598_v10 = vadd.f32 %v3597_v2, %v9005_v25 }
 0x4b9   :  { %4621 = vmatmul.bf16.gmra.mxu0 %v6698_v19  ;;  %v7247_v19 = vld [vmem:[%s11396_s5 + $0x524] sm:$0xf] }
 0x4ba   :  { %v5704_v20 = vmul.f32 %v5311_v46, %v4808_v49 }
 0x4bb   :  { %v4253_v0 = vpop.f32.mrf.mxu3 }
 0x4bc   :  { %v5893_v51 = vsel %vm5771_vm0, %v5704_v20, 0.0  ;;  %v4254_v40 = vadd.f32 %v4253_v0, %v3925_v44  ;;  %v6719_v44 = vld [vmem:[%s11396_s5 + $0x530] sm:$0xf0] }
 0x4bd   :  { %v5894_v26 = vadd.f32 %v5893_v51, %v5892_v43  ;;  %v3926_v47 = vpop.f32.mrf.mxu2  ;;  %v6717_v43 = vld [vmem:[%s11396_s5 + $0x520] sm:$0xf]  ;;  %v6722_v63 = vor.u32 %v7247_v19, %v6719_v44 }
 0x4be   :  { %v3927_v38 = vadd.f32 %v3926_v47, %v3598_v10  ;;  %v4583_v52 = vadd.f32 %v4582_v17, %v4254_v40  ;;  %v4584_v21 = vpop.f32.mrf.mxu0  ;;  %v5326_v10 = vpop.permute.xlu0 %5325  ;;  %v6725_v40 = vld [vmem:[%s11396_s5 + $0x528] sm:$0xf]  ;;  %v7248_v47 = vld [vmem:[%s11396_s5 + $0x52c] sm:$0xf] }
 0x4bf   :  { %v3600_v9 = vpop.f32.mrf.mxu1  ;;  %v5336_v44 = vpop.permute.xlu2 %5335 }
 0x4c0   :  { %v4809_v58 = vmax.f32 %v4583_v52, 0.0  ;;  %v3601_v14 = vadd.f32 %v3600_v9, %v9066_v12  ;;  %v7249_v12 = vld [vmem:[%s11396_s5 + $0x52c] sm:$0xf0] }
 0x4c1   :  { %v6718_v0 = vor.u32 %v7249_v12, %v6717_v43 }
 0x4c2   :  { %v5705_v25 = vmul.f32 %v5316_v6, %v4809_v58  ;;  %3639 = vmatmul.bf16.gmra.mxu1 %v6702_v30  ;;  %3968 = vmatmul.bf16.gmra.mxu2 %v6706_v61 }
 0x4c3   :  { %v4255_v55 = vpop.f32.mrf.mxu3 }
 0x4c4   :  { %v5895_v8 = vsel %vm5771_vm0, %v5705_v25, 0.0  ;;  %v4256_v31 = vadd.f32 %v4255_v55, %v3927_v38  ;;  %v6727_v38 = vld [vmem:[%s11396_s5 + $0x538] sm:$0xf0] }
 0x4c5   :  { %v5896_v54 = vadd.f32 %v5895_v8, %v5894_v26  ;;  %v3929_v27 = vpop.f32.mrf.mxu2  ;;  %v7250_v26 = vld [vmem:[%s11396_s5 + $0x534] sm:$0xf0]  ;;  %v6730_v18 = vor.u32 %v7248_v47, %v6727_v38  ;;  %v5331_v8 = vpop.permute.xlu1 %5330 }
 0x4c6   :  { %v3930_v36 = vadd.f32 %v3929_v27, %v3601_v14  ;;  %v4585_v33 = vadd.f32 %v4584_v21, %v4256_v31  ;;  %v4587_v4 = vpop.f32.mrf.mxu0  ;;  %v6726_v9 = vor.u32 %v7250_v26, %v6725_v40  ;;  %v6733_v31 = vld [vmem:[%s11396_s5 + $0x540] sm:$0xf]  ;;  %v6735_v27 = vld [vmem:[%s11396_s5 + $0x550] sm:$0xf0]  ;;  %v5341_v38 = vpop.permute.xlu0 %5340 }
 0x4c7   :  { %v3602_v62 = vpop.f32.mrf.mxu1 }
 0x4c8   :  { %v4810_v48 = vmax.f32 %v4585_v33, 0.0  ;;  %4297 = vmatmul.bf16.gmra.mxu3 %v6710_v24  ;;  %v3603_v17 = vadd.f32 %v3602_v62, %v8986_v42 }
 0x4c9   :  { %4626 = vmatmul.bf16.gmra.mxu0 %v6714_v41 }
 0x4ca   :  { %v5706_v7 = vmul.f32 %v5321_v23, %v4810_v48 }
 0x4cb   :  { %v4258_v53 = vpop.f32.mrf.mxu3 }
 0x4cc   :  { %v5897_v35 = vsel %vm5771_vm0, %v5706_v7, 0.0  ;;  %v4259_v2 = vadd.f32 %v4258_v53, %v3930_v36 }
 0x4cd   :  { %v5898_v49 = vadd.f32 %v5897_v35, %v5896_v54  ;;  %v3931_v46 = vpop.f32.mrf.mxu2  ;;  %v7251_v54 = vld [vmem:[%s11396_s5 + $0x544] sm:$0xf]  ;;  %v6741_v35 = vld [vmem:[%s11396_s5 + $0x548] sm:$0xf] }
 0x4ce   :  { %v3932_v20 = vadd.f32 %v3931_v46, %v3603_v17  ;;  %v4588_v34 = vadd.f32 %v4587_v4, %v4259_v2  ;;  %v4589_v59 = vpop.f32.mrf.mxu0  ;;  %v6738_v43 = vor.u32 %v7251_v54, %v6735_v27  ;;  %v7254_v17 = vld [vmem:[%s11396_s5 + $0x554] sm:$0xf0]  ;;  %v7252_v2 = vld [vmem:[%s11396_s5 + $0x54c] sm:$0xf]  ;;  %v6757_v54 = vld [vmem:[%s11396_s5 + $0x568] sm:$0xf] }
 0x4cf   :  { %v3605_v16 = vpop.f32.mrf.mxu1  ;;  %v7258_v27 = vld [vmem:[%s11396_s5 + $0x574] sm:$0xf0] }
 0x4d0   :  { %v4811_v51 = vmax.f32 %v4588_v34, 0.0  ;;  %v3606_v61 = vadd.f32 %v3605_v16, %v9032_v37  ;;  %v7253_v37 = vld [vmem:[%s11396_s5 + $0x54c] sm:$0xf0] }
 0x4d1   :  { %v6734_v7 = vor.u32 %v7253_v37, %v6733_v31  ;;  %v5346_v37 = vpop.permute.xlu1 %5345 }
 0x4d2   :  { %v5707_v42 = vmul.f32 %v5326_v10, %v4811_v51  ;;  %3644 = vmatmul.bf16.gmra.mxu1 %v6718_v0  ;;  %3973 = vmatmul.bf16.gmra.mxu2 %v6722_v63  ;;  %v6742_v63 = vor.u32 %v7254_v17, %v6741_v35 }
 0x4d3   :  { %v4260_v52 = vpop.f32.mrf.mxu3 }
 0x4d4   :  { %v5899_v30 = vsel %vm5771_vm0, %v5707_v42, 0.0  ;;  %v4261_v21 = vadd.f32 %v4260_v52, %v3932_v20 }
 0x4d5   :  { %v5900_v58 = vadd.f32 %v5899_v30, %v5898_v49  ;;  %v3934_v6 = vpop.f32.mrf.mxu2  ;;  %v6743_v49 = vld [vmem:[%s11396_s5 + $0x558] sm:$0xf0]  ;;  %v6749_v30 = vld [vmem:[%s11396_s5 + $0x560] sm:$0xf] }
 0x4d6   :  { %v3935_v1 = vadd.f32 %v3934_v6, %v3606_v61  ;;  %v4590_v25 = vadd.f32 %v4589_v59, %v4261_v21  ;;  %v4592_v56 = vpop.f32.mrf.mxu0  ;;  %v6746_v51 = vor.u32 %v7252_v2, %v6743_v49  ;;  %v7255_v21 = vld [vmem:[%s11396_s5 + $0x564] sm:$0xf]  ;;  %v6765_v49 = vld [vmem:[%s11396_s5 + $0x580] sm:$0xf] }
 0x4d7   :  { %v3607_v28 = vpop.f32.mrf.mxu1 }
 0x4d8   :  { %v4812_v55 = vmax.f32 %v4590_v25, 0.0  ;;  %4302 = vmatmul.bf16.gmra.mxu3 %v6726_v9  ;;  %v3608_v36 = vadd.f32 %v3607_v28, %v9102_v22  ;;  %v6751_v9 = vld [vmem:[%s11396_s5 + $0x570] sm:$0xf0] }
 0x4d9   :  { %4631 = vmatmul.bf16.gmra.mxu0 %v6730_v18 }
 0x4da   :  { %v5708_v14 = vmul.f32 %v5331_v8, %v4812_v55  ;;  %v6754_v8 = vor.u32 %v7255_v21, %v6751_v9  ;;  %v7260_v21 = vld [vmem:[%s11396_s5 + $0x58c] sm:$0xf]  ;;  %v6775_v9 = vld [vmem:[%s11396_s5 + $0x598] sm:$0xf0] }
 0x4db   :  { %v4263_v24 = vpop.f32.mrf.mxu3 }
 0x4dc   :  { %v5901_v41 = vsel %vm5771_vm0, %v5708_v14, 0.0  ;;  %v4264_v33 = vadd.f32 %v4263_v24, %v3935_v1 }
 0x4dd   :  { %v5902_v4 = vadd.f32 %v5901_v41, %v5900_v58  ;;  %v3936_v62 = vpop.f32.mrf.mxu2  ;;  %v7256_v41 = vld [vmem:[%s11396_s5 + $0x56c] sm:$0xf] }
 0x4de   :  { %v3937_v48 = vadd.f32 %v3936_v62, %v3608_v36  ;;  %v4593_v23 = vadd.f32 %v4592_v56, %v4264_v33  ;;  %v4594_v53 = vpop.f32.mrf.mxu0  ;;  %v6759_v36 = vld [vmem:[%s11396_s5 + $0x578] sm:$0xf0] }
 0x4df   :  { %v3610_v12 = vpop.f32.mrf.mxu1 }
 0x4e0   :  { %v4813_v19 = vmax.f32 %v4593_v23, 0.0  ;;  %v3611_v34 = vadd.f32 %v3610_v12, %v9007_v29  ;;  %v7257_v29 = vld [vmem:[%s11396_s5 + $0x56c] sm:$0xf0]  ;;  %v6758_v23 = vor.u32 %v7258_v27, %v6757_v54  ;;  %v5361_v54 = vpop.permute.xlu1 %5360 }
 0x4e1   :  { %v6750_v55 = vor.u32 %v7257_v29, %v6749_v30  ;;  %v5356_v30 = vpop.permute.xlu0 %5355  ;;  %v7262_v29 = vld [vmem:[%s11396_s5 + $0x594] sm:$0xf0] }
 0x4e2   :  { %v5709_v22 = vmul.f32 %v5336_v44, %v4813_v19  ;;  %3649 = vmatmul.bf16.gmra.mxu1 %v6734_v7  ;;  %3978 = vmatmul.bf16.gmra.mxu2 %v6738_v43 }
 0x4e3   :  { %v4265_v46 = vpop.f32.mrf.mxu3 }
 0x4e4   :  { %v5903_v20 = vsel %vm5771_vm0, %v5709_v22, 0.0  ;;  %v4266_v0 = vadd.f32 %v4265_v46, %v3937_v48  ;;  %v5351_v22 = vpop.permute.xlu2 %5350 }
 0x4e5   :  { %v5904_v59 = vadd.f32 %v5903_v20, %v5902_v4  ;;  %v3939_v16 = vpop.f32.mrf.mxu2  ;;  %v7259_v20 = vld [vmem:[%s11396_s5 + $0x584] sm:$0xf] }
 0x4e6   :  { %v3940_v10 = vadd.f32 %v3939_v16, %v3611_v34  ;;  %v4595_v40 = vadd.f32 %v4594_v53, %v4266_v0  ;;  %v4597_v26 = vpop.f32.mrf.mxu0  ;;  %v6762_v53 = vor.u32 %v7256_v41, %v6759_v36  ;;  %v6767_v34 = vld [vmem:[%s11396_s5 + $0x590] sm:$0xf0]  ;;  %v7263_v36 = vld [vmem:[%s11396_s5 + $0x5a4] sm:$0xf] }
 0x4e7   :  { %v3612_v42 = vpop.f32.mrf.mxu1 }
 0x4e8   :  { %v4814_v47 = vmax.f32 %v4595_v40, 0.0  ;;  %4307 = vmatmul.bf16.gmra.mxu3 %v6742_v63  ;;  %v3613_v6 = vadd.f32 %v3612_v42, %v9059_v50  ;;  %v6770_v42 = vor.u32 %v7259_v20, %v6767_v34 }
 0x4e9   :  { %4636 = vmatmul.bf16.gmra.mxu0 %v6746_v51 }
 0x4ea   :  { %v5710_v52 = vmul.f32 %v5341_v38, %v4814_v47 }
 0x4eb   :  { %v4268_v61 = vpop.f32.mrf.mxu3 }
 0x4ec   :  { %v5905_v58 = vsel %vm5771_vm0, %v5710_v52, 0.0  ;;  %v4269_v18 = vadd.f32 %v4268_v61, %v3940_v10  ;;  %v6773_v61 = vld [vmem:[%s11396_s5 + $0x588] sm:$0xf] }
 0x4ed   :  { %v5906_v1 = vadd.f32 %v5905_v58, %v5904_v59  ;;  %v3941_v25 = vpop.f32.mrf.mxu2 }
 0x4ee   :  { %v3942_v56 = vadd.f32 %v3941_v25, %v3613_v6  ;;  %v4598_v28 = vadd.f32 %v4597_v26, %v4269_v18  ;;  %v4599_v14 = vpop.f32.mrf.mxu0  ;;  %v6774_v25 = vor.u32 %v7262_v29, %v6773_v61  ;;  %v6797_v61 = vld [vmem:[%s11396_s5 + $0x5c0] sm:$0xf] }
 0x4ef   :  { %v3615_v31 = vpop.f32.mrf.mxu1 }
 0x4f0   :  { %v4815_v24 = vmax.f32 %v4598_v28, 0.0  ;;  %v3616_v62 = vadd.f32 %v3615_v31, %v9120_v60  ;;  %v7261_v60 = vld [vmem:[%s11396_s5 + $0x58c] sm:$0xf0] }
 0x4f1   :  { %v6766_v26 = vor.u32 %v7261_v60, %v6765_v49  ;;  %v7266_v49 = vld [vmem:[%s11396_s5 + $0x5b4] sm:$0xf0]  ;;  %v6791_v60 = vld [vmem:[%s11396_s5 + $0x5b8] sm:$0xf0] }
 0x4f2   :  { %v5711_v50 = vmul.f32 %v5346_v37, %v4815_v24  ;;  %3654 = vmatmul.bf16.gmra.mxu1 %v6750_v55  ;;  %3983 = vmatmul.bf16.gmra.mxu2 %v6754_v8  ;;  %v6778_v55 = vor.u32 %v7260_v21, %v6775_v9  ;;  %v6799_v21 = vld [vmem:[%s11396_s5 + $0x5d0] sm:$0xf0] }
 0x4f3   :  { %v4270_v33 = vpop.f32.mrf.mxu3 }
 0x4f4   :  { %v5907_v4 = vsel %vm5771_vm0, %v5711_v50, 0.0  ;;  %v4271_v48 = vadd.f32 %v4270_v33, %v3942_v56  ;;  %v6781_v50 = vld [vmem:[%s11396_s5 + $0x5a0] sm:$0xf]  ;;  %v6783_v33 = vld [vmem:[%s11396_s5 + $0x5b0] sm:$0xf0] }
 0x4f5   :  { %v5908_v7 = vadd.f32 %v5907_v4, %v5906_v1  ;;  %v3944_v43 = vpop.f32.mrf.mxu2 }
 0x4f6   :  { %v3945_v12 = vadd.f32 %v3944_v43, %v3616_v62  ;;  %v4600_v19 = vadd.f32 %v4599_v14, %v4271_v48  ;;  %v4602_v44 = vpop.f32.mrf.mxu0 }
 0x4f7   :  { %v3617_v35 = vpop.f32.mrf.mxu1 }
 0x4f8   :  { %v4816_v17 = vmax.f32 %v4600_v19, 0.0  ;;  %4312 = vmatmul.bf16.gmra.mxu3 %v6758_v23  ;;  %v3618_v63 = vadd.f32 %v3617_v35, %v9040_v3  ;;  %v6786_v19 = vor.u32 %v7263_v36, %v6783_v33 }
 0x4f9   :  { %4641 = vmatmul.bf16.gmra.mxu0 %v6762_v53 }
 0x4fa   :  { %v5712_v2 = vmul.f32 %v5351_v22, %v4816_v17  ;;  %v5366_v22 = vpop.permute.xlu2 %5365 }
 0x4fb   :  { %v4273_v46 = vpop.f32.mrf.mxu3 }
 0x4fc   :  { %v5909_v0 = vsel %vm5771_vm0, %v5712_v2, 0.0  ;;  %v4274_v59 = vadd.f32 %v4273_v46, %v3945_v12  ;;  %v6789_v2 = vld [vmem:[%s11396_s5 + $0x5a8] sm:$0xf]  ;;  %v7264_v46 = vld [vmem:[%s11396_s5 + $0x5ac] sm:$0xf] }
 0x4fd   :  { %v5910_v16 = vadd.f32 %v5909_v0, %v5908_v7  ;;  %v3946_v51 = vpop.f32.mrf.mxu2 }
 0x4fe   :  { %v3947_v10 = vadd.f32 %v3946_v51, %v3618_v63  ;;  %v4603_v40 = vadd.f32 %v4602_v44, %v4274_v59  ;;  %v4604_v47 = vpop.f32.mrf.mxu0  ;;  %v6790_v59 = vor.u32 %v7266_v49, %v6789_v2  ;;  %v7271_v2 = vld [vmem:[%s11396_s5 + $0x5e4] sm:$0xf]  ;;  %v6815_v49 = vld [vmem:[%s11396_s5 + $0x5f0] sm:$0xf0] }
 0x4ff   :  { %v3620_v38 = vpop.f32.mrf.mxu1 }
 0x500   :  { %v4817_v52 = vmax.f32 %v4603_v40, 0.0  ;;  %v3621_v18 = vadd.f32 %v3620_v38, %v9086_v32  ;;  %v7265_v32 = vld [vmem:[%s11396_s5 + $0x5ac] sm:$0xf0] }
 0x501   :  { %v6782_v12 = vor.u32 %v7265_v32, %v6781_v50  ;;  %v6807_v50 = vld [vmem:[%s11396_s5 + $0x5d8] sm:$0xf0] }
 0x502   :  { %v5713_v3 = vmul.f32 %v5356_v30, %v4817_v52  ;;  %3659 = vmatmul.bf16.gmra.mxu1 %v6766_v26  ;;  %3988 = vmatmul.bf16.gmra.mxu2 %v6770_v42  ;;  %v5371_v52 = vpop.permute.xlu0 %5370 }
 0x503   :  { %v4275_v58 = vpop.f32.mrf.mxu3 }
 0x504   :  { %v5911_v6 = vsel %vm5771_vm0, %v5713_v3, 0.0  ;;  %v4276_v1 = vadd.f32 %v4275_v58, %v3947_v10  ;;  %v6794_v10 = vor.u32 %v7264_v46, %v6791_v60  ;;  %v7267_v3 = vld [vmem:[%s11396_s5 + $0x5c4] sm:$0xf] }
 0x505   :  { %v5912_v56 = vadd.f32 %v5911_v6, %v5910_v16  ;;  %v3949_v28 = vpop.f32.mrf.mxu2 }
 0x506   :  { %v3950_v8 = vadd.f32 %v3949_v28, %v3621_v18  ;;  %v4605_v14 = vadd.f32 %v4604_v47, %v4276_v1  ;;  %v4607_v31 = vpop.f32.mrf.mxu0 }
 0x507   :  { %v3622_v24 = vpop.f32.mrf.mxu1 }
 0x508   :  { %v4818_v37 = vmax.f32 %v4605_v14, 0.0  ;;  %4317 = vmatmul.bf16.gmra.mxu3 %v6774_v25  ;;  %v3623_v62 = vadd.f32 %v3622_v24, %v9156_v15  ;;  %v5376_v24 = vpop.permute.xlu1 %5375 }
 0x509   :  { %4646 = vmatmul.bf16.gmra.mxu0 %v6778_v55  ;;  %v6802_v55 = vor.u32 %v7267_v3, %v6799_v21 }
 0x50a   :  { %v5714_v27 = vmul.f32 %v5361_v54, %v4818_v37  ;;  %v6805_v37 = vld [vmem:[%s11396_s5 + $0x5c8] sm:$0xf]  ;;  %v7270_v54 = vld [vmem:[%s11396_s5 + $0x5d4] sm:$0xf0] }
 0x50b   :  { %v4278_v41 = vpop.f32.mrf.mxu3 }
 0x50c   :  { %v5913_v4 = vsel %vm5771_vm0, %v5714_v27, 0.0  ;;  %v4279_v48 = vadd.f32 %v4278_v41, %v3950_v8  ;;  %v7268_v27 = vld [vmem:[%s11396_s5 + $0x5cc] sm:$0xf] }
 0x50d   :  { %v5914_v23 = vadd.f32 %v5913_v4, %v5912_v56  ;;  %v3951_v7 = vpop.f32.mrf.mxu2  ;;  %v6806_v4 = vor.u32 %v7270_v54, %v6805_v37 }
 0x50e   :  { %v3952_v43 = vadd.f32 %v3951_v7, %v3623_v62  ;;  %v4608_v53 = vadd.f32 %v4607_v31, %v4279_v48  ;;  %v4609_v44 = vpop.f32.mrf.mxu0 }
 0x50f   :  { %v3625_v35 = vpop.f32.mrf.mxu1 }
 0x510   :  { %v4819_v17 = vmax.f32 %v4608_v53, 0.0  ;;  %v3626_v0 = vadd.f32 %v3625_v35, %v9061_v57  ;;  %v7269_v57 = vld [vmem:[%s11396_s5 + $0x5cc] sm:$0xf0] }
 0x511   :  { %v6798_v28 = vor.u32 %v7269_v57, %v6797_v61 }
 0x512   :  { %v5715_v15 = vmul.f32 %v5366_v22, %v4819_v17  ;;  %3664 = vmatmul.bf16.gmra.mxu1 %v6782_v12  ;;  %3993 = vmatmul.bf16.gmra.mxu2 %v6786_v19  ;;  %v6813_v17 = vld [vmem:[%s11396_s5 + $0x5e0] sm:$0xf] }
 0x513   :  { %v4280_v20 = vpop.f32.mrf.mxu3 }
 0x514   :  { %v5915_v34 = vsel %vm5771_vm0, %v5715_v15, 0.0  ;;  %v4281_v63 = vadd.f32 %v4280_v20, %v3952_v43 }
 0x515   :  { %v5916_v16 = vadd.f32 %v5915_v34, %v5914_v23  ;;  %v3954_v51 = vpop.f32.mrf.mxu2  ;;  %v6810_v23 = vor.u32 %v7268_v27, %v6807_v50 }
 0x516   :  { %v3955_v40 = vadd.f32 %v3954_v51, %v3626_v0  ;;  %v4610_v26 = vadd.f32 %v4609_v44, %v4281_v63  ;;  %v4612_v42 = vpop.f32.mrf.mxu0  ;;  %v5381_v44 = vpop.permute.xlu2 %5380 }
 0x517   :  { %v3627_v47 = vpop.f32.mrf.mxu1 }
 0x518   :  { %v4820_v38 = vmax.f32 %v4610_v26, 0.0  ;;  %4322 = vmatmul.bf16.gmra.mxu3 %v6790_v59  ;;  %v3628_v58 = vadd.f32 %v3627_v47, %v9113_v5  ;;  %v5386_v26 = vpop.permute.xlu0 %5385  ;;  %v7274_v47 = vld [vmem:[%s11396_s5 + $0x5f4] sm:$0xf0] }
 0x519   :  { %4651 = vmatmul.bf16.gmra.mxu0 %v6794_v10 }
 0x51a   :  { %v5716_v30 = vmul.f32 %v5371_v52, %v4820_v38  ;;  %v7272_v38 = vld [vmem:[%s11396_s5 + $0x5ec] sm:$0xf]  ;;  %v6823_v52 = vld [vmem:[%s11396_s5 + $0x5f8] sm:$0xf0] }
 0x51b   :  { %v4283_v29 = vpop.f32.mrf.mxu3 }
 0x51c   :  { %v5917_v9 = vsel %vm5771_vm0, %v5716_v30, 0.0  ;;  %v4284_v6 = vadd.f32 %v4283_v29, %v3955_v40 }
 0x51d   :  { %v5918_v18 = vadd.f32 %v5917_v9, %v5916_v16  ;;  %v3956_v1 = vpop.f32.mrf.mxu2  ;;  %v6818_v16 = vor.u32 %v7271_v2, %v6815_v49 }
 0x51e   :  { %v3957_v25 = vadd.f32 %v3956_v1, %v3628_v58  ;;  %v4613_v56 = vadd.f32 %v4612_v42, %v4284_v6  ;;  %v4614_v8 = vpop.f32.mrf.mxu0  ;;  %v6821_v42 = vld [vmem:[%s11396_s5 + $0x5e8] sm:$0xf]  ;;  %v6826_v58 = vor.u32 %v7272_v38, %v6823_v52 }
 0x51f   :  { %v3630_v14 = vpop.f32.mrf.mxu1  ;;  %v6822_v3 = vor.u32 %v7274_v47, %v6821_v42  ;;  %v11670_v47 = vld [vmem:[#allocation106_spill] sm:$0xff] }
 0x520   :  { %v4821_v31 = vmax.f32 %v4613_v56, 0.0  ;;  %v3631_v36 = vadd.f32 %v3630_v14, %v9174_v13  ;;  %v7273_v13 = vld [vmem:[%s11396_s5 + $0x5ec] sm:$0xf0] }
 0x521   :  { %v6814_v59 = vor.u32 %v7273_v13, %v6813_v17 }
 0x522   :  { %v5717_v5 = vmul.f32 %v5376_v24, %v4821_v31  ;;  %3669 = vmatmul.bf16.gmra.mxu1 %v6798_v28  ;;  %3998 = vmatmul.bf16.gmra.mxu2 %v6802_v55  ;;  %v5391_v28 = vpop.permute.xlu1 %5390  ;;  %v7275_v31 = vld [vmem:[%s11396_s5 + $0x604] sm:$0xf]  ;;  %v6831_v24 = vld [vmem:[%s11396_s5 + $0x610] sm:$0xf0] }
 0x523   :  { %v4285_v41 = vpop.f32.mrf.mxu3 }
 0x524   :  { %v5919_v32 = vsel %vm5771_vm0, %v5717_v5, 0.0  ;;  %v4286_v33 = vadd.f32 %v4285_v41, %v3957_v25 }
 0x525   :  { %v5920_v62 = vadd.f32 %v5919_v32, %v5918_v18  ;;  %v3959_v48 = vpop.f32.mrf.mxu2 }
 0x526   :  { %v3960_v7 = vadd.f32 %v3959_v48, %v3631_v36  ;;  %v4615_v43 = vadd.f32 %v4614_v8, %v4286_v33  ;;  %v4617_v53 = vpop.f32.mrf.mxu0  ;;  %v6829_v8 = vld [vmem:[%s11396_s5 + $0x600] sm:$0xf]  ;;  %v6834_v33 = vor.u32 %v7275_v31, %v6831_v24 }
 0x527   :  { %v3632_v12 = vpop.f32.mrf.mxu1 }
 0x528   :  { %v4822_v19 = vmax.f32 %v4615_v43, 0.0  ;;  %4327 = vmatmul.bf16.gmra.mxu3 %v6806_v4  ;;  %v3633_v46 = vadd.f32 %v3632_v12, %v9094_v45  ;;  %v7278_v43 = vld [vmem:[%s11396_s5 + $0x614] sm:$0xf0]  ;;  %v6839_v12 = vld [vmem:[%s11396_s5 + $0x618] sm:$0xf0] }
 0x529   :  { %4656 = vmatmul.bf16.gmra.mxu0 %v6810_v23  ;;  %v5396_v23 = vpop.permute.xlu2 %5395 }
 0x52a   :  { %v5718_v35 = vmul.f32 %v5381_v44, %v4822_v19 }
 0x52b   :  { %v4288_v22 = vpop.f32.mrf.mxu3 }
 0x52c   :  { %v5921_v15 = vsel %vm5771_vm0, %v5718_v35, 0.0  ;;  %v4289_v60 = vadd.f32 %v4288_v22, %v3960_v7  ;;  %v6837_v7 = vld [vmem:[%s11396_s5 + $0x608] sm:$0xf] }
 0x52d   :  { %v5922_v20 = vadd.f32 %v5921_v15, %v5920_v62  ;;  %v3961_v34 = vpop.f32.mrf.mxu2  ;;  %v11669_v35 = vld [vmem:[#allocation6_spill] sm:$0xff]  ;;  %v6838_v13 = vor.u32 %v7278_v43, %v6837_v7  ;;  %v6863_v43 = vld [vmem:[%s11396_s5 + $0x650] sm:$0xf0] }
 0x52e   :  { %v3962_v0 = vadd.f32 %v3961_v34, %v3633_v46  ;;  %v4618_v63 = vadd.f32 %v4617_v53, %v4289_v60  ;;  %v4619_v51 = vpop.f32.mrf.mxu0  ;;  %v7276_v53 = vld [vmem:[%s11396_s5 + $0x60c] sm:$0xf]  ;;  %v7283_v7 = vld [vmem:[%s11396_s5 + $0x644] sm:$0xf] }
 0x52f   :  { %v3635_v10 = vpop.f32.mrf.mxu1  ;;  %v6842_v15 = vor.u32 %v7276_v53, %v6839_v12  ;;  %v11672_v53 = vld [vmem:[#allocation8_spill] sm:$0xff] }
 0x530   :  { %v4823_v40 = vmax.f32 %v4618_v63, 0.0  ;;  %v3636_v29 = vadd.f32 %v3635_v10, %v9140_v39  ;;  %v7277_v39 = vld [vmem:[%s11396_s5 + $0x60c] sm:$0xf0]  ;;  %v5401_v63 = vpop.permute.xlu0 %5400 }
 0x531   :  { %v6830_v36 = vor.u32 %v7277_v39, %v6829_v8  ;;  %v7281_v10 = vld [vmem:[%s11396_s5 + $0x62c] sm:$0xf0] }
 0x532   :  { %v5719_v45 = vmul.f32 %v5386_v26, %v4823_v40  ;;  %3674 = vmatmul.bf16.gmra.mxu1 %v6814_v59  ;;  %4003 = vmatmul.bf16.gmra.mxu2 %v6818_v16  ;;  %v6845_v16 = vld [vmem:[%s11396_s5 + $0x620] sm:$0xf]  ;;  %v7279_v40 = vld [vmem:[%s11396_s5 + $0x624] sm:$0xf]  ;;  %v6847_v26 = vld [vmem:[%s11396_s5 + $0x630] sm:$0xf0] }
 0x533   :  { %v4290_v30 = vpop.f32.mrf.mxu3 }
 0x534   :  { %v5923_v61 = vsel %vm5771_vm0, %v5719_v45, 0.0  ;;  %v4291_v57 = vadd.f32 %v4290_v30, %v3962_v0 }
 0x535   :  { %v5924_v21 = vadd.f32 %v5923_v61, %v5922_v20  ;;  %v3964_v9 = vpop.f32.mrf.mxu2 }
 0x536   :  { %v3965_v6 = vadd.f32 %v3964_v9, %v3636_v29  ;;  %v4620_v18 = vadd.f32 %v4619_v51, %v4291_v57  ;;  %v4622_v1 = vpop.f32.mrf.mxu0  ;;  %v6846_v57 = vor.u32 %v7281_v10, %v6845_v16  ;;  %v11673_v10 = vld [vmem:[#allocation94_spill] sm:$0xff] }
 0x537   :  { %v3637_v25 = vpop.f32.mrf.mxu1 }
 0x538   :  { %v4824_v56 = vmax.f32 %v4620_v18, 0.0  ;;  %4332 = vmatmul.bf16.gmra.mxu3 %v6822_v3  ;;  %v3638_v54 = vadd.f32 %v3637_v25, %v9210_v11  ;;  %v6850_v3 = vor.u32 %v7279_v40, %v6847_v26  ;;  %v6853_v18 = vld [vmem:[%s11396_s5 + $0x628] sm:$0xf] }
 0x539   :  { %4661 = vmatmul.bf16.gmra.mxu0 %v6826_v58 }
 0x53a   :  { %v5720_v55 = vmul.f32 %v5391_v28, %v4824_v56  ;;  %v7280_v56 = vld [vmem:[%s11396_s5 + $0x62c] sm:$0xf]  ;;  %v6855_v28 = vld [vmem:[%s11396_s5 + $0x638] sm:$0xf0] }
 0x53b   :  { %v4293_v14 = vpop.f32.mrf.mxu3 }
 0x53c   :  { %v5925_v37 = vsel %vm5771_vm0, %v5720_v55, 0.0  ;;  %v4294_v5 = vadd.f32 %v4293_v14, %v3965_v6  ;;  %v5406_v6 = vpop.permute.xlu1 %5405  ;;  %v11671_v14 = vld [vmem:[#allocation48_spill] sm:$0xff] }
 0x53d   :  { %v5926_v27 = vadd.f32 %v5925_v37, %v5924_v21  ;;  %v3966_v50 = vpop.f32.mrf.mxu2 }
 0x53e   :  { %v3967_v41 = vadd.f32 %v3966_v50, %v3638_v54  ;;  %v4623_v32 = vadd.f32 %v4622_v1, %v4294_v5  ;;  %v4624_v4 = vpop.f32.mrf.mxu0  ;;  %v7282_v1 = vld [vmem:[%s11396_s5 + $0x634] sm:$0xf0]  ;;  %v6858_v5 = vor.u32 %v7280_v56, %v6855_v28  ;;  %v11674_v56 = vld [vmem:[#allocation38_spill] sm:$0xff] }
 0x53f   :  { %v3640_v62 = vpop.f32.mrf.mxu1  ;;  %v6854_v24 = vor.u32 %v7282_v1, %v6853_v18  ;;  %v7287_v18 = vld [vmem:[%s11396_s5 + $0x664] sm:$0xf]  ;;  %v6879_v1 = vld [vmem:[%s11396_s5 + $0x670] sm:$0xf0] }
 0x540   :  { %v4825_v48 = vmax.f32 %v4623_v32, 0.0  ;;  %v3641_v17 = vadd.f32 %v3640_v62, %v11669_v35  ;;  %v6861_v62 = vld [vmem:[%s11396_s5 + $0x640] sm:$0xf] }
 0x542   :  { %v5721_v11 = vmul.f32 %v5396_v23, %v4825_v48  ;;  %3679 = vmatmul.bf16.gmra.mxu1 %v6830_v36  ;;  %4008 = vmatmul.bf16.gmra.mxu2 %v6834_v33  ;;  %v5411_v33 = vpop.permute.xlu2 %5410  ;;  %v7285_v23 = vld [vmem:[%s11396_s5 + $0x64c] sm:$0xf0] }
 0x543   :  { %v4295_v19 = vpop.f32.mrf.mxu3 }
 0x544   :  { %v5927_v44 = vsel %vm5771_vm0, %v5721_v11, 0.0  ;;  %v4296_v22 = vadd.f32 %v4295_v19, %v3967_v41 }
 0x545   :  { %v5928_v2 = vadd.f32 %v5927_v44, %v5926_v27  ;;  %v3969_v49 = vpop.f32.mrf.mxu2 }
 0x546   :  { %v3970_v46 = vadd.f32 %v3969_v49, %v3641_v17  ;;  %v4625_v60 = vadd.f32 %v4624_v4, %v4296_v22  ;;  %v4627_v20 = vpop.f32.mrf.mxu0 }
 0x547   :  { %v3642_v34 = vpop.f32.mrf.mxu1 }
 0x548   :  { %v4826_v0 = vmax.f32 %v4625_v60, 0.0  ;;  %4337 = vmatmul.bf16.gmra.mxu3 %v6838_v13  ;;  %v3643_v45 = vadd.f32 %v3642_v34, %v11670_v47  ;;  %v6862_v13 = vor.u32 %v7285_v23, %v6861_v62  ;;  %v5416_v60 = vpop.permute.xlu0 %5415  ;;  %v7286_v34 = vld [vmem:[%s11396_s5 + $0x654] sm:$0xf0]  ;;  %v11675_v23 = vld [vmem:[#allocation7_spill] sm:$0xff] }
 0x549   :  { %4666 = vmatmul.bf16.gmra.mxu0 %v6842_v15 }
 0x54a   :  { %v5722_v59 = vmul.f32 %v5401_v63, %v4826_v0  ;;  %v7284_v63 = vld [vmem:[%s11396_s5 + $0x64c] sm:$0xf] }
 0x54b   :  { %v4298_v51 = vpop.f32.mrf.mxu3 }
 0x54c   :  { %v5929_v42 = vsel %vm5771_vm0, %v5722_v59, 0.0  ;;  %v4299_v38 = vadd.f32 %v4298_v51, %v3970_v46  ;;  %v6871_v59 = vld [vmem:[%s11396_s5 + $0x658] sm:$0xf0] }
 0x54d   :  { %v5930_v52 = vadd.f32 %v5929_v42, %v5928_v2  ;;  %v3971_v30 = vpop.f32.mrf.mxu2  ;;  %v6866_v2 = vor.u32 %v7283_v7, %v6863_v43 }
 0x54e   :  { %v3972_v61 = vadd.f32 %v3971_v30, %v3643_v45  ;;  %v4628_v29 = vadd.f32 %v4627_v20, %v4299_v38  ;;  %v4629_v21 = vpop.f32.mrf.mxu0  ;;  %v6869_v20 = vld [vmem:[%s11396_s5 + $0x648] sm:$0xf]  ;;  %v6874_v38 = vor.u32 %v7284_v63, %v6871_v59 }
 0x54f   :  { %v3645_v9 = vpop.f32.mrf.mxu1  ;;  %v6870_v42 = vor.u32 %v7286_v34, %v6869_v20  ;;  %v7291_v20 = vld [vmem:[%s11396_s5 + $0x684] sm:$0xf]  ;;  %v6895_v34 = vld [vmem:[%s11396_s5 + $0x690] sm:$0xf0]  ;;  %v11676_v63 = vld [vmem:[#allocation11_spill] sm:$0xff] }
 0x550   :  { %v4827_v58 = vmax.f32 %v4628_v29, 0.0  ;;  %v3646_v39 = vadd.f32 %v3645_v9, %v11671_v14  ;;  %v6877_v9 = vld [vmem:[%s11396_s5 + $0x660] sm:$0xf] }
 0x552   :  { %v5723_v25 = vmul.f32 %v5406_v6, %v4827_v58  ;;  %3684 = vmatmul.bf16.gmra.mxu1 %v6846_v57  ;;  %4013 = vmatmul.bf16.gmra.mxu2 %v6850_v3  ;;  %v5421_v3 = vpop.permute.xlu1 %5420  ;;  %v7289_v6 = vld [vmem:[%s11396_s5 + $0x66c] sm:$0xf0] }
 0x553   :  { %v4300_v55 = vpop.f32.mrf.mxu3 }
 0x554   :  { %v5931_v8 = vsel %vm5771_vm0, %v5723_v25, 0.0  ;;  %v4301_v31 = vadd.f32 %v4300_v55, %v3972_v61 }
 0x555   :  { %v5932_v37 = vadd.f32 %v5931_v8, %v5930_v52  ;;  %v3974_v54 = vpop.f32.mrf.mxu2 }
 0x556   :  { %v3975_v27 = vadd.f32 %v3974_v54, %v3646_v39  ;;  %v4630_v50 = vadd.f32 %v4629_v21, %v4301_v31  ;;  %v4632_v41 = vpop.f32.mrf.mxu0 }
 0x557   :  { %v3647_v32 = vpop.f32.mrf.mxu1 }
 0x558   :  { %v4828_v36 = vmax.f32 %v4630_v50, 0.0  ;;  %4342 = vmatmul.bf16.gmra.mxu3 %v6854_v24  ;;  %v3648_v12 = vadd.f32 %v3647_v32, %v11672_v53  ;;  %v6878_v24 = vor.u32 %v7289_v6, %v6877_v9  ;;  %v5426_v50 = vpop.permute.xlu2 %5425  ;;  %v7290_v32 = vld [vmem:[%s11396_s5 + $0x674] sm:$0xf0]  ;;  %v11677_v6 = vld [vmem:[#allocation27_spill] sm:$0xff] }
 0x559   :  { %4671 = vmatmul.bf16.gmra.mxu0 %v6858_v5 }
 0x55a   :  { %v5724_v4 = vmul.f32 %v5411_v33, %v4828_v36  ;;  %v7288_v33 = vld [vmem:[%s11396_s5 + $0x66c] sm:$0xf] }
 0x55b   :  { %v4303_v48 = vpop.f32.mrf.mxu3 }
 0x55c   :  { %v5933_v11 = vsel %vm5771_vm0, %v5724_v4, 0.0  ;;  %v4304_v19 = vadd.f32 %v4303_v48, %v3975_v27  ;;  %v6887_v4 = vld [vmem:[%s11396_s5 + $0x678] sm:$0xf0] }
 0x55d   :  { %v5934_v44 = vadd.f32 %v5933_v11, %v5932_v37  ;;  %v3976_v35 = vpop.f32.mrf.mxu2  ;;  %v6882_v37 = vor.u32 %v7287_v18, %v6879_v1 }
 0x55e   :  { %v3977_v17 = vadd.f32 %v3976_v35, %v3648_v12  ;;  %v4633_v22 = vadd.f32 %v4632_v41, %v4304_v19  ;;  %v4634_v49 = vpop.f32.mrf.mxu0  ;;  %v6885_v41 = vld [vmem:[%s11396_s5 + $0x668] sm:$0xf]  ;;  %v6890_v19 = vor.u32 %v7288_v33, %v6887_v4 }
 0x55f   :  { %v3650_v15 = vpop.f32.mrf.mxu1  ;;  %v6886_v11 = vor.u32 %v7290_v32, %v6885_v41  ;;  %v7295_v41 = vld [vmem:[%s11396_s5 + $0x6a4] sm:$0xf]  ;;  %v6911_v32 = vld [vmem:[%s11396_s5 + $0x6b0] sm:$0xf0]  ;;  %v11678_v33 = vld [vmem:[#allocation23_spill] sm:$0xff] }
 0x560   :  { %v4829_v46 = vmax.f32 %v4633_v22, 0.0  ;;  %v3651_v40 = vadd.f32 %v3650_v15, %v11673_v10  ;;  %v6893_v15 = vld [vmem:[%s11396_s5 + $0x680] sm:$0xf] }
 0x562   :  { %v5725_v0 = vmul.f32 %v5416_v60, %v4829_v46  ;;  %3689 = vmatmul.bf16.gmra.mxu1 %v6862_v13  ;;  %4018 = vmatmul.bf16.gmra.mxu2 %v6866_v2  ;;  %v5431_v2 = vpop.permute.xlu0 %5430  ;;  %v7293_v60 = vld [vmem:[%s11396_s5 + $0x68c] sm:$0xf0] }
 0x563   :  { %v4305_v16 = vpop.f32.mrf.mxu3 }
 0x564   :  { %v5935_v51 = vsel %vm5771_vm0, %v5725_v0, 0.0  ;;  %v4306_v26 = vadd.f32 %v4305_v16, %v3977_v17 }
 0x565   :  { %v5936_v47 = vadd.f32 %v5935_v51, %v5934_v44  ;;  %v3979_v45 = vpop.f32.mrf.mxu2 }
 0x566   :  { %v3980_v52 = vadd.f32 %v3979_v45, %v3651_v40  ;;  %v4635_v30 = vadd.f32 %v4634_v49, %v4306_v26  ;;  %v4637_v61 = vpop.f32.mrf.mxu0 }
 0x567   :  { %v3652_v29 = vpop.f32.mrf.mxu1 }
 0x568   :  { %v4830_v57 = vmax.f32 %v4635_v30, 0.0  ;;  %4347 = vmatmul.bf16.gmra.mxu3 %v6870_v42  ;;  %v3653_v28 = vadd.f32 %v3652_v29, %v11674_v56  ;;  %v6894_v42 = vor.u32 %v7293_v60, %v6893_v15  ;;  %v5436_v30 = vpop.permute.xlu1 %5435  ;;  %v7294_v29 = vld [vmem:[%s11396_s5 + $0x694] sm:$0xf0]  ;;  %v11679_v60 = vld [vmem:[#allocation30_spill] sm:$0xff] }
 0x569   :  { %4676 = vmatmul.bf16.gmra.mxu0 %v6874_v38 }
 0x56a   :  { %v5726_v21 = vmul.f32 %v5421_v3, %v4830_v57  ;;  %v7292_v3 = vld [vmem:[%s11396_s5 + $0x68c] sm:$0xf] }
 0x56b   :  { %v4308_v58 = vpop.f32.mrf.mxu3 }
 0x56c   :  { %v5937_v25 = vsel %vm5771_vm0, %v5726_v21, 0.0  ;;  %v4309_v55 = vadd.f32 %v4308_v58, %v3980_v52  ;;  %v6903_v21 = vld [vmem:[%s11396_s5 + $0x698] sm:$0xf0] }
 0x56d   :  { %v5938_v8 = vadd.f32 %v5937_v25, %v5936_v47  ;;  %v3981_v14 = vpop.f32.mrf.mxu2  ;;  %v6898_v47 = vor.u32 %v7291_v20, %v6895_v34 }
 0x56e   :  { %v3982_v39 = vadd.f32 %v3981_v14, %v3653_v28  ;;  %v4638_v31 = vadd.f32 %v4637_v61, %v4309_v55  ;;  %v4639_v54 = vpop.f32.mrf.mxu0  ;;  %v6901_v61 = vld [vmem:[%s11396_s5 + $0x688] sm:$0xf]  ;;  %v6906_v55 = vor.u32 %v7292_v3, %v6903_v21  ;;  %v11680_v3 = vld [vmem:[#allocation109_spill] sm:$0xff] }
 0x56f   :  { %v3655_v5 = vpop.f32.mrf.mxu1  ;;  %v6902_v25 = vor.u32 %v7294_v29, %v6901_v61  ;;  %v7299_v61 = vld [vmem:[%s11396_s5 + $0x6c4] sm:$0xf]  ;;  %v6927_v29 = vld [vmem:[%s11396_s5 + $0x6d0] sm:$0xf0] }
 0x570   :  { %v4831_v27 = vmax.f32 %v4638_v31, 0.0  ;;  %v3656_v7 = vadd.f32 %v3655_v5, %v11675_v23  ;;  %v6909_v5 = vld [vmem:[%s11396_s5 + $0x6a0] sm:$0xf] }
 0x572   :  { %v5727_v36 = vmul.f32 %v5426_v50, %v4831_v27  ;;  %3694 = vmatmul.bf16.gmra.mxu1 %v6878_v24  ;;  %4023 = vmatmul.bf16.gmra.mxu2 %v6882_v37  ;;  %v5441_v37 = vpop.permute.xlu2 %5440  ;;  %v7297_v50 = vld [vmem:[%s11396_s5 + $0x6ac] sm:$0xf0] }
 0x573   :  { %v4310_v62 = vpop.f32.mrf.mxu3 }
 0x574   :  { %v5939_v48 = vsel %vm5771_vm0, %v5727_v36, 0.0  ;;  %v4311_v43 = vadd.f32 %v4310_v62, %v3982_v39 }
 0x575   :  { %v5940_v53 = vadd.f32 %v5939_v48, %v5938_v8  ;;  %v3984_v12 = vpop.f32.mrf.mxu2 }
 0x576   :  { %v3985_v44 = vadd.f32 %v3984_v12, %v3656_v7  ;;  %v4640_v35 = vadd.f32 %v4639_v54, %v4311_v43  ;;  %v4642_v17 = vpop.f32.mrf.mxu0 }
 0x577   :  { %v3657_v22 = vpop.f32.mrf.mxu1 }
 0x578   :  { %v4832_v13 = vmax.f32 %v4640_v35, 0.0  ;;  %4352 = vmatmul.bf16.gmra.mxu3 %v6886_v11  ;;  %v3658_v59 = vadd.f32 %v3657_v22, %v11676_v63  ;;  %v6910_v11 = vor.u32 %v7297_v50, %v6909_v5  ;;  %v5446_v35 = vpop.permute.xlu0 %5445  ;;  %v7298_v22 = vld [vmem:[%s11396_s5 + $0x6b4] sm:$0xf0]  ;;  %v11681_v50 = vld [vmem:[#allocation95_spill] sm:$0xff] }
 0x579   :  { %4681 = vmatmul.bf16.gmra.mxu0 %v6890_v19 }
 0x57a   :  { %v5728_v49 = vmul.f32 %v5431_v2, %v4832_v13  ;;  %v7296_v2 = vld [vmem:[%s11396_s5 + $0x6ac] sm:$0xf] }
 0x57b   :  { %v4313_v46 = vpop.f32.mrf.mxu3 }
 0x57c   :  { %v5941_v0 = vsel %vm5771_vm0, %v5728_v49, 0.0  ;;  %v4314_v16 = vadd.f32 %v4313_v46, %v3985_v44  ;;  %v6919_v49 = vld [vmem:[%s11396_s5 + $0x6b8] sm:$0xf0] }
 0x57d   :  { %v5942_v51 = vadd.f32 %v5941_v0, %v5940_v53  ;;  %v3986_v10 = vpop.f32.mrf.mxu2  ;;  %v6914_v53 = vor.u32 %v7295_v41, %v6911_v32 }
 0x57e   :  { %v3987_v40 = vadd.f32 %v3986_v10, %v3658_v59  ;;  %v4643_v26 = vadd.f32 %v4642_v17, %v4314_v16  ;;  %v4644_v45 = vpop.f32.mrf.mxu0  ;;  %v6917_v17 = vld [vmem:[%s11396_s5 + $0x6a8] sm:$0xf]  ;;  %v6922_v16 = vor.u32 %v7296_v2, %v6919_v49  ;;  %v11682_v2 = vld [vmem:[#allocation113_spill] sm:$0xff] }
 0x57f   :  { %v3660_v38 = vpop.f32.mrf.mxu1  ;;  %v6918_v0 = vor.u32 %v7298_v22, %v6917_v17  ;;  %v7303_v17 = vld [vmem:[%s11396_s5 + $0x6e4] sm:$0xf]  ;;  %v6943_v22 = vld [vmem:[%s11396_s5 + $0x6f0] sm:$0xf0] }
 0x580   :  { %v4833_v52 = vmax.f32 %v4643_v26, 0.0  ;;  %v3661_v18 = vadd.f32 %v3660_v38, %v11677_v6  ;;  %v6925_v38 = vld [vmem:[%s11396_s5 + $0x6c0] sm:$0xf] }
 0x582   :  { %v5729_v57 = vmul.f32 %v5436_v30, %v4833_v52  ;;  %3699 = vmatmul.bf16.gmra.mxu1 %v6894_v42  ;;  %4028 = vmatmul.bf16.gmra.mxu2 %v6898_v47  ;;  %v5451_v47 = vpop.permute.xlu1 %5450  ;;  %v7301_v30 = vld [vmem:[%s11396_s5 + $0x6cc] sm:$0xf0] }
 0x583   :  { %v4315_v9 = vpop.f32.mrf.mxu3 }
 0x584   :  { %v5943_v58 = vsel %vm5771_vm0, %v5729_v57, 0.0  ;;  %v4316_v1 = vadd.f32 %v4315_v9, %v3987_v40 }
 0x585   :  { %v5944_v56 = vadd.f32 %v5943_v58, %v5942_v51  ;;  %v3989_v28 = vpop.f32.mrf.mxu2 }
 0x586   :  { %v3990_v8 = vadd.f32 %v3989_v28, %v3661_v18  ;;  %v4645_v14 = vadd.f32 %v4644_v45, %v4316_v1  ;;  %v4647_v39 = vpop.f32.mrf.mxu0 }
 0x587   :  { %v3662_v31 = vpop.f32.mrf.mxu1 }
 0x588   :  { %v4834_v24 = vmax.f32 %v4645_v14, 0.0  ;;  %4357 = vmatmul.bf16.gmra.mxu3 %v6902_v25  ;;  %v3663_v4 = vadd.f32 %v3662_v31, %v11678_v33  ;;  %v6926_v25 = vor.u32 %v7301_v30, %v6925_v38  ;;  %v5456_v14 = vpop.permute.xlu2 %5455  ;;  %v7302_v31 = vld [vmem:[%s11396_s5 + $0x6d4] sm:$0xf0]  ;;  %v11683_v30 = vld [vmem:[#allocation43_spill] sm:$0xff] }
 0x589   :  { %4686 = vmatmul.bf16.gmra.mxu0 %v6906_v55 }
 0x58a   :  { %v5730_v54 = vmul.f32 %v5441_v37, %v4834_v24  ;;  %v7300_v37 = vld [vmem:[%s11396_s5 + $0x6cc] sm:$0xf] }
 0x58b   :  { %v4318_v27 = vpop.f32.mrf.mxu3 }
 0x58c   :  { %v5945_v36 = vsel %vm5771_vm0, %v5730_v54, 0.0  ;;  %v4319_v62 = vadd.f32 %v4318_v27, %v3990_v8  ;;  %v6935_v54 = vld [vmem:[%s11396_s5 + $0x6d8] sm:$0xf0] }
 0x58d   :  { %v5946_v48 = vadd.f32 %v5945_v36, %v5944_v56  ;;  %v3991_v23 = vpop.f32.mrf.mxu2  ;;  %v6930_v56 = vor.u32 %v7299_v61, %v6927_v29 }
 0x58e   :  { %v3992_v7 = vadd.f32 %v3991_v23, %v3663_v4  ;;  %v4648_v43 = vadd.f32 %v4647_v39, %v4319_v62  ;;  %v4649_v12 = vpop.f32.mrf.mxu0  ;;  %v6933_v39 = vld [vmem:[%s11396_s5 + $0x6c8] sm:$0xf]  ;;  %v6938_v62 = vor.u32 %v7300_v37, %v6935_v54 }
 0x58f   :  { %v3665_v19 = vpop.f32.mrf.mxu1  ;;  %v6934_v36 = vor.u32 %v7302_v31, %v6933_v39  ;;  %v7307_v39 = vld [vmem:[%s11396_s5 + $0x704] sm:$0xf]  ;;  %v6959_v31 = vld [vmem:[%s11396_s5 + $0x710] sm:$0xf0]  ;;  %v11684_v37 = vld [vmem:[#allocation19_spill] sm:$0xff] }
 0x590   :  { %v4835_v44 = vmax.f32 %v4648_v43, 0.0  ;;  %v3666_v20 = vadd.f32 %v3665_v19, %v11679_v60  ;;  %v6941_v19 = vld [vmem:[%s11396_s5 + $0x6e0] sm:$0xf] }
 0x592   :  { %v5731_v13 = vmul.f32 %v5446_v35, %v4835_v44  ;;  %3704 = vmatmul.bf16.gmra.mxu1 %v6910_v11  ;;  %4033 = vmatmul.bf16.gmra.mxu2 %v6914_v53  ;;  %v5461_v53 = vpop.permute.xlu0 %5460  ;;  %v7305_v35 = vld [vmem:[%s11396_s5 + $0x6ec] sm:$0xf0] }
 0x593   :  { %v4320_v15 = vpop.f32.mrf.mxu3 }
 0x594   :  { %v5947_v46 = vsel %vm5771_vm0, %v5731_v13, 0.0  ;;  %v4321_v34 = vadd.f32 %v4320_v15, %v3992_v7 }
 0x595   :  { %v5948_v63 = vadd.f32 %v5947_v46, %v5946_v48  ;;  %v3994_v59 = vpop.f32.mrf.mxu2 }
 0x596   :  { %v3995_v51 = vadd.f32 %v3994_v59, %v3666_v20  ;;  %v4650_v10 = vadd.f32 %v4649_v12, %v4321_v34  ;;  %v4652_v40 = vpop.f32.mrf.mxu0 }
 0x597   :  { %v3667_v26 = vpop.f32.mrf.mxu1 }
 0x598   :  { %v4836_v42 = vmax.f32 %v4650_v10, 0.0  ;;  %4362 = vmatmul.bf16.gmra.mxu3 %v6918_v0  ;;  %v3668_v21 = vadd.f32 %v3667_v26, %v11680_v3  ;;  %v6942_v0 = vor.u32 %v7305_v35, %v6941_v19  ;;  %v5466_v10 = vpop.permute.xlu1 %5465  ;;  %v7306_v26 = vld [vmem:[%s11396_s5 + $0x6f4] sm:$0xf0] }
 0x599   :  { %4691 = vmatmul.bf16.gmra.mxu0 %v6922_v16  ;;  %v11685_v35 = vld [vmem:[#allocation108_spill] sm:$0xff] }
 0x59a   :  { %v5732_v45 = vmul.f32 %v5451_v47, %v4836_v42  ;;  %v7304_v47 = vld [vmem:[%s11396_s5 + $0x6ec] sm:$0xf] }
 0x59b   :  { %v4323_v52 = vpop.f32.mrf.mxu3 }
 0x59c   :  { %v5949_v57 = vsel %vm5771_vm0, %v5732_v45, 0.0  ;;  %v4324_v9 = vadd.f32 %v4323_v52, %v3995_v51  ;;  %v6951_v45 = vld [vmem:[%s11396_s5 + $0x6f8] sm:$0xf0] }
 0x59d   :  { %v5950_v58 = vadd.f32 %v5949_v57, %v5948_v63  ;;  %v3996_v6 = vpop.f32.mrf.mxu2  ;;  %v6946_v63 = vor.u32 %v7303_v17, %v6943_v22 }
 0x59e   :  { %v3997_v18 = vadd.f32 %v3996_v6, %v3668_v21  ;;  %v4653_v1 = vadd.f32 %v4652_v40, %v4324_v9  ;;  %v4654_v28 = vpop.f32.mrf.mxu0  ;;  %v6949_v40 = vld [vmem:[%s11396_s5 + $0x6e8] sm:$0xf]  ;;  %v6954_v9 = vor.u32 %v7304_v47, %v6951_v45  ;;  %v11686_v47 = vld [vmem:[#allocation97_spill] sm:$0xff] }
 0x59f   :  { %v3670_v55 = vpop.f32.mrf.mxu1  ;;  %v6950_v57 = vor.u32 %v7306_v26, %v6949_v40  ;;  %v7311_v40 = vld [vmem:[%s11396_s5 + $0x724] sm:$0xf]  ;;  %v6975_v26 = vld [vmem:[%s11396_s5 + $0x730] sm:$0xf0] }
 0x5a0   :  { %v4837_v8 = vmax.f32 %v4653_v1, 0.0  ;;  %v3671_v41 = vadd.f32 %v3670_v55, %v11681_v50  ;;  %v6957_v55 = vld [vmem:[%s11396_s5 + $0x700] sm:$0xf] }
 0x5a2   :  { %v5733_v24 = vmul.f32 %v5456_v14, %v4837_v8  ;;  %3709 = vmatmul.bf16.gmra.mxu1 %v6926_v25  ;;  %4038 = vmatmul.bf16.gmra.mxu2 %v6930_v56  ;;  %v5471_v56 = vpop.permute.xlu2 %5470  ;;  %v7309_v14 = vld [vmem:[%s11396_s5 + $0x70c] sm:$0xf0] }
 0x5a3   :  { %v4325_v5 = vpop.f32.mrf.mxu3 }
 0x5a4   :  { %v5951_v27 = vsel %vm5771_vm0, %v5733_v24, 0.0  ;;  %v4326_v32 = vadd.f32 %v4325_v5, %v3997_v18 }
 0x5a5   :  { %v5952_v33 = vadd.f32 %v5951_v27, %v5950_v58  ;;  %v3999_v4 = vpop.f32.mrf.mxu2 }
 0x5a6   :  { %v4000_v48 = vadd.f32 %v3999_v4, %v3671_v41  ;;  %v4655_v23 = vadd.f32 %v4654_v28, %v4326_v32  ;;  %v4657_v7 = vpop.f32.mrf.mxu0 }
 0x5a7   :  { %v3672_v43 = vpop.f32.mrf.mxu1 }
 0x5a8   :  { %v4838_v11 = vmax.f32 %v4655_v23, 0.0  ;;  %4367 = vmatmul.bf16.gmra.mxu3 %v6934_v36  ;;  %v3673_v49 = vadd.f32 %v3672_v43, %v11682_v2  ;;  %v6958_v36 = vor.u32 %v7309_v14, %v6957_v55  ;;  %v5476_v23 = vpop.permute.xlu0 %5475  ;;  %v7310_v43 = vld [vmem:[%s11396_s5 + $0x714] sm:$0xf0] }
 0x5a9   :  { %4696 = vmatmul.bf16.gmra.mxu0 %v6938_v62  ;;  %v11687_v14 = vld [vmem:[#allocation37_spill] sm:$0xff] }
 0x5aa   :  { %v5734_v12 = vmul.f32 %v5461_v53, %v4838_v11  ;;  %v7308_v53 = vld [vmem:[%s11396_s5 + $0x70c] sm:$0xf] }
 0x5ab   :  { %v4328_v44 = vpop.f32.mrf.mxu3 }
 0x5ac   :  { %v5953_v13 = vsel %vm5771_vm0, %v5734_v12, 0.0  ;;  %v4329_v15 = vadd.f32 %v4328_v44, %v4000_v48  ;;  %v6967_v12 = vld [vmem:[%s11396_s5 + $0x718] sm:$0xf0] }
 0x5ad   :  { %v5954_v46 = vadd.f32 %v5953_v13, %v5952_v33  ;;  %v4001_v60 = vpop.f32.mrf.mxu2  ;;  %v6962_v33 = vor.u32 %v7307_v39, %v6959_v31 }
 0x5ae   :  { %v4002_v20 = vadd.f32 %v4001_v60, %v3673_v49  ;;  %v4658_v34 = vadd.f32 %v4657_v7, %v4329_v15  ;;  %v4659_v59 = vpop.f32.mrf.mxu0  ;;  %v6965_v7 = vld [vmem:[%s11396_s5 + $0x708] sm:$0xf]  ;;  %v6970_v15 = vor.u32 %v7308_v53, %v6967_v12  ;;  %v11688_v53 = vld [vmem:[#allocation20_spill] sm:$0xff] }
 0x5af   :  { %v3675_v16 = vpop.f32.mrf.mxu1  ;;  %v6966_v13 = vor.u32 %v7310_v43, %v6965_v7  ;;  %v7315_v7 = vld [vmem:[%s11396_s5 + $0x744] sm:$0xf]  ;;  %v6991_v43 = vld [vmem:[%s11396_s5 + $0x750] sm:$0xf0] }
 0x5b0   :  { %v4839_v51 = vmax.f32 %v4658_v34, 0.0  ;;  %v3676_v61 = vadd.f32 %v3675_v16, %v11683_v30  ;;  %v6973_v16 = vld [vmem:[%s11396_s5 + $0x720] sm:$0xf] }
 0x5b2   :  { %v5735_v42 = vmul.f32 %v5466_v10, %v4839_v51  ;;  %3714 = vmatmul.bf16.gmra.mxu1 %v6942_v0  ;;  %4043 = vmatmul.bf16.gmra.mxu2 %v6946_v63  ;;  %v5481_v63 = vpop.permute.xlu1 %5480  ;;  %v7313_v10 = vld [vmem:[%s11396_s5 + $0x72c] sm:$0xf0] }
 0x5b3   :  { %v4330_v38 = vpop.f32.mrf.mxu3 }
 0x5b4   :  { %v5955_v52 = vsel %vm5771_vm0, %v5735_v42, 0.0  ;;  %v4331_v29 = vadd.f32 %v4330_v38, %v4002_v20 }
 0x5b5   :  { %v5956_v3 = vadd.f32 %v5955_v52, %v5954_v46  ;;  %v4004_v21 = vpop.f32.mrf.mxu2 }
 0x5b6   :  { %v4005_v58 = vadd.f32 %v4004_v21, %v3676_v61  ;;  %v4660_v6 = vadd.f32 %v4659_v59, %v4331_v29  ;;  %v4662_v18 = vpop.f32.mrf.mxu0 }
 0x5b7   :  { %v3677_v1 = vpop.f32.mrf.mxu1 }
 0x5b8   :  { %v4840_v25 = vmax.f32 %v4660_v6, 0.0  ;;  %4372 = vmatmul.bf16.gmra.mxu3 %v6950_v57  ;;  %v3678_v54 = vadd.f32 %v3677_v1, %v11684_v37  ;;  %v6974_v57 = vor.u32 %v7313_v10, %v6973_v16  ;;  %v5486_v6 = vpop.permute.xlu2 %5485  ;;  %v7314_v1 = vld [vmem:[%s11396_s5 + $0x734] sm:$0xf0] }
 0x5b9   :  { %4701 = vmatmul.bf16.gmra.mxu0 %v6954_v9  ;;  %v11689_v10 = vld [vmem:[#allocation24_spill] sm:$0xff] }
 0x5ba   :  { %v5736_v28 = vmul.f32 %v5471_v56, %v4840_v25  ;;  %v7312_v56 = vld [vmem:[%s11396_s5 + $0x72c] sm:$0xf] }
 0x5bb   :  { %v4333_v8 = vpop.f32.mrf.mxu3 }
 0x5bc   :  { %v5957_v24 = vsel %vm5771_vm0, %v5736_v28, 0.0  ;;  %v4334_v5 = vadd.f32 %v4333_v8, %v4005_v58  ;;  %v6983_v28 = vld [vmem:[%s11396_s5 + $0x738] sm:$0xf0] }
 0x5bd   :  { %v5958_v27 = vadd.f32 %v5957_v24, %v5956_v3  ;;  %v4006_v50 = vpop.f32.mrf.mxu2  ;;  %v6978_v3 = vor.u32 %v7311_v40, %v6975_v26 }
 0x5be   :  { %v4007_v41 = vadd.f32 %v4006_v50, %v3678_v54  ;;  %v4663_v32 = vadd.f32 %v4662_v18, %v4334_v5  ;;  %v4664_v4 = vpop.f32.mrf.mxu0  ;;  %v6981_v18 = vld [vmem:[%s11396_s5 + $0x728] sm:$0xf]  ;;  %v6986_v5 = vor.u32 %v7312_v56, %v6983_v28 }
 0x5bf   :  { %v3680_v62 = vpop.f32.mrf.mxu1  ;;  %v6982_v24 = vor.u32 %v7314_v1, %v6981_v18  ;;  %v7319_v18 = vld [vmem:[%s11396_s5 + $0x764] sm:$0xf]  ;;  %v7007_v1 = vld [vmem:[%s11396_s5 + $0x770] sm:$0xf0] }
 0x5c0   :  { %v4841_v48 = vmax.f32 %v4663_v32, 0.0  ;;  %v3681_v17 = vadd.f32 %v3680_v62, %v11685_v35  ;;  %v6989_v62 = vld [vmem:[%s11396_s5 + $0x740] sm:$0xf] }
 0x5c1   :  { %v11690_v56 = vld [vmem:[#allocation34_spill] sm:$0xff] }
 0x5c2   :  { %v5737_v11 = vmul.f32 %v5476_v23, %v4841_v48  ;;  %3719 = vmatmul.bf16.gmra.mxu1 %v6958_v36  ;;  %4048 = vmatmul.bf16.gmra.mxu2 %v6962_v33  ;;  %v5491_v33 = vpop.permute.xlu0 %5490  ;;  %v7317_v23 = vld [vmem:[%s11396_s5 + $0x74c] sm:$0xf0] }
 0x5c3   :  { %v4335_v19 = vpop.f32.mrf.mxu3 }
 0x5c4   :  { %v5959_v44 = vsel %vm5771_vm0, %v5737_v11, 0.0  ;;  %v4336_v22 = vadd.f32 %v4335_v19, %v4007_v41 }
 0x5c5   :  { %v5960_v2 = vadd.f32 %v5959_v44, %v5958_v27  ;;  %v4009_v49 = vpop.f32.mrf.mxu2 }
 0x5c6   :  { %v4010_v46 = vadd.f32 %v4009_v49, %v3681_v17  ;;  %v4665_v60 = vadd.f32 %v4664_v4, %v4336_v22  ;;  %v4667_v20 = vpop.f32.mrf.mxu0 }
 0x5c7   :  { %v3682_v34 = vpop.f32.mrf.mxu1 }
 0x5c8   :  { %v4842_v0 = vmax.f32 %v4665_v60, 0.0  ;;  %4377 = vmatmul.bf16.gmra.mxu3 %v6966_v13  ;;  %v3683_v45 = vadd.f32 %v3682_v34, %v11686_v47  ;;  %v6990_v13 = vor.u32 %v7317_v23, %v6989_v62  ;;  %v5496_v60 = vpop.permute.xlu1 %5495  ;;  %v7318_v34 = vld [vmem:[%s11396_s5 + $0x754] sm:$0xf0]  ;;  %v11691_v23 = vld [vmem:[#allocation103_spill] sm:$0xff] }
 0x5c9   :  { %4706 = vmatmul.bf16.gmra.mxu0 %v6970_v15 }
 0x5ca   :  { %v5738_v59 = vmul.f32 %v5481_v63, %v4842_v0  ;;  %v7316_v63 = vld [vmem:[%s11396_s5 + $0x74c] sm:$0xf] }
 0x5cb   :  { %v4338_v51 = vpop.f32.mrf.mxu3 }
 0x5cc   :  { %v5961_v42 = vsel %vm5771_vm0, %v5738_v59, 0.0  ;;  %v4339_v38 = vadd.f32 %v4338_v51, %v4010_v46  ;;  %v6999_v59 = vld [vmem:[%s11396_s5 + $0x758] sm:$0xf0] }
 0x5cd   :  { %v5962_v52 = vadd.f32 %v5961_v42, %v5960_v2  ;;  %v4011_v30 = vpop.f32.mrf.mxu2  ;;  %v6994_v2 = vor.u32 %v7315_v7, %v6991_v43 }
 0x5ce   :  { %v4012_v61 = vadd.f32 %v4011_v30, %v3683_v45  ;;  %v4668_v29 = vadd.f32 %v4667_v20, %v4339_v38  ;;  %v4669_v21 = vpop.f32.mrf.mxu0  ;;  %v6997_v20 = vld [vmem:[%s11396_s5 + $0x748] sm:$0xf]  ;;  %v7002_v38 = vor.u32 %v7316_v63, %v6999_v59 }
 0x5cf   :  { %v3685_v9 = vpop.f32.mrf.mxu1  ;;  %v6998_v42 = vor.u32 %v7318_v34, %v6997_v20  ;;  %v7323_v20 = vld [vmem:[%s11396_s5 + $0x784] sm:$0xf]  ;;  %v7023_v34 = vld [vmem:[%s11396_s5 + $0x790] sm:$0xf0]  ;;  %v11692_v63 = vld [vmem:[#allocation91_spill] sm:$0xff] }
 0x5d0   :  { %v4843_v58 = vmax.f32 %v4668_v29, 0.0  ;;  %v3686_v39 = vadd.f32 %v3685_v9, %v11687_v14  ;;  %v7005_v9 = vld [vmem:[%s11396_s5 + $0x760] sm:$0xf] }
 0x5d2   :  { %v5739_v25 = vmul.f32 %v5486_v6, %v4843_v58  ;;  %3724 = vmatmul.bf16.gmra.mxu1 %v6974_v57  ;;  %4053 = vmatmul.bf16.gmra.mxu2 %v6978_v3  ;;  %v5501_v3 = vpop.permute.xlu2 %5500  ;;  %v7321_v6 = vld [vmem:[%s11396_s5 + $0x76c] sm:$0xf0] }
 0x5d3   :  { %v4340_v55 = vpop.f32.mrf.mxu3 }
 0x5d4   :  { %v5963_v8 = vsel %vm5771_vm0, %v5739_v25, 0.0  ;;  %v4341_v31 = vadd.f32 %v4340_v55, %v4012_v61 }
 0x5d5   :  { %v5964_v37 = vadd.f32 %v5963_v8, %v5962_v52  ;;  %v4014_v54 = vpop.f32.mrf.mxu2 }
 0x5d6   :  { %v4015_v27 = vadd.f32 %v4014_v54, %v3686_v39  ;;  %v4670_v50 = vadd.f32 %v4669_v21, %v4341_v31  ;;  %v4672_v41 = vpop.f32.mrf.mxu0 }
 0x5d7   :  { %v3687_v32 = vpop.f32.mrf.mxu1 }
 0x5d8   :  { %v4844_v36 = vmax.f32 %v4670_v50, 0.0  ;;  %4382 = vmatmul.bf16.gmra.mxu3 %v6982_v24  ;;  %v3688_v12 = vadd.f32 %v3687_v32, %v11688_v53  ;;  %v7006_v24 = vor.u32 %v7321_v6, %v7005_v9  ;;  %v5506_v50 = vpop.permute.xlu0 %5505  ;;  %v7322_v32 = vld [vmem:[%s11396_s5 + $0x774] sm:$0xf0]  ;;  %v11693_v6 = vld [vmem:[#allocation102_spill] sm:$0xff] }
 0x5d9   :  { %4711 = vmatmul.bf16.gmra.mxu0 %v6986_v5 }
 0x5da   :  { %v5740_v4 = vmul.f32 %v5491_v33, %v4844_v36  ;;  %v7320_v33 = vld [vmem:[%s11396_s5 + $0x76c] sm:$0xf] }
 0x5db   :  { %v4343_v48 = vpop.f32.mrf.mxu3 }
 0x5dc   :  { %v5965_v11 = vsel %vm5771_vm0, %v5740_v4, 0.0  ;;  %v4344_v19 = vadd.f32 %v4343_v48, %v4015_v27  ;;  %v7015_v4 = vld [vmem:[%s11396_s5 + $0x778] sm:$0xf0] }
 0x5dd   :  { %v5966_v44 = vadd.f32 %v5965_v11, %v5964_v37  ;;  %v4016_v35 = vpop.f32.mrf.mxu2  ;;  %v7010_v37 = vor.u32 %v7319_v18, %v7007_v1 }
 0x5de   :  { %v4017_v17 = vadd.f32 %v4016_v35, %v3688_v12  ;;  %v4673_v22 = vadd.f32 %v4672_v41, %v4344_v19  ;;  %v4674_v49 = vpop.f32.mrf.mxu0  ;;  %v7013_v41 = vld [vmem:[%s11396_s5 + $0x768] sm:$0xf]  ;;  %v7018_v19 = vor.u32 %v7320_v33, %v7015_v4 }
 0x5df   :  { %v3690_v15 = vpop.f32.mrf.mxu1  ;;  %v7014_v11 = vor.u32 %v7322_v32, %v7013_v41  ;;  %v7327_v41 = vld [vmem:[%s11396_s5 + $0x7a4] sm:$0xf]  ;;  %v7039_v32 = vld [vmem:[%s11396_s5 + $0x7b0] sm:$0xf0]  ;;  %v11694_v33 = vld [vmem:[#allocation35_spill] sm:$0xff] }
 0x5e0   :  { %v4845_v46 = vmax.f32 %v4673_v22, 0.0  ;;  %v3691_v40 = vadd.f32 %v3690_v15, %v11689_v10  ;;  %v7021_v15 = vld [vmem:[%s11396_s5 + $0x780] sm:$0xf] }
 0x5e2   :  { %v5741_v0 = vmul.f32 %v5496_v60, %v4845_v46  ;;  %3729 = vmatmul.bf16.gmra.mxu1 %v6990_v13  ;;  %4058 = vmatmul.bf16.gmra.mxu2 %v6994_v2  ;;  %v5511_v2 = vpop.permute.xlu1 %5510  ;;  %v7325_v60 = vld [vmem:[%s11396_s5 + $0x78c] sm:$0xf0] }
 0x5e3   :  { %v4345_v16 = vpop.f32.mrf.mxu3 }
 0x5e4   :  { %v5967_v51 = vsel %vm5771_vm0, %v5741_v0, 0.0  ;;  %v4346_v26 = vadd.f32 %v4345_v16, %v4017_v17 }
 0x5e5   :  { %v5968_v47 = vadd.f32 %v5967_v51, %v5966_v44  ;;  %v4019_v45 = vpop.f32.mrf.mxu2 }
 0x5e6   :  { %v4020_v52 = vadd.f32 %v4019_v45, %v3691_v40  ;;  %v4675_v30 = vadd.f32 %v4674_v49, %v4346_v26  ;;  %v4677_v61 = vpop.f32.mrf.mxu0 }
 0x5e7   :  { %v3692_v29 = vpop.f32.mrf.mxu1 }
 0x5e8   :  { %v4846_v57 = vmax.f32 %v4675_v30, 0.0  ;;  %4387 = vmatmul.bf16.gmra.mxu3 %v6998_v42  ;;  %v3693_v28 = vadd.f32 %v3692_v29, %v11690_v56  ;;  %v7022_v42 = vor.u32 %v7325_v60, %v7021_v15  ;;  %v5516_v30 = vpop.permute.xlu2 %5515  ;;  %v7326_v29 = vld [vmem:[%s11396_s5 + $0x794] sm:$0xf0] }
 0x5e9   :  { %4716 = vmatmul.bf16.gmra.mxu0 %v7002_v38  ;;  %v11695_v60 = vld [vmem:[#allocation40_spill] sm:$0xff] }
 0x5ea   :  { %v5742_v21 = vmul.f32 %v5501_v3, %v4846_v57  ;;  %v7324_v3 = vld [vmem:[%s11396_s5 + $0x78c] sm:$0xf] }
 0x5eb   :  { %v4348_v58 = vpop.f32.mrf.mxu3 }
 0x5ec   :  { %v5969_v25 = vsel %vm5771_vm0, %v5742_v21, 0.0  ;;  %v4349_v55 = vadd.f32 %v4348_v58, %v4020_v52  ;;  %v7031_v21 = vld [vmem:[%s11396_s5 + $0x798] sm:$0xf0] }
 0x5ed   :  { %v5970_v8 = vadd.f32 %v5969_v25, %v5968_v47  ;;  %v4021_v14 = vpop.f32.mrf.mxu2  ;;  %v7026_v47 = vor.u32 %v7323_v20, %v7023_v34 }
 0x5ee   :  { %v4022_v39 = vadd.f32 %v4021_v14, %v3693_v28  ;;  %v4678_v31 = vadd.f32 %v4677_v61, %v4349_v55  ;;  %v4679_v54 = vpop.f32.mrf.mxu0  ;;  %v7029_v61 = vld [vmem:[%s11396_s5 + $0x788] sm:$0xf]  ;;  %v7034_v55 = vor.u32 %v7324_v3, %v7031_v21 }
 0x5ef   :  { %v3695_v5 = vpop.f32.mrf.mxu1  ;;  %v7030_v25 = vor.u32 %v7326_v29, %v7029_v61  ;;  %v7331_v61 = vld [vmem:[%s11396_s5 + $0x7c4] sm:$0xf]  ;;  %v7055_v29 = vld [vmem:[%s11396_s5 + $0x7d0] sm:$0xf0]  ;;  %v11696_v3 = vld [vmem:[#allocation15_spill] sm:$0xff] }
 0x5f0   :  { %v4847_v27 = vmax.f32 %v4678_v31, 0.0  ;;  %v3696_v7 = vadd.f32 %v3695_v5, %v11691_v23  ;;  %v7037_v5 = vld [vmem:[%s11396_s5 + $0x7a0] sm:$0xf] }
 0x5f2   :  { %v5743_v36 = vmul.f32 %v5506_v50, %v4847_v27  ;;  %3734 = vmatmul.bf16.gmra.mxu1 %v7006_v24  ;;  %4063 = vmatmul.bf16.gmra.mxu2 %v7010_v37  ;;  %v5521_v37 = vpop.permute.xlu0 %5520  ;;  %v7329_v50 = vld [vmem:[%s11396_s5 + $0x7ac] sm:$0xf0] }
 0x5f3   :  { %v4350_v62 = vpop.f32.mrf.mxu3 }
 0x5f4   :  { %v5971_v48 = vsel %vm5771_vm0, %v5743_v36, 0.0  ;;  %v4351_v43 = vadd.f32 %v4350_v62, %v4022_v39 }
 0x5f5   :  { %v5972_v53 = vadd.f32 %v5971_v48, %v5970_v8  ;;  %v4024_v12 = vpop.f32.mrf.mxu2 }
 0x5f6   :  { %v4025_v44 = vadd.f32 %v4024_v12, %v3696_v7  ;;  %v4680_v35 = vadd.f32 %v4679_v54, %v4351_v43  ;;  %v4682_v17 = vpop.f32.mrf.mxu0 }
 0x5f7   :  { %v3697_v22 = vpop.f32.mrf.mxu1 }
 0x5f8   :  { %v4848_v13 = vmax.f32 %v4680_v35, 0.0  ;;  %4392 = vmatmul.bf16.gmra.mxu3 %v7014_v11  ;;  %v3698_v59 = vadd.f32 %v3697_v22, %v11692_v63  ;;  %v7038_v11 = vor.u32 %v7329_v50, %v7037_v5  ;;  %v5526_v35 = vpop.permute.xlu1 %5525  ;;  %v7330_v22 = vld [vmem:[%s11396_s5 + $0x7b4] sm:$0xf0]  ;;  %v11697_v50 = vld [vmem:[#allocation90_spill] sm:$0xff] }
 0x5f9   :  { %4721 = vmatmul.bf16.gmra.mxu0 %v7018_v19 }
 0x5fa   :  { %v5744_v49 = vmul.f32 %v5511_v2, %v4848_v13  ;;  %v7328_v2 = vld [vmem:[%s11396_s5 + $0x7ac] sm:$0xf] }
 0x5fb   :  { %v4353_v46 = vpop.f32.mrf.mxu3 }
 0x5fc   :  { %v5973_v0 = vsel %vm5771_vm0, %v5744_v49, 0.0  ;;  %v4354_v16 = vadd.f32 %v4353_v46, %v4025_v44  ;;  %v7047_v49 = vld [vmem:[%s11396_s5 + $0x7b8] sm:$0xf0] }
 0x5fd   :  { %v5974_v51 = vadd.f32 %v5973_v0, %v5972_v53  ;;  %v4026_v10 = vpop.f32.mrf.mxu2  ;;  %v7042_v53 = vor.u32 %v7327_v41, %v7039_v32 }
 0x5fe   :  { %v4027_v40 = vadd.f32 %v4026_v10, %v3698_v59  ;;  %v4683_v26 = vadd.f32 %v4682_v17, %v4354_v16  ;;  %v4684_v45 = vpop.f32.mrf.mxu0  ;;  %v7045_v17 = vld [vmem:[%s11396_s5 + $0x7a8] sm:$0xf]  ;;  %v7050_v16 = vor.u32 %v7328_v2, %v7047_v49  ;;  %v11698_v2 = vld [vmem:[#allocation80_spill] sm:$0xff] }
 0x5ff   :  { %v3700_v38 = vpop.f32.mrf.mxu1  ;;  %v7046_v0 = vor.u32 %v7330_v22, %v7045_v17  ;;  %v7335_v17 = vld [vmem:[%s11396_s5 + $0x7e4] sm:$0xf]  ;;  %v7071_v22 = vld [vmem:[%s11396_s5 + $0x7f0] sm:$0xf0] }
 0x600   :  { %v4849_v52 = vmax.f32 %v4683_v26, 0.0  ;;  %v3701_v18 = vadd.f32 %v3700_v38, %v11693_v6  ;;  %v7053_v38 = vld [vmem:[%s11396_s5 + $0x7c0] sm:$0xf] }
 0x602   :  { %v5745_v57 = vmul.f32 %v5516_v30, %v4849_v52  ;;  %3739 = vmatmul.bf16.gmra.mxu1 %v7022_v42  ;;  %4068 = vmatmul.bf16.gmra.mxu2 %v7026_v47  ;;  %v5531_v47 = vpop.permute.xlu2 %5530  ;;  %v7333_v30 = vld [vmem:[%s11396_s5 + $0x7cc] sm:$0xf0] }
 0x603   :  { %v4355_v9 = vpop.f32.mrf.mxu3 }
 0x604   :  { %v5975_v58 = vsel %vm5771_vm0, %v5745_v57, 0.0  ;;  %v4356_v1 = vadd.f32 %v4355_v9, %v4027_v40 }
 0x605   :  { %v5976_v56 = vadd.f32 %v5975_v58, %v5974_v51  ;;  %v4029_v28 = vpop.f32.mrf.mxu2 }
 0x606   :  { %v4030_v8 = vadd.f32 %v4029_v28, %v3701_v18  ;;  %v4685_v14 = vadd.f32 %v4684_v45, %v4356_v1  ;;  %v4687_v39 = vpop.f32.mrf.mxu0 }
 0x607   :  { %v3702_v31 = vpop.f32.mrf.mxu1 }
 0x608   :  { %v4850_v24 = vmax.f32 %v4685_v14, 0.0  ;;  %4397 = vmatmul.bf16.gmra.mxu3 %v7030_v25  ;;  %v3703_v4 = vadd.f32 %v3702_v31, %v11694_v33  ;;  %v7054_v25 = vor.u32 %v7333_v30, %v7053_v38  ;;  %v5536_v14 = vpop.permute.xlu0 %5535  ;;  %v7334_v31 = vld [vmem:[%s11396_s5 + $0x7d4] sm:$0xf0]  ;;  %v11699_v30 = vld [vmem:[#allocation98_spill] sm:$0xff] }
 0x609   :  { %4726 = vmatmul.bf16.gmra.mxu0 %v7034_v55 }
 0x60a   :  { %v5746_v54 = vmul.f32 %v5521_v37, %v4850_v24  ;;  %v7332_v37 = vld [vmem:[%s11396_s5 + $0x7cc] sm:$0xf] }
 0x60b   :  { %v4358_v27 = vpop.f32.mrf.mxu3 }
 0x60c   :  { %v5977_v36 = vsel %vm5771_vm0, %v5746_v54, 0.0  ;;  %v4359_v62 = vadd.f32 %v4358_v27, %v4030_v8  ;;  %v7063_v54 = vld [vmem:[%s11396_s5 + $0x7d8] sm:$0xf0] }
 0x60d   :  { %v5978_v48 = vadd.f32 %v5977_v36, %v5976_v56  ;;  %v4031_v23 = vpop.f32.mrf.mxu2  ;;  %v7058_v56 = vor.u32 %v7331_v61, %v7055_v29 }
 0x60e   :  { %v4032_v7 = vadd.f32 %v4031_v23, %v3703_v4  ;;  %v4688_v43 = vadd.f32 %v4687_v39, %v4359_v62  ;;  %v4689_v12 = vpop.f32.mrf.mxu0  ;;  %v7061_v39 = vld [vmem:[%s11396_s5 + $0x7c8] sm:$0xf]  ;;  %v7066_v62 = vor.u32 %v7332_v37, %v7063_v54 }
 0x60f   :  { %v3705_v19 = vpop.f32.mrf.mxu1  ;;  %v7062_v36 = vor.u32 %v7334_v31, %v7061_v39 }
 0x610   :  { %v4851_v44 = vmax.f32 %v4688_v43, 0.0  ;;  %v3706_v20 = vadd.f32 %v3705_v19, %v11695_v60  ;;  %v7069_v19 = vld [vmem:[%s11396_s5 + $0x7e0] sm:$0xf] }
 0x612   :  { %v5747_v13 = vmul.f32 %v5526_v35, %v4851_v44  ;;  %3744 = vmatmul.bf16.gmra.mxu1 %v7038_v11  ;;  %4073 = vmatmul.bf16.gmra.mxu2 %v7042_v53  ;;  %v5541_v53 = vpop.permute.xlu1 %5540  ;;  %v7337_v35 = vld [vmem:[%s11396_s5 + $0x7ec] sm:$0xf0] }
 0x613   :  { %v4360_v15 = vpop.f32.mrf.mxu3 }
 0x614   :  { %v5979_v46 = vsel %vm5771_vm0, %v5747_v13, 0.0  ;;  %v4361_v34 = vadd.f32 %v4360_v15, %v4032_v7 }
 0x615   :  { %v5980_v63 = vadd.f32 %v5979_v46, %v5978_v48  ;;  %v4034_v59 = vpop.f32.mrf.mxu2 }
 0x616   :  { %v4035_v51 = vadd.f32 %v4034_v59, %v3706_v20  ;;  %v4690_v10 = vadd.f32 %v4689_v12, %v4361_v34  ;;  %v4692_v40 = vpop.f32.mrf.mxu0 }
 0x617   :  { %v3707_v26 = vpop.f32.mrf.mxu1 }
 0x618   :  { %v4852_v42 = vmax.f32 %v4690_v10, 0.0  ;;  %4402 = vmatmul.bf16.gmra.mxu3 %v7046_v0  ;;  %v3708_v21 = vadd.f32 %v3707_v26, %v11696_v3  ;;  %v7070_v0 = vor.u32 %v7337_v35, %v7069_v19  ;;  %v5546_v10 = vpop.permute.xlu2 %5545  ;;  %v7338_v26 = vld [vmem:[%s11396_s5 + $0x7f4] sm:$0xf0] }
 0x619   :  { %4731 = vmatmul.bf16.gmra.mxu0 %v7050_v16 }
 0x61a   :  { %v5748_v45 = vmul.f32 %v5531_v47, %v4852_v42  ;;  %v7336_v47 = vld [vmem:[%s11396_s5 + $0x7ec] sm:$0xf] }
 0x61b   :  { %v4363_v52 = vpop.f32.mrf.mxu3 }
 0x61c   :  { %v5981_v57 = vsel %vm5771_vm0, %v5748_v45, 0.0  ;;  %v4364_v9 = vadd.f32 %v4363_v52, %v4035_v51  ;;  %v7079_v45 = vld [vmem:[%s11396_s5 + $0x7f8] sm:$0xf0] }
 0x61d   :  { %v5982_v58 = vadd.f32 %v5981_v57, %v5980_v63  ;;  %v4036_v6 = vpop.f32.mrf.mxu2  ;;  %v7074_v63 = vor.u32 %v7335_v17, %v7071_v22 }
 0x61e   :  { %v4037_v18 = vadd.f32 %v4036_v6, %v3708_v21  ;;  %v4693_v1 = vadd.f32 %v4692_v40, %v4364_v9  ;;  %v4694_v28 = vpop.f32.mrf.mxu0  ;;  %v7077_v40 = vld [vmem:[%s11396_s5 + $0x7e8] sm:$0xf]  ;;  %v7082_v9 = vor.u32 %v7336_v47, %v7079_v45  ;;  %s7426_s5 = smov [#allocation3]  }
 0x61f   :  { %v3710_v55 = vpop.f32.mrf.mxu1  ;;  %v7078_v57 = vor.u32 %v7338_v26, %v7077_v40  ;;  %v11703_v26 = vld [vmem:[#allocation86_spill] sm:$0xff]  ;;  %s6048_s1 = sshll.u32 %s7426_s5, 4  ;;  %s6049_s1 = int_to_ptr.vmem [resolvable:$true] %s6048_s1 }
 0x620   :  { %v4853_v8 = vmax.f32 %v4693_v1, 0.0  ;;  %v3711_v41 = vadd.f32 %v3710_v55, %v11697_v50  ;;  %v5561_v35 = vpop.permute.xlu2 %5560 }
 0x622   :  { %v5749_v24 = vmul.f32 %v5536_v14, %v4853_v8  ;;  %3749 = vmatmul.bf16.gmra.mxu1 %v7054_v25  ;;  %4078 = vmatmul.bf16.gmra.mxu2 %v7058_v56  ;;  %v5551_v56 = vpop.permute.xlu0 %5550  ;;  %v11700_v14 = vld [vmem:[#allocation17_spill] sm:$0xff] }
 0x623   :  { %v4365_v5 = vpop.f32.mrf.mxu3 }
 0x624   :  { %v5983_v27 = vsel %vm5771_vm0, %v5749_v24, 0.0  ;;  %v4366_v32 = vadd.f32 %v4365_v5, %v4037_v18 }
 0x625   :  { %v5984_v33 = vadd.f32 %v5983_v27, %v5982_v58  ;;  %v4039_v4 = vpop.f32.mrf.mxu2 }
 0x626   :  { %v4040_v48 = vadd.f32 %v4039_v4, %v3711_v41  ;;  %v4695_v23 = vadd.f32 %v4694_v28, %v4366_v32  ;;  %v4697_v7 = vpop.f32.mrf.mxu0  ;;  %v5556_v32 = vpop.permute.xlu1 %5555 }
 0x627   :  { %v3712_v43 = vpop.f32.mrf.mxu1 }
 0x628   :  { %v4854_v11 = vmax.f32 %v4695_v23, 0.0  ;;  %4407 = vmatmul.bf16.gmra.mxu3 %v7062_v36  ;;  %v3713_v49 = vadd.f32 %v3712_v43, %v11698_v2  ;;  %v11702_v2 = vld [vmem:[#allocation31_spill] sm:$0xff] }
 0x629   :  { %4736 = vmatmul.bf16.gmra.mxu0 %v7066_v62  ;;  %v11701_v62 = vld [vmem:[#allocation21_spill] sm:$0xff] }
 0x62a   :  { %v5750_v12 = vmul.f32 %v5541_v53, %v4854_v11 }
 0x62b   :  { %v4368_v44 = vpop.f32.mrf.mxu3 }
 0x62c   :  { %v5985_v13 = vsel %vm5771_vm0, %v5750_v12, 0.0  ;;  %v4369_v15 = vadd.f32 %v4368_v44, %v4040_v48 }
 0x62d   :  { %v5986_v46 = vadd.f32 %v5985_v13, %v5984_v33  ;;  %v4041_v60 = vpop.f32.mrf.mxu2 }
 0x62e   :  { %v4042_v20 = vadd.f32 %v4041_v60, %v3713_v49  ;;  %v4698_v34 = vadd.f32 %v4697_v7, %v4369_v15  ;;  %v4699_v59 = vpop.f32.mrf.mxu0 }
 0x62f   :  { %v3715_v16 = vpop.f32.mrf.mxu1 }
 0x630   :  { %v4855_v51 = vmax.f32 %v4698_v34, 0.0  ;;  %v3716_v61 = vadd.f32 %v3715_v16, %v11699_v30  ;;  %v5566_v16 = vpop.permute.xlu0 %5565 }
 0x632   :  { %v5751_v42 = vmul.f32 %v5546_v10, %v4855_v51  ;;  %3754 = vmatmul.bf16.gmra.mxu1 %v7070_v0  ;;  %4083 = vmatmul.bf16.gmra.mxu2 %v7074_v63 }
 0x633   :  { %v4370_v38 = vpop.f32.mrf.mxu3 }
 0x634   :  { %v5987_v52 = vsel %vm5771_vm0, %v5751_v42, 0.0  ;;  %v4371_v29 = vadd.f32 %v4370_v38, %v4042_v20 }
 0x635   :  { %v5988_v3 = vadd.f32 %v5987_v52, %v5986_v46  ;;  %v4044_v21 = vpop.f32.mrf.mxu2 }
 0x636   :  { %v4045_v58 = vadd.f32 %v4044_v21, %v3716_v61  ;;  %v4700_v6 = vadd.f32 %v4699_v59, %v4371_v29  ;;  %v4702_v18 = vpop.f32.mrf.mxu0 }
 0x637   :  { %v3717_v1 = vpop.f32.mrf.mxu1 }
 0x638   :  { %v4856_v25 = vmax.f32 %v4700_v6, 0.0  ;;  %4412 = vmatmul.bf16.gmra.mxu3 %v7078_v57  ;;  %v3718_v39 = vadd.f32 %v3717_v1, %v11700_v14  ;;  %v11704_v6 = vld [vmem:[#allocation76_spill] sm:$0xff] }
 0x639   :  { %4741 = vmatmul.bf16.gmra.mxu0 %v7082_v9 }
 0x63a   :  { %v5752_v28 = vmul.f32 %v5551_v56, %v4856_v25 }
 0x63b   :  { %v4373_v55 = vpop.f32.mrf.mxu3 }
 0x63c   :  { %v5989_v8 = vsel %vm5771_vm0, %v5752_v28, 0.0  ;;  %v4374_v31 = vadd.f32 %v4373_v55, %v4045_v58 }
 0x63d   :  { %v5990_v24 = vadd.f32 %v5989_v8, %v5988_v3  ;;  %v4046_v37 = vpop.f32.mrf.mxu2  ;;  %v5571_v3 = vpop.permute.xlu1 %5570 }
 0x63e   :  { %v4047_v54 = vadd.f32 %v4046_v37, %v3718_v39  ;;  %v4703_v5 = vadd.f32 %v4702_v18, %v4374_v31  ;;  %v4704_v27 = vpop.f32.mrf.mxu0  ;;  %v5576_v31 = vpop.permute.xlu2 %5575 }
 0x63f   :  { %v3720_v50 = vpop.f32.mrf.mxu1 }
 0x640   :  { %v4857_v41 = vmax.f32 %v4703_v5, 0.0  ;;  %v3721_v48 = vadd.f32 %v3720_v50, %v11701_v62  ;;  %v11705_v5 = vld [vmem:[#allocation85_spill] sm:$0xff] }
 0x642   :  { %v5753_v36 = vmul.f32 %v5556_v32, %v4857_v41 }
 0x643   :  { %v4375_v33 = vpop.f32.mrf.mxu3 }
 0x644   :  { %v5991_v4 = vsel %vm5771_vm0, %v5753_v36, 0.0  ;;  %v4376_v23 = vadd.f32 %v4375_v33, %v4047_v54 }
 0x645   :  { %v5992_v7 = vadd.f32 %v5991_v4, %v5990_v24  ;;  %v4049_v43 = vpop.f32.mrf.mxu2 }
 0x646   :  { %v4050_v11 = vadd.f32 %v4049_v43, %v3721_v48  ;;  %v4705_v53 = vadd.f32 %v4704_v27, %v4376_v23  ;;  %v4707_v12 = vpop.f32.mrf.mxu0  ;;  %v5581_v23 = vpop.permute.xlu0 %5580 }
 0x647   :  { %v3722_v19 = vpop.f32.mrf.mxu1 }
 0x648   :  { %v4858_v44 = vmax.f32 %v4705_v53, 0.0  ;;  %v3723_v49 = vadd.f32 %v3722_v19, %v11702_v2 }
 0x64a   :  { %v5754_v17 = vmul.f32 %v5561_v35, %v4858_v44 }
 0x64b   :  { %v4378_v22 = vpop.f32.mrf.mxu3 }
 0x64c   :  { %v5993_v13 = vsel %vm5771_vm0, %v5754_v17, 0.0  ;;  %v4379_v15 = vadd.f32 %v4378_v22, %v4050_v11 }
 0x64d   :  { %v5994_v46 = vadd.f32 %v5993_v13, %v5992_v7  ;;  %v4051_v60 = vpop.f32.mrf.mxu2  ;;  %v5586_v13 = vpop.permute.xlu1 %5585 }
 0x64e   :  { %v4052_v20 = vadd.f32 %v4051_v60, %v3723_v49  ;;  %v4708_v34 = vadd.f32 %v4707_v12, %v4379_v15  ;;  %v4709_v0 = vpop.f32.mrf.mxu0 }
 0x64f   :  { %v3725_v63 = vpop.f32.mrf.mxu1 }
 0x650   :  { %v4859_v59 = vmax.f32 %v4708_v34, 0.0  ;;  %v3726_v42 = vadd.f32 %v3725_v63, %v11703_v26 }
 0x652   :  { %v5755_v51 = vmul.f32 %v5566_v16, %v4859_v59 }
 0x653   :  { %v4380_v10 = vpop.f32.mrf.mxu3 }
 0x654   :  { %v5995_v40 = vsel %vm5771_vm0, %v5755_v51, 0.0  ;;  %v4381_v47 = vadd.f32 %v4380_v10, %v4052_v20 }
 0x655   :  { %v5996_v45 = vadd.f32 %v5995_v40, %v5994_v46  ;;  %v4054_v38 = vpop.f32.mrf.mxu2 }
 0x656   :  { %v4055_v52 = vadd.f32 %v4054_v38, %v3726_v42  ;;  %v4710_v30 = vadd.f32 %v4709_v0, %v4381_v47  ;;  %v4712_v61 = vpop.f32.mrf.mxu0 }
 0x657   :  { %v3727_v29 = vpop.f32.mrf.mxu1 }
 0x658   :  { %v4860_v57 = vmax.f32 %v4710_v30, 0.0  ;;  %v3728_v18 = vadd.f32 %v3727_v29, %v11704_v6 }
 0x65a   :  { %v5756_v21 = vmul.f32 %v5571_v3, %v4860_v57 }
 0x65b   :  { %v4383_v9 = vpop.f32.mrf.mxu3 }
 0x65c   :  { %v5997_v58 = vsel %vm5771_vm0, %v5756_v21, 0.0  ;;  %v4384_v1 = vadd.f32 %v4383_v9, %v4055_v52 }
 0x65d   :  { %v5998_v25 = vadd.f32 %v5997_v58, %v5996_v45  ;;  %v4056_v56 = vpop.f32.mrf.mxu2  ;;  %v11706_v58 = vld [vmem:[#allocation32_spill] sm:$0xff] }
 0x65e   :  { %v4057_v28 = vadd.f32 %v4056_v56, %v3728_v18  ;;  %v4713_v55 = vadd.f32 %v4712_v61, %v4384_v1  ;;  %v4714_v8 = vpop.f32.mrf.mxu0  ;;  %v11707_v1 = vld [vmem:[#allocation70_spill] sm:$0xff] }
 0x65f   :  { %v3730_v14 = vpop.f32.mrf.mxu1 }
 0x660   :  { %v4861_v39 = vmax.f32 %v4713_v55, 0.0  ;;  %v3731_v27 = vadd.f32 %v3730_v14, %v11705_v5  ;;  %v11708_v14 = vld [vmem:[#allocation13_spill] sm:$0xff]  ;;  %v11709_v5 = vld [vmem:[#allocation75_spill] sm:$0xff] }
 0x662   :  { %v5757_v24 = vmul.f32 %v5576_v31, %v4861_v39 }
 0x663   :  { %v4385_v37 = vpop.f32.mrf.mxu3 }
 0x664   :  { %v5999_v54 = vsel %vm5771_vm0, %v5757_v24, 0.0  ;;  %v4386_v50 = vadd.f32 %v4385_v37, %v4057_v28  ;;  %v5591_v28 = vpop.permute.xlu2 %5590 }
 0x665   :  { %v6000_v41 = vadd.f32 %v5999_v54, %v5998_v25  ;;  %v4059_v32 = vpop.f32.mrf.mxu2 }
 0x666   :  { %v4060_v36 = vadd.f32 %v4059_v32, %v3731_v27  ;;  %v4715_v33 = vadd.f32 %v4714_v8, %v4386_v50  ;;  %v4717_v4 = vpop.f32.mrf.mxu0 }
 0x667   :  { %v3732_v62 = vpop.f32.mrf.mxu1 }
 0x668   :  { %v4862_v48 = vmax.f32 %v4715_v33, 0.0  ;;  %v3733_v6 = vadd.f32 %v3732_v62, %v11706_v58  ;;  %v11710_v33 = vld [vmem:[#allocation71_spill] sm:$0xff]  ;;  %v5596_v62 = vpop.permute.xlu0 %5595 }
 0x66a   :  { %v5758_v7 = vmul.f32 %v5581_v23, %v4862_v48 }
 0x66b   :  { %v4388_v43 = vpop.f32.mrf.mxu3 }
 0x66c   :  { %v6001_v11 = vsel %vm5771_vm0, %v5758_v7, 0.0  ;;  %v4389_v53 = vadd.f32 %v4388_v43, %v4060_v36 }
 0x66d   :  { %v6002_v12 = vadd.f32 %v6001_v11, %v6000_v41  ;;  %v4061_v19 = vpop.f32.mrf.mxu2  ;;  %v11711_v11 = vld [vmem:[#allocation81_spill] sm:$0xff] }
 0x66e   :  { %v4718_v44 = vadd.f32 %v4717_v4, %v4389_v53  ;;  %v4719_v35 = vpop.f32.mrf.mxu0  ;;  %v4062_v18 = vadd.f32 %v4061_v19, %v3733_v6 }
 0x66f   :  { %v3735_v17 = vpop.f32.mrf.mxu1 }
 0x670   :  { %v4863_v22 = vmax.f32 %v4718_v44, 0.0  ;;  %v3736_v25 = vadd.f32 %v3735_v17, %v11707_v1 }
 0x672   :  { %v5759_v2 = vmul.f32 %v5586_v13, %v4863_v22 }
 0x673   :  { %v4390_v49 = vpop.f32.mrf.mxu3 }
 0x674   :  { %v6003_v15 = vsel %vm5771_vm0, %v5759_v2, 0.0  ;;  %v4391_v55 = vadd.f32 %v4390_v49, %v4062_v18  ;;  %v11712_v2 = vld [vmem:[#allocation14_spill] sm:$0xff]  ;;  %v5606_v49 = vpop.permute.xlu2 %5605 }
 0x675   :  { %v11363_v46 = vadd.f32 %v6003_v15, %v6002_v12  ;;  %v4064_v60 = vpop.f32.mrf.mxu2  ;;  %v5601_v12 = vpop.permute.xlu1 %5600 }
 0x676   :  { %v4722_v20 = vpop.f32.mrf.mxu0  ;;  %v4065_v8 = vadd.f32 %v4064_v60, %v3736_v25  ;;  %v4720_v50 = vadd.f32 %v4719_v35, %v4391_v55 }
 0x677   :  { %v3737_v34 = vpop.f32.mrf.mxu1 }
 0x678   :  { %v3738_v39 = vadd.f32 %v3737_v34, %v11708_v14  ;;  %v4864_v19 = vmax.f32 %v4720_v50, 0.0 }
 0x67b   :  { %v4393_v0 = vpop.f32.mrf.mxu3 }
 0x67c   :  { %v4394_v24 = vadd.f32 %v4393_v0, %v4065_v8 }
 0x67d   :  { %v4066_v63 = vpop.f32.mrf.mxu2 }
 0x67e   :  { %v4724_v59 = vpop.f32.mrf.mxu0  ;;  %v4067_v37 = vadd.f32 %v4066_v63, %v3738_v39  ;;  %v4723_v48 = vadd.f32 %v4722_v20, %v4394_v24  ;;  %v11713_v63 = vld [vmem:[#allocation10_spill] sm:$0xff] }
 0x67f   :  { %v3740_v16 = vpop.f32.mrf.mxu1 }
 0x680   :  { %v3741_v27 = vadd.f32 %v3740_v16, %v11709_v5  ;;  %v4865_v15 = vmax.f32 %v4723_v48, 0.0  ;;  %v5760_v16 = vmul.f32 %v5591_v28, %v4864_v19 }
 0x682   :  { %v5761_v58 = vmul.f32 %v5596_v62, %v4865_v15 }
 0x683   :  { %v4395_v51 = vpop.f32.mrf.mxu3 }
 0x684   :  { %v4396_v41 = vadd.f32 %v4395_v51, %v4067_v37  ;;  %v5621_v37 = vpop.permute.xlu2 %5620 }
 0x685   :  { %v4069_v10 = vpop.f32.mrf.mxu2 }
 0x686   :  { %v4727_v40 = vpop.f32.mrf.mxu0  ;;  %v4070_v36 = vadd.f32 %v4069_v10, %v3741_v27  ;;  %v4725_v44 = vadd.f32 %v4724_v59, %v4396_v41 }
 0x687   :  { %v3742_v26 = vpop.f32.mrf.mxu1 }
 0x688   :  { %v3743_v4 = vadd.f32 %v3742_v26, %v11710_v33  ;;  %v4866_v51 = vmax.f32 %v4725_v44, 0.0 }
 0x68b   :  { %v4398_v42 = vpop.f32.mrf.mxu3 }
 0x68c   :  { %v4399_v7 = vadd.f32 %v4398_v42, %v4070_v36 }
 0x68d   :  { %v4071_v47 = vpop.f32.mrf.mxu2 }
 0x68e   :  { %v4729_v45 = vpop.f32.mrf.mxu0  ;;  %v4072_v43 = vadd.f32 %v4071_v47, %v3743_v4  ;;  %v4728_v60 = vadd.f32 %v4727_v40, %v4399_v7  ;;  %v5611_v40 = vpop.permute.xlu0 %5610 }
 0x68f   :  { %v3745_v38 = vpop.f32.mrf.mxu1 }
 0x690   :  { %v3746_v53 = vadd.f32 %v3745_v38, %v11711_v11  ;;  %v11714_v38 = vld [vmem:[#allocation28_spill] sm:$0xff]  ;;  %v4867_v6 = vmax.f32 %v4728_v60, 0.0 }
 0x692   :  { %v5763_v8 = vmul.f32 %v5606_v49, %v4867_v6 }
 0x693   :  { %v4400_v52 = vpop.f32.mrf.mxu3 }
 0x694   :  { %v4401_v22 = vadd.f32 %v4400_v52, %v4072_v43  ;;  %v6011_v4 = vsel %vm5771_vm0, %v5763_v8, 0.0 }
 0x695   :  { %v4074_v30 = vpop.f32.mrf.mxu2 }
 0x696   :  { %v4732_v61 = vpop.f32.mrf.mxu0  ;;  %v4075_v13 = vadd.f32 %v4074_v30, %v3746_v53  ;;  %v4730_v26 = vadd.f32 %v4729_v45, %v4401_v22  ;;  %v5616_v45 = vpop.permute.xlu1 %5615 }
 0x697   :  { %v3747_v29 = vpop.f32.mrf.mxu1 }
 0x698   :  { %v3748_v35 = vadd.f32 %v3747_v29, %v11712_v2  ;;  %v4868_v25 = vmax.f32 %v4730_v26, 0.0 }
 0x69a   :  { %v5764_v27 = vmul.f32 %v5611_v40, %v4868_v25 }
 0x69b   :  { %v4403_v57 = vpop.f32.mrf.mxu3 }
 0x69c   :  { %v4404_v34 = vadd.f32 %v4403_v57, %v4075_v13  ;;  %v5762_v57 = vmul.f32 %v5601_v12, %v4866_v51  ;;  %v6013_v43 = vsel %vm5771_vm0, %v5764_v27, 0.0  ;;  %v5626_v12 = vpop.permute.xlu0 %5625  ;;  %v11716_v13 = vld [vmem:[#allocation65_spill] sm:$0xff] }
 0x69d   :  { %v4076_v3 = vpop.f32.mrf.mxu2 }
 0x69e   :  { %v4734_v21 = vpop.f32.mrf.mxu0  ;;  %v4077_v0 = vadd.f32 %v4076_v3, %v3748_v35  ;;  %v4733_v29 = vadd.f32 %v4732_v61, %v4404_v34  ;;  %v6009_v5 = vsel %vm5771_vm0, %v5762_v57, 0.0  ;;  %v5631_v49 = vpop.permute.xlu1 %5630 }
 0x69f   :  { %v3750_v9 = vpop.f32.mrf.mxu1 }
 0x6a0   :  { %v3751_v20 = vadd.f32 %v3750_v9, %v11713_v63  ;;  %v6005_v9 = vsel %vm5771_vm0, %v5760_v16, 0.0  ;;  %v4869_v14 = vmax.f32 %v4733_v29, 0.0  ;;  %v5636_v63 = vpop.permute.xlu2 %5635 }
 0x6a1   :  { %v6006_v61 = vadd.f32 %v6005_v9, %v11363_v46 }
 0x6a2   :  { %v5765_v62 = vmul.f32 %v5616_v45, %v4869_v14 }
 0x6a3   :  { %v4405_v56 = vpop.f32.mrf.mxu3 }
 0x6a4   :  { %v4406_v42 = vadd.f32 %v4405_v56, %v4077_v0  ;;  %v6007_v56 = vsel %vm5771_vm0, %v5761_v58, 0.0  ;;  %v5641_v6 = vpop.permute.xlu0 %5640 }
 0x6a5   :  { %v4079_v31 = vpop.f32.mrf.mxu2  ;;  %v6008_v36 = vadd.f32 %v6007_v56, %v6006_v61 }
 0x6a6   :  { %v4737_v54 = vpop.f32.mrf.mxu0  ;;  %v4080_v47 = vadd.f32 %v4079_v31, %v3751_v20  ;;  %v4735_v28 = vadd.f32 %v4734_v21, %v4406_v42  ;;  %v11715_v31 = vld [vmem:[#allocation36_spill] sm:$0xff] }
 0x6a7   :  { %v3752_v32 = vpop.f32.mrf.mxu1 }
 0x6a8   :  { %v3753_v59 = vadd.f32 %v3752_v32, %v11714_v38  ;;  %v4870_v50 = vmax.f32 %v4735_v28, 0.0 }
 0x6aa   :  { %v5766_v11 = vmul.f32 %v5621_v37, %v4870_v50 }
 0x6ab   :  { %v4408_v23 = vpop.f32.mrf.mxu3 }
 0x6ac   :  { %v4409_v18 = vadd.f32 %v4408_v23, %v4080_v47  ;;  %v6017_v60 = vsel %vm5771_vm0, %v5766_v11, 0.0 }
 0x6ad   :  { %v4081_v17 = vpop.f32.mrf.mxu2 }
 0x6ae   :  { %v4739_v10 = vpop.f32.mrf.mxu0  ;;  %v4082_v1 = vadd.f32 %v4081_v17, %v3753_v59  ;;  %v4738_v39 = vadd.f32 %v4737_v54, %v4409_v18  ;;  %v6010_v54 = vadd.f32 %v6009_v5, %v6008_v36  ;;  %v6015_v17 = vsel %vm5771_vm0, %v5765_v62, 0.0 }
 0x6af   :  { %v3755_v52 = vpop.f32.mrf.mxu1 }
 0x6b0   :  { %v3756_v24 = vadd.f32 %v3755_v52, %v11715_v31  ;;  %v4871_v48 = vmax.f32 %v4738_v39, 0.0  ;;  %v6012_v19 = vadd.f32 %v6011_v4, %v6010_v54 }
 0x6b2   :  { %v5767_v22 = vmul.f32 %v5626_v12, %v4871_v48  ;;  %v6014_v15 = vadd.f32 %v6013_v43, %v6012_v19 }
 0x6b3   :  { %v4410_v30 = vpop.f32.mrf.mxu3 }
 0x6b4   :  { %v4411_v55 = vadd.f32 %v4410_v30, %v4082_v1  ;;  %v6016_v20 = vadd.f32 %v6015_v17, %v6014_v15  ;;  %v6019_v51 = vsel %vm5771_vm0, %v5767_v22, 0.0 }
 0x6b5   :  { %v4084_v3 = vpop.f32.mrf.mxu2 }
 0x6b6   :  { %v4085_v41 = vadd.f32 %v4084_v3, %v3756_v24  ;;  %v4740_v32 = vadd.f32 %v4739_v10, %v4411_v55  ;;  %v4742_v33 = vpop.f32.mrf.mxu0  ;;  %v6018_v42 = vadd.f32 %v6017_v60, %v6016_v20  ;;  %v6037_v55 = vpop.permute.xlu1 %6036 }
 0x6b7   :  { %v3757_v7 = vpop.f32.mrf.mxu1  ;;  %v6039_v56 = vperm.slane %v6037_v55, 0 }
 0x6b8   :  { %v4872_v46 = vmax.f32 %v4740_v32, 0.0  ;;  %v3758_v2 = vadd.f32 %v3757_v7, %v11716_v13  ;;  %v6020_v58 = vadd.f32 %v6019_v51, %v6018_v42 }
 0x6ba   :  { %v5768_v34 = vmul.f32 %v5631_v49, %v4872_v46 }
 0x6bb   :  { %v4413_v21 = vpop.f32.mrf.mxu3 }
 0x6bc   :  { %v4414_v23 = vadd.f32 %v4413_v21, %v4085_v41  ;;  %v6021_v38 = vsel %vm5771_vm0, %v5768_v34, 0.0 }
 0x6bd   :  { %v4086_v44 = vpop.f32.mrf.mxu2  ;;  %v6022_v29 = vadd.f32 %v6021_v38, %v6020_v58 }
 0x6be   :  { %v4743_v53 = vadd.f32 %v4742_v33, %v4414_v23  ;;  %v4087_v0 = vadd.f32 %v4086_v44, %v3758_v2  ;;  %v4744_v47 = vpop.f32.mrf.mxu0 }
 0x6c0   :  { %v4873_v35 = vmax.f32 %v4743_v53, 0.0 }
 0x6c2   :  { %v5769_v10 = vmul.f32 %v5636_v63, %v4873_v35 }
 0x6c3   :  { %v4415_v16 = vpop.f32.mrf.mxu3 }
 0x6c4   :  { %v4416_v26 = vadd.f32 %v4415_v16, %v4087_v0  ;;  %v6023_v52 = vsel %vm5771_vm0, %v5769_v10, 0.0 }
 0x6c5   :  { %v6024_v1 = vadd.f32 %v6023_v52, %v6022_v29 }
 0x6c6   :  { %v4745_v59 = vadd.f32 %v4744_v47, %v4416_v26 }
 0x6c8   :  { %v4874_v30 = vmax.f32 %v4745_v59, 0.0 }
 0x6ca   :  { %v5770_v18 = vmul.f32 %v5641_v6, %v4874_v30 }
 0x6cc   :  { %v6025_v40 = vsel %vm5771_vm0, %v5770_v18, 0.0 }
 0x6cd   :  { %v6026_v57 = vadd.f32 %v6025_v40, %v6024_v1 }
 0x6cf   :  { %v6027_v3 = vrot.slane %v6026_v57, 4 }
 0x6d1   :  { %v6028_v9 = vadd.f32 %v6027_v3, %v6026_v57 }
 0x6d3   :  { %v6029_v25 = vrot.slane %v6028_v9, 2 }
 0x6d5   :  { %v6030_v28 = vadd.f32 %v6029_v25, %v6028_v9 }
 0x6d7   :  { %v6031_v45 = vrot.slane %v6030_v28, 1 }
 0x6d9   :  { %v6032_v8 = vadd.f32 %v6031_v45, %v6030_v28 }
 0x6db   :  { %v6040_v14 = vadd.f32 %v6039_v56, %v6032_v8 }
 0x6dd   :  { %6042 = vst.msk [vmem:[#allocation3] sm:$0x1] %vm6041_vm1, %v6040_v14 }
 0x6de   :  { %6053 = dma.vmem_to_hbm [thread:$0]  %s6049_s1, 16, %s6051_s29, [#allocation4]  }
 0x6df   :  { %7422 = dma.done.wait [#allocation4], 16  }
 0x6e0   :  { %7423 = vsyncadd [#allocation4], 4294967280 }
 0x6e1   :  { %6058 = vsyncpa [#allocation4], 1 }

</bundles_post_ra>
